<compile_context>
chip_gen: v7x
topology: tpu7x:2x2x1
jax: 0.10.0
libtpu: 0.0.40
codegen_flags: <defaults>
</compile_context>

<pallas_src>
import functools

import jax
import jax.numpy as jnp
import numpy as np
from jax import lax
from jax.experimental import pallas as pl
from jax.experimental.pallas import tpu as pltpu


def _round_up(n, m):
    return ((n + m - 1) // m) * m


def _conv3d_kernel(x_ref, w_ref, b_ref, o_ref, rhs_ref, *, K, Wp, Lout, td, cin_p):
    """One grid step computes `td` output depth planes for one batch element.

    x_ref:   (1, Dp, Cin_p, L_in)  zero-padded volume; per (depth, channel) the
                                   (Hp, Wp) plane is flattened row-major (+ a
                                   K-1 tail) so taps are pure lane offsets.
    w_ref:   (Cout, K^3*Cin_p)     weights, contraction order (kd, kh, kw, ci).
    b_ref:   (Cout, 1)             bias, float32.
    o_ref:   (1, td, Cout, Lout)   output planes, Lout = H*Wp (lane-dense).
    rhs_ref: (K^3*Cin_p, Lout)     VMEM scratch holding the im2col slab.
    """
    dt = pl.program_id(1)
    for j in range(td):                          # static; planes are independent
        dz = dt * td + j                         # padded depth index of tap kd=0
        # Build the im2col slab: row block t=(kd,kh,kw) holds the Cin_p input
        # channels of padded plane dz+kd, lane-shifted by kh*Wp + kw.
        for kd in range(K):
            plane = x_ref[0, dz + kd]            # (Cin_p, L_in), native dtype
            for kh in range(K):
                for kw in range(K):
                    t = (kd * K + kh) * K + kw
                    off = kh * Wp + kw           # static lane offset
                    rhs_ref[t * cin_p:(t + 1) * cin_p, :] = plane[:, off:off + Lout]
        # One MXU matmul per output plane; native-dtype operands, f32 accumulate.
        acc = jnp.dot(w_ref[...], rhs_ref[...],
                      preferred_element_type=jnp.float32)       # (Cout, Lout) f32
        acc = acc + b_ref[...]                   # (Cout, 1) broadcasts over lanes
        o_ref[0, j] = acc.astype(o_ref.dtype)


def conv3d_pallas(x, weight, bias):
    """x: (B, Cin, D, H, W); weight: (Cout, Cin, K, K, K); bias: (Cout,)."""
    B, Cin, D, H, W = x.shape
    Cout, Cin_w, K, K2, K3 = weight.shape
    assert Cin == Cin_w and K == K2 == K3
    # TODO(synk): even kernel sizes change the output spatial size in torch;
    # only the odd ("same" padding) case used by the module is implemented.
    assert K % 2 == 1, "only odd kernel sizes (same padding) are supported"
    p = (K - 1) // 2
    Dp, Hp, Wp = D + 2 * p, H + 2 * p, W + 2 * p
    cin_p = _round_up(max(Cin, 1), 8)            # channels on sublanes
    Lout = H * Wp                                # per-plane flat output length
    L_in = Hp * Wp + (K - 1)                     # flat plane + tail for last-row taps
    td = next(t for t in (8, 4, 2, 1) if D % t == 0)   # depth planes per grid step

    # --- XLA glue: layout + zero padding -------------------------------------
    x_t = jnp.transpose(x, (0, 2, 1, 3, 4))                       # (B, D, Cin, H, W)
    x_pad = jnp.pad(x_t, ((0, 0), (p, p), (0, cin_p - Cin), (p, p), (p, p)))
    x_flat = x_pad.reshape(B, Dp, cin_p, Hp * Wp)
    x_flat = jnp.pad(x_flat, ((0, 0), (0, 0), (0, 0), (0, K - 1)))  # (B,Dp,Cin_p,L_in)

    w2 = jnp.transpose(weight, (0, 2, 3, 4, 1))                   # (Cout,kd,kh,kw,Cin)
    w2 = jnp.pad(w2, ((0, 0), (0, 0), (0, 0), (0, 0), (0, cin_p - Cin)))
    w2 = w2.reshape(Cout, K * K * K * cin_p).astype(x.dtype)      # native-dtype lhs
    b2 = bias.reshape(Cout, 1).astype(jnp.float32)                # bias stays f32

    # --- VMEM budget with (8,128) tile padding; generation-aware cap ---------
    isz = jnp.dtype(x.dtype).itemsize
    in_blk = Dp * cin_p * _round_up(L_in, 128) * isz
    out_blk = td * _round_up(Cout, 8) * _round_up(Lout, 128) * isz
    w_blk = _round_up(Cout, 8) * _round_up(K ** 3 * cin_p, 128) * isz
    b_blk = 8 * 128 * 4
    rhs_blk = K ** 3 * cin_p * _round_up(Lout, 128) * isz
    need = 2 * (in_blk + out_blk + w_blk + b_blk) + rhs_blk + (4 << 20)
    cap = 128 << 20
    try:
        info = pltpu.get_tpu_info()
        cap = int(getattr(info, "vmem_capacity_bytes", cap)) or cap
    except Exception:
        pass
    vmem_limit = int(min(max(need, 32 << 20), int(cap * 0.85)))

    kernel = functools.partial(_conv3d_kernel, K=K, Wp=Wp, Lout=Lout, td=td,
                               cin_p=cin_p)

    out = pl.pallas_call(
        kernel,
        out_shape=jax.ShapeDtypeStruct((B, D, Cout, Lout), x.dtype),
        grid_spec=pltpu.PrefetchScalarGridSpec(
            num_scalar_prefetch=0,
            grid=(B, D // td),
            in_specs=[
                # Whole padded volume for batch b; index_map ignores the depth
                # tile so the block stays resident in VMEM across depth steps.
                pl.BlockSpec((1, Dp, cin_p, L_in), lambda b, t: (b, 0, 0, 0)),
                pl.BlockSpec((Cout, K * K * K * cin_p), lambda b, t: (0, 0)),
                pl.BlockSpec((Cout, 1), lambda b, t: (0, 0)),
            ],
            out_specs=pl.BlockSpec((1, td, Cout, Lout), lambda b, t: (b, t, 0, 0)),
            scratch_shapes=[pltpu.VMEM((K * K * K * cin_p, Lout), x.dtype)],
        ),
        compiler_params=pltpu.CompilerParams(
            dimension_semantics=("parallel", "parallel"),
            vmem_limit_bytes=vmem_limit,
        ),
    )(x_flat, w2, b2)

    out = out.reshape(B, D, Cout, H, Wp)[..., :W]   # drop padded garbage columns
    return jnp.transpose(out, (0, 2, 1, 3, 4))      # -> NCDHW


def conv3d_ref(x, weight, bias):
    # Pure-XLA reference matching torch.nn.Conv3d(padding=(K-1)//2).
    K = weight.shape[2]
    p = (K - 1) // 2
    dn = lax.conv_dimension_numbers(x.shape, weight.shape,
                                    ("NCDHW", "OIDHW", "NCDHW"))
    y = lax.conv_general_dilated(
        x, weight, window_strides=(1, 1, 1),
        padding=[(p, p)] * 3, dimension_numbers=dn)
    return y + bias.reshape(1, -1, 1, 1, 1)


if __name__ == "__main__":
    key = jax.random.PRNGKey(0)
    kx, kw, kb = jax.random.split(key, 3)

    B, Cin, Cout, K = 2, 4, 8, 3
    D = H = W = 16
    x = jax.random.normal(kx, (B, Cin, D, H, W), dtype=jnp.float32)
    weight = jax.random.normal(kw, (Cout, Cin, K, K, K), dtype=jnp.float32) * 0.1
    bias = jax.random.normal(kb, (Cout,), dtype=jnp.float32)

    out = conv3d_pallas(x, weight, bias)
    out = jax.block_until_ready(out)

    ref = conv3d_ref(x, weight, bias)
    np.testing.assert_allclose(np.asarray(out), np.asarray(ref),
                               rtol=1e-4, atol=1e-4)

    print("KERNEL_OK")
</pallas_src>

<mosaic_0001>
module attributes {stable_mosaic.version = 11 : i64} {
  func.func @_conv3d_kernel(%arg0: i32, %arg1: i32, %arg2: memref<1x18x8x326xf32, #tpu.memory_space<vmem>>, %arg3: memref<8x216xf32, #tpu.memory_space<vmem>>, %arg4: memref<8x1xf32, #tpu.memory_space<vmem>>, %arg5: memref<1x8x8x288xf32, #tpu.memory_space<vmem>>, %arg6: memref<216x288xf32, #tpu.memory_space<vmem>>) attributes {dimension_semantics = [#tpu.dimension_semantics<parallel>, #tpu.dimension_semantics<parallel>], iteration_bounds = array<i64: 2, 2>, scalar_prefetch = 0 : i64, scratch_operands = 1 : i64, tpu.core_type = #tpu.core_type<tc>, window_params = [{transform_indices = @transform_0, window_bounds = array<i64: 1, 18, 8, 326>}, {pipeline_mode = #tpu.pipeline_mode<synchronous>, transform_indices = @transform_1, window_bounds = array<i64: 8, 216>}, {pipeline_mode = #tpu.pipeline_mode<synchronous>, transform_indices = @transform_2, window_bounds = array<i64: 8, 1>}, {transform_indices = @transform_3, window_bounds = array<i64: 1, 8, 8, 288>}]} {
    %c8_i32 = arith.constant 8 : i32
    %0 = arith.muli %arg1, %c8_i32 : i32
    %c0_i32 = arith.constant 0 : i32
    %1 = arith.addi %0, %c0_i32 : i32
    %c0_i32_0 = arith.constant 0 : i32
    %2 = arith.addi %1, %c0_i32_0 : i32
    %c0 = arith.constant 0 : index
    %3 = arith.index_cast %2 : i32 to index
    %c0_1 = arith.constant 0 : index
    %c0_2 = arith.constant 0 : index
    %4 = vector.load %arg2[%c0, %3, %c0_1, %c0_2] : memref<1x18x8x326xf32, #tpu.memory_space<vmem>>, vector<1x1x8x326xf32>
    %5 = vector.shape_cast %4 : vector<1x1x8x326xf32> to vector<8x326xf32>
    %6 = vector.extract_strided_slice %5 {offsets = [0, 0], sizes = [8, 288], strides = [1, 1]} : vector<8x326xf32> to vector<8x288xf32>
    %c0_3 = arith.constant 0 : index
    %c0_4 = arith.constant 0 : index
    %7 = vector.load %arg6[%c0_3, %c0_4] : memref<216x288xf32, #tpu.memory_space<vmem>>, vector<8x288xf32>
    tpu.vector_store %arg6[%c0_3, %c0_4], %6 {strides = array<i32>} : memref<216x288xf32, #tpu.memory_space<vmem>>, vector<8x288xf32>,
    %8 = vector.extract_strided_slice %5 {offsets = [0, 1], sizes = [8, 288], strides = [1, 1]} : vector<8x326xf32> to vector<8x288xf32>
    %c8 = arith.constant 8 : index
    %c0_5 = arith.constant 0 : index
    %9 = vector.load %arg6[%c8, %c0_5] : memref<216x288xf32, #tpu.memory_space<vmem>>, vector<8x288xf32>
    tpu.vector_store %arg6[%c8, %c0_5], %8 {strides = array<i32>} : memref<216x288xf32, #tpu.memory_space<vmem>>, vector<8x288xf32>,
    %10 = vector.extract_strided_slice %5 {offsets = [0, 2], sizes = [8, 288], strides = [1, 1]} : vector<8x326xf32> to vector<8x288xf32>
    %c16 = arith.constant 16 : index
    %c0_6 = arith.constant 0 : index
    %11 = vector.load %arg6[%c16, %c0_6] : memref<216x288xf32, #tpu.memory_space<vmem>>, vector<8x288xf32>
    tpu.vector_store %arg6[%c16, %c0_6], %10 {strides = array<i32>} : memref<216x288xf32, #tpu.memory_space<vmem>>, vector<8x288xf32>,
    %12 = vector.extract_strided_slice %5 {offsets = [0, 18], sizes = [8, 288], strides = [1, 1]} : vector<8x326xf32> to vector<8x288xf32>
    %c24 = arith.constant 24 : index
    %c0_7 = arith.constant 0 : index
    %13 = vector.load %arg6[%c24, %c0_7] : memref<216x288xf32, #tpu.memory_space<vmem>>, vector<8x288xf32>
    tpu.vector_store %arg6[%c24, %c0_7], %12 {strides = array<i32>} : memref<216x288xf32, #tpu.memory_space<vmem>>, vector<8x288xf32>,
    %14 = vector.extract_strided_slice %5 {offsets = [0, 19], sizes = [8, 288], strides = [1, 1]} : vector<8x326xf32> to vector<8x288xf32>
    %c32 = arith.constant 32 : index
    %c0_8 = arith.constant 0 : index
    %15 = vector.load %arg6[%c32, %c0_8] : memref<216x288xf32, #tpu.memory_space<vmem>>, vector<8x288xf32>
    tpu.vector_store %arg6[%c32, %c0_8], %14 {strides = array<i32>} : memref<216x288xf32, #tpu.memory_space<vmem>>, vector<8x288xf32>,
    %16 = vector.extract_strided_slice %5 {offsets = [0, 20], sizes = [8, 288], strides = [1, 1]} : vector<8x326xf32> to vector<8x288xf32>
    %c40 = arith.constant 40 : index
    %c0_9 = arith.constant 0 : index
    %17 = vector.load %arg6[%c40, %c0_9] : memref<216x288xf32, #tpu.memory_space<vmem>>, vector<8x288xf32>
    tpu.vector_store %arg6[%c40, %c0_9], %16 {strides = array<i32>} : memref<216x288xf32, #tpu.memory_space<vmem>>, vector<8x288xf32>,
    %18 = vector.extract_strided_slice %5 {offsets = [0, 36], sizes = [8, 288], strides = [1, 1]} : vector<8x326xf32> to vector<8x288xf32>
    %c48 = arith.constant 48 : index
    %c0_10 = arith.constant 0 : index
    %19 = vector.load %arg6[%c48, %c0_10] : memref<216x288xf32, #tpu.memory_space<vmem>>, vector<8x288xf32>
    tpu.vector_store %arg6[%c48, %c0_10], %18 {strides = array<i32>} : memref<216x288xf32, #tpu.memory_space<vmem>>, vector<8x288xf32>,
    %20 = vector.extract_strided_slice %5 {offsets = [0, 37], sizes = [8, 288], strides = [1, 1]} : vector<8x326xf32> to vector<8x288xf32>
    %c56 = arith.constant 56 : index
    %c0_11 = arith.constant 0 : index
    %21 = vector.load %arg6[%c56, %c0_11] : memref<216x288xf32, #tpu.memory_space<vmem>>, vector<8x288xf32>
    tpu.vector_store %arg6[%c56, %c0_11], %20 {strides = array<i32>} : memref<216x288xf32, #tpu.memory_space<vmem>>, vector<8x288xf32>,
    %22 = vector.extract_strided_slice %5 {offsets = [0, 38], sizes = [8, 288], strides = [1, 1]} : vector<8x326xf32> to vector<8x288xf32>
    %c64 = arith.constant 64 : index
    %c0_12 = arith.constant 0 : index
    %23 = vector.load %arg6[%c64, %c0_12] : memref<216x288xf32, #tpu.memory_space<vmem>>, vector<8x288xf32>
    tpu.vector_store %arg6[%c64, %c0_12], %22 {strides = array<i32>} : memref<216x288xf32, #tpu.memory_space<vmem>>, vector<8x288xf32>,
    %c1_i32 = arith.constant 1 : i32
    %24 = arith.addi %1, %c1_i32 : i32
    %c0_13 = arith.constant 0 : index
    %25 = arith.index_cast %24 : i32 to index
    %c0_14 = arith.constant 0 : index
    %c0_15 = arith.constant 0 : index
    %26 = vector.load %arg2[%c0_13, %25, %c0_14, %c0_15] : memref<1x18x8x326xf32, #tpu.memory_space<vmem>>, vector<1x1x8x326xf32>
    %27 = vector.shape_cast %26 : vector<1x1x8x326xf32> to vector<8x326xf32>
    %28 = vector.extract_strided_slice %27 {offsets = [0, 0], sizes = [8, 288], strides = [1, 1]} : vector<8x326xf32> to vector<8x288xf32>
    %c72 = arith.constant 72 : index
    %c0_16 = arith.constant 0 : index
    %29 = vector.load %arg6[%c72, %c0_16] : memref<216x288xf32, #tpu.memory_space<vmem>>, vector<8x288xf32>
    tpu.vector_store %arg6[%c72, %c0_16], %28 {strides = array<i32>} : memref<216x288xf32, #tpu.memory_space<vmem>>, vector<8x288xf32>,
    %30 = vector.extract_strided_slice %27 {offsets = [0, 1], sizes = [8, 288], strides = [1, 1]} : vector<8x326xf32> to vector<8x288xf32>
    %c80 = arith.constant 80 : index
    %c0_17 = arith.constant 0 : index
    %31 = vector.load %arg6[%c80, %c0_17] : memref<216x288xf32, #tpu.memory_space<vmem>>, vector<8x288xf32>
    tpu.vector_store %arg6[%c80, %c0_17], %30 {strides = array<i32>} : memref<216x288xf32, #tpu.memory_space<vmem>>, vector<8x288xf32>,
    %32 = vector.extract_strided_slice %27 {offsets = [0, 2], sizes = [8, 288], strides = [1, 1]} : vector<8x326xf32> to vector<8x288xf32>
    %c88 = arith.constant 88 : index
    %c0_18 = arith.constant 0 : index
    %33 = vector.load %arg6[%c88, %c0_18] : memref<216x288xf32, #tpu.memory_space<vmem>>, vector<8x288xf32>
    tpu.vector_store %arg6[%c88, %c0_18], %32 {strides = array<i32>} : memref<216x288xf32, #tpu.memory_space<vmem>>, vector<8x288xf32>,
    %34 = vector.extract_strided_slice %27 {offsets = [0, 18], sizes = [8, 288], strides = [1, 1]} : vector<8x326xf32> to vector<8x288xf32>
    %c96 = arith.constant 96 : index
    %c0_19 = arith.constant 0 : index
    %35 = vector.load %arg6[%c96, %c0_19] : memref<216x288xf32, #tpu.memory_space<vmem>>, vector<8x288xf32>
    tpu.vector_store %arg6[%c96, %c0_19], %34 {strides = array<i32>} : memref<216x288xf32, #tpu.memory_space<vmem>>, vector<8x288xf32>,
    %36 = vector.extract_strided_slice %27 {offsets = [0, 19], sizes = [8, 288], strides = [1, 1]} : vector<8x326xf32> to vector<8x288xf32>
    %c104 = arith.constant 104 : index
    %c0_20 = arith.constant 0 : index
    %37 = vector.load %arg6[%c104, %c0_20] : memref<216x288xf32, #tpu.memory_space<vmem>>, vector<8x288xf32>
    tpu.vector_store %arg6[%c104, %c0_20], %36 {strides = array<i32>} : memref<216x288xf32, #tpu.memory_space<vmem>>, vector<8x288xf32>,
    %38 = vector.extract_strided_slice %27 {offsets = [0, 20], sizes = [8, 288], strides = [1, 1]} : vector<8x326xf32> to vector<8x288xf32>
    %c112 = arith.constant 112 : index
    %c0_21 = arith.constant 0 : index
    %39 = vector.load %arg6[%c112, %c0_21] : memref<216x288xf32, #tpu.memory_space<vmem>>, vector<8x288xf32>
    tpu.vector_store %arg6[%c112, %c0_21], %38 {strides = array<i32>} : memref<216x288xf32, #tpu.memory_space<vmem>>, vector<8x288xf32>,
    %40 = vector.extract_strided_slice %27 {offsets = [0, 36], sizes = [8, 288], strides = [1, 1]} : vector<8x326xf32> to vector<8x288xf32>
    %c120 = arith.constant 120 : index
    %c0_22 = arith.constant 0 : index
    %41 = vector.load %arg6[%c120, %c0_22] : memref<216x288xf32, #tpu.memory_space<vmem>>, vector<8x288xf32>
    tpu.vector_store %arg6[%c120, %c0_22], %40 {strides = array<i32>} : memref<216x288xf32, #tpu.memory_space<vmem>>, vector<8x288xf32>,
    %42 = vector.extract_strided_slice %27 {offsets = [0, 37], sizes = [8, 288], strides = [1, 1]} : vector<8x326xf32> to vector<8x288xf32>
    %c128 = arith.constant 128 : index
    %c0_23 = arith.constant 0 : index
    %43 = vector.load %arg6[%c128, %c0_23] : memref<216x288xf32, #tpu.memory_space<vmem>>, vector<8x288xf32>
    tpu.vector_store %arg6[%c128, %c0_23], %42 {strides = array<i32>} : memref<216x288xf32, #tpu.memory_space<vmem>>, vector<8x288xf32>,
    %44 = vector.extract_strided_slice %27 {offsets = [0, 38], sizes = [8, 288], strides = [1, 1]} : vector<8x326xf32> to vector<8x288xf32>
    %c136 = arith.constant 136 : index
    %c0_24 = arith.constant 0 : index
    %45 = vector.load %arg6[%c136, %c0_24] : memref<216x288xf32, #tpu.memory_space<vmem>>, vector<8x288xf32>
    tpu.vector_store %arg6[%c136, %c0_24], %44 {strides = array<i32>} : memref<216x288xf32, #tpu.memory_space<vmem>>, vector<8x288xf32>,
    %c2_i32 = arith.constant 2 : i32
    %46 = arith.addi %1, %c2_i32 : i32
    %c0_25 = arith.constant 0 : index
    %47 = arith.index_cast %46 : i32 to index
    %c0_26 = arith.constant 0 : index
    %c0_27 = arith.constant 0 : index
    %48 = vector.load %arg2[%c0_25, %47, %c0_26, %c0_27] : memref<1x18x8x326xf32, #tpu.memory_space<vmem>>, vector<1x1x8x326xf32>
    %49 = vector.shape_cast %48 : vector<1x1x8x326xf32> to vector<8x326xf32>
    %50 = vector.extract_strided_slice %49 {offsets = [0, 0], sizes = [8, 288], strides = [1, 1]} : vector<8x326xf32> to vector<8x288xf32>
    %c144 = arith.constant 144 : index
    %c0_28 = arith.constant 0 : index
    %51 = vector.load %arg6[%c144, %c0_28] : memref<216x288xf32, #tpu.memory_space<vmem>>, vector<8x288xf32>
    tpu.vector_store %arg6[%c144, %c0_28], %50 {strides = array<i32>} : memref<216x288xf32, #tpu.memory_space<vmem>>, vector<8x288xf32>,
    %52 = vector.extract_strided_slice %49 {offsets = [0, 1], sizes = [8, 288], strides = [1, 1]} : vector<8x326xf32> to vector<8x288xf32>
    %c152 = arith.constant 152 : index
    %c0_29 = arith.constant 0 : index
    %53 = vector.load %arg6[%c152, %c0_29] : memref<216x288xf32, #tpu.memory_space<vmem>>, vector<8x288xf32>
    tpu.vector_store %arg6[%c152, %c0_29], %52 {strides = array<i32>} : memref<216x288xf32, #tpu.memory_space<vmem>>, vector<8x288xf32>,
    %54 = vector.extract_strided_slice %49 {offsets = [0, 2], sizes = [8, 288], strides = [1, 1]} : vector<8x326xf32> to vector<8x288xf32>
    %c160 = arith.constant 160 : index
    %c0_30 = arith.constant 0 : index
    %55 = vector.load %arg6[%c160, %c0_30] : memref<216x288xf32, #tpu.memory_space<vmem>>, vector<8x288xf32>
    tpu.vector_store %arg6[%c160, %c0_30], %54 {strides = array<i32>} : memref<216x288xf32, #tpu.memory_space<vmem>>, vector<8x288xf32>,
    %56 = vector.extract_strided_slice %49 {offsets = [0, 18], sizes = [8, 288], strides = [1, 1]} : vector<8x326xf32> to vector<8x288xf32>
    %c168 = arith.constant 168 : index
    %c0_31 = arith.constant 0 : index
    %57 = vector.load %arg6[%c168, %c0_31] : memref<216x288xf32, #tpu.memory_space<vmem>>, vector<8x288xf32>
    tpu.vector_store %arg6[%c168, %c0_31], %56 {strides = array<i32>} : memref<216x288xf32, #tpu.memory_space<vmem>>, vector<8x288xf32>,
    %58 = vector.extract_strided_slice %49 {offsets = [0, 19], sizes = [8, 288], strides = [1, 1]} : vector<8x326xf32> to vector<8x288xf32>
    %c176 = arith.constant 176 : index
    %c0_32 = arith.constant 0 : index
    %59 = vector.load %arg6[%c176, %c0_32] : memref<216x288xf32, #tpu.memory_space<vmem>>, vector<8x288xf32>
    tpu.vector_store %arg6[%c176, %c0_32], %58 {strides = array<i32>} : memref<216x288xf32, #tpu.memory_space<vmem>>, vector<8x288xf32>,
    %60 = vector.extract_strided_slice %49 {offsets = [0, 20], sizes = [8, 288], strides = [1, 1]} : vector<8x326xf32> to vector<8x288xf32>
    %c184 = arith.constant 184 : index
    %c0_33 = arith.constant 0 : index
    %61 = vector.load %arg6[%c184, %c0_33] : memref<216x288xf32, #tpu.memory_space<vmem>>, vector<8x288xf32>
    tpu.vector_store %arg6[%c184, %c0_33], %60 {strides = array<i32>} : memref<216x288xf32, #tpu.memory_space<vmem>>, vector<8x288xf32>,
    %62 = vector.extract_strided_slice %49 {offsets = [0, 36], sizes = [8, 288], strides = [1, 1]} : vector<8x326xf32> to vector<8x288xf32>
    %c192 = arith.constant 192 : index
    %c0_34 = arith.constant 0 : index
    %63 = vector.load %arg6[%c192, %c0_34] : memref<216x288xf32, #tpu.memory_space<vmem>>, vector<8x288xf32>
    tpu.vector_store %arg6[%c192, %c0_34], %62 {strides = array<i32>} : memref<216x288xf32, #tpu.memory_space<vmem>>, vector<8x288xf32>,
    %64 = vector.extract_strided_slice %49 {offsets = [0, 37], sizes = [8, 288], strides = [1, 1]} : vector<8x326xf32> to vector<8x288xf32>
    %c200 = arith.constant 200 : index
    %c0_35 = arith.constant 0 : index
    %65 = vector.load %arg6[%c200, %c0_35] : memref<216x288xf32, #tpu.memory_space<vmem>>, vector<8x288xf32>
    tpu.vector_store %arg6[%c200, %c0_35], %64 {strides = array<i32>} : memref<216x288xf32, #tpu.memory_space<vmem>>, vector<8x288xf32>,
    %66 = vector.extract_strided_slice %49 {offsets = [0, 38], sizes = [8, 288], strides = [1, 1]} : vector<8x326xf32> to vector<8x288xf32>
    %c208 = arith.constant 208 : index
    %c0_36 = arith.constant 0 : index
    %67 = vector.load %arg6[%c208, %c0_36] : memref<216x288xf32, #tpu.memory_space<vmem>>, vector<8x288xf32>
    tpu.vector_store %arg6[%c208, %c0_36], %66 {strides = array<i32>} : memref<216x288xf32, #tpu.memory_space<vmem>>, vector<8x288xf32>,
    %c0_37 = arith.constant 0 : index
    %c0_38 = arith.constant 0 : index
    %68 = vector.load %arg3[%c0_37, %c0_38] : memref<8x216xf32, #tpu.memory_space<vmem>>, vector<8x216xf32>
    %c0_39 = arith.constant 0 : index
    %c0_40 = arith.constant 0 : index
    %69 = vector.load %arg6[%c0_39, %c0_40] : memref<216x288xf32, #tpu.memory_space<vmem>>, vector<216x288xf32>
    %cst = arith.constant dense<0.000000e+00> : vector<8x288xf32>
    %70 = tpu.matmul %68, %69, %cst {dimension_numbers = #tpu.dot_dimension_numbers<[1], [0], [0], [1], [0, 0, 1, 1], [], []>} : vector<8x216xf32>, vector<216x288xf32>, vector<8x288xf32> -> vector<8x288xf32>
    %c0_41 = arith.constant 0 : index
    %c0_42 = arith.constant 0 : index
    %71 = vector.load %arg4[%c0_41, %c0_42] : memref<8x1xf32, #tpu.memory_space<vmem>>, vector<8x1xf32>
    %72 = vector.broadcast %71 : vector<8x1xf32> to vector<8x288xf32>
    %73 = arith.addf %70, %72 : vector<8x288xf32>
    %c0_43 = arith.constant 0 : index
    %c0_44 = arith.constant 0 : index
    %c0_45 = arith.constant 0 : index
    %c0_46 = arith.constant 0 : index
    %74 = vector.load %arg5[%c0_43, %c0_44, %c0_45, %c0_46] : memref<1x8x8x288xf32, #tpu.memory_space<vmem>>, vector<1x1x8x288xf32>
    %75 = vector.shape_cast %74 : vector<1x1x8x288xf32> to vector<8x288xf32>
    %76 = vector.shape_cast %73 : vector<8x288xf32> to vector<1x1x8x288xf32>
    tpu.vector_store %arg5[%c0_43, %c0_44, %c0_45, %c0_46], %76 {strides = array<i32>} : memref<1x8x8x288xf32, #tpu.memory_space<vmem>>, vector<1x1x8x288xf32>,
    %c8_i32_47 = arith.constant 8 : i32
    %77 = arith.muli %arg1, %c8_i32_47 : i32
    %c1_i32_48 = arith.constant 1 : i32
    %78 = arith.addi %77, %c1_i32_48 : i32
    %c0_i32_49 = arith.constant 0 : i32
    %79 = arith.addi %78, %c0_i32_49 : i32
    %c0_50 = arith.constant 0 : index
    %80 = arith.index_cast %79 : i32 to index
    %c0_51 = arith.constant 0 : index
    %c0_52 = arith.constant 0 : index
    %81 = vector.load %arg2[%c0_50, %80, %c0_51, %c0_52] : memref<1x18x8x326xf32, #tpu.memory_space<vmem>>, vector<1x1x8x326xf32>
    %82 = vector.shape_cast %81 : vector<1x1x8x326xf32> to vector<8x326xf32>
    %83 = vector.extract_strided_slice %82 {offsets = [0, 0], sizes = [8, 288], strides = [1, 1]} : vector<8x326xf32> to vector<8x288xf32>
    %c0_53 = arith.constant 0 : index
    %c0_54 = arith.constant 0 : index
    %84 = vector.load %arg6[%c0_53, %c0_54] : memref<216x288xf32, #tpu.memory_space<vmem>>, vector<8x288xf32>
    tpu.vector_store %arg6[%c0_53, %c0_54], %83 {strides = array<i32>} : memref<216x288xf32, #tpu.memory_space<vmem>>, vector<8x288xf32>,
    %85 = vector.extract_strided_slice %82 {offsets = [0, 1], sizes = [8, 288], strides = [1, 1]} : vector<8x326xf32> to vector<8x288xf32>
    %c8_55 = arith.constant 8 : index
    %c0_56 = arith.constant 0 : index
    %86 = vector.load %arg6[%c8_55, %c0_56] : memref<216x288xf32, #tpu.memory_space<vmem>>, vector<8x288xf32>
    tpu.vector_store %arg6[%c8_55, %c0_56], %85 {strides = array<i32>} : memref<216x288xf32, #tpu.memory_space<vmem>>, vector<8x288xf32>,
    %87 = vector.extract_strided_slice %82 {offsets = [0, 2], sizes = [8, 288], strides = [1, 1]} : vector<8x326xf32> to vector<8x288xf32>
    %c16_57 = arith.constant 16 : index
    %c0_58 = arith.constant 0 : index
    %88 = vector.load %arg6[%c16_57, %c0_58] : memref<216x288xf32, #tpu.memory_space<vmem>>, vector<8x288xf32>
    tpu.vector_store %arg6[%c16_57, %c0_58], %87 {strides = array<i32>} : memref<216x288xf32, #tpu.memory_space<vmem>>, vector<8x288xf32>,
    %89 = vector.extract_strided_slice %82 {offsets = [0, 18], sizes = [8, 288], strides = [1, 1]} : vector<8x326xf32> to vector<8x288xf32>
    %c24_59 = arith.constant 24 : index
    %c0_60 = arith.constant 0 : index
    %90 = vector.load %arg6[%c24_59, %c0_60] : memref<216x288xf32, #tpu.memory_space<vmem>>, vector<8x288xf32>
    tpu.vector_store %arg6[%c24_59, %c0_60], %89 {strides = array<i32>} : memref<216x288xf32, #tpu.memory_space<vmem>>, vector<8x288xf32>,
    %91 = vector.extract_strided_slice %82 {offsets = [0, 19], sizes = [8, 288], strides = [1, 1]} : vector<8x326xf32> to vector<8x288xf32>
    %c32_61 = arith.constant 32 : index
    %c0_62 = arith.constant 0 : index
    %92 = vector.load %arg6[%c32_61, %c0_62] : memref<216x288xf32, #tpu.memory_space<vmem>>, vector<8x288xf32>
    tpu.vector_store %arg6[%c32_61, %c0_62], %91 {strides = array<i32>} : memref<216x288xf32, #tpu.memory_space<vmem>>, vector<8x288xf32>,
    %93 = vector.extract_strided_slice %82 {offsets = [0, 20], sizes = [8, 288], strides = [1, 1]} : vector<8x326xf32> to vector<8x288xf32>
    %c40_63 = arith.constant 40 : index
    %c0_64 = arith.constant 0 : index
    %94 = vector.load %arg6[%c40_63, %c0_64] : memref<216x288xf32, #tpu.memory_space<vmem>>, vector<8x288xf32>
    tpu.vector_store %arg6[%c40_63, %c0_64], %93 {strides = array<i32>} : memref<216x288xf32, #tpu.memory_space<vmem>>, vector<8x288xf32>,
    %95 = vector.extract_strided_slice %82 {offsets = [0, 36], sizes = [8, 288], strides = [1, 1]} : vector<8x326xf32> to vector<8x288xf32>
    %c48_65 = arith.constant 48 : index
    %c0_66 = arith.constant 0 : index
    %96 = vector.load %arg6[%c48_65, %c0_66] : memref<216x288xf32, #tpu.memory_space<vmem>>, vector<8x288xf32>
    tpu.vector_store %arg6[%c48_65, %c0_66], %95 {strides = array<i32>} : memref<216x288xf32, #tpu.memory_space<vmem>>, vector<8x288xf32>,
    %97 = vector.extract_strided_slice %82 {offsets = [0, 37], sizes = [8, 288], strides = [1, 1]} : vector<8x326xf32> to vector<8x288xf32>
    %c56_67 = arith.constant 56 : index
    %c0_68 = arith.constant 0 : index
    %98 = vector.load %arg6[%c56_67, %c0_68] : memref<216x288xf32, #tpu.memory_space<vmem>>, vector<8x288xf32>
    tpu.vector_store %arg6[%c56_67, %c0_68], %97 {strides = array<i32>} : memref<216x288xf32, #tpu.memory_space<vmem>>, vector<8x288xf32>,
    %99 = vector.extract_strided_slice %82 {offsets = [0, 38], sizes = [8, 288], strides = [1, 1]} : vector<8x326xf32> to vector<8x288xf32>
    %c64_69 = arith.constant 64 : index
    %c0_70 = arith.constant 0 : index
    %100 = vector.load %arg6[%c64_69, %c0_70] : memref<216x288xf32, #tpu.memory_space<vmem>>, vector<8x288xf32>
    tpu.vector_store %arg6[%c64_69, %c0_70], %99 {strides = array<i32>} : memref<216x288xf32, #tpu.memory_space<vmem>>, vector<8x288xf32>,
    %c1_i32_71 = arith.constant 1 : i32
    %101 = arith.addi %78, %c1_i32_71 : i32
    %c0_72 = arith.constant 0 : index
    %102 = arith.index_cast %101 : i32 to index
    %c0_73 = arith.constant 0 : index
    %c0_74 = arith.constant 0 : index
    %103 = vector.load %arg2[%c0_72, %102, %c0_73, %c0_74] : memref<1x18x8x326xf32, #tpu.memory_space<vmem>>, vector<1x1x8x326xf32>
    %104 = vector.shape_cast %103 : vector<1x1x8x326xf32> to vector<8x326xf32>
    %105 = vector.extract_strided_slice %104 {offsets = [0, 0], sizes = [8, 288], strides = [1, 1]} : vector<8x326xf32> to vector<8x288xf32>
    %c72_75 = arith.constant 72 : index
    %c0_76 = arith.constant 0 : index
    %106 = vector.load %arg6[%c72_75, %c0_76] : memref<216x288xf32, #tpu.memory_space<vmem>>, vector<8x288xf32>
    tpu.vector_store %arg6[%c72_75, %c0_76], %105 {strides = array<i32>} : memref<216x288xf32, #tpu.memory_space<vmem>>, vector<8x288xf32>,
    %107 = vector.extract_strided_slice %104 {offsets = [0, 1], sizes = [8, 288], strides = [1, 1]} : vector<8x326xf32> to vector<8x288xf32>
    %c80_77 = arith.constant 80 : index
    %c0_78 = arith.constant 0 : index
    %108 = vector.load %arg6[%c80_77, %c0_78] : memref<216x288xf32, #tpu.memory_space<vmem>>, vector<8x288xf32>
    tpu.vector_store %arg6[%c80_77, %c0_78], %107 {strides = array<i32>} : memref<216x288xf32, #tpu.memory_space<vmem>>, vector<8x288xf32>,
    %109 = vector.extract_strided_slice %104 {offsets = [0, 2], sizes = [8, 288], strides = [1, 1]} : vector<8x326xf32> to vector<8x288xf32>
    %c88_79 = arith.constant 88 : index
    %c0_80 = arith.constant 0 : index
    %110 = vector.load %arg6[%c88_79, %c0_80] : memref<216x288xf32, #tpu.memory_space<vmem>>, vector<8x288xf32>
    tpu.vector_store %arg6[%c88_79, %c0_80], %109 {strides = array<i32>} : memref<216x288xf32, #tpu.memory_space<vmem>>, vector<8x288xf32>,
    %111 = vector.extract_strided_slice %104 {offsets = [0, 18], sizes = [8, 288], strides = [1, 1]} : vector<8x326xf32> to vector<8x288xf32>
    %c96_81 = arith.constant 96 : index
    %c0_82 = arith.constant 0 : index
    %112 = vector.load %arg6[%c96_81, %c0_82] : memref<216x288xf32, #tpu.memory_space<vmem>>, vector<8x288xf32>
    tpu.vector_store %arg6[%c96_81, %c0_82], %111 {strides = array<i32>} : memref<216x288xf32, #tpu.memory_space<vmem>>, vector<8x288xf32>,
    %113 = vector.extract_strided_slice %104 {offsets = [0, 19], sizes = [8, 288], strides = [1, 1]} : vector<8x326xf32> to vector<8x288xf32>
    %c104_83 = arith.constant 104 : index
    %c0_84 = arith.constant 0 : index
    %114 = vector.load %arg6[%c104_83, %c0_84] : memref<216x288xf32, #tpu.memory_space<vmem>>, vector<8x288xf32>
    tpu.vector_store %arg6[%c104_83, %c0_84], %113 {strides = array<i32>} : memref<216x288xf32, #tpu.memory_space<vmem>>, vector<8x288xf32>,
    %115 = vector.extract_strided_slice %104 {offsets = [0, 20], sizes = [8, 288], strides = [1, 1]} : vector<8x326xf32> to vector<8x288xf32>
    %c112_85 = arith.constant 112 : index
    %c0_86 = arith.constant 0 : index
    %116 = vector.load %arg6[%c112_85, %c0_86] : memref<216x288xf32, #tpu.memory_space<vmem>>, vector<8x288xf32>
    tpu.vector_store %arg6[%c112_85, %c0_86], %115 {strides = array<i32>} : memref<216x288xf32, #tpu.memory_space<vmem>>, vector<8x288xf32>,
    %117 = vector.extract_strided_slice %104 {offsets = [0, 36], sizes = [8, 288], strides = [1, 1]} : vector<8x326xf32> to vector<8x288xf32>
    %c120_87 = arith.constant 120 : index
    %c0_88 = arith.constant 0 : index
    %118 = vector.load %arg6[%c120_87, %c0_88] : memref<216x288xf32, #tpu.memory_space<vmem>>, vector<8x288xf32>
    tpu.vector_store %arg6[%c120_87, %c0_88], %117 {strides = array<i32>} : memref<216x288xf32, #tpu.memory_space<vmem>>, vector<8x288xf32>,
    %119 = vector.extract_strided_slice %104 {offsets = [0, 37], sizes = [8, 288], strides = [1, 1]} : vector<8x326xf32> to vector<8x288xf32>
    %c128_89 = arith.constant 128 : index
    %c0_90 = arith.constant 0 : index
    %120 = vector.load %arg6[%c128_89, %c0_90] : memref<216x288xf32, #tpu.memory_space<vmem>>, vector<8x288xf32>
    tpu.vector_store %arg6[%c128_89, %c0_90], %119 {strides = array<i32>} : memref<216x288xf32, #tpu.memory_space<vmem>>, vector<8x288xf32>,
    %121 = vector.extract_strided_slice %104 {offsets = [0, 38], sizes = [8, 288], strides = [1, 1]} : vector<8x326xf32> to vector<8x288xf32>
    %c136_91 = arith.constant 136 : index
    %c0_92 = arith.constant 0 : index
    %122 = vector.load %arg6[%c136_91, %c0_92] : memref<216x288xf32, #tpu.memory_space<vmem>>, vector<8x288xf32>
    tpu.vector_store %arg6[%c136_91, %c0_92], %121 {strides = array<i32>} : memref<216x288xf32, #tpu.memory_space<vmem>>, vector<8x288xf32>,
    %c2_i32_93 = arith.constant 2 : i32
    %123 = arith.addi %78, %c2_i32_93 : i32
    %c0_94 = arith.constant 0 : index
    %124 = arith.index_cast %123 : i32 to index
    %c0_95 = arith.constant 0 : index
    %c0_96 = arith.constant 0 : index
    %125 = vector.load %arg2[%c0_94, %124, %c0_95, %c0_96] : memref<1x18x8x326xf32, #tpu.memory_space<vmem>>, vector<1x1x8x326xf32>
    %126 = vector.shape_cast %125 : vector<1x1x8x326xf32> to vector<8x326xf32>
    %127 = vector.extract_strided_slice %126 {offsets = [0, 0], sizes = [8, 288], strides = [1, 1]} : vector<8x326xf32> to vector<8x288xf32>
    %c144_97 = arith.constant 144 : index
    %c0_98 = arith.constant 0 : index
    %128 = vector.load %arg6[%c144_97, %c0_98] : memref<216x288xf32, #tpu.memory_space<vmem>>, vector<8x288xf32>
    tpu.vector_store %arg6[%c144_97, %c0_98], %127 {strides = array<i32>} : memref<216x288xf32, #tpu.memory_space<vmem>>, vector<8x288xf32>,
    %129 = vector.extract_strided_slice %126 {offsets = [0, 1], sizes = [8, 288], strides = [1, 1]} : vector<8x326xf32> to vector<8x288xf32>
    %c152_99 = arith.constant 152 : index
    %c0_100 = arith.constant 0 : index
    %130 = vector.load %arg6[%c152_99, %c0_100] : memref<216x288xf32, #tpu.memory_space<vmem>>, vector<8x288xf32>
    tpu.vector_store %arg6[%c152_99, %c0_100], %129 {strides = array<i32>} : memref<216x288xf32, #tpu.memory_space<vmem>>, vector<8x288xf32>,
    %131 = vector.extract_strided_slice %126 {offsets = [0, 2], sizes = [8, 288], strides = [1, 1]} : vector<8x326xf32> to vector<8x288xf32>
    %c160_101 = arith.constant 160 : index
    %c0_102 = arith.constant 0 : index
    %132 = vector.load %arg6[%c160_101, %c0_102] : memref<216x288xf32, #tpu.memory_space<vmem>>, vector<8x288xf32>
    tpu.vector_store %arg6[%c160_101, %c0_102], %131 {strides = array<i32>} : memref<216x288xf32, #tpu.memory_space<vmem>>, vector<8x288xf32>,
    %133 = vector.extract_strided_slice %126 {offsets = [0, 18], sizes = [8, 288], strides = [1, 1]} : vector<8x326xf32> to vector<8x288xf32>
    %c168_103 = arith.constant 168 : index
    %c0_104 = arith.constant 0 : index
    %134 = vector.load %arg6[%c168_103, %c0_104] : memref<216x288xf32, #tpu.memory_space<vmem>>, vector<8x288xf32>
    tpu.vector_store %arg6[%c168_103, %c0_104], %133 {strides = array<i32>} : memref<216x288xf32, #tpu.memory_space<vmem>>, vector<8x288xf32>,
    %135 = vector.extract_strided_slice %126 {offsets = [0, 19], sizes = [8, 288], strides = [1, 1]} : vector<8x326xf32> to vector<8x288xf32>
    %c176_105 = arith.constant 176 : index
    %c0_106 = arith.constant 0 : index
    %136 = vector.load %arg6[%c176_105, %c0_106] : memref<216x288xf32, #tpu.memory_space<vmem>>, vector<8x288xf32>
    tpu.vector_store %arg6[%c176_105, %c0_106], %135 {strides = array<i32>} : memref<216x288xf32, #tpu.memory_space<vmem>>, vector<8x288xf32>,
    %137 = vector.extract_strided_slice %126 {offsets = [0, 20], sizes = [8, 288], strides = [1, 1]} : vector<8x326xf32> to vector<8x288xf32>
    %c184_107 = arith.constant 184 : index
    %c0_108 = arith.constant 0 : index
    %138 = vector.load %arg6[%c184_107, %c0_108] : memref<216x288xf32, #tpu.memory_space<vmem>>, vector<8x288xf32>
    tpu.vector_store %arg6[%c184_107, %c0_108], %137 {strides = array<i32>} : memref<216x288xf32, #tpu.memory_space<vmem>>, vector<8x288xf32>,
    %139 = vector.extract_strided_slice %126 {offsets = [0, 36], sizes = [8, 288], strides = [1, 1]} : vector<8x326xf32> to vector<8x288xf32>
    %c192_109 = arith.constant 192 : index
    %c0_110 = arith.constant 0 : index
    %140 = vector.load %arg6[%c192_109, %c0_110] : memref<216x288xf32, #tpu.memory_space<vmem>>, vector<8x288xf32>
    tpu.vector_store %arg6[%c192_109, %c0_110], %139 {strides = array<i32>} : memref<216x288xf32, #tpu.memory_space<vmem>>, vector<8x288xf32>,
    %141 = vector.extract_strided_slice %126 {offsets = [0, 37], sizes = [8, 288], strides = [1, 1]} : vector<8x326xf32> to vector<8x288xf32>
    %c200_111 = arith.constant 200 : index
    %c0_112 = arith.constant 0 : index
    %142 = vector.load %arg6[%c200_111, %c0_112] : memref<216x288xf32, #tpu.memory_space<vmem>>, vector<8x288xf32>
    tpu.vector_store %arg6[%c200_111, %c0_112], %141 {strides = array<i32>} : memref<216x288xf32, #tpu.memory_space<vmem>>, vector<8x288xf32>,
    %143 = vector.extract_strided_slice %126 {offsets = [0, 38], sizes = [8, 288], strides = [1, 1]} : vector<8x326xf32> to vector<8x288xf32>
    %c208_113 = arith.constant 208 : index
    %c0_114 = arith.constant 0 : index
    %144 = vector.load %arg6[%c208_113, %c0_114] : memref<216x288xf32, #tpu.memory_space<vmem>>, vector<8x288xf32>
    tpu.vector_store %arg6[%c208_113, %c0_114], %143 {strides = array<i32>} : memref<216x288xf32, #tpu.memory_space<vmem>>, vector<8x288xf32>,
    %c0_115 = arith.constant 0 : index
    %c0_116 = arith.constant 0 : index
    %145 = vector.load %arg3[%c0_115, %c0_116] : memref<8x216xf32, #tpu.memory_space<vmem>>, vector<8x216xf32>
    %c0_117 = arith.constant 0 : index
    %c0_118 = arith.constant 0 : index
    %146 = vector.load %arg6[%c0_117, %c0_118] : memref<216x288xf32, #tpu.memory_space<vmem>>, vector<216x288xf32>
    %cst_119 = arith.constant dense<0.000000e+00> : vector<8x288xf32>
    %147 = tpu.matmul %145, %146, %cst_119 {dimension_numbers = #tpu.dot_dimension_numbers<[1], [0], [0], [1], [0, 0, 1, 1], [], []>} : vector<8x216xf32>, vector<216x288xf32>, vector<8x288xf32> -> vector<8x288xf32>
    %c0_120 = arith.constant 0 : index
    %c0_121 = arith.constant 0 : index
    %148 = vector.load %arg4[%c0_120, %c0_121] : memref<8x1xf32, #tpu.memory_space<vmem>>, vector<8x1xf32>
    %149 = vector.broadcast %148 : vector<8x1xf32> to vector<8x288xf32>
    %150 = arith.addf %147, %149 : vector<8x288xf32>
    %c0_122 = arith.constant 0 : index
    %c1 = arith.constant 1 : index
    %c0_123 = arith.constant 0 : index
    %c0_124 = arith.constant 0 : index
    %151 = vector.load %arg5[%c0_122, %c1, %c0_123, %c0_124] : memref<1x8x8x288xf32, #tpu.memory_space<vmem>>, vector<1x1x8x288xf32>
    %152 = vector.shape_cast %151 : vector<1x1x8x288xf32> to vector<8x288xf32>
    %153 = vector.shape_cast %150 : vector<8x288xf32> to vector<1x1x8x288xf32>
    tpu.vector_store %arg5[%c0_122, %c1, %c0_123, %c0_124], %153 {strides = array<i32>} : memref<1x8x8x288xf32, #tpu.memory_space<vmem>>, vector<1x1x8x288xf32>,
    %c8_i32_125 = arith.constant 8 : i32
    %154 = arith.muli %arg1, %c8_i32_125 : i32
    %c2_i32_126 = arith.constant 2 : i32
    %155 = arith.addi %154, %c2_i32_126 : i32
    %c0_i32_127 = arith.constant 0 : i32
    %156 = arith.addi %155, %c0_i32_127 : i32
    %c0_128 = arith.constant 0 : index
    %157 = arith.index_cast %156 : i32 to index
    %c0_129 = arith.constant 0 : index
    %c0_130 = arith.constant 0 : index
    %158 = vector.load %arg2[%c0_128, %157, %c0_129, %c0_130] : memref<1x18x8x326xf32, #tpu.memory_space<vmem>>, vector<1x1x8x326xf32>
    %159 = vector.shape_cast %158 : vector<1x1x8x326xf32> to vector<8x326xf32>
    %160 = vector.extract_strided_slice %159 {offsets = [0, 0], sizes = [8, 288], strides = [1, 1]} : vector<8x326xf32> to vector<8x288xf32>
    %c0_131 = arith.constant 0 : index
    %c0_132 = arith.constant 0 : index
    %161 = vector.load %arg6[%c0_131, %c0_132] : memref<216x288xf32, #tpu.memory_space<vmem>>, vector<8x288xf32>
    tpu.vector_store %arg6[%c0_131, %c0_132], %160 {strides = array<i32>} : memref<216x288xf32, #tpu.memory_space<vmem>>, vector<8x288xf32>,
    %162 = vector.extract_strided_slice %159 {offsets = [0, 1], sizes = [8, 288], strides = [1, 1]} : vector<8x326xf32> to vector<8x288xf32>
    %c8_133 = arith.constant 8 : index
    %c0_134 = arith.constant 0 : index
    %163 = vector.load %arg6[%c8_133, %c0_134] : memref<216x288xf32, #tpu.memory_space<vmem>>, vector<8x288xf32>
    tpu.vector_store %arg6[%c8_133, %c0_134], %162 {strides = array<i32>} : memref<216x288xf32, #tpu.memory_space<vmem>>, vector<8x288xf32>,
    %164 = vector.extract_strided_slice %159 {offsets = [0, 2], sizes = [8, 288], strides = [1, 1]} : vector<8x326xf32> to vector<8x288xf32>
    %c16_135 = arith.constant 16 : index
    %c0_136 = arith.constant 0 : index
    %165 = vector.load %arg6[%c16_135, %c0_136] : memref<216x288xf32, #tpu.memory_space<vmem>>, vector<8x288xf32>
    tpu.vector_store %arg6[%c16_135, %c0_136], %164 {strides = array<i32>} : memref<216x288xf32, #tpu.memory_space<vmem>>, vector<8x288xf32>,
    %166 = vector.extract_strided_slice %159 {offsets = [0, 18], sizes = [8, 288], strides = [1, 1]} : vector<8x326xf32> to vector<8x288xf32>
    %c24_137 = arith.constant 24 : index
    %c0_138 = arith.constant 0 : index
    %167 = vector.load %arg6[%c24_137, %c0_138] : memref<216x288xf32, #tpu.memory_space<vmem>>, vector<8x288xf32>
    tpu.vector_store %arg6[%c24_137, %c0_138], %166 {strides = array<i32>} : memref<216x288xf32, #tpu.memory_space<vmem>>, vector<8x288xf32>,
    %168 = vector.extract_strided_slice %159 {offsets = [0, 19], sizes = [8, 288], strides = [1, 1]} : vector<8x326xf32> to vector<8x288xf32>
    %c32_139 = arith.constant 32 : index
    %c0_140 = arith.constant 0 : index
    %169 = vector.load %arg6[%c32_139, %c0_140] : memref<216x288xf32, #tpu.memory_space<vmem>>, vector<8x288xf32>
    tpu.vector_store %arg6[%c32_139, %c0_140], %168 {strides = array<i32>} : memref<216x288xf32, #tpu.memory_space<vmem>>, vector<8x288xf32>,
    %170 = vector.extract_strided_slice %159 {offsets = [0, 20], sizes = [8, 288], strides = [1, 1]} : vector<8x326xf32> to vector<8x288xf32>
    %c40_141 = arith.constant 40 : index
    %c0_142 = arith.constant 0 : index
    %171 = vector.load %arg6[%c40_141, %c0_142] : memref<216x288xf32, #tpu.memory_space<vmem>>, vector<8x288xf32>
    tpu.vector_store %arg6[%c40_141, %c0_142], %170 {strides = array<i32>} : memref<216x288xf32, #tpu.memory_space<vmem>>, vector<8x288xf32>,
    %172 = vector.extract_strided_slice %159 {offsets = [0, 36], sizes = [8, 288], strides = [1, 1]} : vector<8x326xf32> to vector<8x288xf32>
    %c48_143 = arith.constant 48 : index
    %c0_144 = arith.constant 0 : index
    %173 = vector.load %arg6[%c48_143, %c0_144] : memref<216x288xf32, #tpu.memory_space<vmem>>, vector<8x288xf32>
    tpu.vector_store %arg6[%c48_143, %c0_144], %172 {strides = array<i32>} : memref<216x288xf32, #tpu.memory_space<vmem>>, vector<8x288xf32>,
    %174 = vector.extract_strided_slice %159 {offsets = [0, 37], sizes = [8, 288], strides = [1, 1]} : vector<8x326xf32> to vector<8x288xf32>
    %c56_145 = arith.constant 56 : index
    %c0_146 = arith.constant 0 : index
    %175 = vector.load %arg6[%c56_145, %c0_146] : memref<216x288xf32, #tpu.memory_space<vmem>>, vector<8x288xf32>
    tpu.vector_store %arg6[%c56_145, %c0_146], %174 {strides = array<i32>} : memref<216x288xf32, #tpu.memory_space<vmem>>, vector<8x288xf32>,
    %176 = vector.extract_strided_slice %159 {offsets = [0, 38], sizes = [8, 288], strides = [1, 1]} : vector<8x326xf32> to vector<8x288xf32>
    %c64_147 = arith.constant 64 : index
    %c0_148 = arith.constant 0 : index
    %177 = vector.load %arg6[%c64_147, %c0_148] : memref<216x288xf32, #tpu.memory_space<vmem>>, vector<8x288xf32>
    tpu.vector_store %arg6[%c64_147, %c0_148], %176 {strides = array<i32>} : memref<216x288xf32, #tpu.memory_space<vmem>>, vector<8x288xf32>,
    %c1_i32_149 = arith.constant 1 : i32
    %178 = arith.addi %155, %c1_i32_149 : i32
    %c0_150 = arith.constant 0 : index
    %179 = arith.index_cast %178 : i32 to index
    %c0_151 = arith.constant 0 : index
    %c0_152 = arith.constant 0 : index
    %180 = vector.load %arg2[%c0_150, %179, %c0_151, %c0_152] : memref<1x18x8x326xf32, #tpu.memory_space<vmem>>, vector<1x1x8x326xf32>
    %181 = vector.shape_cast %180 : vector<1x1x8x326xf32> to vector<8x326xf32>
    %182 = vector.extract_strided_slice %181 {offsets = [0, 0], sizes = [8, 288], strides = [1, 1]} : vector<8x326xf32> to vector<8x288xf32>
    %c72_153 = arith.constant 72 : index
    %c0_154 = arith.constant 0 : index
    %183 = vector.load %arg6[%c72_153, %c0_154] : memref<216x288xf32, #tpu.memory_space<vmem>>, vector<8x288xf32>
    tpu.vector_store %arg6[%c72_153, %c0_154], %182 {strides = array<i32>} : memref<216x288xf32, #tpu.memory_space<vmem>>, vector<8x288xf32>,
    %184 = vector.extract_strided_slice %181 {offsets = [0, 1], sizes = [8, 288], strides = [1, 1]} : vector<8x326xf32> to vector<8x288xf32>
    %c80_155 = arith.constant 80 : index
    %c0_156 = arith.constant 0 : index
    %185 = vector.load %arg6[%c80_155, %c0_156] : memref<216x288xf32, #tpu.memory_space<vmem>>, vector<8x288xf32>
    tpu.vector_store %arg6[%c80_155, %c0_156], %184 {strides = array<i32>} : memref<216x288xf32, #tpu.memory_space<vmem>>, vector<8x288xf32>,
    %186 = vector.extract_strided_slice %181 {offsets = [0, 2], sizes = [8, 288], strides = [1, 1]} : vector<8x326xf32> to vector<8x288xf32>
    %c88_157 = arith.constant 88 : index
    %c0_158 = arith.constant 0 : index
    %187 = vector.load %arg6[%c88_157, %c0_158] : memref<216x288xf32, #tpu.memory_space<vmem>>, vector<8x288xf32>
    tpu.vector_store %arg6[%c88_157, %c0_158], %186 {strides = array<i32>} : memref<216x288xf32, #tpu.memory_space<vmem>>, vector<8x288xf32>,
    %188 = vector.extract_strided_slice %181 {offsets = [0, 18], sizes = [8, 288], strides = [1, 1]} : vector<8x326xf32> to vector<8x288xf32>
    %c96_159 = arith.constant 96 : index
    %c0_160 = arith.constant 0 : index
    %189 = vector.load %arg6[%c96_159, %c0_160] : memref<216x288xf32, #tpu.memory_space<vmem>>, vector<8x288xf32>
    tpu.vector_store %arg6[%c96_159, %c0_160], %188 {strides = array<i32>} : memref<216x288xf32, #tpu.memory_space<vmem>>, vector<8x288xf32>,
    %190 = vector.extract_strided_slice %181 {offsets = [0, 19], sizes = [8, 288], strides = [1, 1]} : vector<8x326xf32> to vector<8x288xf32>
    %c104_161 = arith.constant 104 : index
    %c0_162 = arith.constant 0 : index
    %191 = vector.load %arg6[%c104_161, %c0_162] : memref<216x288xf32, #tpu.memory_space<vmem>>, vector<8x288xf32>
    tpu.vector_store %arg6[%c104_161, %c0_162], %190 {strides = array<i32>} : memref<216x288xf32, #tpu.memory_space<vmem>>, vector<8x288xf32>,
    %192 = vector.extract_strided_slice %181 {offsets = [0, 20], sizes = [8, 288], strides = [1, 1]} : vector<8x326xf32> to vector<8x288xf32>
    %c112_163 = arith.constant 112 : index
    %c0_164 = arith.constant 0 : index
    %193 = vector.load %arg6[%c112_163, %c0_164] : memref<216x288xf32, #tpu.memory_space<vmem>>, vector<8x288xf32>
    tpu.vector_store %arg6[%c112_163, %c0_164], %192 {strides = array<i32>} : memref<216x288xf32, #tpu.memory_space<vmem>>, vector<8x288xf32>,
    %194 = vector.extract_strided_slice %181 {offsets = [0, 36], sizes = [8, 288], strides = [1, 1]} : vector<8x326xf32> to vector<8x288xf32>
    %c120_165 = arith.constant 120 : index
    %c0_166 = arith.constant 0 : index
    %195 = vector.load %arg6[%c120_165, %c0_166] : memref<216x288xf32, #tpu.memory_space<vmem>>, vector<8x288xf32>
    tpu.vector_store %arg6[%c120_165, %c0_166], %194 {strides = array<i32>} : memref<216x288xf32, #tpu.memory_space<vmem>>, vector<8x288xf32>,
    %196 = vector.extract_strided_slice %181 {offsets = [0, 37], sizes = [8, 288], strides = [1, 1]} : vector<8x326xf32> to vector<8x288xf32>
    %c128_167 = arith.constant 128 : index
    %c0_168 = arith.constant 0 : index
    %197 = vector.load %arg6[%c128_167, %c0_168] : memref<216x288xf32, #tpu.memory_space<vmem>>, vector<8x288xf32>
    tpu.vector_store %arg6[%c128_167, %c0_168], %196 {strides = array<i32>} : memref<216x288xf32, #tpu.memory_space<vmem>>, vector<8x288xf32>,
    %198 = vector.extract_strided_slice %181 {offsets = [0, 38], sizes = [8, 288], strides = [1, 1]} : vector<8x326xf32> to vector<8x288xf32>
    %c136_169 = arith.constant 136 : index
    %c0_170 = arith.constant 0 : index
    %199 = vector.load %arg6[%c136_169, %c0_170] : memref<216x288xf32, #tpu.memory_space<vmem>>, vector<8x288xf32>
    tpu.vector_store %arg6[%c136_169, %c0_170], %198 {strides = array<i32>} : memref<216x288xf32, #tpu.memory_space<vmem>>, vector<8x288xf32>,
    %c2_i32_171 = arith.constant 2 : i32
    %200 = arith.addi %155, %c2_i32_171 : i32
    %c0_172 = arith.constant 0 : index
    %201 = arith.index_cast %200 : i32 to index
    %c0_173 = arith.constant 0 : index
    %c0_174 = arith.constant 0 : index
    %202 = vector.load %arg2[%c0_172, %201, %c0_173, %c0_174] : memref<1x18x8x326xf32, #tpu.memory_space<vmem>>, vector<1x1x8x326xf32>
    %203 = vector.shape_cast %202 : vector<1x1x8x326xf32> to vector<8x326xf32>
    %204 = vector.extract_strided_slice %203 {offsets = [0, 0], sizes = [8, 288], strides = [1, 1]} : vector<8x326xf32> to vector<8x288xf32>
    %c144_175 = arith.constant 144 : index
    %c0_176 = arith.constant 0 : index
    %205 = vector.load %arg6[%c144_175, %c0_176] : memref<216x288xf32, #tpu.memory_space<vmem>>, vector<8x288xf32>
    tpu.vector_store %arg6[%c144_175, %c0_176], %204 {strides = array<i32>} : memref<216x288xf32, #tpu.memory_space<vmem>>, vector<8x288xf32>,
    %206 = vector.extract_strided_slice %203 {offsets = [0, 1], sizes = [8, 288], strides = [1, 1]} : vector<8x326xf32> to vector<8x288xf32>
    %c152_177 = arith.constant 152 : index
    %c0_178 = arith.constant 0 : index
    %207 = vector.load %arg6[%c152_177, %c0_178] : memref<216x288xf32, #tpu.memory_space<vmem>>, vector<8x288xf32>
    tpu.vector_store %arg6[%c152_177, %c0_178], %206 {strides = array<i32>} : memref<216x288xf32, #tpu.memory_space<vmem>>, vector<8x288xf32>,
    %208 = vector.extract_strided_slice %203 {offsets = [0, 2], sizes = [8, 288], strides = [1, 1]} : vector<8x326xf32> to vector<8x288xf32>
    %c160_179 = arith.constant 160 : index
    %c0_180 = arith.constant 0 : index
    %209 = vector.load %arg6[%c160_179, %c0_180] : memref<216x288xf32, #tpu.memory_space<vmem>>, vector<8x288xf32>
    tpu.vector_store %arg6[%c160_179, %c0_180], %208 {strides = array<i32>} : memref<216x288xf32, #tpu.memory_space<vmem>>, vector<8x288xf32>,
    %210 = vector.extract_strided_slice %203 {offsets = [0, 18], sizes = [8, 288], strides = [1, 1]} : vector<8x326xf32> to vector<8x288xf32>
    %c168_181 = arith.constant 168 : index
    %c0_182 = arith.constant 0 : index
    %211 = vector.load %arg6[%c168_181, %c0_182] : memref<216x288xf32, #tpu.memory_space<vmem>>, vector<8x288xf32>
    tpu.vector_store %arg6[%c168_181, %c0_182], %210 {strides = array<i32>} : memref<216x288xf32, #tpu.memory_space<vmem>>, vector<8x288xf32>,
    %212 = vector.extract_strided_slice %203 {offsets = [0, 19], sizes = [8, 288], strides = [1, 1]} : vector<8x326xf32> to vector<8x288xf32>
    %c176_183 = arith.constant 176 : index
    %c0_184 = arith.constant 0 : index
    %213 = vector.load %arg6[%c176_183, %c0_184] : memref<216x288xf32, #tpu.memory_space<vmem>>, vector<8x288xf32>
    tpu.vector_store %arg6[%c176_183, %c0_184], %212 {strides = array<i32>} : memref<216x288xf32, #tpu.memory_space<vmem>>, vector<8x288xf32>,
    %214 = vector.extract_strided_slice %203 {offsets = [0, 20], sizes = [8, 288], strides = [1, 1]} : vector<8x326xf32> to vector<8x288xf32>
    %c184_185 = arith.constant 184 : index
    %c0_186 = arith.constant 0 : index
    %215 = vector.load %arg6[%c184_185, %c0_186] : memref<216x288xf32, #tpu.memory_space<vmem>>, vector<8x288xf32>
    tpu.vector_store %arg6[%c184_185, %c0_186], %214 {strides = array<i32>} : memref<216x288xf32, #tpu.memory_space<vmem>>, vector<8x288xf32>,
    %216 = vector.extract_strided_slice %203 {offsets = [0, 36], sizes = [8, 288], strides = [1, 1]} : vector<8x326xf32> to vector<8x288xf32>
    %c192_187 = arith.constant 192 : index
    %c0_188 = arith.constant 0 : index
    %217 = vector.load %arg6[%c192_187, %c0_188] : memref<216x288xf32, #tpu.memory_space<vmem>>, vector<8x288xf32>
    tpu.vector_store %arg6[%c192_187, %c0_188], %216 {strides = array<i32>} : memref<216x288xf32, #tpu.memory_space<vmem>>, vector<8x288xf32>,
    %218 = vector.extract_strided_slice %203 {offsets = [0, 37], sizes = [8, 288], strides = [1, 1]} : vector<8x326xf32> to vector<8x288xf32>
    %c200_189 = arith.constant 200 : index
    %c0_190 = arith.constant 0 : index
    %219 = vector.load %arg6[%c200_189, %c0_190] : memref<216x288xf32, #tpu.memory_space<vmem>>, vector<8x288xf32>
    tpu.vector_store %arg6[%c200_189, %c0_190], %218 {strides = array<i32>} : memref<216x288xf32, #tpu.memory_space<vmem>>, vector<8x288xf32>,
    %220 = vector.extract_strided_slice %203 {offsets = [0, 38], sizes = [8, 288], strides = [1, 1]} : vector<8x326xf32> to vector<8x288xf32>
    %c208_191 = arith.constant 208 : index
    %c0_192 = arith.constant 0 : index
    %221 = vector.load %arg6[%c208_191, %c0_192] : memref<216x288xf32, #tpu.memory_space<vmem>>, vector<8x288xf32>
    tpu.vector_store %arg6[%c208_191, %c0_192], %220 {strides = array<i32>} : memref<216x288xf32, #tpu.memory_space<vmem>>, vector<8x288xf32>,
    %c0_193 = arith.constant 0 : index
    %c0_194 = arith.constant 0 : index
    %222 = vector.load %arg3[%c0_193, %c0_194] : memref<8x216xf32, #tpu.memory_space<vmem>>, vector<8x216xf32>
    %c0_195 = arith.constant 0 : index
    %c0_196 = arith.constant 0 : index
    %223 = vector.load %arg6[%c0_195, %c0_196] : memref<216x288xf32, #tpu.memory_space<vmem>>, vector<216x288xf32>
    %cst_197 = arith.constant dense<0.000000e+00> : vector<8x288xf32>
    %224 = tpu.matmul %222, %223, %cst_197 {dimension_numbers = #tpu.dot_dimension_numbers<[1], [0], [0], [1], [0, 0, 1, 1], [], []>} : vector<8x216xf32>, vector<216x288xf32>, vector<8x288xf32> -> vector<8x288xf32>
    %c0_198 = arith.constant 0 : index
    %c0_199 = arith.constant 0 : index
    %225 = vector.load %arg4[%c0_198, %c0_199] : memref<8x1xf32, #tpu.memory_space<vmem>>, vector<8x1xf32>
    %226 = vector.broadcast %225 : vector<8x1xf32> to vector<8x288xf32>
    %227 = arith.addf %224, %226 : vector<8x288xf32>
    %c0_200 = arith.constant 0 : index
    %c2 = arith.constant 2 : index
    %c0_201 = arith.constant 0 : index
    %c0_202 = arith.constant 0 : index
    %228 = vector.load %arg5[%c0_200, %c2, %c0_201, %c0_202] : memref<1x8x8x288xf32, #tpu.memory_space<vmem>>, vector<1x1x8x288xf32>
    %229 = vector.shape_cast %228 : vector<1x1x8x288xf32> to vector<8x288xf32>
    %230 = vector.shape_cast %227 : vector<8x288xf32> to vector<1x1x8x288xf32>
    tpu.vector_store %arg5[%c0_200, %c2, %c0_201, %c0_202], %230 {strides = array<i32>} : memref<1x8x8x288xf32, #tpu.memory_space<vmem>>, vector<1x1x8x288xf32>,
    %c8_i32_203 = arith.constant 8 : i32
    %231 = arith.muli %arg1, %c8_i32_203 : i32
    %c3_i32 = arith.constant 3 : i32
    %232 = arith.addi %231, %c3_i32 : i32
    %c0_i32_204 = arith.constant 0 : i32
    %233 = arith.addi %232, %c0_i32_204 : i32
    %c0_205 = arith.constant 0 : index
    %234 = arith.index_cast %233 : i32 to index
    %c0_206 = arith.constant 0 : index
    %c0_207 = arith.constant 0 : index
    %235 = vector.load %arg2[%c0_205, %234, %c0_206, %c0_207] : memref<1x18x8x326xf32, #tpu.memory_space<vmem>>, vector<1x1x8x326xf32>
    %236 = vector.shape_cast %235 : vector<1x1x8x326xf32> to vector<8x326xf32>
    %237 = vector.extract_strided_slice %236 {offsets = [0, 0], sizes = [8, 288], strides = [1, 1]} : vector<8x326xf32> to vector<8x288xf32>
    %c0_208 = arith.constant 0 : index
    %c0_209 = arith.constant 0 : index
    %238 = vector.load %arg6[%c0_208, %c0_209] : memref<216x288xf32, #tpu.memory_space<vmem>>, vector<8x288xf32>
    tpu.vector_store %arg6[%c0_208, %c0_209], %237 {strides = array<i32>} : memref<216x288xf32, #tpu.memory_space<vmem>>, vector<8x288xf32>,
    %239 = vector.extract_strided_slice %236 {offsets = [0, 1], sizes = [8, 288], strides = [1, 1]} : vector<8x326xf32> to vector<8x288xf32>
    %c8_210 = arith.constant 8 : index
    %c0_211 = arith.constant 0 : index
    %240 = vector.load %arg6[%c8_210, %c0_211] : memref<216x288xf32, #tpu.memory_space<vmem>>, vector<8x288xf32>
    tpu.vector_store %arg6[%c8_210, %c0_211], %239 {strides = array<i32>} : memref<216x288xf32, #tpu.memory_space<vmem>>, vector<8x288xf32>,
    %241 = vector.extract_strided_slice %236 {offsets = [0, 2], sizes = [8, 288], strides = [1, 1]} : vector<8x326xf32> to vector<8x288xf32>
    %c16_212 = arith.constant 16 : index
    %c0_213 = arith.constant 0 : index
    %242 = vector.load %arg6[%c16_212, %c0_213] : memref<216x288xf32, #tpu.memory_space<vmem>>, vector<8x288xf32>
    tpu.vector_store %arg6[%c16_212, %c0_213], %241 {strides = array<i32>} : memref<216x288xf32, #tpu.memory_space<vmem>>, vector<8x288xf32>,
    %243 = vector.extract_strided_slice %236 {offsets = [0, 18], sizes = [8, 288], strides = [1, 1]} : vector<8x326xf32> to vector<8x288xf32>
    %c24_214 = arith.constant 24 : index
    %c0_215 = arith.constant 0 : index
    %244 = vector.load %arg6[%c24_214, %c0_215] : memref<216x288xf32, #tpu.memory_space<vmem>>, vector<8x288xf32>
    tpu.vector_store %arg6[%c24_214, %c0_215], %243 {strides = array<i32>} : memref<216x288xf32, #tpu.memory_space<vmem>>, vector<8x288xf32>,
    %245 = vector.extract_strided_slice %236 {offsets = [0, 19], sizes = [8, 288], strides = [1, 1]} : vector<8x326xf32> to vector<8x288xf32>
    %c32_216 = arith.constant 32 : index
    %c0_217 = arith.constant 0 : index
    %246 = vector.load %arg6[%c32_216, %c0_217] : memref<216x288xf32, #tpu.memory_space<vmem>>, vector<8x288xf32>
    tpu.vector_store %arg6[%c32_216, %c0_217], %245 {strides = array<i32>} : memref<216x288xf32, #tpu.memory_space<vmem>>, vector<8x288xf32>,
    %247 = vector.extract_strided_slice %236 {offsets = [0, 20], sizes = [8, 288], strides = [1, 1]} : vector<8x326xf32> to vector<8x288xf32>
    %c40_218 = arith.constant 40 : index
    %c0_219 = arith.constant 0 : index
    %248 = vector.load %arg6[%c40_218, %c0_219] : memref<216x288xf32, #tpu.memory_space<vmem>>, vector<8x288xf32>
    tpu.vector_store %arg6[%c40_218, %c0_219], %247 {strides = array<i32>} : memref<216x288xf32, #tpu.memory_space<vmem>>, vector<8x288xf32>,
    %249 = vector.extract_strided_slice %236 {offsets = [0, 36], sizes = [8, 288], strides = [1, 1]} : vector<8x326xf32> to vector<8x288xf32>
    %c48_220 = arith.constant 48 : index
    %c0_221 = arith.constant 0 : index
    %250 = vector.load %arg6[%c48_220, %c0_221] : memref<216x288xf32, #tpu.memory_space<vmem>>, vector<8x288xf32>
    tpu.vector_store %arg6[%c48_220, %c0_221], %249 {strides = array<i32>} : memref<216x288xf32, #tpu.memory_space<vmem>>, vector<8x288xf32>,
    %251 = vector.extract_strided_slice %236 {offsets = [0, 37], sizes = [8, 288], strides = [1, 1]} : vector<8x326xf32> to vector<8x288xf32>
    %c56_222 = arith.constant 56 : index
    %c0_223 = arith.constant 0 : index
    %252 = vector.load %arg6[%c56_222, %c0_223] : memref<216x288xf32, #tpu.memory_space<vmem>>, vector<8x288xf32>
    tpu.vector_store %arg6[%c56_222, %c0_223], %251 {strides = array<i32>} : memref<216x288xf32, #tpu.memory_space<vmem>>, vector<8x288xf32>,
    %253 = vector.extract_strided_slice %236 {offsets = [0, 38], sizes = [8, 288], strides = [1, 1]} : vector<8x326xf32> to vector<8x288xf32>
    %c64_224 = arith.constant 64 : index
    %c0_225 = arith.constant 0 : index
    %254 = vector.load %arg6[%c64_224, %c0_225] : memref<216x288xf32, #tpu.memory_space<vmem>>, vector<8x288xf32>
    tpu.vector_store %arg6[%c64_224, %c0_225], %253 {strides = array<i32>} : memref<216x288xf32, #tpu.memory_space<vmem>>, vector<8x288xf32>,
    %c1_i32_226 = arith.constant 1 : i32
    %255 = arith.addi %232, %c1_i32_226 : i32
    %c0_227 = arith.constant 0 : index
    %256 = arith.index_cast %255 : i32 to index
    %c0_228 = arith.constant 0 : index
    %c0_229 = arith.constant 0 : index
    %257 = vector.load %arg2[%c0_227, %256, %c0_228, %c0_229] : memref<1x18x8x326xf32, #tpu.memory_space<vmem>>, vector<1x1x8x326xf32>
    %258 = vector.shape_cast %257 : vector<1x1x8x326xf32> to vector<8x326xf32>
    %259 = vector.extract_strided_slice %258 {offsets = [0, 0], sizes = [8, 288], strides = [1, 1]} : vector<8x326xf32> to vector<8x288xf32>
    %c72_230 = arith.constant 72 : index
    %c0_231 = arith.constant 0 : index
    %260 = vector.load %arg6[%c72_230, %c0_231] : memref<216x288xf32, #tpu.memory_space<vmem>>, vector<8x288xf32>
    tpu.vector_store %arg6[%c72_230, %c0_231], %259 {strides = array<i32>} : memref<216x288xf32, #tpu.memory_space<vmem>>, vector<8x288xf32>,
    %261 = vector.extract_strided_slice %258 {offsets = [0, 1], sizes = [8, 288], strides = [1, 1]} : vector<8x326xf32> to vector<8x288xf32>
    %c80_232 = arith.constant 80 : index
    %c0_233 = arith.constant 0 : index
    %262 = vector.load %arg6[%c80_232, %c0_233] : memref<216x288xf32, #tpu.memory_space<vmem>>, vector<8x288xf32>
    tpu.vector_store %arg6[%c80_232, %c0_233], %261 {strides = array<i32>} : memref<216x288xf32, #tpu.memory_space<vmem>>, vector<8x288xf32>,
    %263 = vector.extract_strided_slice %258 {offsets = [0, 2], sizes = [8, 288], strides = [1, 1]} : vector<8x326xf32> to vector<8x288xf32>
    %c88_234 = arith.constant 88 : index
    %c0_235 = arith.constant 0 : index
    %264 = vector.load %arg6[%c88_234, %c0_235] : memref<216x288xf32, #tpu.memory_space<vmem>>, vector<8x288xf32>
    tpu.vector_store %arg6[%c88_234, %c0_235], %263 {strides = array<i32>} : memref<216x288xf32, #tpu.memory_space<vmem>>, vector<8x288xf32>,
    %265 = vector.extract_strided_slice %258 {offsets = [0, 18], sizes = [8, 288], strides = [1, 1]} : vector<8x326xf32> to vector<8x288xf32>
    %c96_236 = arith.constant 96 : index
    %c0_237 = arith.constant 0 : index
    %266 = vector.load %arg6[%c96_236, %c0_237] : memref<216x288xf32, #tpu.memory_space<vmem>>, vector<8x288xf32>
    tpu.vector_store %arg6[%c96_236, %c0_237], %265 {strides = array<i32>} : memref<216x288xf32, #tpu.memory_space<vmem>>, vector<8x288xf32>,
    %267 = vector.extract_strided_slice %258 {offsets = [0, 19], sizes = [8, 288], strides = [1, 1]} : vector<8x326xf32> to vector<8x288xf32>
    %c104_238 = arith.constant 104 : index
    %c0_239 = arith.constant 0 : index
    %268 = vector.load %arg6[%c104_238, %c0_239] : memref<216x288xf32, #tpu.memory_space<vmem>>, vector<8x288xf32>
    tpu.vector_store %arg6[%c104_238, %c0_239], %267 {strides = array<i32>} : memref<216x288xf32, #tpu.memory_space<vmem>>, vector<8x288xf32>,
    %269 = vector.extract_strided_slice %258 {offsets = [0, 20], sizes = [8, 288], strides = [1, 1]} : vector<8x326xf32> to vector<8x288xf32>
    %c112_240 = arith.constant 112 : index
    %c0_241 = arith.constant 0 : index
    %270 = vector.load %arg6[%c112_240, %c0_241] : memref<216x288xf32, #tpu.memory_space<vmem>>, vector<8x288xf32>
    tpu.vector_store %arg6[%c112_240, %c0_241], %269 {strides = array<i32>} : memref<216x288xf32, #tpu.memory_space<vmem>>, vector<8x288xf32>,
    %271 = vector.extract_strided_slice %258 {offsets = [0, 36], sizes = [8, 288], strides = [1, 1]} : vector<8x326xf32> to vector<8x288xf32>
    %c120_242 = arith.constant 120 : index
    %c0_243 = arith.constant 0 : index
    %272 = vector.load %arg6[%c120_242, %c0_243] : memref<216x288xf32, #tpu.memory_space<vmem>>, vector<8x288xf32>
    tpu.vector_store %arg6[%c120_242, %c0_243], %271 {strides = array<i32>} : memref<216x288xf32, #tpu.memory_space<vmem>>, vector<8x288xf32>,
    %273 = vector.extract_strided_slice %258 {offsets = [0, 37], sizes = [8, 288], strides = [1, 1]} : vector<8x326xf32> to vector<8x288xf32>
    %c128_244 = arith.constant 128 : index
    %c0_245 = arith.constant 0 : index
    %274 = vector.load %arg6[%c128_244, %c0_245] : memref<216x288xf32, #tpu.memory_space<vmem>>, vector<8x288xf32>
    tpu.vector_store %arg6[%c128_244, %c0_245], %273 {strides = array<i32>} : memref<216x288xf32, #tpu.memory_space<vmem>>, vector<8x288xf32>,
    %275 = vector.extract_strided_slice %258 {offsets = [0, 38], sizes = [8, 288], strides = [1, 1]} : vector<8x326xf32> to vector<8x288xf32>
    %c136_246 = arith.constant 136 : index
    %c0_247 = arith.constant 0 : index
    %276 = vector.load %arg6[%c136_246, %c0_247] : memref<216x288xf32, #tpu.memory_space<vmem>>, vector<8x288xf32>
    tpu.vector_store %arg6[%c136_246, %c0_247], %275 {strides = array<i32>} : memref<216x288xf32, #tpu.memory_space<vmem>>, vector<8x288xf32>,
    %c2_i32_248 = arith.constant 2 : i32
    %277 = arith.addi %232, %c2_i32_248 : i32
    %c0_249 = arith.constant 0 : index
    %278 = arith.index_cast %277 : i32 to index
    %c0_250 = arith.constant 0 : index
    %c0_251 = arith.constant 0 : index
    %279 = vector.load %arg2[%c0_249, %278, %c0_250, %c0_251] : memref<1x18x8x326xf32, #tpu.memory_space<vmem>>, vector<1x1x8x326xf32>
    %280 = vector.shape_cast %279 : vector<1x1x8x326xf32> to vector<8x326xf32>
    %281 = vector.extract_strided_slice %280 {offsets = [0, 0], sizes = [8, 288], strides = [1, 1]} : vector<8x326xf32> to vector<8x288xf32>
    %c144_252 = arith.constant 144 : index
    %c0_253 = arith.constant 0 : index
    %282 = vector.load %arg6[%c144_252, %c0_253] : memref<216x288xf32, #tpu.memory_space<vmem>>, vector<8x288xf32>
    tpu.vector_store %arg6[%c144_252, %c0_253], %281 {strides = array<i32>} : memref<216x288xf32, #tpu.memory_space<vmem>>, vector<8x288xf32>,
    %283 = vector.extract_strided_slice %280 {offsets = [0, 1], sizes = [8, 288], strides = [1, 1]} : vector<8x326xf32> to vector<8x288xf32>
    %c152_254 = arith.constant 152 : index
    %c0_255 = arith.constant 0 : index
    %284 = vector.load %arg6[%c152_254, %c0_255] : memref<216x288xf32, #tpu.memory_space<vmem>>, vector<8x288xf32>
    tpu.vector_store %arg6[%c152_254, %c0_255], %283 {strides = array<i32>} : memref<216x288xf32, #tpu.memory_space<vmem>>, vector<8x288xf32>,
    %285 = vector.extract_strided_slice %280 {offsets = [0, 2], sizes = [8, 288], strides = [1, 1]} : vector<8x326xf32> to vector<8x288xf32>
    %c160_256 = arith.constant 160 : index
    %c0_257 = arith.constant 0 : index
    %286 = vector.load %arg6[%c160_256, %c0_257] : memref<216x288xf32, #tpu.memory_space<vmem>>, vector<8x288xf32>
    tpu.vector_store %arg6[%c160_256, %c0_257], %285 {strides = array<i32>} : memref<216x288xf32, #tpu.memory_space<vmem>>, vector<8x288xf32>,
    %287 = vector.extract_strided_slice %280 {offsets = [0, 18], sizes = [8, 288], strides = [1, 1]} : vector<8x326xf32> to vector<8x288xf32>
    %c168_258 = arith.constant 168 : index
    %c0_259 = arith.constant 0 : index
    %288 = vector.load %arg6[%c168_258, %c0_259] : memref<216x288xf32, #tpu.memory_space<vmem>>, vector<8x288xf32>
    tpu.vector_store %arg6[%c168_258, %c0_259], %287 {strides = array<i32>} : memref<216x288xf32, #tpu.memory_space<vmem>>, vector<8x288xf32>,
    %289 = vector.extract_strided_slice %280 {offsets = [0, 19], sizes = [8, 288], strides = [1, 1]} : vector<8x326xf32> to vector<8x288xf32>
    %c176_260 = arith.constant 176 : index
    %c0_261 = arith.constant 0 : index
    %290 = vector.load %arg6[%c176_260, %c0_261] : memref<216x288xf32, #tpu.memory_space<vmem>>, vector<8x288xf32>
    tpu.vector_store %arg6[%c176_260, %c0_261], %289 {strides = array<i32>} : memref<216x288xf32, #tpu.memory_space<vmem>>, vector<8x288xf32>,
    %291 = vector.extract_strided_slice %280 {offsets = [0, 20], sizes = [8, 288], strides = [1, 1]} : vector<8x326xf32> to vector<8x288xf32>
    %c184_262 = arith.constant 184 : index
    %c0_263 = arith.constant 0 : index
    %292 = vector.load %arg6[%c184_262, %c0_263] : memref<216x288xf32, #tpu.memory_space<vmem>>, vector<8x288xf32>
    tpu.vector_store %arg6[%c184_262, %c0_263], %291 {strides = array<i32>} : memref<216x288xf32, #tpu.memory_space<vmem>>, vector<8x288xf32>,
    %293 = vector.extract_strided_slice %280 {offsets = [0, 36], sizes = [8, 288], strides = [1, 1]} : vector<8x326xf32> to vector<8x288xf32>
    %c192_264 = arith.constant 192 : index
    %c0_265 = arith.constant 0 : index
    %294 = vector.load %arg6[%c192_264, %c0_265] : memref<216x288xf32, #tpu.memory_space<vmem>>, vector<8x288xf32>
    tpu.vector_store %arg6[%c192_264, %c0_265], %293 {strides = array<i32>} : memref<216x288xf32, #tpu.memory_space<vmem>>, vector<8x288xf32>,
    %295 = vector.extract_strided_slice %280 {offsets = [0, 37], sizes = [8, 288], strides = [1, 1]} : vector<8x326xf32> to vector<8x288xf32>
    %c200_266 = arith.constant 200 : index
    %c0_267 = arith.constant 0 : index
    %296 = vector.load %arg6[%c200_266, %c0_267] : memref<216x288xf32, #tpu.memory_space<vmem>>, vector<8x288xf32>
    tpu.vector_store %arg6[%c200_266, %c0_267], %295 {strides = array<i32>} : memref<216x288xf32, #tpu.memory_space<vmem>>, vector<8x288xf32>,
    %297 = vector.extract_strided_slice %280 {offsets = [0, 38], sizes = [8, 288], strides = [1, 1]} : vector<8x326xf32> to vector<8x288xf32>
    %c208_268 = arith.constant 208 : index
    %c0_269 = arith.constant 0 : index
    %298 = vector.load %arg6[%c208_268, %c0_269] : memref<216x288xf32, #tpu.memory_space<vmem>>, vector<8x288xf32>
    tpu.vector_store %arg6[%c208_268, %c0_269], %297 {strides = array<i32>} : memref<216x288xf32, #tpu.memory_space<vmem>>, vector<8x288xf32>,
    %c0_270 = arith.constant 0 : index
    %c0_271 = arith.constant 0 : index
    %299 = vector.load %arg3[%c0_270, %c0_271] : memref<8x216xf32, #tpu.memory_space<vmem>>, vector<8x216xf32>
    %c0_272 = arith.constant 0 : index
    %c0_273 = arith.constant 0 : index
    %300 = vector.load %arg6[%c0_272, %c0_273] : memref<216x288xf32, #tpu.memory_space<vmem>>, vector<216x288xf32>
    %cst_274 = arith.constant dense<0.000000e+00> : vector<8x288xf32>
    %301 = tpu.matmul %299, %300, %cst_274 {dimension_numbers = #tpu.dot_dimension_numbers<[1], [0], [0], [1], [0, 0, 1, 1], [], []>} : vector<8x216xf32>, vector<216x288xf32>, vector<8x288xf32> -> vector<8x288xf32>
    %c0_275 = arith.constant 0 : index
    %c0_276 = arith.constant 0 : index
    %302 = vector.load %arg4[%c0_275, %c0_276] : memref<8x1xf32, #tpu.memory_space<vmem>>, vector<8x1xf32>
    %303 = vector.broadcast %302 : vector<8x1xf32> to vector<8x288xf32>
    %304 = arith.addf %301, %303 : vector<8x288xf32>
    %c0_277 = arith.constant 0 : index
    %c3 = arith.constant 3 : index
    %c0_278 = arith.constant 0 : index
    %c0_279 = arith.constant 0 : index
    %305 = vector.load %arg5[%c0_277, %c3, %c0_278, %c0_279] : memref<1x8x8x288xf32, #tpu.memory_space<vmem>>, vector<1x1x8x288xf32>
    %306 = vector.shape_cast %305 : vector<1x1x8x288xf32> to vector<8x288xf32>
    %307 = vector.shape_cast %304 : vector<8x288xf32> to vector<1x1x8x288xf32>
    tpu.vector_store %arg5[%c0_277, %c3, %c0_278, %c0_279], %307 {strides = array<i32>} : memref<1x8x8x288xf32, #tpu.memory_space<vmem>>, vector<1x1x8x288xf32>,
    %c8_i32_280 = arith.constant 8 : i32
    %308 = arith.muli %arg1, %c8_i32_280 : i32
    %c4_i32 = arith.constant 4 : i32
    %309 = arith.addi %308, %c4_i32 : i32
    %c0_i32_281 = arith.constant 0 : i32
    %310 = arith.addi %309, %c0_i32_281 : i32
    %c0_282 = arith.constant 0 : index
    %311 = arith.index_cast %310 : i32 to index
    %c0_283 = arith.constant 0 : index
    %c0_284 = arith.constant 0 : index
    %312 = vector.load %arg2[%c0_282, %311, %c0_283, %c0_284] : memref<1x18x8x326xf32, #tpu.memory_space<vmem>>, vector<1x1x8x326xf32>
    %313 = vector.shape_cast %312 : vector<1x1x8x326xf32> to vector<8x326xf32>
    %314 = vector.extract_strided_slice %313 {offsets = [0, 0], sizes = [8, 288], strides = [1, 1]} : vector<8x326xf32> to vector<8x288xf32>
    %c0_285 = arith.constant 0 : index
    %c0_286 = arith.constant 0 : index
    %315 = vector.load %arg6[%c0_285, %c0_286] : memref<216x288xf32, #tpu.memory_space<vmem>>, vector<8x288xf32>
    tpu.vector_store %arg6[%c0_285, %c0_286], %314 {strides = array<i32>} : memref<216x288xf32, #tpu.memory_space<vmem>>, vector<8x288xf32>,
    %316 = vector.extract_strided_slice %313 {offsets = [0, 1], sizes = [8, 288], strides = [1, 1]} : vector<8x326xf32> to vector<8x288xf32>
    %c8_287 = arith.constant 8 : index
    %c0_288 = arith.constant 0 : index
    %317 = vector.load %arg6[%c8_287, %c0_288] : memref<216x288xf32, #tpu.memory_space<vmem>>, vector<8x288xf32>
    tpu.vector_store %arg6[%c8_287, %c0_288], %316 {strides = array<i32>} : memref<216x288xf32, #tpu.memory_space<vmem>>, vector<8x288xf32>,
    %318 = vector.extract_strided_slice %313 {offsets = [0, 2], sizes = [8, 288], strides = [1, 1]} : vector<8x326xf32> to vector<8x288xf32>
    %c16_289 = arith.constant 16 : index
    %c0_290 = arith.constant 0 : index
    %319 = vector.load %arg6[%c16_289, %c0_290] : memref<216x288xf32, #tpu.memory_space<vmem>>, vector<8x288xf32>
    tpu.vector_store %arg6[%c16_289, %c0_290], %318 {strides = array<i32>} : memref<216x288xf32, #tpu.memory_space<vmem>>, vector<8x288xf32>,
    %320 = vector.extract_strided_slice %313 {offsets = [0, 18], sizes = [8, 288], strides = [1, 1]} : vector<8x326xf32> to vector<8x288xf32>
    %c24_291 = arith.constant 24 : index
    %c0_292 = arith.constant 0 : index
    %321 = vector.load %arg6[%c24_291, %c0_292] : memref<216x288xf32, #tpu.memory_space<vmem>>, vector<8x288xf32>
    tpu.vector_store %arg6[%c24_291, %c0_292], %320 {strides = array<i32>} : memref<216x288xf32, #tpu.memory_space<vmem>>, vector<8x288xf32>,
    %322 = vector.extract_strided_slice %313 {offsets = [0, 19], sizes = [8, 288], strides = [1, 1]} : vector<8x326xf32> to vector<8x288xf32>
    %c32_293 = arith.constant 32 : index
    %c0_294 = arith.constant 0 : index
    %323 = vector.load %arg6[%c32_293, %c0_294] : memref<216x288xf32, #tpu.memory_space<vmem>>, vector<8x288xf32>
    tpu.vector_store %arg6[%c32_293, %c0_294], %322 {strides = array<i32>} : memref<216x288xf32, #tpu.memory_space<vmem>>, vector<8x288xf32>,
    %324 = vector.extract_strided_slice %313 {offsets = [0, 20], sizes = [8, 288], strides = [1, 1]} : vector<8x326xf32> to vector<8x288xf32>
    %c40_295 = arith.constant 40 : index
    %c0_296 = arith.constant 0 : index
    %325 = vector.load %arg6[%c40_295, %c0_296] : memref<216x288xf32, #tpu.memory_space<vmem>>, vector<8x288xf32>
    tpu.vector_store %arg6[%c40_295, %c0_296], %324 {strides = array<i32>} : memref<216x288xf32, #tpu.memory_space<vmem>>, vector<8x288xf32>,
    %326 = vector.extract_strided_slice %313 {offsets = [0, 36], sizes = [8, 288], strides = [1, 1]} : vector<8x326xf32> to vector<8x288xf32>
    %c48_297 = arith.constant 48 : index
    %c0_298 = arith.constant 0 : index
    %327 = vector.load %arg6[%c48_297, %c0_298] : memref<216x288xf32, #tpu.memory_space<vmem>>, vector<8x288xf32>
    tpu.vector_store %arg6[%c48_297, %c0_298], %326 {strides = array<i32>} : memref<216x288xf32, #tpu.memory_space<vmem>>, vector<8x288xf32>,
    %328 = vector.extract_strided_slice %313 {offsets = [0, 37], sizes = [8, 288], strides = [1, 1]} : vector<8x326xf32> to vector<8x288xf32>
    %c56_299 = arith.constant 56 : index
    %c0_300 = arith.constant 0 : index
    %329 = vector.load %arg6[%c56_299, %c0_300] : memref<216x288xf32, #tpu.memory_space<vmem>>, vector<8x288xf32>
    tpu.vector_store %arg6[%c56_299, %c0_300], %328 {strides = array<i32>} : memref<216x288xf32, #tpu.memory_space<vmem>>, vector<8x288xf32>,
    %330 = vector.extract_strided_slice %313 {offsets = [0, 38], sizes = [8, 288], strides = [1, 1]} : vector<8x326xf32> to vector<8x288xf32>
    %c64_301 = arith.constant 64 : index
    %c0_302 = arith.constant 0 : index
    %331 = vector.load %arg6[%c64_301, %c0_302] : memref<216x288xf32, #tpu.memory_space<vmem>>, vector<8x288xf32>
    tpu.vector_store %arg6[%c64_301, %c0_302], %330 {strides = array<i32>} : memref<216x288xf32, #tpu.memory_space<vmem>>, vector<8x288xf32>,
    %c1_i32_303 = arith.constant 1 : i32
    %332 = arith.addi %309, %c1_i32_303 : i32
    %c0_304 = arith.constant 0 : index
    %333 = arith.index_cast %332 : i32 to index
    %c0_305 = arith.constant 0 : index
    %c0_306 = arith.constant 0 : index
    %334 = vector.load %arg2[%c0_304, %333, %c0_305, %c0_306] : memref<1x18x8x326xf32, #tpu.memory_space<vmem>>, vector<1x1x8x326xf32>
    %335 = vector.shape_cast %334 : vector<1x1x8x326xf32> to vector<8x326xf32>
    %336 = vector.extract_strided_slice %335 {offsets = [0, 0], sizes = [8, 288], strides = [1, 1]} : vector<8x326xf32> to vector<8x288xf32>
    %c72_307 = arith.constant 72 : index
    %c0_308 = arith.constant 0 : index
    %337 = vector.load %arg6[%c72_307, %c0_308] : memref<216x288xf32, #tpu.memory_space<vmem>>, vector<8x288xf32>
    tpu.vector_store %arg6[%c72_307, %c0_308], %336 {strides = array<i32>} : memref<216x288xf32, #tpu.memory_space<vmem>>, vector<8x288xf32>,
    %338 = vector.extract_strided_slice %335 {offsets = [0, 1], sizes = [8, 288], strides = [1, 1]} : vector<8x326xf32> to vector<8x288xf32>
    %c80_309 = arith.constant 80 : index
    %c0_310 = arith.constant 0 : index
    %339 = vector.load %arg6[%c80_309, %c0_310] : memref<216x288xf32, #tpu.memory_space<vmem>>, vector<8x288xf32>
    tpu.vector_store %arg6[%c80_309, %c0_310], %338 {strides = array<i32>} : memref<216x288xf32, #tpu.memory_space<vmem>>, vector<8x288xf32>,
    %340 = vector.extract_strided_slice %335 {offsets = [0, 2], sizes = [8, 288], strides = [1, 1]} : vector<8x326xf32> to vector<8x288xf32>
    %c88_311 = arith.constant 88 : index
    %c0_312 = arith.constant 0 : index
    %341 = vector.load %arg6[%c88_311, %c0_312] : memref<216x288xf32, #tpu.memory_space<vmem>>, vector<8x288xf32>
    tpu.vector_store %arg6[%c88_311, %c0_312], %340 {strides = array<i32>} : memref<216x288xf32, #tpu.memory_space<vmem>>, vector<8x288xf32>,
    %342 = vector.extract_strided_slice %335 {offsets = [0, 18], sizes = [8, 288], strides = [1, 1]} : vector<8x326xf32> to vector<8x288xf32>
    %c96_313 = arith.constant 96 : index
    %c0_314 = arith.constant 0 : index
    %343 = vector.load %arg6[%c96_313, %c0_314] : memref<216x288xf32, #tpu.memory_space<vmem>>, vector<8x288xf32>
    tpu.vector_store %arg6[%c96_313, %c0_314], %342 {strides = array<i32>} : memref<216x288xf32, #tpu.memory_space<vmem>>, vector<8x288xf32>,
    %344 = vector.extract_strided_slice %335 {offsets = [0, 19], sizes = [8, 288], strides = [1, 1]} : vector<8x326xf32> to vector<8x288xf32>
    %c104_315 = arith.constant 104 : index
    %c0_316 = arith.constant 0 : index
    %345 = vector.load %arg6[%c104_315, %c0_316] : memref<216x288xf32, #tpu.memory_space<vmem>>, vector<8x288xf32>
    tpu.vector_store %arg6[%c104_315, %c0_316], %344 {strides = array<i32>} : memref<216x288xf32, #tpu.memory_space<vmem>>, vector<8x288xf32>,
    %346 = vector.extract_strided_slice %335 {offsets = [0, 20], sizes = [8, 288], strides = [1, 1]} : vector<8x326xf32> to vector<8x288xf32>
    %c112_317 = arith.constant 112 : index
    %c0_318 = arith.constant 0 : index
    %347 = vector.load %arg6[%c112_317, %c0_318] : memref<216x288xf32, #tpu.memory_space<vmem>>, vector<8x288xf32>
    tpu.vector_store %arg6[%c112_317, %c0_318], %346 {strides = array<i32>} : memref<216x288xf32, #tpu.memory_space<vmem>>, vector<8x288xf32>,
    %348 = vector.extract_strided_slice %335 {offsets = [0, 36], sizes = [8, 288], strides = [1, 1]} : vector<8x326xf32> to vector<8x288xf32>
    %c120_319 = arith.constant 120 : index
    %c0_320 = arith.constant 0 : index
    %349 = vector.load %arg6[%c120_319, %c0_320] : memref<216x288xf32, #tpu.memory_space<vmem>>, vector<8x288xf32>
    tpu.vector_store %arg6[%c120_319, %c0_320], %348 {strides = array<i32>} : memref<216x288xf32, #tpu.memory_space<vmem>>, vector<8x288xf32>,
    %350 = vector.extract_strided_slice %335 {offsets = [0, 37], sizes = [8, 288], strides = [1, 1]} : vector<8x326xf32> to vector<8x288xf32>
    %c128_321 = arith.constant 128 : index
    %c0_322 = arith.constant 0 : index
    %351 = vector.load %arg6[%c128_321, %c0_322] : memref<216x288xf32, #tpu.memory_space<vmem>>, vector<8x288xf32>
    tpu.vector_store %arg6[%c128_321, %c0_322], %350 {strides = array<i32>} : memref<216x288xf32, #tpu.memory_space<vmem>>, vector<8x288xf32>,
    %352 = vector.extract_strided_slice %335 {offsets = [0, 38], sizes = [8, 288], strides = [1, 1]} : vector<8x326xf32> to vector<8x288xf32>
    %c136_323 = arith.constant 136 : index
    %c0_324 = arith.constant 0 : index
    %353 = vector.load %arg6[%c136_323, %c0_324] : memref<216x288xf32, #tpu.memory_space<vmem>>, vector<8x288xf32>
    tpu.vector_store %arg6[%c136_323, %c0_324], %352 {strides = array<i32>} : memref<216x288xf32, #tpu.memory_space<vmem>>, vector<8x288xf32>,
    %c2_i32_325 = arith.constant 2 : i32
    %354 = arith.addi %309, %c2_i32_325 : i32
    %c0_326 = arith.constant 0 : index
    %355 = arith.index_cast %354 : i32 to index
    %c0_327 = arith.constant 0 : index
    %c0_328 = arith.constant 0 : index
    %356 = vector.load %arg2[%c0_326, %355, %c0_327, %c0_328] : memref<1x18x8x326xf32, #tpu.memory_space<vmem>>, vector<1x1x8x326xf32>
    %357 = vector.shape_cast %356 : vector<1x1x8x326xf32> to vector<8x326xf32>
    %358 = vector.extract_strided_slice %357 {offsets = [0, 0], sizes = [8, 288], strides = [1, 1]} : vector<8x326xf32> to vector<8x288xf32>
    %c144_329 = arith.constant 144 : index
    %c0_330 = arith.constant 0 : index
    %359 = vector.load %arg6[%c144_329, %c0_330] : memref<216x288xf32, #tpu.memory_space<vmem>>, vector<8x288xf32>
    tpu.vector_store %arg6[%c144_329, %c0_330], %358 {strides = array<i32>} : memref<216x288xf32, #tpu.memory_space<vmem>>, vector<8x288xf32>,
    %360 = vector.extract_strided_slice %357 {offsets = [0, 1], sizes = [8, 288], strides = [1, 1]} : vector<8x326xf32> to vector<8x288xf32>
    %c152_331 = arith.constant 152 : index
    %c0_332 = arith.constant 0 : index
    %361 = vector.load %arg6[%c152_331, %c0_332] : memref<216x288xf32, #tpu.memory_space<vmem>>, vector<8x288xf32>
    tpu.vector_store %arg6[%c152_331, %c0_332], %360 {strides = array<i32>} : memref<216x288xf32, #tpu.memory_space<vmem>>, vector<8x288xf32>,
    %362 = vector.extract_strided_slice %357 {offsets = [0, 2], sizes = [8, 288], strides = [1, 1]} : vector<8x326xf32> to vector<8x288xf32>
    %c160_333 = arith.constant 160 : index
    %c0_334 = arith.constant 0 : index
    %363 = vector.load %arg6[%c160_333, %c0_334] : memref<216x288xf32, #tpu.memory_space<vmem>>, vector<8x288xf32>
    tpu.vector_store %arg6[%c160_333, %c0_334], %362 {strides = array<i32>} : memref<216x288xf32, #tpu.memory_space<vmem>>, vector<8x288xf32>,
    %364 = vector.extract_strided_slice %357 {offsets = [0, 18], sizes = [8, 288], strides = [1, 1]} : vector<8x326xf32> to vector<8x288xf32>
    %c168_335 = arith.constant 168 : index
    %c0_336 = arith.constant 0 : index
    %365 = vector.load %arg6[%c168_335, %c0_336] : memref<216x288xf32, #tpu.memory_space<vmem>>, vector<8x288xf32>
    tpu.vector_store %arg6[%c168_335, %c0_336], %364 {strides = array<i32>} : memref<216x288xf32, #tpu.memory_space<vmem>>, vector<8x288xf32>,
    %366 = vector.extract_strided_slice %357 {offsets = [0, 19], sizes = [8, 288], strides = [1, 1]} : vector<8x326xf32> to vector<8x288xf32>
    %c176_337 = arith.constant 176 : index
    %c0_338 = arith.constant 0 : index
    %367 = vector.load %arg6[%c176_337, %c0_338] : memref<216x288xf32, #tpu.memory_space<vmem>>, vector<8x288xf32>
    tpu.vector_store %arg6[%c176_337, %c0_338], %366 {strides = array<i32>} : memref<216x288xf32, #tpu.memory_space<vmem>>, vector<8x288xf32>,
    %368 = vector.extract_strided_slice %357 {offsets = [0, 20], sizes = [8, 288], strides = [1, 1]} : vector<8x326xf32> to vector<8x288xf32>
    %c184_339 = arith.constant 184 : index
    %c0_340 = arith.constant 0 : index
    %369 = vector.load %arg6[%c184_339, %c0_340] : memref<216x288xf32, #tpu.memory_space<vmem>>, vector<8x288xf32>
    tpu.vector_store %arg6[%c184_339, %c0_340], %368 {strides = array<i32>} : memref<216x288xf32, #tpu.memory_space<vmem>>, vector<8x288xf32>,
    %370 = vector.extract_strided_slice %357 {offsets = [0, 36], sizes = [8, 288], strides = [1, 1]} : vector<8x326xf32> to vector<8x288xf32>
    %c192_341 = arith.constant 192 : index
    %c0_342 = arith.constant 0 : index
    %371 = vector.load %arg6[%c192_341, %c0_342] : memref<216x288xf32, #tpu.memory_space<vmem>>, vector<8x288xf32>
    tpu.vector_store %arg6[%c192_341, %c0_342], %370 {strides = array<i32>} : memref<216x288xf32, #tpu.memory_space<vmem>>, vector<8x288xf32>,
    %372 = vector.extract_strided_slice %357 {offsets = [0, 37], sizes = [8, 288], strides = [1, 1]} : vector<8x326xf32> to vector<8x288xf32>
    %c200_343 = arith.constant 200 : index
    %c0_344 = arith.constant 0 : index
    %373 = vector.load %arg6[%c200_343, %c0_344] : memref<216x288xf32, #tpu.memory_space<vmem>>, vector<8x288xf32>
    tpu.vector_store %arg6[%c200_343, %c0_344], %372 {strides = array<i32>} : memref<216x288xf32, #tpu.memory_space<vmem>>, vector<8x288xf32>,
    %374 = vector.extract_strided_slice %357 {offsets = [0, 38], sizes = [8, 288], strides = [1, 1]} : vector<8x326xf32> to vector<8x288xf32>
    %c208_345 = arith.constant 208 : index
    %c0_346 = arith.constant 0 : index
    %375 = vector.load %arg6[%c208_345, %c0_346] : memref<216x288xf32, #tpu.memory_space<vmem>>, vector<8x288xf32>
    tpu.vector_store %arg6[%c208_345, %c0_346], %374 {strides = array<i32>} : memref<216x288xf32, #tpu.memory_space<vmem>>, vector<8x288xf32>,
    %c0_347 = arith.constant 0 : index
    %c0_348 = arith.constant 0 : index
    %376 = vector.load %arg3[%c0_347, %c0_348] : memref<8x216xf32, #tpu.memory_space<vmem>>, vector<8x216xf32>
    %c0_349 = arith.constant 0 : index
    %c0_350 = arith.constant 0 : index
    %377 = vector.load %arg6[%c0_349, %c0_350] : memref<216x288xf32, #tpu.memory_space<vmem>>, vector<216x288xf32>
    %cst_351 = arith.constant dense<0.000000e+00> : vector<8x288xf32>
    %378 = tpu.matmul %376, %377, %cst_351 {dimension_numbers = #tpu.dot_dimension_numbers<[1], [0], [0], [1], [0, 0, 1, 1], [], []>} : vector<8x216xf32>, vector<216x288xf32>, vector<8x288xf32> -> vector<8x288xf32>
    %c0_352 = arith.constant 0 : index
    %c0_353 = arith.constant 0 : index
    %379 = vector.load %arg4[%c0_352, %c0_353] : memref<8x1xf32, #tpu.memory_space<vmem>>, vector<8x1xf32>
    %380 = vector.broadcast %379 : vector<8x1xf32> to vector<8x288xf32>
    %381 = arith.addf %378, %380 : vector<8x288xf32>
    %c0_354 = arith.constant 0 : index
    %c4 = arith.constant 4 : index
    %c0_355 = arith.constant 0 : index
    %c0_356 = arith.constant 0 : index
    %382 = vector.load %arg5[%c0_354, %c4, %c0_355, %c0_356] : memref<1x8x8x288xf32, #tpu.memory_space<vmem>>, vector<1x1x8x288xf32>
    %383 = vector.shape_cast %382 : vector<1x1x8x288xf32> to vector<8x288xf32>
    %384 = vector.shape_cast %381 : vector<8x288xf32> to vector<1x1x8x288xf32>
    tpu.vector_store %arg5[%c0_354, %c4, %c0_355, %c0_356], %384 {strides = array<i32>} : memref<1x8x8x288xf32, #tpu.memory_space<vmem>>, vector<1x1x8x288xf32>,
    %c8_i32_357 = arith.constant 8 : i32
    %385 = arith.muli %arg1, %c8_i32_357 : i32
    %c5_i32 = arith.constant 5 : i32
    %386 = arith.addi %385, %c5_i32 : i32
    %c0_i32_358 = arith.constant 0 : i32
    %387 = arith.addi %386, %c0_i32_358 : i32
    %c0_359 = arith.constant 0 : index
    %388 = arith.index_cast %387 : i32 to index
    %c0_360 = arith.constant 0 : index
    %c0_361 = arith.constant 0 : index
    %389 = vector.load %arg2[%c0_359, %388, %c0_360, %c0_361] : memref<1x18x8x326xf32, #tpu.memory_space<vmem>>, vector<1x1x8x326xf32>
    %390 = vector.shape_cast %389 : vector<1x1x8x326xf32> to vector<8x326xf32>
    %391 = vector.extract_strided_slice %390 {offsets = [0, 0], sizes = [8, 288], strides = [1, 1]} : vector<8x326xf32> to vector<8x288xf32>
    %c0_362 = arith.constant 0 : index
    %c0_363 = arith.constant 0 : index
    %392 = vector.load %arg6[%c0_362, %c0_363] : memref<216x288xf32, #tpu.memory_space<vmem>>, vector<8x288xf32>
    tpu.vector_store %arg6[%c0_362, %c0_363], %391 {strides = array<i32>} : memref<216x288xf32, #tpu.memory_space<vmem>>, vector<8x288xf32>,
    %393 = vector.extract_strided_slice %390 {offsets = [0, 1], sizes = [8, 288], strides = [1, 1]} : vector<8x326xf32> to vector<8x288xf32>
    %c8_364 = arith.constant 8 : index
    %c0_365 = arith.constant 0 : index
    %394 = vector.load %arg6[%c8_364, %c0_365] : memref<216x288xf32, #tpu.memory_space<vmem>>, vector<8x288xf32>
    tpu.vector_store %arg6[%c8_364, %c0_365], %393 {strides = array<i32>} : memref<216x288xf32, #tpu.memory_space<vmem>>, vector<8x288xf32>,
    %395 = vector.extract_strided_slice %390 {offsets = [0, 2], sizes = [8, 288], strides = [1, 1]} : vector<8x326xf32> to vector<8x288xf32>
    %c16_366 = arith.constant 16 : index
    %c0_367 = arith.constant 0 : index
    %396 = vector.load %arg6[%c16_366, %c0_367] : memref<216x288xf32, #tpu.memory_space<vmem>>, vector<8x288xf32>
    tpu.vector_store %arg6[%c16_366, %c0_367], %395 {strides = array<i32>} : memref<216x288xf32, #tpu.memory_space<vmem>>, vector<8x288xf32>,
    %397 = vector.extract_strided_slice %390 {offsets = [0, 18], sizes = [8, 288], strides = [1, 1]} : vector<8x326xf32> to vector<8x288xf32>
    %c24_368 = arith.constant 24 : index
    %c0_369 = arith.constant 0 : index
    %398 = vector.load %arg6[%c24_368, %c0_369] : memref<216x288xf32, #tpu.memory_space<vmem>>, vector<8x288xf32>
    tpu.vector_store %arg6[%c24_368, %c0_369], %397 {strides = array<i32>} : memref<216x288xf32, #tpu.memory_space<vmem>>, vector<8x288xf32>,
    %399 = vector.extract_strided_slice %390 {offsets = [0, 19], sizes = [8, 288], strides = [1, 1]} : vector<8x326xf32> to vector<8x288xf32>
    %c32_370 = arith.constant 32 : index
    %c0_371 = arith.constant 0 : index
    %400 = vector.load %arg6[%c32_370, %c0_371] : memref<216x288xf32, #tpu.memory_space<vmem>>, vector<8x288xf32>
    tpu.vector_store %arg6[%c32_370, %c0_371], %399 {strides = array<i32>} : memref<216x288xf32, #tpu.memory_space<vmem>>, vector<8x288xf32>,
    %401 = vector.extract_strided_slice %390 {offsets = [0, 20], sizes = [8, 288], strides = [1, 1]} : vector<8x326xf32> to vector<8x288xf32>
    %c40_372 = arith.constant 40 : index
    %c0_373 = arith.constant 0 : index
    %402 = vector.load %arg6[%c40_372, %c0_373] : memref<216x288xf32, #tpu.memory_space<vmem>>, vector<8x288xf32>
    tpu.vector_store %arg6[%c40_372, %c0_373], %401 {strides = array<i32>} : memref<216x288xf32, #tpu.memory_space<vmem>>, vector<8x288xf32>,
    %403 = vector.extract_strided_slice %390 {offsets = [0, 36], sizes = [8, 288], strides = [1, 1]} : vector<8x326xf32> to vector<8x288xf32>
    %c48_374 = arith.constant 48 : index
    %c0_375 = arith.constant 0 : index
    %404 = vector.load %arg6[%c48_374, %c0_375] : memref<216x288xf32, #tpu.memory_space<vmem>>, vector<8x288xf32>
    tpu.vector_store %arg6[%c48_374, %c0_375], %403 {strides = array<i32>} : memref<216x288xf32, #tpu.memory_space<vmem>>, vector<8x288xf32>,
    %405 = vector.extract_strided_slice %390 {offsets = [0, 37], sizes = [8, 288], strides = [1, 1]} : vector<8x326xf32> to vector<8x288xf32>
    %c56_376 = arith.constant 56 : index
    %c0_377 = arith.constant 0 : index
    %406 = vector.load %arg6[%c56_376, %c0_377] : memref<216x288xf32, #tpu.memory_space<vmem>>, vector<8x288xf32>
    tpu.vector_store %arg6[%c56_376, %c0_377], %405 {strides = array<i32>} : memref<216x288xf32, #tpu.memory_space<vmem>>, vector<8x288xf32>,
    %407 = vector.extract_strided_slice %390 {offsets = [0, 38], sizes = [8, 288], strides = [1, 1]} : vector<8x326xf32> to vector<8x288xf32>
    %c64_378 = arith.constant 64 : index
    %c0_379 = arith.constant 0 : index
    %408 = vector.load %arg6[%c64_378, %c0_379] : memref<216x288xf32, #tpu.memory_space<vmem>>, vector<8x288xf32>
    tpu.vector_store %arg6[%c64_378, %c0_379], %407 {strides = array<i32>} : memref<216x288xf32, #tpu.memory_space<vmem>>, vector<8x288xf32>,
    %c1_i32_380 = arith.constant 1 : i32
    %409 = arith.addi %386, %c1_i32_380 : i32
    %c0_381 = arith.constant 0 : index
    %410 = arith.index_cast %409 : i32 to index
    %c0_382 = arith.constant 0 : index
    %c0_383 = arith.constant 0 : index
    %411 = vector.load %arg2[%c0_381, %410, %c0_382, %c0_383] : memref<1x18x8x326xf32, #tpu.memory_space<vmem>>, vector<1x1x8x326xf32>
    %412 = vector.shape_cast %411 : vector<1x1x8x326xf32> to vector<8x326xf32>
    %413 = vector.extract_strided_slice %412 {offsets = [0, 0], sizes = [8, 288], strides = [1, 1]} : vector<8x326xf32> to vector<8x288xf32>
    %c72_384 = arith.constant 72 : index
    %c0_385 = arith.constant 0 : index
    %414 = vector.load %arg6[%c72_384, %c0_385] : memref<216x288xf32, #tpu.memory_space<vmem>>, vector<8x288xf32>
    tpu.vector_store %arg6[%c72_384, %c0_385], %413 {strides = array<i32>} : memref<216x288xf32, #tpu.memory_space<vmem>>, vector<8x288xf32>,
    %415 = vector.extract_strided_slice %412 {offsets = [0, 1], sizes = [8, 288], strides = [1, 1]} : vector<8x326xf32> to vector<8x288xf32>
    %c80_386 = arith.constant 80 : index
    %c0_387 = arith.constant 0 : index
    %416 = vector.load %arg6[%c80_386, %c0_387] : memref<216x288xf32, #tpu.memory_space<vmem>>, vector<8x288xf32>
    tpu.vector_store %arg6[%c80_386, %c0_387], %415 {strides = array<i32>} : memref<216x288xf32, #tpu.memory_space<vmem>>, vector<8x288xf32>,
    %417 = vector.extract_strided_slice %412 {offsets = [0, 2], sizes = [8, 288], strides = [1, 1]} : vector<8x326xf32> to vector<8x288xf32>
    %c88_388 = arith.constant 88 : index
    %c0_389 = arith.constant 0 : index
    %418 = vector.load %arg6[%c88_388, %c0_389] : memref<216x288xf32, #tpu.memory_space<vmem>>, vector<8x288xf32>
    tpu.vector_store %arg6[%c88_388, %c0_389], %417 {strides = array<i32>} : memref<216x288xf32, #tpu.memory_space<vmem>>, vector<8x288xf32>,
    %419 = vector.extract_strided_slice %412 {offsets = [0, 18], sizes = [8, 288], strides = [1, 1]} : vector<8x326xf32> to vector<8x288xf32>
    %c96_390 = arith.constant 96 : index
    %c0_391 = arith.constant 0 : index
    %420 = vector.load %arg6[%c96_390, %c0_391] : memref<216x288xf32, #tpu.memory_space<vmem>>, vector<8x288xf32>
    tpu.vector_store %arg6[%c96_390, %c0_391], %419 {strides = array<i32>} : memref<216x288xf32, #tpu.memory_space<vmem>>, vector<8x288xf32>,
    %421 = vector.extract_strided_slice %412 {offsets = [0, 19], sizes = [8, 288], strides = [1, 1]} : vector<8x326xf32> to vector<8x288xf32>
    %c104_392 = arith.constant 104 : index
    %c0_393 = arith.constant 0 : index
    %422 = vector.load %arg6[%c104_392, %c0_393] : memref<216x288xf32, #tpu.memory_space<vmem>>, vector<8x288xf32>
    tpu.vector_store %arg6[%c104_392, %c0_393], %421 {strides = array<i32>} : memref<216x288xf32, #tpu.memory_space<vmem>>, vector<8x288xf32>,
    %423 = vector.extract_strided_slice %412 {offsets = [0, 20], sizes = [8, 288], strides = [1, 1]} : vector<8x326xf32> to vector<8x288xf32>
    %c112_394 = arith.constant 112 : index
    %c0_395 = arith.constant 0 : index
    %424 = vector.load %arg6[%c112_394, %c0_395] : memref<216x288xf32, #tpu.memory_space<vmem>>, vector<8x288xf32>
    tpu.vector_store %arg6[%c112_394, %c0_395], %423 {strides = array<i32>} : memref<216x288xf32, #tpu.memory_space<vmem>>, vector<8x288xf32>,
    %425 = vector.extract_strided_slice %412 {offsets = [0, 36], sizes = [8, 288], strides = [1, 1]} : vector<8x326xf32> to vector<8x288xf32>
    %c120_396 = arith.constant 120 : index
    %c0_397 = arith.constant 0 : index
    %426 = vector.load %arg6[%c120_396, %c0_397] : memref<216x288xf32, #tpu.memory_space<vmem>>, vector<8x288xf32>
    tpu.vector_store %arg6[%c120_396, %c0_397], %425 {strides = array<i32>} : memref<216x288xf32, #tpu.memory_space<vmem>>, vector<8x288xf32>,
    %427 = vector.extract_strided_slice %412 {offsets = [0, 37], sizes = [8, 288], strides = [1, 1]} : vector<8x326xf32> to vector<8x288xf32>
    %c128_398 = arith.constant 128 : index
    %c0_399 = arith.constant 0 : index
    %428 = vector.load %arg6[%c128_398, %c0_399] : memref<216x288xf32, #tpu.memory_space<vmem>>, vector<8x288xf32>
    tpu.vector_store %arg6[%c128_398, %c0_399], %427 {strides = array<i32>} : memref<216x288xf32, #tpu.memory_space<vmem>>, vector<8x288xf32>,
    %429 = vector.extract_strided_slice %412 {offsets = [0, 38], sizes = [8, 288], strides = [1, 1]} : vector<8x326xf32> to vector<8x288xf32>
    %c136_400 = arith.constant 136 : index
    %c0_401 = arith.constant 0 : index
    %430 = vector.load %arg6[%c136_400, %c0_401] : memref<216x288xf32, #tpu.memory_space<vmem>>, vector<8x288xf32>
    tpu.vector_store %arg6[%c136_400, %c0_401], %429 {strides = array<i32>} : memref<216x288xf32, #tpu.memory_space<vmem>>, vector<8x288xf32>,
    %c2_i32_402 = arith.constant 2 : i32
    %431 = arith.addi %386, %c2_i32_402 : i32
    %c0_403 = arith.constant 0 : index
    %432 = arith.index_cast %431 : i32 to index
    %c0_404 = arith.constant 0 : index
    %c0_405 = arith.constant 0 : index
    %433 = vector.load %arg2[%c0_403, %432, %c0_404, %c0_405] : memref<1x18x8x326xf32, #tpu.memory_space<vmem>>, vector<1x1x8x326xf32>
    %434 = vector.shape_cast %433 : vector<1x1x8x326xf32> to vector<8x326xf32>
    %435 = vector.extract_strided_slice %434 {offsets = [0, 0], sizes = [8, 288], strides = [1, 1]} : vector<8x326xf32> to vector<8x288xf32>
    %c144_406 = arith.constant 144 : index
    %c0_407 = arith.constant 0 : index
    %436 = vector.load %arg6[%c144_406, %c0_407] : memref<216x288xf32, #tpu.memory_space<vmem>>, vector<8x288xf32>
    tpu.vector_store %arg6[%c144_406, %c0_407], %435 {strides = array<i32>} : memref<216x288xf32, #tpu.memory_space<vmem>>, vector<8x288xf32>,
    %437 = vector.extract_strided_slice %434 {offsets = [0, 1], sizes = [8, 288], strides = [1, 1]} : vector<8x326xf32> to vector<8x288xf32>
    %c152_408 = arith.constant 152 : index
    %c0_409 = arith.constant 0 : index
    %438 = vector.load %arg6[%c152_408, %c0_409] : memref<216x288xf32, #tpu.memory_space<vmem>>, vector<8x288xf32>
    tpu.vector_store %arg6[%c152_408, %c0_409], %437 {strides = array<i32>} : memref<216x288xf32, #tpu.memory_space<vmem>>, vector<8x288xf32>,
    %439 = vector.extract_strided_slice %434 {offsets = [0, 2], sizes = [8, 288], strides = [1, 1]} : vector<8x326xf32> to vector<8x288xf32>
    %c160_410 = arith.constant 160 : index
    %c0_411 = arith.constant 0 : index
    %440 = vector.load %arg6[%c160_410, %c0_411] : memref<216x288xf32, #tpu.memory_space<vmem>>, vector<8x288xf32>
    tpu.vector_store %arg6[%c160_410, %c0_411], %439 {strides = array<i32>} : memref<216x288xf32, #tpu.memory_space<vmem>>, vector<8x288xf32>,
    %441 = vector.extract_strided_slice %434 {offsets = [0, 18], sizes = [8, 288], strides = [1, 1]} : vector<8x326xf32> to vector<8x288xf32>
    %c168_412 = arith.constant 168 : index
    %c0_413 = arith.constant 0 : index
    %442 = vector.load %arg6[%c168_412, %c0_413] : memref<216x288xf32, #tpu.memory_space<vmem>>, vector<8x288xf32>
    tpu.vector_store %arg6[%c168_412, %c0_413], %441 {strides = array<i32>} : memref<216x288xf32, #tpu.memory_space<vmem>>, vector<8x288xf32>,
    %443 = vector.extract_strided_slice %434 {offsets = [0, 19], sizes = [8, 288], strides = [1, 1]} : vector<8x326xf32> to vector<8x288xf32>
    %c176_414 = arith.constant 176 : index
    %c0_415 = arith.constant 0 : index
    %444 = vector.load %arg6[%c176_414, %c0_415] : memref<216x288xf32, #tpu.memory_space<vmem>>, vector<8x288xf32>
    tpu.vector_store %arg6[%c176_414, %c0_415], %443 {strides = array<i32>} : memref<216x288xf32, #tpu.memory_space<vmem>>, vector<8x288xf32>,
    %445 = vector.extract_strided_slice %434 {offsets = [0, 20], sizes = [8, 288], strides = [1, 1]} : vector<8x326xf32> to vector<8x288xf32>
    %c184_416 = arith.constant 184 : index
    %c0_417 = arith.constant 0 : index
    %446 = vector.load %arg6[%c184_416, %c0_417] : memref<216x288xf32, #tpu.memory_space<vmem>>, vector<8x288xf32>
    tpu.vector_store %arg6[%c184_416, %c0_417], %445 {strides = array<i32>} : memref<216x288xf32, #tpu.memory_space<vmem>>, vector<8x288xf32>,
    %447 = vector.extract_strided_slice %434 {offsets = [0, 36], sizes = [8, 288], strides = [1, 1]} : vector<8x326xf32> to vector<8x288xf32>
    %c192_418 = arith.constant 192 : index
    %c0_419 = arith.constant 0 : index
    %448 = vector.load %arg6[%c192_418, %c0_419] : memref<216x288xf32, #tpu.memory_space<vmem>>, vector<8x288xf32>
    tpu.vector_store %arg6[%c192_418, %c0_419], %447 {strides = array<i32>} : memref<216x288xf32, #tpu.memory_space<vmem>>, vector<8x288xf32>,
    %449 = vector.extract_strided_slice %434 {offsets = [0, 37], sizes = [8, 288], strides = [1, 1]} : vector<8x326xf32> to vector<8x288xf32>
    %c200_420 = arith.constant 200 : index
    %c0_421 = arith.constant 0 : index
    %450 = vector.load %arg6[%c200_420, %c0_421] : memref<216x288xf32, #tpu.memory_space<vmem>>, vector<8x288xf32>
    tpu.vector_store %arg6[%c200_420, %c0_421], %449 {strides = array<i32>} : memref<216x288xf32, #tpu.memory_space<vmem>>, vector<8x288xf32>,
    %451 = vector.extract_strided_slice %434 {offsets = [0, 38], sizes = [8, 288], strides = [1, 1]} : vector<8x326xf32> to vector<8x288xf32>
    %c208_422 = arith.constant 208 : index
    %c0_423 = arith.constant 0 : index
    %452 = vector.load %arg6[%c208_422, %c0_423] : memref<216x288xf32, #tpu.memory_space<vmem>>, vector<8x288xf32>
    tpu.vector_store %arg6[%c208_422, %c0_423], %451 {strides = array<i32>} : memref<216x288xf32, #tpu.memory_space<vmem>>, vector<8x288xf32>,
    %c0_424 = arith.constant 0 : index
    %c0_425 = arith.constant 0 : index
    %453 = vector.load %arg3[%c0_424, %c0_425] : memref<8x216xf32, #tpu.memory_space<vmem>>, vector<8x216xf32>
    %c0_426 = arith.constant 0 : index
    %c0_427 = arith.constant 0 : index
    %454 = vector.load %arg6[%c0_426, %c0_427] : memref<216x288xf32, #tpu.memory_space<vmem>>, vector<216x288xf32>
    %cst_428 = arith.constant dense<0.000000e+00> : vector<8x288xf32>
    %455 = tpu.matmul %453, %454, %cst_428 {dimension_numbers = #tpu.dot_dimension_numbers<[1], [0], [0], [1], [0, 0, 1, 1], [], []>} : vector<8x216xf32>, vector<216x288xf32>, vector<8x288xf32> -> vector<8x288xf32>
    %c0_429 = arith.constant 0 : index
    %c0_430 = arith.constant 0 : index
    %456 = vector.load %arg4[%c0_429, %c0_430] : memref<8x1xf32, #tpu.memory_space<vmem>>, vector<8x1xf32>
    %457 = vector.broadcast %456 : vector<8x1xf32> to vector<8x288xf32>
    %458 = arith.addf %455, %457 : vector<8x288xf32>
    %c0_431 = arith.constant 0 : index
    %c5 = arith.constant 5 : index
    %c0_432 = arith.constant 0 : index
    %c0_433 = arith.constant 0 : index
    %459 = vector.load %arg5[%c0_431, %c5, %c0_432, %c0_433] : memref<1x8x8x288xf32, #tpu.memory_space<vmem>>, vector<1x1x8x288xf32>
    %460 = vector.shape_cast %459 : vector<1x1x8x288xf32> to vector<8x288xf32>
    %461 = vector.shape_cast %458 : vector<8x288xf32> to vector<1x1x8x288xf32>
    tpu.vector_store %arg5[%c0_431, %c5, %c0_432, %c0_433], %461 {strides = array<i32>} : memref<1x8x8x288xf32, #tpu.memory_space<vmem>>, vector<1x1x8x288xf32>,
    %c8_i32_434 = arith.constant 8 : i32
    %462 = arith.muli %arg1, %c8_i32_434 : i32
    %c6_i32 = arith.constant 6 : i32
    %463 = arith.addi %462, %c6_i32 : i32
    %c0_i32_435 = arith.constant 0 : i32
    %464 = arith.addi %463, %c0_i32_435 : i32
    %c0_436 = arith.constant 0 : index
    %465 = arith.index_cast %464 : i32 to index
    %c0_437 = arith.constant 0 : index
    %c0_438 = arith.constant 0 : index
    %466 = vector.load %arg2[%c0_436, %465, %c0_437, %c0_438] : memref<1x18x8x326xf32, #tpu.memory_space<vmem>>, vector<1x1x8x326xf32>
    %467 = vector.shape_cast %466 : vector<1x1x8x326xf32> to vector<8x326xf32>
    %468 = vector.extract_strided_slice %467 {offsets = [0, 0], sizes = [8, 288], strides = [1, 1]} : vector<8x326xf32> to vector<8x288xf32>
    %c0_439 = arith.constant 0 : index
    %c0_440 = arith.constant 0 : index
    %469 = vector.load %arg6[%c0_439, %c0_440] : memref<216x288xf32, #tpu.memory_space<vmem>>, vector<8x288xf32>
    tpu.vector_store %arg6[%c0_439, %c0_440], %468 {strides = array<i32>} : memref<216x288xf32, #tpu.memory_space<vmem>>, vector<8x288xf32>,
    %470 = vector.extract_strided_slice %467 {offsets = [0, 1], sizes = [8, 288], strides = [1, 1]} : vector<8x326xf32> to vector<8x288xf32>
    %c8_441 = arith.constant 8 : index
    %c0_442 = arith.constant 0 : index
    %471 = vector.load %arg6[%c8_441, %c0_442] : memref<216x288xf32, #tpu.memory_space<vmem>>, vector<8x288xf32>
    tpu.vector_store %arg6[%c8_441, %c0_442], %470 {strides = array<i32>} : memref<216x288xf32, #tpu.memory_space<vmem>>, vector<8x288xf32>,
    %472 = vector.extract_strided_slice %467 {offsets = [0, 2], sizes = [8, 288], strides = [1, 1]} : vector<8x326xf32> to vector<8x288xf32>
    %c16_443 = arith.constant 16 : index
    %c0_444 = arith.constant 0 : index
    %473 = vector.load %arg6[%c16_443, %c0_444] : memref<216x288xf32, #tpu.memory_space<vmem>>, vector<8x288xf32>
    tpu.vector_store %arg6[%c16_443, %c0_444], %472 {strides = array<i32>} : memref<216x288xf32, #tpu.memory_space<vmem>>, vector<8x288xf32>,
    %474 = vector.extract_strided_slice %467 {offsets = [0, 18], sizes = [8, 288], strides = [1, 1]} : vector<8x326xf32> to vector<8x288xf32>
    %c24_445 = arith.constant 24 : index
    %c0_446 = arith.constant 0 : index
    %475 = vector.load %arg6[%c24_445, %c0_446] : memref<216x288xf32, #tpu.memory_space<vmem>>, vector<8x288xf32>
    tpu.vector_store %arg6[%c24_445, %c0_446], %474 {strides = array<i32>} : memref<216x288xf32, #tpu.memory_space<vmem>>, vector<8x288xf32>,
    %476 = vector.extract_strided_slice %467 {offsets = [0, 19], sizes = [8, 288], strides = [1, 1]} : vector<8x326xf32> to vector<8x288xf32>
    %c32_447 = arith.constant 32 : index
    %c0_448 = arith.constant 0 : index
    %477 = vector.load %arg6[%c32_447, %c0_448] : memref<216x288xf32, #tpu.memory_space<vmem>>, vector<8x288xf32>
    tpu.vector_store %arg6[%c32_447, %c0_448], %476 {strides = array<i32>} : memref<216x288xf32, #tpu.memory_space<vmem>>, vector<8x288xf32>,
    %478 = vector.extract_strided_slice %467 {offsets = [0, 20], sizes = [8, 288], strides = [1, 1]} : vector<8x326xf32> to vector<8x288xf32>
    %c40_449 = arith.constant 40 : index
    %c0_450 = arith.constant 0 : index
    %479 = vector.load %arg6[%c40_449, %c0_450] : memref<216x288xf32, #tpu.memory_space<vmem>>, vector<8x288xf32>
    tpu.vector_store %arg6[%c40_449, %c0_450], %478 {strides = array<i32>} : memref<216x288xf32, #tpu.memory_space<vmem>>, vector<8x288xf32>,
    %480 = vector.extract_strided_slice %467 {offsets = [0, 36], sizes = [8, 288], strides = [1, 1]} : vector<8x326xf32> to vector<8x288xf32>
    %c48_451 = arith.constant 48 : index
    %c0_452 = arith.constant 0 : index
    %481 = vector.load %arg6[%c48_451, %c0_452] : memref<216x288xf32, #tpu.memory_space<vmem>>, vector<8x288xf32>
    tpu.vector_store %arg6[%c48_451, %c0_452], %480 {strides = array<i32>} : memref<216x288xf32, #tpu.memory_space<vmem>>, vector<8x288xf32>,
    %482 = vector.extract_strided_slice %467 {offsets = [0, 37], sizes = [8, 288], strides = [1, 1]} : vector<8x326xf32> to vector<8x288xf32>
    %c56_453 = arith.constant 56 : index
    %c0_454 = arith.constant 0 : index
    %483 = vector.load %arg6[%c56_453, %c0_454] : memref<216x288xf32, #tpu.memory_space<vmem>>, vector<8x288xf32>
    tpu.vector_store %arg6[%c56_453, %c0_454], %482 {strides = array<i32>} : memref<216x288xf32, #tpu.memory_space<vmem>>, vector<8x288xf32>,
    %484 = vector.extract_strided_slice %467 {offsets = [0, 38], sizes = [8, 288], strides = [1, 1]} : vector<8x326xf32> to vector<8x288xf32>
    %c64_455 = arith.constant 64 : index
    %c0_456 = arith.constant 0 : index
    %485 = vector.load %arg6[%c64_455, %c0_456] : memref<216x288xf32, #tpu.memory_space<vmem>>, vector<8x288xf32>
    tpu.vector_store %arg6[%c64_455, %c0_456], %484 {strides = array<i32>} : memref<216x288xf32, #tpu.memory_space<vmem>>, vector<8x288xf32>,
    %c1_i32_457 = arith.constant 1 : i32
    %486 = arith.addi %463, %c1_i32_457 : i32
    %c0_458 = arith.constant 0 : index
    %487 = arith.index_cast %486 : i32 to index
    %c0_459 = arith.constant 0 : index
    %c0_460 = arith.constant 0 : index
    %488 = vector.load %arg2[%c0_458, %487, %c0_459, %c0_460] : memref<1x18x8x326xf32, #tpu.memory_space<vmem>>, vector<1x1x8x326xf32>
    %489 = vector.shape_cast %488 : vector<1x1x8x326xf32> to vector<8x326xf32>
    %490 = vector.extract_strided_slice %489 {offsets = [0, 0], sizes = [8, 288], strides = [1, 1]} : vector<8x326xf32> to vector<8x288xf32>
    %c72_461 = arith.constant 72 : index
    %c0_462 = arith.constant 0 : index
    %491 = vector.load %arg6[%c72_461, %c0_462] : memref<216x288xf32, #tpu.memory_space<vmem>>, vector<8x288xf32>
    tpu.vector_store %arg6[%c72_461, %c0_462], %490 {strides = array<i32>} : memref<216x288xf32, #tpu.memory_space<vmem>>, vector<8x288xf32>,
    %492 = vector.extract_strided_slice %489 {offsets = [0, 1], sizes = [8, 288], strides = [1, 1]} : vector<8x326xf32> to vector<8x288xf32>
    %c80_463 = arith.constant 80 : index
    %c0_464 = arith.constant 0 : index
    %493 = vector.load %arg6[%c80_463, %c0_464] : memref<216x288xf32, #tpu.memory_space<vmem>>, vector<8x288xf32>
    tpu.vector_store %arg6[%c80_463, %c0_464], %492 {strides = array<i32>} : memref<216x288xf32, #tpu.memory_space<vmem>>, vector<8x288xf32>,
    %494 = vector.extract_strided_slice %489 {offsets = [0, 2], sizes = [8, 288], strides = [1, 1]} : vector<8x326xf32> to vector<8x288xf32>
    %c88_465 = arith.constant 88 : index
    %c0_466 = arith.constant 0 : index
    %495 = vector.load %arg6[%c88_465, %c0_466] : memref<216x288xf32, #tpu.memory_space<vmem>>, vector<8x288xf32>
    tpu.vector_store %arg6[%c88_465, %c0_466], %494 {strides = array<i32>} : memref<216x288xf32, #tpu.memory_space<vmem>>, vector<8x288xf32>,
    %496 = vector.extract_strided_slice %489 {offsets = [0, 18], sizes = [8, 288], strides = [1, 1]} : vector<8x326xf32> to vector<8x288xf32>
    %c96_467 = arith.constant 96 : index
    %c0_468 = arith.constant 0 : index
    %497 = vector.load %arg6[%c96_467, %c0_468] : memref<216x288xf32, #tpu.memory_space<vmem>>, vector<8x288xf32>
    tpu.vector_store %arg6[%c96_467, %c0_468], %496 {strides = array<i32>} : memref<216x288xf32, #tpu.memory_space<vmem>>, vector<8x288xf32>,
    %498 = vector.extract_strided_slice %489 {offsets = [0, 19], sizes = [8, 288], strides = [1, 1]} : vector<8x326xf32> to vector<8x288xf32>
    %c104_469 = arith.constant 104 : index
    %c0_470 = arith.constant 0 : index
    %499 = vector.load %arg6[%c104_469, %c0_470] : memref<216x288xf32, #tpu.memory_space<vmem>>, vector<8x288xf32>
    tpu.vector_store %arg6[%c104_469, %c0_470], %498 {strides = array<i32>} : memref<216x288xf32, #tpu.memory_space<vmem>>, vector<8x288xf32>,
    %500 = vector.extract_strided_slice %489 {offsets = [0, 20], sizes = [8, 288], strides = [1, 1]} : vector<8x326xf32> to vector<8x288xf32>
    %c112_471 = arith.constant 112 : index
    %c0_472 = arith.constant 0 : index
    %501 = vector.load %arg6[%c112_471, %c0_472] : memref<216x288xf32, #tpu.memory_space<vmem>>, vector<8x288xf32>
    tpu.vector_store %arg6[%c112_471, %c0_472], %500 {strides = array<i32>} : memref<216x288xf32, #tpu.memory_space<vmem>>, vector<8x288xf32>,
    %502 = vector.extract_strided_slice %489 {offsets = [0, 36], sizes = [8, 288], strides = [1, 1]} : vector<8x326xf32> to vector<8x288xf32>
    %c120_473 = arith.constant 120 : index
    %c0_474 = arith.constant 0 : index
    %503 = vector.load %arg6[%c120_473, %c0_474] : memref<216x288xf32, #tpu.memory_space<vmem>>, vector<8x288xf32>
    tpu.vector_store %arg6[%c120_473, %c0_474], %502 {strides = array<i32>} : memref<216x288xf32, #tpu.memory_space<vmem>>, vector<8x288xf32>,
    %504 = vector.extract_strided_slice %489 {offsets = [0, 37], sizes = [8, 288], strides = [1, 1]} : vector<8x326xf32> to vector<8x288xf32>
    %c128_475 = arith.constant 128 : index
    %c0_476 = arith.constant 0 : index
    %505 = vector.load %arg6[%c128_475, %c0_476] : memref<216x288xf32, #tpu.memory_space<vmem>>, vector<8x288xf32>
    tpu.vector_store %arg6[%c128_475, %c0_476], %504 {strides = array<i32>} : memref<216x288xf32, #tpu.memory_space<vmem>>, vector<8x288xf32>,
    %506 = vector.extract_strided_slice %489 {offsets = [0, 38], sizes = [8, 288], strides = [1, 1]} : vector<8x326xf32> to vector<8x288xf32>
    %c136_477 = arith.constant 136 : index
    %c0_478 = arith.constant 0 : index
    %507 = vector.load %arg6[%c136_477, %c0_478] : memref<216x288xf32, #tpu.memory_space<vmem>>, vector<8x288xf32>
    tpu.vector_store %arg6[%c136_477, %c0_478], %506 {strides = array<i32>} : memref<216x288xf32, #tpu.memory_space<vmem>>, vector<8x288xf32>,
    %c2_i32_479 = arith.constant 2 : i32
    %508 = arith.addi %463, %c2_i32_479 : i32
    %c0_480 = arith.constant 0 : index
    %509 = arith.index_cast %508 : i32 to index
    %c0_481 = arith.constant 0 : index
    %c0_482 = arith.constant 0 : index
    %510 = vector.load %arg2[%c0_480, %509, %c0_481, %c0_482] : memref<1x18x8x326xf32, #tpu.memory_space<vmem>>, vector<1x1x8x326xf32>
    %511 = vector.shape_cast %510 : vector<1x1x8x326xf32> to vector<8x326xf32>
    %512 = vector.extract_strided_slice %511 {offsets = [0, 0], sizes = [8, 288], strides = [1, 1]} : vector<8x326xf32> to vector<8x288xf32>
    %c144_483 = arith.constant 144 : index
    %c0_484 = arith.constant 0 : index
    %513 = vector.load %arg6[%c144_483, %c0_484] : memref<216x288xf32, #tpu.memory_space<vmem>>, vector<8x288xf32>
    tpu.vector_store %arg6[%c144_483, %c0_484], %512 {strides = array<i32>} : memref<216x288xf32, #tpu.memory_space<vmem>>, vector<8x288xf32>,
    %514 = vector.extract_strided_slice %511 {offsets = [0, 1], sizes = [8, 288], strides = [1, 1]} : vector<8x326xf32> to vector<8x288xf32>
    %c152_485 = arith.constant 152 : index
    %c0_486 = arith.constant 0 : index
    %515 = vector.load %arg6[%c152_485, %c0_486] : memref<216x288xf32, #tpu.memory_space<vmem>>, vector<8x288xf32>
    tpu.vector_store %arg6[%c152_485, %c0_486], %514 {strides = array<i32>} : memref<216x288xf32, #tpu.memory_space<vmem>>, vector<8x288xf32>,
    %516 = vector.extract_strided_slice %511 {offsets = [0, 2], sizes = [8, 288], strides = [1, 1]} : vector<8x326xf32> to vector<8x288xf32>
    %c160_487 = arith.constant 160 : index
    %c0_488 = arith.constant 0 : index
    %517 = vector.load %arg6[%c160_487, %c0_488] : memref<216x288xf32, #tpu.memory_space<vmem>>, vector<8x288xf32>
    tpu.vector_store %arg6[%c160_487, %c0_488], %516 {strides = array<i32>} : memref<216x288xf32, #tpu.memory_space<vmem>>, vector<8x288xf32>,
    %518 = vector.extract_strided_slice %511 {offsets = [0, 18], sizes = [8, 288], strides = [1, 1]} : vector<8x326xf32> to vector<8x288xf32>
    %c168_489 = arith.constant 168 : index
    %c0_490 = arith.constant 0 : index
    %519 = vector.load %arg6[%c168_489, %c0_490] : memref<216x288xf32, #tpu.memory_space<vmem>>, vector<8x288xf32>
    tpu.vector_store %arg6[%c168_489, %c0_490], %518 {strides = array<i32>} : memref<216x288xf32, #tpu.memory_space<vmem>>, vector<8x288xf32>,
    %520 = vector.extract_strided_slice %511 {offsets = [0, 19], sizes = [8, 288], strides = [1, 1]} : vector<8x326xf32> to vector<8x288xf32>
    %c176_491 = arith.constant 176 : index
    %c0_492 = arith.constant 0 : index
    %521 = vector.load %arg6[%c176_491, %c0_492] : memref<216x288xf32, #tpu.memory_space<vmem>>, vector<8x288xf32>
    tpu.vector_store %arg6[%c176_491, %c0_492], %520 {strides = array<i32>} : memref<216x288xf32, #tpu.memory_space<vmem>>, vector<8x288xf32>,
    %522 = vector.extract_strided_slice %511 {offsets = [0, 20], sizes = [8, 288], strides = [1, 1]} : vector<8x326xf32> to vector<8x288xf32>
    %c184_493 = arith.constant 184 : index
    %c0_494 = arith.constant 0 : index
    %523 = vector.load %arg6[%c184_493, %c0_494] : memref<216x288xf32, #tpu.memory_space<vmem>>, vector<8x288xf32>
    tpu.vector_store %arg6[%c184_493, %c0_494], %522 {strides = array<i32>} : memref<216x288xf32, #tpu.memory_space<vmem>>, vector<8x288xf32>,
    %524 = vector.extract_strided_slice %511 {offsets = [0, 36], sizes = [8, 288], strides = [1, 1]} : vector<8x326xf32> to vector<8x288xf32>
    %c192_495 = arith.constant 192 : index
    %c0_496 = arith.constant 0 : index
    %525 = vector.load %arg6[%c192_495, %c0_496] : memref<216x288xf32, #tpu.memory_space<vmem>>, vector<8x288xf32>
    tpu.vector_store %arg6[%c192_495, %c0_496], %524 {strides = array<i32>} : memref<216x288xf32, #tpu.memory_space<vmem>>, vector<8x288xf32>,
    %526 = vector.extract_strided_slice %511 {offsets = [0, 37], sizes = [8, 288], strides = [1, 1]} : vector<8x326xf32> to vector<8x288xf32>
    %c200_497 = arith.constant 200 : index
    %c0_498 = arith.constant 0 : index
    %527 = vector.load %arg6[%c200_497, %c0_498] : memref<216x288xf32, #tpu.memory_space<vmem>>, vector<8x288xf32>
    tpu.vector_store %arg6[%c200_497, %c0_498], %526 {strides = array<i32>} : memref<216x288xf32, #tpu.memory_space<vmem>>, vector<8x288xf32>,
    %528 = vector.extract_strided_slice %511 {offsets = [0, 38], sizes = [8, 288], strides = [1, 1]} : vector<8x326xf32> to vector<8x288xf32>
    %c208_499 = arith.constant 208 : index
    %c0_500 = arith.constant 0 : index
    %529 = vector.load %arg6[%c208_499, %c0_500] : memref<216x288xf32, #tpu.memory_space<vmem>>, vector<8x288xf32>
    tpu.vector_store %arg6[%c208_499, %c0_500], %528 {strides = array<i32>} : memref<216x288xf32, #tpu.memory_space<vmem>>, vector<8x288xf32>,
    %c0_501 = arith.constant 0 : index
    %c0_502 = arith.constant 0 : index
    %530 = vector.load %arg3[%c0_501, %c0_502] : memref<8x216xf32, #tpu.memory_space<vmem>>, vector<8x216xf32>
    %c0_503 = arith.constant 0 : index
    %c0_504 = arith.constant 0 : index
    %531 = vector.load %arg6[%c0_503, %c0_504] : memref<216x288xf32, #tpu.memory_space<vmem>>, vector<216x288xf32>
    %cst_505 = arith.constant dense<0.000000e+00> : vector<8x288xf32>
    %532 = tpu.matmul %530, %531, %cst_505 {dimension_numbers = #tpu.dot_dimension_numbers<[1], [0], [0], [1], [0, 0, 1, 1], [], []>} : vector<8x216xf32>, vector<216x288xf32>, vector<8x288xf32> -> vector<8x288xf32>
    %c0_506 = arith.constant 0 : index
    %c0_507 = arith.constant 0 : index
    %533 = vector.load %arg4[%c0_506, %c0_507] : memref<8x1xf32, #tpu.memory_space<vmem>>, vector<8x1xf32>
    %534 = vector.broadcast %533 : vector<8x1xf32> to vector<8x288xf32>
    %535 = arith.addf %532, %534 : vector<8x288xf32>
    %c0_508 = arith.constant 0 : index
    %c6 = arith.constant 6 : index
    %c0_509 = arith.constant 0 : index
    %c0_510 = arith.constant 0 : index
    %536 = vector.load %arg5[%c0_508, %c6, %c0_509, %c0_510] : memref<1x8x8x288xf32, #tpu.memory_space<vmem>>, vector<1x1x8x288xf32>
    %537 = vector.shape_cast %536 : vector<1x1x8x288xf32> to vector<8x288xf32>
    %538 = vector.shape_cast %535 : vector<8x288xf32> to vector<1x1x8x288xf32>
    tpu.vector_store %arg5[%c0_508, %c6, %c0_509, %c0_510], %538 {strides = array<i32>} : memref<1x8x8x288xf32, #tpu.memory_space<vmem>>, vector<1x1x8x288xf32>,
    %c8_i32_511 = arith.constant 8 : i32
    %539 = arith.muli %arg1, %c8_i32_511 : i32
    %c7_i32 = arith.constant 7 : i32
    %540 = arith.addi %539, %c7_i32 : i32
    %c0_i32_512 = arith.constant 0 : i32
    %541 = arith.addi %540, %c0_i32_512 : i32
    %c0_513 = arith.constant 0 : index
    %542 = arith.index_cast %541 : i32 to index
    %c0_514 = arith.constant 0 : index
    %c0_515 = arith.constant 0 : index
    %543 = vector.load %arg2[%c0_513, %542, %c0_514, %c0_515] : memref<1x18x8x326xf32, #tpu.memory_space<vmem>>, vector<1x1x8x326xf32>
    %544 = vector.shape_cast %543 : vector<1x1x8x326xf32> to vector<8x326xf32>
    %545 = vector.extract_strided_slice %544 {offsets = [0, 0], sizes = [8, 288], strides = [1, 1]} : vector<8x326xf32> to vector<8x288xf32>
    %c0_516 = arith.constant 0 : index
    %c0_517 = arith.constant 0 : index
    %546 = vector.load %arg6[%c0_516, %c0_517] : memref<216x288xf32, #tpu.memory_space<vmem>>, vector<8x288xf32>
    tpu.vector_store %arg6[%c0_516, %c0_517], %545 {strides = array<i32>} : memref<216x288xf32, #tpu.memory_space<vmem>>, vector<8x288xf32>,
    %547 = vector.extract_strided_slice %544 {offsets = [0, 1], sizes = [8, 288], strides = [1, 1]} : vector<8x326xf32> to vector<8x288xf32>
    %c8_518 = arith.constant 8 : index
    %c0_519 = arith.constant 0 : index
    %548 = vector.load %arg6[%c8_518, %c0_519] : memref<216x288xf32, #tpu.memory_space<vmem>>, vector<8x288xf32>
    tpu.vector_store %arg6[%c8_518, %c0_519], %547 {strides = array<i32>} : memref<216x288xf32, #tpu.memory_space<vmem>>, vector<8x288xf32>,
    %549 = vector.extract_strided_slice %544 {offsets = [0, 2], sizes = [8, 288], strides = [1, 1]} : vector<8x326xf32> to vector<8x288xf32>
    %c16_520 = arith.constant 16 : index
    %c0_521 = arith.constant 0 : index
    %550 = vector.load %arg6[%c16_520, %c0_521] : memref<216x288xf32, #tpu.memory_space<vmem>>, vector<8x288xf32>
    tpu.vector_store %arg6[%c16_520, %c0_521], %549 {strides = array<i32>} : memref<216x288xf32, #tpu.memory_space<vmem>>, vector<8x288xf32>,
    %551 = vector.extract_strided_slice %544 {offsets = [0, 18], sizes = [8, 288], strides = [1, 1]} : vector<8x326xf32> to vector<8x288xf32>
    %c24_522 = arith.constant 24 : index
    %c0_523 = arith.constant 0 : index
    %552 = vector.load %arg6[%c24_522, %c0_523] : memref<216x288xf32, #tpu.memory_space<vmem>>, vector<8x288xf32>
    tpu.vector_store %arg6[%c24_522, %c0_523], %551 {strides = array<i32>} : memref<216x288xf32, #tpu.memory_space<vmem>>, vector<8x288xf32>,
    %553 = vector.extract_strided_slice %544 {offsets = [0, 19], sizes = [8, 288], strides = [1, 1]} : vector<8x326xf32> to vector<8x288xf32>
    %c32_524 = arith.constant 32 : index
    %c0_525 = arith.constant 0 : index
    %554 = vector.load %arg6[%c32_524, %c0_525] : memref<216x288xf32, #tpu.memory_space<vmem>>, vector<8x288xf32>
    tpu.vector_store %arg6[%c32_524, %c0_525], %553 {strides = array<i32>} : memref<216x288xf32, #tpu.memory_space<vmem>>, vector<8x288xf32>,
    %555 = vector.extract_strided_slice %544 {offsets = [0, 20], sizes = [8, 288], strides = [1, 1]} : vector<8x326xf32> to vector<8x288xf32>
    %c40_526 = arith.constant 40 : index
    %c0_527 = arith.constant 0 : index
    %556 = vector.load %arg6[%c40_526, %c0_527] : memref<216x288xf32, #tpu.memory_space<vmem>>, vector<8x288xf32>
    tpu.vector_store %arg6[%c40_526, %c0_527], %555 {strides = array<i32>} : memref<216x288xf32, #tpu.memory_space<vmem>>, vector<8x288xf32>,
    %557 = vector.extract_strided_slice %544 {offsets = [0, 36], sizes = [8, 288], strides = [1, 1]} : vector<8x326xf32> to vector<8x288xf32>
    %c48_528 = arith.constant 48 : index
    %c0_529 = arith.constant 0 : index
    %558 = vector.load %arg6[%c48_528, %c0_529] : memref<216x288xf32, #tpu.memory_space<vmem>>, vector<8x288xf32>
    tpu.vector_store %arg6[%c48_528, %c0_529], %557 {strides = array<i32>} : memref<216x288xf32, #tpu.memory_space<vmem>>, vector<8x288xf32>,
    %559 = vector.extract_strided_slice %544 {offsets = [0, 37], sizes = [8, 288], strides = [1, 1]} : vector<8x326xf32> to vector<8x288xf32>
    %c56_530 = arith.constant 56 : index
    %c0_531 = arith.constant 0 : index
    %560 = vector.load %arg6[%c56_530, %c0_531] : memref<216x288xf32, #tpu.memory_space<vmem>>, vector<8x288xf32>
    tpu.vector_store %arg6[%c56_530, %c0_531], %559 {strides = array<i32>} : memref<216x288xf32, #tpu.memory_space<vmem>>, vector<8x288xf32>,
    %561 = vector.extract_strided_slice %544 {offsets = [0, 38], sizes = [8, 288], strides = [1, 1]} : vector<8x326xf32> to vector<8x288xf32>
    %c64_532 = arith.constant 64 : index
    %c0_533 = arith.constant 0 : index
    %562 = vector.load %arg6[%c64_532, %c0_533] : memref<216x288xf32, #tpu.memory_space<vmem>>, vector<8x288xf32>
    tpu.vector_store %arg6[%c64_532, %c0_533], %561 {strides = array<i32>} : memref<216x288xf32, #tpu.memory_space<vmem>>, vector<8x288xf32>,
    %c1_i32_534 = arith.constant 1 : i32
    %563 = arith.addi %540, %c1_i32_534 : i32
    %c0_535 = arith.constant 0 : index
    %564 = arith.index_cast %563 : i32 to index
    %c0_536 = arith.constant 0 : index
    %c0_537 = arith.constant 0 : index
    %565 = vector.load %arg2[%c0_535, %564, %c0_536, %c0_537] : memref<1x18x8x326xf32, #tpu.memory_space<vmem>>, vector<1x1x8x326xf32>
    %566 = vector.shape_cast %565 : vector<1x1x8x326xf32> to vector<8x326xf32>
    %567 = vector.extract_strided_slice %566 {offsets = [0, 0], sizes = [8, 288], strides = [1, 1]} : vector<8x326xf32> to vector<8x288xf32>
    %c72_538 = arith.constant 72 : index
    %c0_539 = arith.constant 0 : index
    %568 = vector.load %arg6[%c72_538, %c0_539] : memref<216x288xf32, #tpu.memory_space<vmem>>, vector<8x288xf32>
    tpu.vector_store %arg6[%c72_538, %c0_539], %567 {strides = array<i32>} : memref<216x288xf32, #tpu.memory_space<vmem>>, vector<8x288xf32>,
    %569 = vector.extract_strided_slice %566 {offsets = [0, 1], sizes = [8, 288], strides = [1, 1]} : vector<8x326xf32> to vector<8x288xf32>
    %c80_540 = arith.constant 80 : index
    %c0_541 = arith.constant 0 : index
    %570 = vector.load %arg6[%c80_540, %c0_541] : memref<216x288xf32, #tpu.memory_space<vmem>>, vector<8x288xf32>
    tpu.vector_store %arg6[%c80_540, %c0_541], %569 {strides = array<i32>} : memref<216x288xf32, #tpu.memory_space<vmem>>, vector<8x288xf32>,
    %571 = vector.extract_strided_slice %566 {offsets = [0, 2], sizes = [8, 288], strides = [1, 1]} : vector<8x326xf32> to vector<8x288xf32>
    %c88_542 = arith.constant 88 : index
    %c0_543 = arith.constant 0 : index
    %572 = vector.load %arg6[%c88_542, %c0_543] : memref<216x288xf32, #tpu.memory_space<vmem>>, vector<8x288xf32>
    tpu.vector_store %arg6[%c88_542, %c0_543], %571 {strides = array<i32>} : memref<216x288xf32, #tpu.memory_space<vmem>>, vector<8x288xf32>,
    %573 = vector.extract_strided_slice %566 {offsets = [0, 18], sizes = [8, 288], strides = [1, 1]} : vector<8x326xf32> to vector<8x288xf32>
    %c96_544 = arith.constant 96 : index
    %c0_545 = arith.constant 0 : index
    %574 = vector.load %arg6[%c96_544, %c0_545] : memref<216x288xf32, #tpu.memory_space<vmem>>, vector<8x288xf32>
    tpu.vector_store %arg6[%c96_544, %c0_545], %573 {strides = array<i32>} : memref<216x288xf32, #tpu.memory_space<vmem>>, vector<8x288xf32>,
    %575 = vector.extract_strided_slice %566 {offsets = [0, 19], sizes = [8, 288], strides = [1, 1]} : vector<8x326xf32> to vector<8x288xf32>
    %c104_546 = arith.constant 104 : index
    %c0_547 = arith.constant 0 : index
    %576 = vector.load %arg6[%c104_546, %c0_547] : memref<216x288xf32, #tpu.memory_space<vmem>>, vector<8x288xf32>
    tpu.vector_store %arg6[%c104_546, %c0_547], %575 {strides = array<i32>} : memref<216x288xf32, #tpu.memory_space<vmem>>, vector<8x288xf32>,
    %577 = vector.extract_strided_slice %566 {offsets = [0, 20], sizes = [8, 288], strides = [1, 1]} : vector<8x326xf32> to vector<8x288xf32>
    %c112_548 = arith.constant 112 : index
    %c0_549 = arith.constant 0 : index
    %578 = vector.load %arg6[%c112_548, %c0_549] : memref<216x288xf32, #tpu.memory_space<vmem>>, vector<8x288xf32>
    tpu.vector_store %arg6[%c112_548, %c0_549], %577 {strides = array<i32>} : memref<216x288xf32, #tpu.memory_space<vmem>>, vector<8x288xf32>,
    %579 = vector.extract_strided_slice %566 {offsets = [0, 36], sizes = [8, 288], strides = [1, 1]} : vector<8x326xf32> to vector<8x288xf32>
    %c120_550 = arith.constant 120 : index
    %c0_551 = arith.constant 0 : index
    %580 = vector.load %arg6[%c120_550, %c0_551] : memref<216x288xf32, #tpu.memory_space<vmem>>, vector<8x288xf32>
    tpu.vector_store %arg6[%c120_550, %c0_551], %579 {strides = array<i32>} : memref<216x288xf32, #tpu.memory_space<vmem>>, vector<8x288xf32>,
    %581 = vector.extract_strided_slice %566 {offsets = [0, 37], sizes = [8, 288], strides = [1, 1]} : vector<8x326xf32> to vector<8x288xf32>
    %c128_552 = arith.constant 128 : index
    %c0_553 = arith.constant 0 : index
    %582 = vector.load %arg6[%c128_552, %c0_553] : memref<216x288xf32, #tpu.memory_space<vmem>>, vector<8x288xf32>
    tpu.vector_store %arg6[%c128_552, %c0_553], %581 {strides = array<i32>} : memref<216x288xf32, #tpu.memory_space<vmem>>, vector<8x288xf32>,
    %583 = vector.extract_strided_slice %566 {offsets = [0, 38], sizes = [8, 288], strides = [1, 1]} : vector<8x326xf32> to vector<8x288xf32>
    %c136_554 = arith.constant 136 : index
    %c0_555 = arith.constant 0 : index
    %584 = vector.load %arg6[%c136_554, %c0_555] : memref<216x288xf32, #tpu.memory_space<vmem>>, vector<8x288xf32>
    tpu.vector_store %arg6[%c136_554, %c0_555], %583 {strides = array<i32>} : memref<216x288xf32, #tpu.memory_space<vmem>>, vector<8x288xf32>,
    %c2_i32_556 = arith.constant 2 : i32
    %585 = arith.addi %540, %c2_i32_556 : i32
    %c0_557 = arith.constant 0 : index
    %586 = arith.index_cast %585 : i32 to index
    %c0_558 = arith.constant 0 : index
    %c0_559 = arith.constant 0 : index
    %587 = vector.load %arg2[%c0_557, %586, %c0_558, %c0_559] : memref<1x18x8x326xf32, #tpu.memory_space<vmem>>, vector<1x1x8x326xf32>
    %588 = vector.shape_cast %587 : vector<1x1x8x326xf32> to vector<8x326xf32>
    %589 = vector.extract_strided_slice %588 {offsets = [0, 0], sizes = [8, 288], strides = [1, 1]} : vector<8x326xf32> to vector<8x288xf32>
    %c144_560 = arith.constant 144 : index
    %c0_561 = arith.constant 0 : index
    %590 = vector.load %arg6[%c144_560, %c0_561] : memref<216x288xf32, #tpu.memory_space<vmem>>, vector<8x288xf32>
    tpu.vector_store %arg6[%c144_560, %c0_561], %589 {strides = array<i32>} : memref<216x288xf32, #tpu.memory_space<vmem>>, vector<8x288xf32>,
    %591 = vector.extract_strided_slice %588 {offsets = [0, 1], sizes = [8, 288], strides = [1, 1]} : vector<8x326xf32> to vector<8x288xf32>
    %c152_562 = arith.constant 152 : index
    %c0_563 = arith.constant 0 : index
    %592 = vector.load %arg6[%c152_562, %c0_563] : memref<216x288xf32, #tpu.memory_space<vmem>>, vector<8x288xf32>
    tpu.vector_store %arg6[%c152_562, %c0_563], %591 {strides = array<i32>} : memref<216x288xf32, #tpu.memory_space<vmem>>, vector<8x288xf32>,
    %593 = vector.extract_strided_slice %588 {offsets = [0, 2], sizes = [8, 288], strides = [1, 1]} : vector<8x326xf32> to vector<8x288xf32>
    %c160_564 = arith.constant 160 : index
    %c0_565 = arith.constant 0 : index
    %594 = vector.load %arg6[%c160_564, %c0_565] : memref<216x288xf32, #tpu.memory_space<vmem>>, vector<8x288xf32>
    tpu.vector_store %arg6[%c160_564, %c0_565], %593 {strides = array<i32>} : memref<216x288xf32, #tpu.memory_space<vmem>>, vector<8x288xf32>,
    %595 = vector.extract_strided_slice %588 {offsets = [0, 18], sizes = [8, 288], strides = [1, 1]} : vector<8x326xf32> to vector<8x288xf32>
    %c168_566 = arith.constant 168 : index
    %c0_567 = arith.constant 0 : index
    %596 = vector.load %arg6[%c168_566, %c0_567] : memref<216x288xf32, #tpu.memory_space<vmem>>, vector<8x288xf32>
    tpu.vector_store %arg6[%c168_566, %c0_567], %595 {strides = array<i32>} : memref<216x288xf32, #tpu.memory_space<vmem>>, vector<8x288xf32>,
    %597 = vector.extract_strided_slice %588 {offsets = [0, 19], sizes = [8, 288], strides = [1, 1]} : vector<8x326xf32> to vector<8x288xf32>
    %c176_568 = arith.constant 176 : index
    %c0_569 = arith.constant 0 : index
    %598 = vector.load %arg6[%c176_568, %c0_569] : memref<216x288xf32, #tpu.memory_space<vmem>>, vector<8x288xf32>
    tpu.vector_store %arg6[%c176_568, %c0_569], %597 {strides = array<i32>} : memref<216x288xf32, #tpu.memory_space<vmem>>, vector<8x288xf32>,
    %599 = vector.extract_strided_slice %588 {offsets = [0, 20], sizes = [8, 288], strides = [1, 1]} : vector<8x326xf32> to vector<8x288xf32>
    %c184_570 = arith.constant 184 : index
    %c0_571 = arith.constant 0 : index
    %600 = vector.load %arg6[%c184_570, %c0_571] : memref<216x288xf32, #tpu.memory_space<vmem>>, vector<8x288xf32>
    tpu.vector_store %arg6[%c184_570, %c0_571], %599 {strides = array<i32>} : memref<216x288xf32, #tpu.memory_space<vmem>>, vector<8x288xf32>,
    %601 = vector.extract_strided_slice %588 {offsets = [0, 36], sizes = [8, 288], strides = [1, 1]} : vector<8x326xf32> to vector<8x288xf32>
    %c192_572 = arith.constant 192 : index
    %c0_573 = arith.constant 0 : index
    %602 = vector.load %arg6[%c192_572, %c0_573] : memref<216x288xf32, #tpu.memory_space<vmem>>, vector<8x288xf32>
    tpu.vector_store %arg6[%c192_572, %c0_573], %601 {strides = array<i32>} : memref<216x288xf32, #tpu.memory_space<vmem>>, vector<8x288xf32>,
    %603 = vector.extract_strided_slice %588 {offsets = [0, 37], sizes = [8, 288], strides = [1, 1]} : vector<8x326xf32> to vector<8x288xf32>
    %c200_574 = arith.constant 200 : index
    %c0_575 = arith.constant 0 : index
    %604 = vector.load %arg6[%c200_574, %c0_575] : memref<216x288xf32, #tpu.memory_space<vmem>>, vector<8x288xf32>
    tpu.vector_store %arg6[%c200_574, %c0_575], %603 {strides = array<i32>} : memref<216x288xf32, #tpu.memory_space<vmem>>, vector<8x288xf32>,
    %605 = vector.extract_strided_slice %588 {offsets = [0, 38], sizes = [8, 288], strides = [1, 1]} : vector<8x326xf32> to vector<8x288xf32>
    %c208_576 = arith.constant 208 : index
    %c0_577 = arith.constant 0 : index
    %606 = vector.load %arg6[%c208_576, %c0_577] : memref<216x288xf32, #tpu.memory_space<vmem>>, vector<8x288xf32>
    tpu.vector_store %arg6[%c208_576, %c0_577], %605 {strides = array<i32>} : memref<216x288xf32, #tpu.memory_space<vmem>>, vector<8x288xf32>,
    %c0_578 = arith.constant 0 : index
    %c0_579 = arith.constant 0 : index
    %607 = vector.load %arg3[%c0_578, %c0_579] : memref<8x216xf32, #tpu.memory_space<vmem>>, vector<8x216xf32>
    %c0_580 = arith.constant 0 : index
    %c0_581 = arith.constant 0 : index
    %608 = vector.load %arg6[%c0_580, %c0_581] : memref<216x288xf32, #tpu.memory_space<vmem>>, vector<216x288xf32>
    %cst_582 = arith.constant dense<0.000000e+00> : vector<8x288xf32>
    %609 = tpu.matmul %607, %608, %cst_582 {dimension_numbers = #tpu.dot_dimension_numbers<[1], [0], [0], [1], [0, 0, 1, 1], [], []>} : vector<8x216xf32>, vector<216x288xf32>, vector<8x288xf32> -> vector<8x288xf32>
    %c0_583 = arith.constant 0 : index
    %c0_584 = arith.constant 0 : index
    %610 = vector.load %arg4[%c0_583, %c0_584] : memref<8x1xf32, #tpu.memory_space<vmem>>, vector<8x1xf32>
    %611 = vector.broadcast %610 : vector<8x1xf32> to vector<8x288xf32>
    %612 = arith.addf %609, %611 : vector<8x288xf32>
    %c0_585 = arith.constant 0 : index
    %c7 = arith.constant 7 : index
    %c0_586 = arith.constant 0 : index
    %c0_587 = arith.constant 0 : index
    %613 = vector.load %arg5[%c0_585, %c7, %c0_586, %c0_587] : memref<1x8x8x288xf32, #tpu.memory_space<vmem>>, vector<1x1x8x288xf32>
    %614 = vector.shape_cast %613 : vector<1x1x8x288xf32> to vector<8x288xf32>
    %615 = vector.shape_cast %612 : vector<8x288xf32> to vector<1x1x8x288xf32>
    tpu.vector_store %arg5[%c0_585, %c7, %c0_586, %c0_587], %615 {strides = array<i32>} : memref<1x8x8x288xf32, #tpu.memory_space<vmem>>, vector<1x1x8x288xf32>,
    return
  }
  func.func @transform_0(%arg0: i32, %arg1: i32) -> (i32, i32, i32, i32) {
    %c0_i32 = arith.constant 0 : i32
    %c0_i32_0 = arith.constant 0 : i32
    %c0_i32_1 = arith.constant 0 : i32
    %c0_i32_2 = arith.constant 0 : i32
    return %arg0, %c0_i32, %c0_i32_0, %c0_i32_1 : i32, i32, i32, i32
  }
  func.func @transform_1(%arg0: i32, %arg1: i32) -> (i32, i32) {
    %c0_i32 = arith.constant 0 : i32
    %c0_i32_0 = arith.constant 0 : i32
    %c0_i32_1 = arith.constant 0 : i32
    return %c0_i32, %c0_i32_0 : i32, i32
  }
  func.func @transform_2(%arg0: i32, %arg1: i32) -> (i32, i32) {
    %c0_i32 = arith.constant 0 : i32
    %c0_i32_0 = arith.constant 0 : i32
    %c0_i32_1 = arith.constant 0 : i32
    return %c0_i32, %c0_i32_0 : i32, i32
  }
  func.func @transform_3(%arg0: i32, %arg1: i32) -> (i32, i32, i32, i32) {
    %c0_i32 = arith.constant 0 : i32
    %c0_i32_0 = arith.constant 0 : i32
    %c0_i32_1 = arith.constant 0 : i32
    return %arg0, %arg1, %c0_i32, %c0_i32_0 : i32, i32, i32, i32
  }
}

</mosaic_0001>

<bundles_post_ra>
// kernel: tpu_custom_call.1
= control target key start
LH: loop header
LB: loop body
LE: loop exit
PB: predicated region body
PF: predicated region fallthrough
CT: control target
= control target key end

     0   :  { %s9029_s0 = inlined_call_operand.hbm [shape: f32[2,18,8,326], index: 0, kind: input, shape index: {}]   ;;  %s9030_s1 = inlined_call_operand.hbm [shape: f32[8,216], index: 1, kind: input, shape index: {}]   ;;  %s9031_s2 = inlined_call_operand.vmem [shape: f32[8,1], index: 2, kind: input, shape index: {}]   ;;  %s9032_s3 = inlined_call_operand.hbm [shape: f32[2,16,8,288], index: 3, kind: output, shape index: {}]  }
   0x1   :  { %9043 = sst [smem:[#allocation16_spill]] %s9030_s1 }
   0x2   :  { %8 = vsyncpa [#allocation4], 0 }
   0x3   :  { %10 = vsyncpa [#allocation4 + $0x1], 0 }
   0x4   :  { %11 = vsyncpa [#allocation7], 0 }
   0x5   :  { %12 = vsyncpa [#allocation5], 0 }
   0x6   :  { %14 = vsyncpa [#allocation5 + $0x1], 0  ;;  %s6463_s12 = smov 0   ;;  %s6465_s13 = smov 0  }
   0x7   :  { %s6467_s14 = smov 0   ;;  %s6469_s15 = smov 0  }
   0x8   :  { %s6471_s16 = smov 0   ;;  %s6473_s17 = smov 0  }
   0x9   :  { %s6475_s18 = smov 0   ;;  %s6477_s19 = smov 0  }
   0xa   :  { %s6479_s20 = smov 0   ;;  %s6481_s21 = smov 0  }
   0xb   :  { %s6483_s22 = smov 0  }
   0xc LB: > { %9044 = sst [smem:[#allocation12_spill]] %s6383_s12  ;;  %s5218_s23 = sadd.s32 4294967295, %s6423_s22   ;;  %s6423_s22 = sphi %s6483_s22, %s20_s22   ;;  %s6419_s21 = sphi %s6481_s21, %s9077_s21   ;;  %s6415_s20 = sphi %s6479_s20, %s9076_s20   ;;  %s6411_s19 = sphi %s6477_s19, %s9075_s19   ;;  %s6407_s18 = sphi %s6475_s18, %s9066_s18   ;;  %s6403_s17 = sphi %s6473_s17, %s9074_s17   ;;  %s6399_s16 = sphi %s6471_s16, %s9073_s16   ;;  %s6395_s15 = sphi %s6469_s15, %s9072_s15   ;;  %s6391_s14 = sphi %s6467_s14, %s9071_s14   ;;  %s6387_s13 = sphi %s6465_s13, %s9070_s13   ;;  %s6383_s12 = sphi %s6463_s12, %s9069_s12  }
   0xd   : > { %9045 = sst [smem:[#allocation13_spill]] %s6415_s20  ;;  %s5219_s24 = sadd.s32 4294967294, %s6423_s22  }
   0xe   : > { %p46_p0 = scmp.ne.s32.totalorder %s6403_s17, %s6399_s16  ;;  %p47_p1 = scmp.eq.s32.totalorder %s6423_s22, 0 }
   0xf   : > { %p52_p2 = scmp.ne.s32.totalorder %s6399_s16, %s6395_s15  ;;  %p6523_p3 = scmp.eq.s32.totalorder %s5218_s23, 0 }
  0x10   : > { %p6527_p4 = por %p47_p1, %p46_p0  ;;  %p119_p5 = scmp.ne.s32.totalorder %s6391_s14, %s6387_s13 }
  0x11   : > { %s9046_s26 = scalar_select %p6523_p3, 1, 0 }
  0x12   : > { %p6535_p6 = por %p6523_p3, %p52_p2  ;;  %p120_p7 = scmp.eq.s32.totalorder %s5218_s23, 3 }
  0x13   : > { %p125_p8 = scmp.ne.s32.totalorder %s6387_s13, %s6383_s12  ;;  %p126_p9 = scmp.eq.s32.totalorder %s5219_s24, 3 }
  0x14   : > { %s9048_s28 = scalar_select %p6535_p6, 1, 0 }
  0x15   : > { %p6541_p10 = por %p120_p7, %p119_p5  ;;  %p5220_p11 = scmp.ge.s32.totalorder %s6423_s22, 1 }
  0x16   : > { %p6546_p12 = por %p126_p9, %p125_p8  ;;  %p133_p13 = scmp.lt.s32.totalorder %s6423_s22, 5 }
  0x17   : > { %s9049_s29 = scalar_select %p6541_p10, 1, 0 }
  0x18   : > { %s9050_s30 = scalar_select %p6546_p12, 1, 0 }
  0x19   : > { %p6551_p0 = pnand %p5220_p11, %p133_p13  ;;  %s6425_s5 = smov [#allocation6]  }
  0x1a   : > { %9051 = sst [smem:[#allocation14_spill]] %s9050_s30  ;;  %s146_s6 = sshll.u32 %s6425_s5, 4  ;;  %s147_s6 = int_to_ptr.vmem [resolvable:$true] %s146_s6 }
  0x1b   : > { %s9052_s4 = scalar_select %p6551_p0, 1, 0 }
  0x1c   : > { %p6101_p1 = pneg %p6551_p0  ;;  %p6114_p2 = scmp.lt.s32.totalorder %s6423_s22, 4 }
  0x1d   : > { %s9055_s1 = sld [smem:[#allocation16_spill]] }
  0x1e   : > { %p6560_p5 = pnand %p6101_p1, %p6523_p3  ;;  %p6566_p7 = pnand %p6114_p2, %p6527_p4 }
  0x20   : > { %s9054_s8 = scalar_select %p6566_p7, 1, 0 }
  0x21   : > { %p6241_p9 = pneg %p6560_p5 }
  0x23   : > { %s6239_s11 = scalar_lea.hbm %s9055_s1, 256 }
  0x24   : > { %p6240_p8 = scmp.ne.s32.totalorder %s9055_s1, %s6239_s11  ;;  %p6246_p1 = scmp.lt.u32.totalorder %s6239_s11, %s9055_s1 }
  0x26   : > { %p6242_p11 = pnand %p6241_p9, %p6240_p8 }
  0x28   : > { %p6243_p13 = pneg %p6242_p11 }
  0x2a   : > { %p6248_p4 = pnand %p6246_p1, %p6243_p13 }
  0x2c   : > { %6251 = shalt.err (!%p6248_p4)
}
  0x2d   : > { %s6252_s27 = scalar_lea.vmem %s147_s6, 256  ;;  %p6260_p3 = scmp.lt.s32.totalorder %s147_s6, %s147_s6 }
  0x2e   : > { %p6253_p2 = scmp.ne.s32.totalorder %s147_s6, %s6252_s27  ;;  %p6261_p6 = scmp.lt.s32.totalorder %s6252_s27, %s6252_s27 }
  0x30   : > { %p6255_p12 = pnand %p6253_p2, %p6241_p9  ;;  %p6262_p0 = por %p6261_p6, %p6260_p3 }
  0x32   : > { %p6256_p10 = pneg %p6255_p12 }
  0x34   : > { %p6263_p7 = pnand %p6262_p0, %p6256_p10 }
  0x36   : > { %6266 = shalt.err (!%p6263_p7)
}
  0x37   : > { %6104 = dma.hbm_to_vmem [thread:$0]  (!%p6560_p5), %s9055_s1, 256, %s147_s6, [#allocation7]  }
  0x38   : > { %s29_s11 = sadd.s32 1, %s6415_s20  ;;  %s32_s15 = sadd.s32 1, %s6419_s21 }
  0x39   : > { %p30_p12 = scmp.ge.s32.totalorder %s29_s11, 2  ;;  %s160_s23 = sand.u32 1, %s6403_s17  }
  0x3a   : > { %s109_s24 = sadd.s32 1, %s6391_s14  ;;  %s6087_s7 = smul.u32 432, %s160_s23 }
  0x3b   : > { %s9079_s11 = smov (%p30_p12, %s29_s11), 0  ;;  %s9081_s15 = smov (!%p30_p12, %s32_s15), %s6419_s21 }
  0x3c   : > { %9056 = sst [smem:[#allocation15_spill]] %s9079_s11  ;;  %p34_p3 = scmp.ge.s32.totalorder %s9081_s15, 2 }
  0x3d   : > { %s6088_s5 = smul.u32 6912, %s6419_s21  ;;  %s105_s27 = ssub.s32 %s6415_s20, %s9079_s11 }
  0x3e   : > { %s164_s6 = scalar_lea.vmem [#allocation3], %s6087_s7  ;;  %s9083_s15 = smov (%p34_p3, %s9081_s15), 0 }
  0x3f   : > { %s171_s9 = sshll.u32 %s164_s6, 4  ;;  %s6601_s1 = scalar_lea.hbm %s9029_s0, %s6088_s5  ;;  %s6605_s9 = int_to_ptr.vmem [resolvable:$true] %s171_s9 }
  0x40   : > { %s36_s30 = ssub.s32 %s6419_s21, %s9083_s15  ;;  %s9057_s7 = sadd.s32 1, %s6403_s17 }
  0x41   : > { %p37_p6 = scmp.eq.s32.totalorder %s36_s30, 0  ;;  %s106_s11 = sor.u32 %s105_s27, %s36_s30 }
  0x42   : > { %p107_p10 = scmp.eq.s32.totalorder %s106_s11, 0  ;;  %s6615_s12 = scalar_lea.sflag [#allocation4], %s160_s23 }
  0x43   : > { %s6610_s6 = scalar_select %p37_p6, %s6403_s17, %s9057_s7  }
  0x44   : > { %s6613_s20 = scalar_select %p107_p10, %s6391_s14, %s109_s24  }
  0x45   : > { %s6267_s25 = scalar_lea.hbm %s6601_s1, 6912  ;;  %p9058_p5 = scmp.ne.s32.totalorder %s9054_s8, 0 }
  0x46   : > { %p6268_p0 = scmp.ne.s32.totalorder %s6601_s1, %s6267_s25  ;;  %s6272_s30 = scalar_lea.hbm %s9029_s0, 13824 }
  0x47   : > { %p6269_p7 = pneg %p9058_p5  ;;  %p6273_p11 = scmp.lt.u32.totalorder %s6601_s1, %s9029_s0 }
  0x48   : > { %p6274_p13 = scmp.lt.u32.totalorder %s6272_s30, %s6267_s25  ;;  %p6276_p4 = scmp.lt.u32.totalorder %s6267_s25, %s6601_s1 }
  0x49   : > { %p6270_p8 = pnand %p6269_p7, %p6268_p0 }
  0x4a   : > { %p6275_p1 = por %p6274_p13, %p6273_p11 }
  0x4b   : > { %p6271_p9 = pneg %p6270_p8 }
  0x4c   : > { %p6277_p2 = por %p6276_p4, %p6275_p1 }
  0x4e   : > { %p6278_p12 = pnand %p6277_p2, %p6271_p9 }
  0x50   : > { %6281 = shalt.err (!%p6278_p12)
}
  0x51   : > { %s6282_s23 = scalar_lea.vmem %s6605_s9, 6912  ;;  %s6426_s24 = smov [#allocation3]  }
  0x52   : > { %p6283_p3 = scmp.ne.s32.totalorder %s6605_s9, %s6282_s23  ;;  %s6287_s7 = sshll.u32 %s6426_s24, 4  ;;  %s6288_s7 = int_to_ptr.vmem [resolvable:$false] %s6287_s7 }
  0x53   : > { %s6289_s5 = scalar_lea.vmem %s6288_s7, 13824  ;;  %p6290_p0 = scmp.lt.s32.totalorder %s6605_s9, %s6288_s7 }
  0x54   : > { %p6285_p6 = pnand %p6283_p3, %p6269_p7  ;;  %p6291_p8 = scmp.lt.s32.totalorder %s6289_s5, %s6282_s23 }
  0x56   : > { %p6286_p10 = pneg %p6285_p6  ;;  %p6292_p11 = por %p6291_p8, %p6290_p0 }
  0x58   : > { %p6293_p13 = pnand %p6292_p11, %p6286_p10 }
  0x5a   : > { %6296 = shalt.err (!%p6293_p13)
}
  0x5b   : > { %s6427_s25 = smov 384   ;;  %s6428_s10 = smov 24  }
  0x5c   : > { %6108 = dma.hbm_to_vmem [thread:$0]  (!%p9058_p5), %s6601_s1, 6912, %s6605_s9, %s6615_s12, %s6427_s25, %s6427_s25, %s6428_s10  }
  0x5d   : > { %p9059_p7 = scmp.ne.s32.totalorder %s9052_s4, 0 }
  0x5e   : > { %s185_s30 = sand.u32 (!%p9059_p7), 1, %s6399_s16   ;;  %p9060_p9 = scmp.ne.s32.totalorder (!%p9059_p7), %s9048_s28, 0 }
  0x5f   : > { %183 = sbr.rel (%p9059_p7) target bundleno = 1632 (0x660), region = 32  ;;  %s186_s27 = scalar_lea.sflag (!%p9059_p7), [#allocation4], %s185_s30 }
  0x60   : > { %s6089_s11 = smul.u32 (!%p9059_p7), 432, %s185_s30 }
  0x62   : > { %s189_s23 = scalar_lea.vmem (!%p9059_p7), [#allocation3], %s6089_s11 }
  0x66   : > { %6370 = dma.done.wait (%p9060_p9), %s186_s27, 6912  }
  0x67   : > { %6372 = vsyncadd (%p9060_p9), %s186_s27, 4294960384  ;;  %p9061_p1 = scmp.ne.s32.totalorder %s9046_s26, 0 }
  0x69   : > { %6374 = dma.done.wait (%p9061_p1), [#allocation7], 256  }
  0x6a   : > { %6376 = vsyncadd (%p9061_p1), [#allocation7], 4294967040  ;;  %s5358_s1 = smul.u32 192, %s6407_s18  ;;  %v6429_v0 = vmov 0.0|0.0   ;;  %vm226_vm0 = vcmask 261120   ;;  %s6430_s28 = smov 127  }
  0x6b   : > { %5411 = vmatprep.subr.bf16.mxu1 %v6429_v0  ;;  %s6431_s26 = smov 126   ;;  %s6432_s4 = smov 110   ;;  %v6433_v7 = vmov 0   ;;  %vm237_vm1 = vcmask 1039360   ;;  %vm267_vm2 = vcmask 900096   ;;  %vm252_vm3 = vcmask 1031168  }
  0x6c   : > { %s6655_s12 = scalar_lea.vmem %s189_s23, %s5358_s1 [#allocation3]  ;;  %6221 = vset.pattern.permute.xlu0 %v6433_v7  ;;  %6222 = vset.pattern.permute.xlu1 %v6433_v7  ;;  %s6434_s8 = smov 109   ;;  %v6839_v34 = vld [vmem:[#allocation6 + $0x8] sm:$0xff]  ;;  %vm690_vm4 = vcmask 719872   ;;  %vm297_vm5 = vcmask 883712   ;;  %vm282_vm6 = vcmask 891904   ;;  %v6862_v45 = vld [vmem:[%s9031_s2] sm:$0xff] }
  0x6d   : > { %v223_v1 = vld [vmem:[%s6655_s12 + $0x10] sm:$0xff]  ;;  %v6660_v2 = vld [vmem:[%s6655_s12] sm:$0xff]  ;;  %v6667_v3 = vld [vmem:[%s6655_s12 + $0x8] sm:$0xff]  ;;  %s6435_s9 = smov 108   ;;  %s6436_s24 = smov 92   ;;  %5240 = vmatprep.mubr.msk.f32.mxu1 %vm690_vm4, %v6839_v34  ;;  %5239 = vmatprep.mubr.msk.f32.mxu0 %vm690_vm4, %v6839_v34  ;;  %vm327_vm7 = vcmask 744448  }
  0x6e   : > { %235 = vrot.lane.b32.xlu1 %v223_v1, %s6430_s28  ;;  %231 = vrot.lane.b32.xlu0 %v6660_v2, %s6430_s28  ;;  %227 = vst.msk [vmem:[#allocation2 + $0x10] sm:$0xff] %vm226_vm0, %v223_v1  ;;  %v6670_v4 = vld [vmem:[%s6655_s12 + $0x28] sm:$0xff]  ;;  %v6673_v5 = vld [vmem:[%s6655_s12 + $0x40] sm:$0xff]  ;;  %s6437_s7 = smov 91   ;;  %s6438_s5 = smov 90   ;;  %vm312_vm8 = vcmask 752640  }
  0x6f   : > { %360 = vst.msk [vmem:[#allocation2 + $0xe8] sm:$0xff] %vm226_vm0, %v6670_v4  ;;  %485 = vst.msk [vmem:[#allocation2 + $0x1c0] sm:$0xff] %vm226_vm0, %v6673_v5  ;;  %v6725_v9 = vld [vmem:[%s6655_s12 + $0x20] sm:$0xff]  ;;  %v6728_v10 = vld [vmem:[%s6655_s12 + $0x18] sm:$0xff]  ;;  %vm342_vm9 = vcmask 736256   ;;  %s213_s27 = sand.u32 1, %s6387_s13  }
  0x70   : > { %v6779_v11 = vld [vmem:[%s6655_s12 + $0x38] sm:$0xff]  ;;  %v6782_v12 = vld [vmem:[%s6655_s12 + $0x30] sm:$0xff]  ;;  %s6090_s23 = smul.u32 192, %s213_s27  ;;  %p9062_p4 = scmp.ne.s32.totalorder %s9049_s29, 0 }
  0x71   : > { %v6791_v14 = vld [vmem:[%s6655_s12 + $0x58] sm:$0xff]  ;;  %s6440_s11 = smov [#allocation8]  }
  0x72   : > { %246 = vrot.lane.b32.xlu1 %v6660_v2, %s6431_s26  ;;  %233 = vrot.lane.b32.xlu0 %v6667_v3, %s6430_s28  ;;  %s7506_s1 = scalar_lea.vmem [#allocation8], %s6090_s23  ;;  %s6301_s23 = sshll.u32 %s6440_s11, 4  ;;  %s6302_s23 = int_to_ptr.vmem [resolvable:$false] %s6301_s23 }
  0x73   : > { %s6303_s25 = scalar_lea.vmem %s6302_s23, 6144 }
  0x75   : > { %v6683_v6 = vld [vmem:[#allocation2 + $0x10] sm:$0xff] }
  0x76   : > { %250 = vrot.lane.b32.xlu1 %v223_v1, %s6431_s26  ;;  %248 = vrot.lane.b32.xlu0 %v6667_v3, %s6431_s26  ;;  %843 = vst.msk [vmem:[#allocation2 + $0x10] sm:$0xff] %vm226_vm0, %v6670_v4  ;;  %v6717_v8 = vld [vmem:[#allocation2 + $0xe8] sm:$0xff]  ;;  %v6788_v13 = vld [vmem:[#allocation2 + $0x1c0] sm:$0xff] }
  0x77   : > { %964 = vst.msk [vmem:[#allocation2 + $0xe8] sm:$0xff] %vm226_vm0, %v6673_v5  ;;  %1089 = vst.msk [vmem:[#allocation2 + $0x1c0] sm:$0xff] %vm226_vm0, %v6791_v14 }
  0x7a   : > { %263 = vrot.lane.b32.xlu1 %v6667_v3, %s6432_s4  ;;  %261 = vrot.lane.b32.xlu0 %v6660_v2, %s6432_s4 }
  0x7e   : > { %276 = vrot.lane.b32.xlu1 %v6660_v2, %s6434_s8  ;;  %265 = vrot.lane.b32.xlu0 %v223_v1, %s6432_s4 }
  0x82   : > { %280 = vrot.lane.b32.xlu1 %v223_v1, %s6434_s8  ;;  %278 = vrot.lane.b32.xlu0 %v6667_v3, %s6434_s8 }
  0x86   : > { %293 = vrot.lane.b32.xlu1 %v6667_v3, %s6435_s9  ;;  %291 = vrot.lane.b32.xlu0 %v6660_v2, %s6435_s9 }
  0x8a   : > { %306 = vrot.lane.b32.xlu1 %v6660_v2, %s6436_s24  ;;  %295 = vrot.lane.b32.xlu0 %v223_v1, %s6435_s9 }
  0x8e   : > { %310 = vrot.lane.b32.xlu1 %v223_v1, %s6436_s24  ;;  %308 = vrot.lane.b32.xlu0 %v6667_v3, %s6436_s24 }
  0x92   : > { %323 = vrot.lane.b32.xlu1 %v6667_v3, %s6437_s7  ;;  %321 = vrot.lane.b32.xlu0 %v6660_v2, %s6437_s7 }
  0x96   : > { %336 = vrot.lane.b32.xlu1 %v6660_v2, %s6438_s5  ;;  %325 = vrot.lane.b32.xlu0 %v223_v1, %s6437_s7 }
  0x9a   : > { %340 = vrot.lane.b32.xlu1 %v223_v1, %s6438_s5  ;;  %338 = vrot.lane.b32.xlu0 %v6667_v3, %s6438_s5 }
  0x9e   : > { %366 = vrot.lane.b32.xlu1 %v6725_v9, %s6430_s28  ;;  %364 = vrot.lane.b32.xlu0 %v6728_v10, %s6430_s28 }
  0xa2   : > { %378 = vrot.lane.b32.xlu1 %v6728_v10, %s6431_s26  ;;  %368 = vrot.lane.b32.xlu0 %v6670_v4, %s6430_s28 }
  0xa6   : > { %382 = vrot.lane.b32.xlu1 %v6670_v4, %s6431_s26  ;;  %380 = vrot.lane.b32.xlu0 %v6725_v9, %s6431_s26 }
  0xaa   : > { %394 = vrot.lane.b32.xlu1 %v6725_v9, %s6432_s4  ;;  %392 = vrot.lane.b32.xlu0 %v6728_v10, %s6432_s4 }
  0xae   : > { %406 = vrot.lane.b32.xlu1 %v6728_v10, %s6434_s8  ;;  %396 = vrot.lane.b32.xlu0 %v6670_v4, %s6432_s4 }
  0xb2   : > { %410 = vrot.lane.b32.xlu1 %v6670_v4, %s6434_s8  ;;  %408 = vrot.lane.b32.xlu0 %v6725_v9, %s6434_s8 }
  0xb6   : > { %422 = vrot.lane.b32.xlu1 %v6725_v9, %s6435_s9  ;;  %420 = vrot.lane.b32.xlu0 %v6728_v10, %s6435_s9 }
  0xba   : > { %434 = vrot.lane.b32.xlu1 %v6728_v10, %s6436_s24  ;;  %424 = vrot.lane.b32.xlu0 %v6670_v4, %s6435_s9 }
  0xbe   : > { %438 = vrot.lane.b32.xlu1 %v6670_v4, %s6436_s24  ;;  %436 = vrot.lane.b32.xlu0 %v6725_v9, %s6436_s24 }
  0xc2   : > { %450 = vrot.lane.b32.xlu1 %v6725_v9, %s6437_s7  ;;  %448 = vrot.lane.b32.xlu0 %v6728_v10, %s6437_s7 }
  0xc6   : > { %462 = vrot.lane.b32.xlu1 %v6728_v10, %s6438_s5  ;;  %452 = vrot.lane.b32.xlu0 %v6670_v4, %s6437_s7 }
  0xca   : > { %466 = vrot.lane.b32.xlu1 %v6670_v4, %s6438_s5  ;;  %464 = vrot.lane.b32.xlu0 %v6725_v9, %s6438_s5 }
  0xce   : > { %491 = vrot.lane.b32.xlu1 %v6779_v11, %s6430_s28  ;;  %489 = vrot.lane.b32.xlu0 %v6782_v12, %s6430_s28 }
  0xd2   : > { %503 = vrot.lane.b32.xlu1 %v6782_v12, %s6431_s26  ;;  %493 = vrot.lane.b32.xlu0 %v6673_v5, %s6430_s28 }
  0xd6   : > { %507 = vrot.lane.b32.xlu1 %v6673_v5, %s6431_s26  ;;  %505 = vrot.lane.b32.xlu0 %v6779_v11, %s6431_s26 }
  0xda   : > { %519 = vrot.lane.b32.xlu1 %v6779_v11, %s6432_s4  ;;  %517 = vrot.lane.b32.xlu0 %v6782_v12, %s6432_s4 }
  0xde   : > { %531 = vrot.lane.b32.xlu1 %v6782_v12, %s6434_s8  ;;  %521 = vrot.lane.b32.xlu0 %v6673_v5, %s6432_s4 }
  0xe0   : > { %v236_v15 = vpop.permute.xlu1 %235  ;;  %v232_v16 = vpop.permute.xlu0 %231 }
  0xe1   : > { %245 = vst.msk [vmem:[#allocation2 + $0x28] sm:$0xff] %vm226_vm0, %v236_v15 }
  0xe2   : > { %535 = vrot.lane.b32.xlu1 %v6673_v5, %s6434_s8  ;;  %533 = vrot.lane.b32.xlu0 %v6779_v11, %s6434_s8 }
  0xe4   : > { %v247_v17 = vpop.permute.xlu1 %246  ;;  %v234_v18 = vpop.permute.xlu0 %233 }
  0xe5   : > { %v238_v19 = vsel %vm237_vm1, %v232_v16, %v234_v18  ;;  %v239_v20 = vsel %vm237_vm1, %v234_v18, %v236_v15  ;;  %v6895_v18 = vld [vmem:[%s6655_s12 + $0x40] sm:$0xff] }
  0xe6   : > { %547 = vrot.lane.b32.xlu1 %v6779_v11, %s6435_s9  ;;  %545 = vrot.lane.b32.xlu0 %v6782_v12, %s6435_s9  ;;  %v5359_v21 = vpack.c.bf16 %v239_v20, %v6667_v3  ;;  %v5361_v22 = vpack.c.bf16 %v238_v19, %v6660_v2 }
  0xe8   : > { %v251_v23 = vpop.permute.xlu1 %250  ;;  %v249_v24 = vpop.permute.xlu0 %248  ;;  %v608_v25 = vld [vmem:[#allocation2 + $0x28] sm:$0xff]  ;;  %5360 = vmatprep.subr.bf16.mxu0 %v5359_v21 }
  0xe9   : > { %260 = vst.msk [vmem:[#allocation2 + $0x40] sm:$0xff] %vm226_vm0, %v251_v23  ;;  %v5412_v26 = vpack.c.bf16 %v608_v25, %v6683_v6  ;;  %5362 = vmatpush1.bf16.msra.mxu0 %v5361_v22  ;;  %v254_v32 = vsel %vm252_vm3, %v249_v24, %v251_v23  ;;  %v253_v35 = vsel %vm252_vm3, %v247_v17, %v249_v24  ;;  %v6892_v17 = vld [vmem:[#allocation2 + $0x10] sm:$0xff] }
  0xea   : > { %559 = vrot.lane.b32.xlu1 %v6782_v12, %s6436_s24  ;;  %549 = vrot.lane.b32.xlu0 %v6673_v5, %s6435_s9  ;;  %1447 = vst.msk [vmem:[#allocation2 + $0x10] sm:$0xff] %vm226_vm0, %v6895_v18 }
  0xeb   : > { %5413 = vmatpush1.bf16.msra.mxu1 %v5412_v26 }
  0xec   : > { %v264_v27 = vpop.permute.xlu1 %263  ;;  %v262_v28 = vpop.permute.xlu0 %261  ;;  %5414 = vmatprep.subr.bf16.mxu1 %v6429_v0 }
  0xed   : > { %v268_v29 = vsel %vm267_vm2, %v262_v28, %v264_v27 }
  0xee   : > { %563 = vrot.lane.b32.xlu1 %v6673_v5, %s6436_s24  ;;  %561 = vrot.lane.b32.xlu0 %v6779_v11, %s6436_s24  ;;  %v5365_v37 = vpack.c.bf16 %v268_v29, %v253_v35 }
  0xf0   : > { %v277_v30 = vpop.permute.xlu1 %276  ;;  %v266_v31 = vpop.permute.xlu0 %265  ;;  %v611_v42 = vld [vmem:[#allocation2 + $0x40] sm:$0xff] }
  0xf1   : > { %v269_v33 = vsel %vm267_vm2, %v264_v27, %v266_v31  ;;  %275 = vst.msk [vmem:[#allocation2 + $0x58] sm:$0xff] %vm226_vm0, %v266_v31 }
  0xf2   : > { %575 = vrot.lane.b32.xlu1 %v6779_v11, %s6437_s7  ;;  %573 = vrot.lane.b32.xlu0 %v6782_v12, %s6437_s7  ;;  %v5363_v36 = vpack.c.bf16 %v269_v33, %v254_v32 }
  0xf4   : > { %v281_v38 = vpop.permute.xlu1 %280  ;;  %v279_v39 = vpop.permute.xlu0 %278  ;;  %5364 = vmatprep.subr.bf16.mxu0 %v5363_v36 }
  0xf5   : > { %290 = vst.msk [vmem:[#allocation2 + $0x70] sm:$0xff] %vm226_vm0, %v281_v38  ;;  %5366 = vmatpush1.bf16.msra.mxu0 %v5365_v37  ;;  %v284_v49 = vsel %vm282_vm6, %v279_v39, %v281_v38  ;;  %v283_v51 = vsel %vm282_vm6, %v277_v30, %v279_v39 }
  0xf6   : > { %587 = vrot.lane.b32.xlu1 %v6782_v12, %s6438_s5  ;;  %577 = vrot.lane.b32.xlu0 %v6673_v5, %s6437_s7 }
  0xf8   : > { %v294_v40 = vpop.permute.xlu1 %293  ;;  %v292_v41 = vpop.permute.xlu0 %291  ;;  %v614_v43 = vld [vmem:[#allocation2 + $0x58] sm:$0xff] }
  0xf9   : > { %v5415_v44 = vpack.c.bf16 %v614_v43, %v611_v42  ;;  %v298_v46 = vsel %vm297_vm5, %v292_v41, %v294_v40 }
  0xfa   : > { %591 = vrot.lane.b32.xlu1 %v6673_v5, %s6438_s5  ;;  %589 = vrot.lane.b32.xlu0 %v6779_v11, %s6438_s5  ;;  %v5369_v53 = vpack.c.bf16 %v298_v46, %v283_v51 }
  0xfb   : > { %5416 = vmatpush1.bf16.msra.mxu1 %v5415_v44 }
  0xfc   : > { %v307_v47 = vpop.permute.xlu1 %306  ;;  %v296_v48 = vpop.permute.xlu0 %295  ;;  %5417 = vmatprep.subr.bf16.mxu1 %v6429_v0  ;;  %v617_v58 = vld [vmem:[#allocation2 + $0x70] sm:$0xff] }
  0xfd   : > { %v299_v50 = vsel %vm297_vm5, %v294_v40, %v296_v48  ;;  %305 = vst.msk [vmem:[#allocation2 + $0x88] sm:$0xff] %vm226_vm0, %v296_v48 }
  0xfe   : > { %847 = vrot.lane.b32.xlu1 %v6728_v10, %s6430_s28  ;;  %687 = vperm.xlu0 %6221, %v6862_v45   ;;  %v5367_v52 = vpack.c.bf16 %v299_v50, %v284_v49 }
 0x100   : > { %v311_v54 = vpop.permute.xlu1 %310  ;;  %v309_v55 = vpop.permute.xlu0 %308  ;;  %5368 = vmatprep.subr.bf16.mxu0 %v5367_v52 }
 0x101   : > { %320 = vst.msk [vmem:[#allocation2 + $0xa0] sm:$0xff] %vm226_vm0, %v311_v54  ;;  %5370 = vmatpush1.bf16.msra.mxu0 %v5369_v53  ;;  %v314_v1 = vsel %vm312_vm8, %v309_v55, %v311_v54  ;;  %v313_v3 = vsel %vm312_vm8, %v307_v47, %v309_v55 }
 0x102   : > { %849 = vrot.lane.b32.xlu1 %v6725_v9, %s6430_s28  ;;  %851 = vrot.lane.b32.xlu0 %v6670_v4, %s6430_s28 }
 0x104   : > { %v324_v56 = vpop.permute.xlu1 %323  ;;  %v322_v57 = vpop.permute.xlu0 %321  ;;  %v620_v59 = vld [vmem:[#allocation2 + $0x88] sm:$0xff] }
 0x105   : > { %v5418_v60 = vpack.c.bf16 %v620_v59, %v617_v58  ;;  %v328_v61 = vsel %vm327_vm7, %v322_v57, %v324_v56  ;;  %v6952_v58 = vld [vmem:[#allocation2 + $0xe8] sm:$0xff] }
 0x106   : > { %861 = vrot.lane.b32.xlu1 %v6728_v10, %s6431_s26  ;;  %863 = vrot.lane.b32.xlu0 %v6725_v9, %s6431_s26  ;;  %v5373_v7 = vpack.c.bf16 %v328_v61, %v313_v3  ;;  %1568 = vst.msk [vmem:[#allocation2 + $0xe8] sm:$0xff] %vm226_vm0, %v6791_v14 }
 0x107   : > { %5419 = vmatpush1.bf16.msra.mxu1 %v5418_v60 }
 0x108   : > { %v337_v62 = vpop.permute.xlu1 %336  ;;  %v326_v63 = vpop.permute.xlu0 %325  ;;  %5420 = vmatprep.subr.bf16.mxu1 %v6429_v0  ;;  %v623_v25 = vld [vmem:[#allocation2 + $0xa0] sm:$0xff] }
 0x109   : > { %v329_v2 = vsel %vm327_vm7, %v324_v56, %v326_v63  ;;  %335 = vst.msk [vmem:[#allocation2 + $0xb8] sm:$0xff] %vm226_vm0, %v326_v63 }
 0x10a   : > { %865 = vrot.lane.b32.xlu1 %v6670_v4, %s6431_s26  ;;  %875 = vrot.lane.b32.xlu0 %v6728_v10, %s6432_s4  ;;  %v5371_v6 = vpack.c.bf16 %v329_v2, %v314_v1 }
 0x10c   : > { %v341_v15 = vpop.permute.xlu1 %340  ;;  %v339_v16 = vpop.permute.xlu0 %338  ;;  %5372 = vmatprep.subr.bf16.mxu0 %v5371_v6 }
 0x10d   : > { %350 = vst.msk [vmem:[#allocation2 + $0xd0] sm:$0xff] %vm226_vm0, %v341_v15  ;;  %v343_v19 = vsel %vm342_vm9, %v337_v62, %v339_v16  ;;  %v344_v20 = vsel %vm342_vm9, %v339_v16, %v341_v15  ;;  %5374 = vmatpush1.bf16.msra.mxu0 %v5373_v7 }
 0x10e   : > { %877 = vrot.lane.b32.xlu1 %v6725_v9, %s6432_s4  ;;  %879 = vrot.lane.b32.xlu0 %v6670_v4, %s6432_s4  ;;  %v5375_v21 = vpack.c.bf16 %v6725_v9, %v344_v20  ;;  %v5377_v22 = vpack.c.bf16 %v6728_v10, %v343_v19 }
 0x110   : > { %v367_v23 = vpop.permute.xlu1 %366  ;;  %v365_v24 = vpop.permute.xlu0 %364  ;;  %v626_v26 = vld [vmem:[#allocation2 + $0xb8] sm:$0xff]  ;;  %5376 = vmatprep.subr.bf16.mxu0 %v5375_v21 }
 0x111   : > { %v5421_v27 = vpack.c.bf16 %v626_v26, %v623_v25  ;;  %5378 = vmatpush1.bf16.msra.mxu0 %v5377_v22  ;;  %v370_v35 = vsel %vm237_vm1, %v365_v24, %v367_v23 }
 0x112   : > { %889 = vrot.lane.b32.xlu1 %v6728_v10, %s6434_s8  ;;  %891 = vrot.lane.b32.xlu0 %v6725_v9, %s6434_s8 }
 0x113   : > { %5422 = vmatpush1.bf16.msra.mxu1 %v5421_v27 }
 0x114   : > { %v379_v28 = vpop.permute.xlu1 %378  ;;  %v369_v29 = vpop.permute.xlu0 %368  ;;  %5423 = vmatprep.subr.bf16.mxu1 %v6429_v0  ;;  %v629_v30 = vld [vmem:[#allocation2 + $0xd0] sm:$0xff] }
 0x115   : > { %377 = vst.msk [vmem:[#allocation2 + $0x100] sm:$0xff] %vm226_vm0, %v369_v29  ;;  %v5424_v31 = vpack.c.bf16 %v6717_v8, %v629_v30  ;;  %v371_v36 = vsel %vm237_vm1, %v367_v23, %v369_v29 }
 0x116   : > { %893 = vrot.lane.b32.xlu1 %v6670_v4, %s6434_s8  ;;  %903 = vrot.lane.b32.xlu0 %v6728_v10, %s6435_s9 }
 0x117   : > { %5425 = vmatpush1.bf16.msra.mxu1 %v5424_v31 }
 0x118   : > { %v383_v32 = vpop.permute.xlu1 %382  ;;  %v381_v33 = vpop.permute.xlu0 %380  ;;  %5426 = vmatprep.subr.bf16.mxu1 %v6429_v0 }
 0x119   : > { %391 = vst.msk [vmem:[#allocation2 + $0x118] sm:$0xff] %vm226_vm0, %v383_v32  ;;  %v384_v37 = vsel %vm252_vm3, %v379_v28, %v381_v33  ;;  %v385_v8 = vsel %vm252_vm3, %v381_v33, %v383_v32 }
 0x11a   : > { %905 = vrot.lane.b32.xlu1 %v6725_v9, %s6435_s9  ;;  %907 = vrot.lane.b32.xlu0 %v6670_v4, %s6435_s9  ;;  %v5379_v38 = vpack.c.bf16 %v385_v8, %v371_v36  ;;  %v5381_v39 = vpack.c.bf16 %v384_v37, %v370_v35 }
 0x11c   : > { %v395_v40 = vpop.permute.xlu1 %394  ;;  %v393_v41 = vpop.permute.xlu0 %392  ;;  %5380 = vmatprep.subr.bf16.mxu0 %v5379_v38  ;;  %v635_v44 = vld [vmem:[#allocation2 + $0x100] sm:$0xff] }
 0x11d   : > { %5382 = vmatpush1.bf16.msra.mxu0 %v5381_v39  ;;  %v398_v50 = vsel %vm267_vm2, %v393_v41, %v395_v40 }
 0x11e   : > { %917 = vrot.lane.b32.xlu1 %v6728_v10, %s6436_s24  ;;  %919 = vrot.lane.b32.xlu0 %v6725_v9, %s6436_s24 }
 0x120   : > { %v407_v42 = vpop.permute.xlu1 %406  ;;  %v397_v43 = vpop.permute.xlu0 %396  ;;  %v638_v46 = vld [vmem:[#allocation2 + $0x118] sm:$0xff] }
 0x121   : > { %405 = vst.msk [vmem:[#allocation2 + $0x130] sm:$0xff] %vm226_vm0, %v397_v43  ;;  %v5427_v47 = vpack.c.bf16 %v638_v46, %v635_v44  ;;  %v399_v51 = vsel %vm267_vm2, %v395_v40, %v397_v43 }
 0x122   : > { %921 = vrot.lane.b32.xlu1 %v6670_v4, %s6436_s24  ;;  %931 = vrot.lane.b32.xlu0 %v6728_v10, %s6437_s7 }
 0x123   : > { %5428 = vmatpush1.bf16.msra.mxu1 %v5427_v47 }
 0x124   : > { %v411_v48 = vpop.permute.xlu1 %410  ;;  %v409_v49 = vpop.permute.xlu0 %408  ;;  %5429 = vmatprep.subr.bf16.mxu1 %v6429_v0 }
 0x125   : > { %419 = vst.msk [vmem:[#allocation2 + $0x148] sm:$0xff] %vm226_vm0, %v411_v48  ;;  %v412_v52 = vsel %vm282_vm6, %v407_v42, %v409_v49  ;;  %v413_v53 = vsel %vm282_vm6, %v409_v49, %v411_v48 }
 0x126   : > { %933 = vrot.lane.b32.xlu1 %v6725_v9, %s6437_s7  ;;  %935 = vrot.lane.b32.xlu0 %v6670_v4, %s6437_s7  ;;  %v5383_v54 = vpack.c.bf16 %v413_v53, %v399_v51  ;;  %v5385_v55 = vpack.c.bf16 %v412_v52, %v398_v50 }
 0x128   : > { %v423_v56 = vpop.permute.xlu1 %422  ;;  %v421_v57 = vpop.permute.xlu0 %420  ;;  %5384 = vmatprep.subr.bf16.mxu0 %v5383_v54  ;;  %v641_v61 = vld [vmem:[#allocation2 + $0x130] sm:$0xff] }
 0x129   : > { %5386 = vmatpush1.bf16.msra.mxu0 %v5385_v55  ;;  %v426_v3 = vsel %vm297_vm5, %v421_v57, %v423_v56 }
 0x12a   : > { %945 = vrot.lane.b32.xlu1 %v6728_v10, %s6438_s5  ;;  %947 = vrot.lane.b32.xlu0 %v6725_v9, %s6438_s5 }
 0x12c   : > { %v435_v59 = vpop.permute.xlu1 %434  ;;  %v425_v60 = vpop.permute.xlu0 %424  ;;  %v644_v62 = vld [vmem:[#allocation2 + $0x148] sm:$0xff] }
 0x12d   : > { %433 = vst.msk [vmem:[#allocation2 + $0x160] sm:$0xff] %vm226_vm0, %v425_v60  ;;  %v5430_v63 = vpack.c.bf16 %v644_v62, %v641_v61  ;;  %v427_v6 = vsel %vm297_vm5, %v423_v56, %v425_v60 }
 0x12e   : > { %949 = vrot.lane.b32.xlu1 %v6670_v4, %s6438_s5  ;;  %968 = vrot.lane.b32.xlu0 %v6782_v12, %s6430_s28 }
 0x12f   : > { %5431 = vmatpush1.bf16.msra.mxu1 %v5430_v63 }
 0x130   : > { %v439_v1 = vpop.permute.xlu1 %438  ;;  %v437_v2 = vpop.permute.xlu0 %436  ;;  %5432 = vmatprep.subr.bf16.mxu1 %v6429_v0 }
 0x131   : > { %447 = vst.msk [vmem:[#allocation2 + $0x178] sm:$0xff] %vm226_vm0, %v439_v1  ;;  %v440_v7 = vsel %vm312_vm8, %v435_v59, %v437_v2  ;;  %v441_v15 = vsel %vm312_vm8, %v437_v2, %v439_v1 }
 0x132   : > { %970 = vrot.lane.b32.xlu1 %v6779_v11, %s6430_s28  ;;  %972 = vrot.lane.b32.xlu0 %v6673_v5, %s6430_s28  ;;  %v5387_v4 = vpack.c.bf16 %v441_v15, %v427_v6  ;;  %v5389_v16 = vpack.c.bf16 %v440_v7, %v426_v3  ;;  %v7034_v6 = vld [vmem:[%s6655_s12 + $0x48] sm:$0xff] }
 0x134   : > { %v451_v19 = vpop.permute.xlu1 %450  ;;  %v449_v20 = vpop.permute.xlu0 %448  ;;  %5388 = vmatprep.subr.bf16.mxu0 %v5387_v4  ;;  %v647_v23 = vld [vmem:[#allocation2 + $0x160] sm:$0xff] }
 0x135   : > { %5390 = vmatpush1.bf16.msra.mxu0 %v5389_v16  ;;  %v454_v28 = vsel %vm327_vm7, %v449_v20, %v451_v19 }
 0x136   : > { %982 = vrot.lane.b32.xlu1 %v6782_v12, %s6431_s26  ;;  %984 = vrot.lane.b32.xlu0 %v6779_v11, %s6431_s26 }
 0x138   : > { %v463_v21 = vpop.permute.xlu1 %462  ;;  %v453_v22 = vpop.permute.xlu0 %452  ;;  %v650_v24 = vld [vmem:[#allocation2 + $0x178] sm:$0xff] }
 0x139   : > { %461 = vst.msk [vmem:[#allocation2 + $0x190] sm:$0xff] %vm226_vm0, %v453_v22  ;;  %v5433_v25 = vpack.c.bf16 %v650_v24, %v647_v23  ;;  %v455_v29 = vsel %vm327_vm7, %v451_v19, %v453_v22  ;;  %v7047_v22 = vld [vmem:[%s6655_s12 + $0x50] sm:$0xff] }
 0x13a   : > { %986 = vrot.lane.b32.xlu1 %v6673_v5, %s6431_s26  ;;  %996 = vrot.lane.b32.xlu0 %v6782_v12, %s6432_s4 }
 0x13b   : > { %5434 = vmatpush1.bf16.msra.mxu1 %v5433_v25 }
 0x13c   : > { %v467_v26 = vpop.permute.xlu1 %466  ;;  %v465_v27 = vpop.permute.xlu0 %464  ;;  %5435 = vmatprep.subr.bf16.mxu1 %v6429_v0 }
 0x13d   : > { %475 = vst.msk [vmem:[#allocation2 + $0x1a8] sm:$0xff] %vm226_vm0, %v467_v26  ;;  %v468_v30 = vsel %vm342_vm9, %v463_v21, %v465_v27  ;;  %v469_v31 = vsel %vm342_vm9, %v465_v27, %v467_v26 }
 0x13e   : > { %998 = vrot.lane.b32.xlu1 %v6779_v11, %s6432_s4  ;;  %1000 = vrot.lane.b32.xlu0 %v6673_v5, %s6432_s4  ;;  %v5391_v32 = vpack.c.bf16 %v469_v31, %v455_v29  ;;  %v5393_v33 = vpack.c.bf16 %v468_v30, %v454_v28 }
 0x140   : > { %v492_v35 = vpop.permute.xlu1 %491  ;;  %v490_v36 = vpop.permute.xlu0 %489  ;;  %5392 = vmatprep.subr.bf16.mxu0 %v5391_v32  ;;  %v653_v39 = vld [vmem:[#allocation2 + $0x190] sm:$0xff] }
 0x141   : > { %5394 = vmatpush1.bf16.msra.mxu0 %v5393_v33  ;;  %v495_v37 = vsel %vm237_vm1, %v490_v36, %v492_v35 }
 0x142   : > { %1010 = vrot.lane.b32.xlu1 %v6782_v12, %s6434_s8  ;;  %1012 = vrot.lane.b32.xlu0 %v6779_v11, %s6434_s8  ;;  %v5397_v44 = vpack.c.bf16 %v495_v37, %v6782_v12 }
 0x144   : > { %v504_v8 = vpop.permute.xlu1 %503  ;;  %v494_v38 = vpop.permute.xlu0 %493  ;;  %v656_v40 = vld [vmem:[#allocation2 + $0x1a8] sm:$0xff] }
 0x145   : > { %v496_v41 = vsel %vm237_vm1, %v492_v35, %v494_v38  ;;  %502 = vst.msk [vmem:[#allocation2 + $0x1d8] sm:$0xff] %vm226_vm0, %v494_v38  ;;  %v5436_v42 = vpack.c.bf16 %v656_v40, %v653_v39  ;;  %v7068_v40 = vld [vmem:[#allocation2 + $0x1c0] sm:$0xff] }
 0x146   : > { %1014 = vrot.lane.b32.xlu1 %v6673_v5, %s6434_s8  ;;  %1024 = vrot.lane.b32.xlu0 %v6782_v12, %s6435_s9  ;;  %v5395_v43 = vpack.c.bf16 %v496_v41, %v6779_v11  ;;  %v7071_v41 = vld [vmem:[%s6655_s12 + $0x70] sm:$0xff] }
 0x147   : > { %5437 = vmatpush1.bf16.msra.mxu1 %v5436_v42  ;;  %1693 = vst.msk [vmem:[#allocation2 + $0x1c0] sm:$0xff] %vm226_vm0, %v7071_v41 }
 0x148   : > { %v508_v46 = vpop.permute.xlu1 %507  ;;  %v506_v47 = vpop.permute.xlu0 %505  ;;  %5438 = vmatprep.subr.bf16.mxu1 %v6429_v0  ;;  %5396 = vmatprep.subr.bf16.mxu0 %v5395_v43 }
 0x149   : > { %516 = vst.msk [vmem:[#allocation2 + $0x1f0] sm:$0xff] %vm226_vm0, %v508_v46  ;;  %5398 = vmatpush1.bf16.msra.mxu0 %v5397_v44  ;;  %v510_v55 = vsel %vm252_vm3, %v506_v47, %v508_v46 }
 0x14a   : > { %1026 = vrot.lane.b32.xlu1 %v6779_v11, %s6435_s9  ;;  %1028 = vrot.lane.b32.xlu0 %v6673_v5, %s6435_s9 }
 0x14c   : > { %v520_v48 = vpop.permute.xlu1 %519  ;;  %v518_v49 = vpop.permute.xlu0 %517  ;;  %v662_v50 = vld [vmem:[#allocation2 + $0x1d8] sm:$0xff] }
 0x14d   : > { %v5439_v51 = vpack.c.bf16 %v662_v50, %v6788_v13  ;;  %v523_v52 = vsel %vm267_vm2, %v518_v49, %v520_v48  ;;  %v509_v13 = vsel %vm252_vm3, %v504_v8, %v506_v47 }
 0x14e   : > { %1038 = vrot.lane.b32.xlu1 %v6782_v12, %s6436_s24  ;;  %1040 = vrot.lane.b32.xlu0 %v6779_v11, %s6436_s24  ;;  %v5401_v59 = vpack.c.bf16 %v523_v52, %v509_v13 }
 0x14f   : > { %5440 = vmatpush1.bf16.msra.mxu1 %v5439_v51  ;;  %v6439_v51 = vmov 0.0  }
 0x150   : > { %v532_v53 = vpop.permute.xlu1 %531  ;;  %v522_v54 = vpop.permute.xlu0 %521  ;;  %5441 = vmatprep.subr.bf16.mxu1 %v6429_v0  ;;  %v665_v1 = vld [vmem:[#allocation2 + $0x1f0] sm:$0xff] }
 0x151   : > { %v524_v56 = vsel %vm267_vm2, %v520_v48, %v522_v54  ;;  %530 = vst.msk [vmem:[#allocation2 + $0x208] sm:$0xff] %vm226_vm0, %v522_v54  ;;  %v7082_v48 = vld [vmem:[#allocation6] sm:$0xff] }
 0x152   : > { %1042 = vrot.lane.b32.xlu1 %v6673_v5, %s6436_s24  ;;  %1052 = vrot.lane.b32.xlu0 %v6782_v12, %s6437_s7  ;;  %v5399_v57 = vpack.c.bf16 %v524_v56, %v510_v55 }
 0x154   : > { %v536_v60 = vpop.permute.xlu1 %535  ;;  %v534_v61 = vpop.permute.xlu0 %533  ;;  %5400 = vmatprep.subr.bf16.mxu0 %v5399_v57 }
 0x155   : > { %544 = vst.msk [vmem:[#allocation2 + $0x220] sm:$0xff] %vm226_vm0, %v536_v60  ;;  %5402 = vmatpush1.bf16.msra.mxu0 %v5401_v59  ;;  %v538_v16 = vsel %vm282_vm6, %v534_v61, %v536_v60  ;;  %v537_v20 = vsel %vm282_vm6, %v532_v53, %v534_v61 }
 0x156   : > { %1054 = vrot.lane.b32.xlu1 %v6779_v11, %s6437_s7  ;;  %1056 = vrot.lane.b32.xlu0 %v6673_v5, %s6437_s7 }
 0x158   : > { %v548_v62 = vpop.permute.xlu1 %547  ;;  %v546_v63 = vpop.permute.xlu0 %545  ;;  %v668_v2 = vld [vmem:[#allocation2 + $0x208] sm:$0xff] }
 0x159   : > { %v5442_v3 = vpack.c.bf16 %v668_v2, %v665_v1  ;;  %v551_v7 = vsel %vm297_vm5, %v546_v63, %v548_v62 }
 0x15a   : > { %1066 = vrot.lane.b32.xlu1 %v6782_v12, %s6438_s5  ;;  %1068 = vrot.lane.b32.xlu0 %v6779_v11, %s6438_s5  ;;  %v5405_v23 = vpack.c.bf16 %v551_v7, %v537_v20 }
 0x15b   : > { %5443 = vmatpush1.bf16.msra.mxu1 %v5442_v3 }
 0x15c   : > { %v560_v15 = vpop.permute.xlu1 %559  ;;  %v550_v4 = vpop.permute.xlu0 %549  ;;  %5444 = vmatprep.subr.bf16.mxu1 %v6429_v0  ;;  %v671_v27 = vld [vmem:[#allocation2 + $0x220] sm:$0xff] }
 0x15d   : > { %v552_v19 = vsel %vm297_vm5, %v548_v62, %v550_v4  ;;  %558 = vst.msk [vmem:[#allocation2 + $0x238] sm:$0xff] %vm226_vm0, %v550_v4 }
 0x15e   : > { %1070 = vrot.lane.b32.xlu1 %v6673_v5, %s6438_s5  ;;  %1093 = vrot.lane.b32.xlu0 %v7034_v6, %s6430_s28  ;;  %v5403_v21 = vpack.c.bf16 %v552_v19, %v538_v16  ;;  %v7139_v16 = vld [vmem:[%s6655_s12 + $0x38] sm:$0xff] }
 0x160   : > { %v564_v24 = vpop.permute.xlu1 %563  ;;  %v562_v25 = vpop.permute.xlu0 %561  ;;  %5404 = vmatprep.subr.bf16.mxu0 %v5403_v21 }
 0x161   : > { %572 = vst.msk [vmem:[#allocation2 + $0x250] sm:$0xff] %vm226_vm0, %v564_v24  ;;  %5406 = vmatpush1.bf16.msra.mxu0 %v5405_v23  ;;  %v566_v33 = vsel %vm312_vm8, %v562_v25, %v564_v24  ;;  %v565_v36 = vsel %vm312_vm8, %v560_v15, %v562_v25 }
 0x162   : > { %1095 = vrot.lane.b32.xlu1 %v7047_v22, %s6430_s28  ;;  %1097 = vrot.lane.b32.xlu0 %v6791_v14, %s6430_s28 }
 0x164   : > { %v576_v5 = vpop.permute.xlu1 %575  ;;  %v574_v26 = vpop.permute.xlu0 %573  ;;  %v674_v28 = vld [vmem:[#allocation2 + $0x238] sm:$0xff] }
 0x165   : > { %v5445_v29 = vpack.c.bf16 %v674_v28, %v671_v27  ;;  %v579_v30 = vsel %vm327_vm7, %v574_v26, %v576_v5  ;;  %v7154_v28 = vld [vmem:[#allocation2 + $0x10] sm:$0xff] }
 0x166   : > { %1107 = vrot.lane.b32.xlu1 %v7034_v6, %s6431_s26  ;;  %1109 = vrot.lane.b32.xlu0 %v7047_v22, %s6431_s26  ;;  %v5409_v8 = vpack.c.bf16 %v579_v30, %v565_v36 }
 0x167   : > { %5446 = vmatpush1.bf16.msra.mxu1 %v5445_v29  ;;  %v7157_v29 = vld [vmem:[%s6655_s12 + $0x58] sm:$0xff] }
 0x168   : > { %v588_v31 = vpop.permute.xlu1 %587  ;;  %v578_v32 = vpop.permute.xlu0 %577  ;;  %5447 = vmatprep.subr.bf16.mxu1 %v6429_v0  ;;  %v677_v46 = vld [vmem:[#allocation2 + $0x250] sm:$0xff]  ;;  %2051 = vst.msk [vmem:[#allocation2 + $0x10] sm:$0xff] %vm226_vm0, %v7157_v29 }
 0x169   : > { %v580_v35 = vsel %vm327_vm7, %v576_v5, %v578_v32  ;;  %586 = vst.msk [vmem:[#allocation2 + $0x268] sm:$0xff] %vm226_vm0, %v578_v32 }
 0x16a   : > { %1111 = vrot.lane.b32.xlu1 %v6791_v14, %s6431_s26  ;;  %1121 = vrot.lane.b32.xlu0 %v7034_v6, %s6432_s4  ;;  %v5407_v37 = vpack.c.bf16 %v580_v35, %v566_v33 }
 0x16c   : > { %v592_v38 = vpop.permute.xlu1 %591  ;;  %v590_v39 = vpop.permute.xlu0 %589  ;;  %5408 = vmatprep.subr.bf16.mxu0 %v5407_v37 }
 0x16d   : > { %600 = vst.msk [vmem:[#allocation2 + $0x280] sm:$0xff] %vm226_vm0, %v592_v38  ;;  %v594_v42 = vsel %vm342_vm9, %v590_v39, %v592_v38  ;;  %5410 = vmatpush1.bf16.msra.mxu0 %v5409_v8  ;;  %v593_v43 = vsel %vm342_vm9, %v588_v31, %v590_v39 }
 0x16e   : > { %1123 = vrot.lane.b32.xlu1 %v7047_v22, %s6432_s4  ;;  %1125 = vrot.lane.b32.xlu0 %v6791_v14, %s6432_s4 }
 0x16f   : > { %746 = vmatprep.subr.mxu0 %v594_v42 }
 0x170   : > { %v848_v44 = vpop.permute.xlu1 %847  ;;  %v680_v47 = vld [vmem:[#allocation2 + $0x268] sm:$0xff] }
 0x171   : > { %v5448_v49 = vpack.c.bf16 %v680_v47, %v677_v46  ;;  %747 = vmatpush1.msra.mxu0 %v593_v43 }
 0x172   : > { %1135 = vrot.lane.b32.xlu1 %v7034_v6, %s6434_s8  ;;  %1137 = vrot.lane.b32.xlu0 %v7047_v22, %s6434_s8 }
 0x173   : > { %5449 = vmatpush1.bf16.msra.mxu1 %v5448_v49  ;;  %759 = vmatmul.mubr.f32.vlgmr.msra.gmra.mrb[0].mxu0 %v7082_v48 }
 0x174   : > { %v850_v50 = vpop.permute.xlu1 %849  ;;  %817 = vmatprep.subr.mxu1 %v6439_v51  ;;  %v683_v52 = vld [vmem:[#allocation2 + $0x280] sm:$0xff]  ;;  %5252 = vmatprep.mubr.msk.f32.mxu0 %vm690_vm4, %v6839_v34 }
 0x176   : > { %1139 = vrot.lane.b32.xlu1 %v6791_v14, %s6434_s8  ;;  %1149 = vrot.lane.b32.xlu0 %v7034_v6, %s6435_s9 }
 0x177   : > { %818 = vmatpush1.msra.mxu1 %v683_v52 }
 0x178   : > { %v862_v53 = vpop.permute.xlu1 %861  ;;  %830 = vmatmul.mubr.f32.vlgmr.msra.gmra.mrb[0].mxu1 %v7082_v48  ;;  %5502 = vmatprep.subr.bf16.mxu1 %v6429_v0 }
 0x179   : > { %5253 = vmatprep.mubr.msk.f32.mxu1 %vm690_vm4, %v6839_v34  ;;  %v853_v34 = vsel %vm237_vm1, %v848_v44, %v850_v50 }
 0x17a   : > { %1151 = vrot.lane.b32.xlu1 %v7047_v22, %s6435_s9  ;;  %1153 = vrot.lane.b32.xlu0 %v6791_v14, %s6435_s9  ;;  %v5452_v62 = vpack.c.bf16 %v853_v34, %v6728_v10 }
 0x17c   : > { %v866_v54 = vpop.permute.xlu1 %865 }
 0x17d   : > { %874 = vst.msk [vmem:[#allocation2 + $0x40] sm:$0xff] %vm226_vm0, %v866_v54  ;;  %v7105_v55 = vpop.permute.xlu0 %687 }
 0x17e   : > { %1163 = vrot.lane.b32.xlu1 %v7034_v6, %s6436_s24  ;;  %1165 = vrot.lane.b32.xlu0 %v7047_v22, %s6436_s24 }
 0x180   : > { %v878_v56 = vpop.permute.xlu1 %877 }
 0x181   : > { %v852_v13 = vpop.permute.xlu0 %851 }
 0x182   : > { %v854_v57 = vsel %vm237_vm1, %v850_v50, %v852_v13  ;;  %860 = vst.msk [vmem:[#allocation2 + $0x28] sm:$0xff] %vm226_vm0, %v852_v13  ;;  %1167 = vrot.lane.b32.xlu1 %v6791_v14, %s6436_s24  ;;  %1177 = vrot.lane.b32.xlu0 %v7034_v6, %s6437_s7 }
 0x183   : > { %v5450_v59 = vpack.c.bf16 %v854_v57, %v6725_v9 }
 0x184   : > { %v890_v60 = vpop.permute.xlu1 %889  ;;  %v1215_v5 = vld [vmem:[#allocation2 + $0x40] sm:$0xff] }
 0x185   : > { %v864_v61 = vpop.permute.xlu0 %863  ;;  %5451 = vmatprep.subr.bf16.mxu0 %v5450_v59 }
 0x186   : > { %1179 = vrot.lane.b32.xlu1 %v7047_v22, %s6437_s7  ;;  %1181 = vrot.lane.b32.xlu0 %v6791_v14, %s6437_s7  ;;  %v868_v7 = vsel %vm252_vm3, %v864_v61, %v866_v54  ;;  %v867_v20 = vsel %vm252_vm3, %v862_v53, %v864_v61 }
 0x187   : > { %5453 = vmatpush1.bf16.msra.mxu0 %v5452_v62 }
 0x188   : > { %v894_v63 = vpop.permute.xlu1 %893 }
 0x189   : > { %902 = vst.msk [vmem:[#allocation2 + $0x70] sm:$0xff] %vm226_vm0, %v894_v63  ;;  %v876_v1 = vpop.permute.xlu0 %875  ;;  %v1212_v2 = vld [vmem:[#allocation2 + $0x28] sm:$0xff] }
 0x18a   : > { %1191 = vrot.lane.b32.xlu1 %v7034_v6, %s6438_s5  ;;  %1193 = vrot.lane.b32.xlu0 %v7047_v22, %s6438_s5  ;;  %v5503_v9 = vpack.c.bf16 %v1212_v2, %v6892_v17  ;;  %v881_v15 = vsel %vm267_vm2, %v876_v1, %v878_v56  ;;  %v7142_v17 = vld [vmem:[%s6655_s12 + $0x30] sm:$0xff] }
 0x18b   : > { %v5456_v24 = vpack.c.bf16 %v881_v15, %v867_v20 }
 0x18c   : > { %v906_v10 = vpop.permute.xlu1 %905  ;;  %5504 = vmatpush1.bf16.msra.mxu1 %v5503_v9 }
 0x18d   : > { %v880_v3 = vpop.permute.xlu0 %879  ;;  %5505 = vmatprep.subr.bf16.mxu1 %v6429_v0 }
 0x18e   : > { %v882_v4 = vsel %vm267_vm2, %v878_v56, %v880_v3  ;;  %888 = vst.msk [vmem:[#allocation2 + $0x58] sm:$0xff] %vm226_vm0, %v880_v3  ;;  %1195 = vrot.lane.b32.xlu1 %v6791_v14, %s6438_s5  ;;  %1291 = vperm.xlu0 %6221, %v6862_v45  }
 0x18f   : > { %v5454_v19 = vpack.c.bf16 %v882_v4, %v868_v7 }
 0x190   : > { %v918_v21 = vpop.permute.xlu1 %917  ;;  %v1221_v44 = vld [vmem:[#allocation2 + $0x70] sm:$0xff] }
 0x191   : > { %v892_v23 = vpop.permute.xlu0 %891  ;;  %5455 = vmatprep.subr.bf16.mxu0 %v5454_v19 }
 0x192   : > { %1451 = vrot.lane.b32.xlu1 %v7142_v17, %s6430_s28  ;;  %1453 = vrot.lane.b32.xlu0 %v7139_v16, %s6430_s28  ;;  %v896_v32 = vsel %vm282_vm6, %v892_v23, %v894_v63  ;;  %v895_v37 = vsel %vm282_vm6, %v890_v60, %v892_v23 }
 0x193   : > { %5457 = vmatpush1.bf16.msra.mxu0 %v5456_v24 }
 0x194   : > { %v922_v45 = vpop.permute.xlu1 %921 }
 0x195   : > { %930 = vst.msk [vmem:[#allocation2 + $0xa0] sm:$0xff] %vm226_vm0, %v922_v45  ;;  %v904_v25 = vpop.permute.xlu0 %903  ;;  %v1218_v26 = vld [vmem:[#allocation2 + $0x58] sm:$0xff] }
 0x196   : > { %1455 = vrot.lane.b32.xlu1 %v6895_v18, %s6430_s28  ;;  %1465 = vrot.lane.b32.xlu0 %v7142_v17, %s6431_s26  ;;  %v5506_v27 = vpack.c.bf16 %v1218_v26, %v1215_v5  ;;  %v909_v33 = vsel %vm297_vm5, %v904_v25, %v906_v10 }
 0x197   : > { %v5460_v39 = vpack.c.bf16 %v909_v33, %v895_v37 }
 0x198   : > { %v934_v30 = vpop.permute.xlu1 %933  ;;  %5507 = vmatpush1.bf16.msra.mxu1 %v5506_v27 }
 0x199   : > { %v908_v31 = vpop.permute.xlu0 %907  ;;  %5508 = vmatprep.subr.bf16.mxu1 %v6429_v0 }
 0x19a   : > { %v910_v35 = vsel %vm297_vm5, %v906_v10, %v908_v31  ;;  %916 = vst.msk [vmem:[#allocation2 + $0x88] sm:$0xff] %vm226_vm0, %v908_v31  ;;  %1467 = vrot.lane.b32.xlu1 %v7139_v16, %s6431_s26  ;;  %1469 = vrot.lane.b32.xlu0 %v6895_v18, %s6431_s26 }
 0x19b   : > { %v5458_v36 = vpack.c.bf16 %v910_v35, %v896_v32 }
 0x19c   : > { %v946_v8 = vpop.permute.xlu1 %945  ;;  %v1227_v9 = vld [vmem:[#allocation2 + $0xa0] sm:$0xff] }
 0x19d   : > { %v920_v38 = vpop.permute.xlu0 %919  ;;  %5459 = vmatprep.subr.bf16.mxu0 %v5458_v36 }
 0x19e   : > { %1479 = vrot.lane.b32.xlu1 %v7142_v17, %s6432_s4  ;;  %1481 = vrot.lane.b32.xlu0 %v7139_v16, %s6432_s4  ;;  %v924_v52 = vsel %vm312_vm8, %v920_v38, %v922_v45  ;;  %v923_v13 = vsel %vm312_vm8, %v918_v21, %v920_v38 }
 0x19f   : > { %5461 = vmatpush1.bf16.msra.mxu0 %v5460_v39 }
 0x1a0   : > { %v950_v42 = vpop.permute.xlu1 %949 }
 0x1a1   : > { %958 = vst.msk [vmem:[#allocation2 + $0xd0] sm:$0xff] %vm226_vm0, %v950_v42  ;;  %v932_v43 = vpop.permute.xlu0 %931  ;;  %v1224_v46 = vld [vmem:[#allocation2 + $0x88] sm:$0xff] }
 0x1a2   : > { %1483 = vrot.lane.b32.xlu1 %v6895_v18, %s6432_s4  ;;  %1493 = vrot.lane.b32.xlu0 %v7142_v17, %s6434_s8  ;;  %v5509_v47 = vpack.c.bf16 %v1224_v46, %v1221_v44  ;;  %v937_v53 = vsel %vm327_vm7, %v932_v43, %v934_v30 }
 0x1a3   : > { %v5464_v59 = vpack.c.bf16 %v937_v53, %v923_v13 }
 0x1a4   : > { %v971_v49 = vpop.permute.xlu1 %970  ;;  %5510 = vmatpush1.bf16.msra.mxu1 %v5509_v47 }
 0x1a5   : > { %v936_v50 = vpop.permute.xlu0 %935  ;;  %5511 = vmatprep.subr.bf16.mxu1 %v6429_v0 }
 0x1a6   : > { %v938_v54 = vsel %vm327_vm7, %v934_v30, %v936_v50  ;;  %944 = vst.msk [vmem:[#allocation2 + $0xb8] sm:$0xff] %vm226_vm0, %v936_v50  ;;  %1495 = vrot.lane.b32.xlu1 %v7139_v16, %s6434_s8  ;;  %1497 = vrot.lane.b32.xlu0 %v6895_v18, %s6434_s8 }
 0x1a7   : > { %v5462_v56 = vpack.c.bf16 %v938_v54, %v924_v52 }
 0x1a8   : > { %v983_v34 = vpop.permute.xlu1 %982  ;;  %v1233_v7 = vld [vmem:[#allocation2 + $0xd0] sm:$0xff] }
 0x1a9   : > { %v948_v57 = vpop.permute.xlu0 %947  ;;  %5463 = vmatprep.subr.bf16.mxu0 %v5462_v56 }
 0x1aa   : > { %v951_v60 = vsel %vm342_vm9, %v946_v8, %v948_v57  ;;  %v952_v61 = vsel %vm342_vm9, %v948_v57, %v950_v42  ;;  %1507 = vrot.lane.b32.xlu1 %v7142_v17, %s6435_s9  ;;  %1509 = vrot.lane.b32.xlu0 %v7139_v16, %s6435_s9 }
 0x1ab   : > { %5465 = vmatpush1.bf16.msra.mxu0 %v5464_v59  ;;  %v5466_v62 = vpack.c.bf16 %v6779_v11, %v952_v61  ;;  %v5468_v63 = vpack.c.bf16 %v6782_v12, %v951_v60  ;;  %v5515_v12 = vpack.c.bf16 %v6952_v58, %v1233_v7 }
 0x1ac   : > { %v987_v1 = vpop.permute.xlu1 %986 }
 0x1ad   : > { %995 = vst.msk [vmem:[#allocation2 + $0x118] sm:$0xff] %vm226_vm0, %v987_v1  ;;  %v969_v2 = vpop.permute.xlu0 %968  ;;  %v1230_v10 = vld [vmem:[#allocation2 + $0xb8] sm:$0xff]  ;;  %5467 = vmatprep.subr.bf16.mxu0 %v5466_v62 }
 0x1ae   : > { %1511 = vrot.lane.b32.xlu1 %v6895_v18, %s6435_s9  ;;  %1521 = vrot.lane.b32.xlu0 %v7142_v17, %s6436_s24  ;;  %v5512_v3 = vpack.c.bf16 %v1230_v10, %v1227_v9  ;;  %v974_v19 = vsel %vm237_vm1, %v969_v2, %v971_v49 }
 0x1af   : > { %5469 = vmatpush1.bf16.msra.mxu0 %v5468_v63 }
 0x1b0   : > { %v999_v15 = vpop.permute.xlu1 %998  ;;  %5513 = vmatpush1.bf16.msra.mxu1 %v5512_v3 }
 0x1b1   : > { %v973_v11 = vpop.permute.xlu0 %972  ;;  %5514 = vmatprep.subr.bf16.mxu1 %v6429_v0 }
 0x1b2   : > { %981 = vst.msk [vmem:[#allocation2 + $0x100] sm:$0xff] %vm226_vm0, %v973_v11  ;;  %1523 = vrot.lane.b32.xlu1 %v7139_v16, %s6436_s24  ;;  %1525 = vrot.lane.b32.xlu0 %v6895_v18, %s6436_s24  ;;  %v975_v21 = vsel %vm237_vm1, %v971_v49, %v973_v11  ;;  %v7243_v49 = vld [vmem:[#allocation2 + $0xe8] sm:$0xff] }
 0x1b3   : > { %2172 = vst.msk [vmem:[#allocation2 + $0xe8] sm:$0xff] %vm226_vm0, %v7071_v41 }
 0x1b4   : > { %v1011_v4 = vpop.permute.xlu1 %1010  ;;  %5516 = vmatpush1.bf16.msra.mxu1 %v5515_v12  ;;  %v1242_v27 = vld [vmem:[#allocation2 + $0x118] sm:$0xff] }
 0x1b5   : > { %v985_v20 = vpop.permute.xlu0 %984  ;;  %5517 = vmatprep.subr.bf16.mxu1 %v6429_v0 }
 0x1b6   : > { %v988_v23 = vsel %vm252_vm3, %v983_v34, %v985_v20  ;;  %v989_v24 = vsel %vm252_vm3, %v985_v20, %v987_v1  ;;  %1535 = vrot.lane.b32.xlu1 %v7142_v17, %s6437_s7  ;;  %1537 = vrot.lane.b32.xlu0 %v7139_v16, %s6437_s7 }
 0x1b7   : > { %v5470_v58 = vpack.c.bf16 %v989_v24, %v975_v21  ;;  %v5472_v45 = vpack.c.bf16 %v988_v23, %v974_v19 }
 0x1b8   : > { %v1015_v25 = vpop.permute.xlu1 %1014 }
 0x1b9   : > { %1023 = vst.msk [vmem:[#allocation2 + $0x148] sm:$0xff] %vm226_vm0, %v1015_v25  ;;  %v997_v5 = vpop.permute.xlu0 %996  ;;  %v1239_v26 = vld [vmem:[#allocation2 + $0x100] sm:$0xff]  ;;  %5471 = vmatprep.subr.bf16.mxu0 %v5470_v58 }
 0x1ba   : > { %1539 = vrot.lane.b32.xlu1 %v6895_v18, %s6437_s7  ;;  %1549 = vrot.lane.b32.xlu0 %v7142_v17, %s6438_s5  ;;  %v5518_v30 = vpack.c.bf16 %v1242_v27, %v1239_v26  ;;  %v1002_v35 = vsel %vm267_vm2, %v997_v5, %v999_v15 }
 0x1bb   : > { %5473 = vmatpush1.bf16.msra.mxu0 %v5472_v45 }
 0x1bc   : > { %v1027_v31 = vpop.permute.xlu1 %1026  ;;  %5519 = vmatpush1.bf16.msra.mxu1 %v5518_v30 }
 0x1bd   : > { %v1001_v32 = vpop.permute.xlu0 %1000  ;;  %5520 = vmatprep.subr.bf16.mxu1 %v6429_v0 }
 0x1be   : > { %1009 = vst.msk [vmem:[#allocation2 + $0x130] sm:$0xff] %vm226_vm0, %v1001_v32  ;;  %1551 = vrot.lane.b32.xlu1 %v7139_v16, %s6438_s5  ;;  %1553 = vrot.lane.b32.xlu0 %v6895_v18, %s6438_s5  ;;  %v1003_v37 = vsel %vm267_vm2, %v999_v15, %v1001_v32 }
 0x1c0   : > { %v1039_v33 = vpop.permute.xlu1 %1038  ;;  %v1248_v46 = vld [vmem:[#allocation2 + $0x148] sm:$0xff] }
 0x1c1   : > { %v1013_v36 = vpop.permute.xlu0 %1012 }
 0x1c2   : > { %v1016_v8 = vsel %vm282_vm6, %v1011_v4, %v1013_v36  ;;  %v1017_v38 = vsel %vm282_vm6, %v1013_v36, %v1015_v25  ;;  %1572 = vrot.lane.b32.xlu1 %v7034_v6, %s6430_s28  ;;  %1574 = vrot.lane.b32.xlu0 %v7047_v22, %s6430_s28 }
 0x1c3   : > { %v5474_v39 = vpack.c.bf16 %v1017_v38, %v1003_v37  ;;  %v5476_v42 = vpack.c.bf16 %v1016_v8, %v1002_v35 }
 0x1c4   : > { %v1043_v43 = vpop.permute.xlu1 %1042 }
 0x1c5   : > { %1051 = vst.msk [vmem:[#allocation2 + $0x178] sm:$0xff] %vm226_vm0, %v1043_v43  ;;  %v1025_v18 = vpop.permute.xlu0 %1024  ;;  %v1245_v44 = vld [vmem:[#allocation2 + $0x130] sm:$0xff]  ;;  %5475 = vmatprep.subr.bf16.mxu0 %v5474_v39 }
 0x1c6   : > { %1576 = vrot.lane.b32.xlu1 %v6791_v14, %s6430_s28  ;;  %1586 = vrot.lane.b32.xlu0 %v7034_v6, %s6431_s26  ;;  %v5521_v47 = vpack.c.bf16 %v1248_v46, %v1245_v44  ;;  %v1030_v54 = vsel %vm297_vm5, %v1025_v18, %v1027_v31 }
 0x1c7   : > { %5477 = vmatpush1.bf16.msra.mxu0 %v5476_v42 }
 0x1c8   : > { %v1055_v50 = vpop.permute.xlu1 %1054  ;;  %5522 = vmatpush1.bf16.msra.mxu1 %v5521_v47 }
 0x1c9   : > { %v1029_v52 = vpop.permute.xlu0 %1028  ;;  %5523 = vmatprep.subr.bf16.mxu1 %v6429_v0 }
 0x1ca   : > { %1037 = vst.msk [vmem:[#allocation2 + $0x160] sm:$0xff] %vm226_vm0, %v1029_v52  ;;  %1588 = vrot.lane.b32.xlu1 %v7047_v22, %s6431_s26  ;;  %1590 = vrot.lane.b32.xlu0 %v6791_v14, %s6431_s26  ;;  %v1031_v13 = vsel %vm297_vm5, %v1027_v31, %v1029_v52 }
 0x1cc   : > { %v1067_v53 = vpop.permute.xlu1 %1066  ;;  %v1254_v1 = vld [vmem:[#allocation2 + $0x178] sm:$0xff] }
 0x1cd   : > { %v1041_v56 = vpop.permute.xlu0 %1040 }
 0x1ce   : > { %v1044_v34 = vsel %vm312_vm8, %v1039_v33, %v1041_v56  ;;  %v1045_v57 = vsel %vm312_vm8, %v1041_v56, %v1043_v43  ;;  %1600 = vrot.lane.b32.xlu1 %v7034_v6, %s6432_s4  ;;  %1602 = vrot.lane.b32.xlu0 %v7047_v22, %s6432_s4 }
 0x1cf   : > { %v5478_v59 = vpack.c.bf16 %v1045_v57, %v1031_v13  ;;  %v5480_v60 = vpack.c.bf16 %v1044_v34, %v1030_v54 }
 0x1d0   : > { %v1071_v61 = vpop.permute.xlu1 %1070 }
 0x1d1   : > { %1079 = vst.msk [vmem:[#allocation2 + $0x1a8] sm:$0xff] %vm226_vm0, %v1071_v61  ;;  %v1053_v62 = vpop.permute.xlu0 %1052  ;;  %v1251_v63 = vld [vmem:[#allocation2 + $0x160] sm:$0xff]  ;;  %5479 = vmatprep.subr.bf16.mxu0 %v5478_v59 }
 0x1d2   : > { %1604 = vrot.lane.b32.xlu1 %v6791_v14, %s6432_s4  ;;  %1614 = vrot.lane.b32.xlu0 %v7034_v6, %s6434_s8  ;;  %v5524_v2 = vpack.c.bf16 %v1254_v1, %v1251_v63  ;;  %v1058_v7 = vsel %vm327_vm7, %v1053_v62, %v1055_v50  ;;  %v7340_v1 = vld [vmem:[#allocation2 + $0x1c0] sm:$0xff] }
 0x1d3   : > { %5481 = vmatpush1.bf16.msra.mxu0 %v5480_v60 }
 0x1d4   : > { %v1096_v9 = vpop.permute.xlu1 %1095  ;;  %5525 = vmatpush1.bf16.msra.mxu1 %v5524_v2  ;;  %v7343_v2 = vld [vmem:[%s6655_s12 + $0x88] sm:$0xff] }
 0x1d5   : > { %v1057_v10 = vpop.permute.xlu0 %1056  ;;  %5526 = vmatprep.subr.bf16.mxu1 %v6429_v0  ;;  %2297 = vst.msk [vmem:[#allocation2 + $0x1c0] sm:$0xff] %vm226_vm0, %v7343_v2 }
 0x1d6   : > { %1065 = vst.msk [vmem:[#allocation2 + $0x190] sm:$0xff] %vm226_vm0, %v1057_v10  ;;  %1616 = vrot.lane.b32.xlu1 %v7047_v22, %s6434_s8  ;;  %1618 = vrot.lane.b32.xlu0 %v6791_v14, %s6434_s8  ;;  %v1059_v11 = vsel %vm327_vm7, %v1055_v50, %v1057_v10 }
 0x1d8   : > { %v1108_v3 = vpop.permute.xlu1 %1107  ;;  %v1260_v58 = vld [vmem:[#allocation2 + $0x1a8] sm:$0xff] }
 0x1d9   : > { %v1069_v15 = vpop.permute.xlu0 %1068 }
 0x1da   : > { %v1072_v12 = vsel %vm342_vm9, %v1067_v53, %v1069_v15  ;;  %v1073_v4 = vsel %vm342_vm9, %v1069_v15, %v1071_v61  ;;  %1628 = vrot.lane.b32.xlu1 %v7034_v6, %s6435_s9  ;;  %1630 = vrot.lane.b32.xlu0 %v7047_v22, %s6435_s9 }
 0x1db   : > { %v5482_v19 = vpack.c.bf16 %v1073_v4, %v1059_v11  ;;  %v5484_v20 = vpack.c.bf16 %v1072_v12, %v1058_v7 }
 0x1dc   : > { %v1112_v21 = vpop.permute.xlu1 %1111 }
 0x1dd   : > { %1120 = vst.msk [vmem:[#allocation2 + $0x1f0] sm:$0xff] %vm226_vm0, %v1112_v21  ;;  %v1094_v23 = vpop.permute.xlu0 %1093  ;;  %v1257_v24 = vld [vmem:[#allocation2 + $0x190] sm:$0xff]  ;;  %5483 = vmatprep.subr.bf16.mxu0 %v5482_v19 }
 0x1de   : > { %1632 = vrot.lane.b32.xlu1 %v6791_v14, %s6435_s9  ;;  %1642 = vrot.lane.b32.xlu0 %v7034_v6, %s6436_s24  ;;  %v5527_v45 = vpack.c.bf16 %v1260_v58, %v1257_v24  ;;  %v1099_v26 = vsel %vm237_vm1, %v1094_v23, %v1096_v9 }
 0x1df   : > { %5485 = vmatpush1.bf16.msra.mxu0 %v5484_v20  ;;  %v5488_v33 = vpack.c.bf16 %v1099_v26, %v7034_v6 }
 0x1e0   : > { %v1124_v25 = vpop.permute.xlu1 %1123  ;;  %5528 = vmatpush1.bf16.msra.mxu1 %v5527_v45 }
 0x1e1   : > { %v1098_v5 = vpop.permute.xlu0 %1097  ;;  %5529 = vmatprep.subr.bf16.mxu1 %v6429_v0 }
 0x1e2   : > { %v1100_v27 = vsel %vm237_vm1, %v1096_v9, %v1098_v5  ;;  %1106 = vst.msk [vmem:[#allocation2 + $0x1d8] sm:$0xff] %vm226_vm0, %v1098_v5  ;;  %1644 = vrot.lane.b32.xlu1 %v7047_v22, %s6436_s24  ;;  %1646 = vrot.lane.b32.xlu0 %v6791_v14, %s6436_s24 }
 0x1e3   : > { %v5486_v30 = vpack.c.bf16 %v1100_v27, %v7047_v22 }
 0x1e4   : > { %v1136_v31 = vpop.permute.xlu1 %1135  ;;  %v1269_v53 = vld [vmem:[#allocation2 + $0x1f0] sm:$0xff] }
 0x1e5   : > { %v1110_v32 = vpop.permute.xlu0 %1109  ;;  %5487 = vmatprep.subr.bf16.mxu0 %v5486_v30 }
 0x1e6   : > { %1656 = vrot.lane.b32.xlu1 %v7034_v6, %s6437_s7  ;;  %1658 = vrot.lane.b32.xlu0 %v7047_v22, %s6437_s7  ;;  %v1114_v42 = vsel %vm252_vm3, %v1110_v32, %v1112_v21  ;;  %v1113_v46 = vsel %vm252_vm3, %v1108_v3, %v1110_v32 }
 0x1e7   : > { %5489 = vmatpush1.bf16.msra.mxu0 %v5488_v33 }
 0x1e8   : > { %v1140_v35 = vpop.permute.xlu1 %1139 }
 0x1e9   : > { %1148 = vst.msk [vmem:[#allocation2 + $0x220] sm:$0xff] %vm226_vm0, %v1140_v35  ;;  %v1122_v36 = vpop.permute.xlu0 %1121  ;;  %v1266_v37 = vld [vmem:[#allocation2 + $0x1d8] sm:$0xff] }
 0x1ea   : > { %1660 = vrot.lane.b32.xlu1 %v6791_v14, %s6437_s7  ;;  %1670 = vrot.lane.b32.xlu0 %v7034_v6, %s6438_s5  ;;  %v5530_v8 = vpack.c.bf16 %v1266_v37, %v7068_v40  ;;  %v1127_v43 = vsel %vm267_vm2, %v1122_v36, %v1124_v25  ;;  %v7315_v6 = vld [vmem:[%s6655_s12 + $0x68] sm:$0xff]  ;;  %v7318_v40 = vld [vmem:[%s6655_s12 + $0x60] sm:$0xff] }
 0x1eb   : > { %v5492_v52 = vpack.c.bf16 %v1127_v43, %v1113_v46 }
 0x1ec   : > { %v1152_v38 = vpop.permute.xlu1 %1151  ;;  %5531 = vmatpush1.bf16.msra.mxu1 %v5530_v8 }
 0x1ed   : > { %v1126_v39 = vpop.permute.xlu0 %1125  ;;  %5532 = vmatprep.subr.bf16.mxu1 %v6429_v0 }
 0x1ee   : > { %v1128_v18 = vsel %vm267_vm2, %v1124_v25, %v1126_v39  ;;  %1134 = vst.msk [vmem:[#allocation2 + $0x208] sm:$0xff] %vm226_vm0, %v1126_v39  ;;  %1672 = vrot.lane.b32.xlu1 %v7047_v22, %s6438_s5  ;;  %1674 = vrot.lane.b32.xlu0 %v6791_v14, %s6438_s5 }
 0x1ef   : > { %v5490_v44 = vpack.c.bf16 %v1128_v18, %v1114_v42 }
 0x1f0   : > { %v1164_v47 = vpop.permute.xlu1 %1163  ;;  %v1275_v15 = vld [vmem:[#allocation2 + $0x220] sm:$0xff] }
 0x1f1   : > { %v1138_v50 = vpop.permute.xlu0 %1137  ;;  %5491 = vmatprep.subr.bf16.mxu0 %v5490_v44 }
 0x1f2   : > { %1697 = vrot.lane.b32.xlu1 %v7318_v40, %s6430_s28  ;;  %1699 = vrot.lane.b32.xlu0 %v7315_v6, %s6430_s28  ;;  %v1142_v57 = vsel %vm282_vm6, %v1138_v50, %v1140_v35  ;;  %v1141_v62 = vsel %vm282_vm6, %v1136_v31, %v1138_v50 }
 0x1f3   : > { %5493 = vmatpush1.bf16.msra.mxu0 %v5492_v52 }
 0x1f4   : > { %v1168_v22 = vpop.permute.xlu1 %1167 }
 0x1f5   : > { %1176 = vst.msk [vmem:[#allocation2 + $0x250] sm:$0xff] %vm226_vm0, %v1168_v22  ;;  %v1150_v14 = vpop.permute.xlu0 %1149  ;;  %v1272_v54 = vld [vmem:[#allocation2 + $0x208] sm:$0xff] }
 0x1f6   : > { %1701 = vrot.lane.b32.xlu1 %v7071_v41, %s6430_s28  ;;  %1711 = vrot.lane.b32.xlu0 %v7318_v40, %s6431_s26  ;;  %v5533_v56 = vpack.c.bf16 %v1272_v54, %v1269_v53  ;;  %v1155_v59 = vsel %vm297_vm5, %v1150_v14, %v1152_v38  ;;  %v7412_v53 = vld [vmem:[%s6655_s12 + $0x48] sm:$0xff]  ;;  %v7417_v54 = vld [vmem:[%s9031_s2] sm:$0xff] }
 0x1f7   : > { %v5496_v10 = vpack.c.bf16 %v1155_v59, %v1141_v62 }
 0x1f8   : > { %v1180_v13 = vpop.permute.xlu1 %1179  ;;  %5534 = vmatpush1.bf16.msra.mxu1 %v5533_v56 }
 0x1f9   : > { %v1154_v34 = vpop.permute.xlu0 %1153  ;;  %5535 = vmatprep.subr.bf16.mxu1 %v6429_v0 }
 0x1fa   : > { %v1156_v60 = vsel %vm297_vm5, %v1152_v38, %v1154_v34  ;;  %1162 = vst.msk [vmem:[#allocation2 + $0x238] sm:$0xff] %vm226_vm0, %v1154_v34  ;;  %1713 = vrot.lane.b32.xlu1 %v7315_v6, %s6431_s26  ;;  %1715 = vrot.lane.b32.xlu0 %v7071_v41, %s6431_s26 }
 0x1fb   : > { %v5494_v61 = vpack.c.bf16 %v1156_v60, %v1142_v57 }
 0x1fc   : > { %v1192_v63 = vpop.permute.xlu1 %1191  ;;  %v1281_v31 = vld [vmem:[#allocation2 + $0x250] sm:$0xff] }
 0x1fd   : > { %v1166_v9 = vpop.permute.xlu0 %1165  ;;  %5495 = vmatprep.subr.bf16.mxu0 %v5494_v61  ;;  %v7420_v61 = vld [vmem:[#allocation6 + $0x8] sm:$0xff] }
 0x1fe   : > { %1725 = vrot.lane.b32.xlu1 %v7318_v40, %s6432_s4  ;;  %1727 = vrot.lane.b32.xlu0 %v7315_v6, %s6432_s4  ;;  %v1170_v20 = vsel %vm312_vm8, %v1166_v9, %v1168_v22  ;;  %v1169_v58 = vsel %vm312_vm8, %v1164_v47, %v1166_v9 }
 0x1ff   : > { %5497 = vmatpush1.bf16.msra.mxu0 %v5496_v10 }
 0x200   : > { %v1196_v3 = vpop.permute.xlu1 %1195 }
 0x201   : > { %1204 = vst.msk [vmem:[#allocation2 + $0x280] sm:$0xff] %vm226_vm0, %v1196_v3  ;;  %v1178_v7 = vpop.permute.xlu0 %1177  ;;  %v1278_v11 = vld [vmem:[#allocation2 + $0x238] sm:$0xff] }
 0x202   : > { %1729 = vrot.lane.b32.xlu1 %v7071_v41, %s6432_s4  ;;  %1739 = vrot.lane.b32.xlu0 %v7318_v40, %s6434_s8  ;;  %v5536_v12 = vpack.c.bf16 %v1278_v11, %v1275_v15  ;;  %v1183_v21 = vsel %vm327_vm7, %v1178_v7, %v1180_v13 }
 0x203   : > { %v5500_v5 = vpack.c.bf16 %v1183_v21, %v1169_v58 }
 0x204   : > { %v1452_v4 = vpop.permute.xlu1 %1451  ;;  %5537 = vmatpush1.bf16.msra.mxu1 %v5536_v12 }
 0x205   : > { %v1182_v19 = vpop.permute.xlu0 %1181  ;;  %5538 = vmatprep.subr.bf16.mxu1 %v6429_v0 }
 0x206   : > { %v1184_v23 = vsel %vm327_vm7, %v1180_v13, %v1182_v19  ;;  %1190 = vst.msk [vmem:[#allocation2 + $0x268] sm:$0xff] %vm226_vm0, %v1182_v19  ;;  %1741 = vrot.lane.b32.xlu1 %v7315_v6, %s6434_s8  ;;  %1743 = vrot.lane.b32.xlu0 %v7071_v41, %s6434_s8 }
 0x207   : > { %v5498_v24 = vpack.c.bf16 %v1184_v23, %v1170_v20 }
 0x208   : > { %v1456_v45 = vpop.permute.xlu1 %1455  ;;  %v1287_v42 = vld [vmem:[#allocation2 + $0x280] sm:$0xff] }
 0x209   : > { %1464 = vst.msk [vmem:[#allocation2 + $0x28] sm:$0xff] %vm226_vm0, %v1456_v45  ;;  %v1194_v25 = vpop.permute.xlu0 %1193  ;;  %5499 = vmatprep.subr.bf16.mxu0 %v5498_v24 }
 0x20a   : > { %v1198_v26 = vsel %vm342_vm9, %v1194_v25, %v1196_v3  ;;  %1753 = vrot.lane.b32.xlu1 %v7318_v40, %s6435_s9  ;;  %1755 = vrot.lane.b32.xlu0 %v7315_v6, %s6435_s9  ;;  %v1197_v33 = vsel %vm342_vm9, %v1192_v63, %v1194_v25  ;;  %v7426_v63 = vld [vmem:[%s6655_s12 + $0x50] sm:$0xff] }
 0x20b   : > { %5501 = vmatpush1.bf16.msra.mxu0 %v5500_v5  ;;  %v7451_v5 = vld [vmem:[#allocation2 + $0x10] sm:$0xff] }
 0x20c   : > { %v1468_v27 = vpop.permute.xlu1 %1467  ;;  %1349 = vmatprep.subr.mxu0 %v1198_v26  ;;  %v7454_v26 = vld [vmem:[%s6655_s12 + $0x70] sm:$0xff] }
 0x20d   : > { %v7372_v30 = vpop.permute.xlu0 %1291  ;;  %v1284_v32 = vld [vmem:[#allocation2 + $0x268] sm:$0xff]  ;;  %2655 = vst.msk [vmem:[#allocation2 + $0x10] sm:$0xff] %vm226_vm0, %v7454_v26 }
 0x20e   : > { %1757 = vrot.lane.b32.xlu1 %v7071_v41, %s6435_s9  ;;  %1767 = vrot.lane.b32.xlu0 %v7318_v40, %s6436_s24  ;;  %v5539_v35 = vpack.c.bf16 %v1284_v32, %v1281_v31 }
 0x20f   : > { %1350 = vmatpush1.msra.mxu0 %v1197_v33 }
 0x210   : > { %v1480_v36 = vpop.permute.xlu1 %1479  ;;  %5540 = vmatpush1.bf16.msra.mxu1 %v5539_v35  ;;  %v1816_v37 = vld [vmem:[#allocation2 + $0x28] sm:$0xff]  ;;  %1362 = vmatmul.mubr.f32.vlgmr.msra.gmra.mrb[2].mxu0 %v7082_v48 }
 0x211   : > { %v1454_v8 = vpop.permute.xlu0 %1453  ;;  %1420 = vmatprep.subr.mxu1 %v6439_v51  ;;  %v5594_v43 = vpack.c.bf16 %v1816_v37, %v7154_v28  ;;  %5268 = vmatprep.mubr.msk.f32.mxu0 %vm690_vm4, %v7420_v61 }
 0x212   : > { %v1457_v38 = vsel %vm237_vm1, %v1452_v4, %v1454_v8  ;;  %v1458_v39 = vsel %vm237_vm1, %v1454_v8, %v1456_v45  ;;  %1769 = vrot.lane.b32.xlu1 %v7315_v6, %s6436_s24  ;;  %1771 = vrot.lane.b32.xlu0 %v7071_v41, %s6436_s24 }
 0x213   : > { %v5541_v18 = vpack.c.bf16 %v1458_v39, %v7139_v16  ;;  %v5543_v46 = vpack.c.bf16 %v1457_v38, %v7142_v17 }
 0x214   : > { %v1484_v44 = vpop.permute.xlu1 %1483  ;;  %1421 = vmatpush1.msra.mxu1 %v1287_v42 }
 0x215   : > { %1492 = vst.msk [vmem:[#allocation2 + $0x58] sm:$0xff] %vm226_vm0, %v1484_v44  ;;  %1433 = vmatmul.mubr.f32.vlgmr.msra.gmra.mrb[2].mxu1 %v7082_v48  ;;  %5593 = vmatprep.subr.bf16.mxu1 %v6429_v0  ;;  %v1466_v47 = vpop.permute.xlu0 %1465 }
 0x216   : > { %1781 = vrot.lane.b32.xlu1 %v7318_v40, %s6437_s7  ;;  %1783 = vrot.lane.b32.xlu0 %v7315_v6, %s6437_s7  ;;  %v1471_v28 = vsel %vm252_vm3, %v1466_v47, %v1468_v27 }
 0x217   : > { %5595 = vmatpush1.bf16.msra.mxu1 %v5594_v43  ;;  %5542 = vmatprep.subr.bf16.mxu0 %v5541_v18 }
 0x218   : > { %v1496_v16 = vpop.permute.xlu1 %1495  ;;  %5544 = vmatpush1.bf16.msra.mxu0 %v5543_v46  ;;  %5596 = vmatprep.subr.bf16.mxu1 %v6429_v0 }
 0x219   : > { %v1470_v17 = vpop.permute.xlu0 %1469  ;;  %5269 = vmatprep.mubr.msk.f32.mxu1 %vm690_vm4, %v7420_v61 }
 0x21a   : > { %1478 = vst.msk [vmem:[#allocation2 + $0x40] sm:$0xff] %vm226_vm0, %v1470_v17  ;;  %1785 = vrot.lane.b32.xlu1 %v7071_v41, %s6437_s7  ;;  %1795 = vrot.lane.b32.xlu0 %v7318_v40, %s6438_s5  ;;  %v1472_v52 = vsel %vm252_vm3, %v1468_v27, %v1470_v17 }
 0x21c   : > { %v1508_v48 = vpop.permute.xlu1 %1507  ;;  %v1822_v60 = vld [vmem:[#allocation2 + $0x58] sm:$0xff] }
 0x21d   : > { %v1482_v50 = vpop.permute.xlu0 %1481 }
 0x21e   : > { %v1485_v22 = vsel %vm267_vm2, %v1480_v36, %v1482_v50  ;;  %v1486_v14 = vsel %vm267_vm2, %v1482_v50, %v1484_v44  ;;  %1797 = vrot.lane.b32.xlu1 %v7315_v6, %s6438_s5  ;;  %1799 = vrot.lane.b32.xlu0 %v7071_v41, %s6438_s5 }
 0x21f   : > { %v5545_v56 = vpack.c.bf16 %v1486_v14, %v1472_v52  ;;  %v5547_v13 = vpack.c.bf16 %v1485_v22, %v1471_v28  ;;  %v6224_v22 = vld [vmem:[%s6655_s12 + $0x48] sm:$0xff] }
 0x220   : > { %v1512_v34 = vpop.permute.xlu1 %1511 }
 0x221   : > { %1520 = vst.msk [vmem:[#allocation2 + $0x88] sm:$0xff] %vm226_vm0, %v1512_v34  ;;  %v1494_v57 = vpop.permute.xlu0 %1493  ;;  %v1819_v59 = vld [vmem:[#allocation2 + $0x40] sm:$0xff]  ;;  %5546 = vmatprep.subr.bf16.mxu0 %v5545_v56 }
 0x222   : > { %1895 = vperm.xlu1 %6222, %v7417_v54   ;;  %2055 = vrot.lane.b32.xlu0 %v7412_v53, %s6430_s28  ;;  %v5597_v62 = vpack.c.bf16 %v1822_v60, %v1819_v59  ;;  %v1499_v7 = vsel %vm282_vm6, %v1494_v57, %v1496_v16 }
 0x223   : > { %5548 = vmatpush1.bf16.msra.mxu0 %v5547_v13 }
 0x224   : > { %v1524_v9 = vpop.permute.xlu1 %1523  ;;  %5598 = vmatpush1.bf16.msra.mxu1 %v5597_v62 }
 0x225   : > { %v1498_v10 = vpop.permute.xlu0 %1497  ;;  %5599 = vmatprep.subr.bf16.mxu1 %v6429_v0 }
 0x226   : > { %1506 = vst.msk [vmem:[#allocation2 + $0x70] sm:$0xff] %vm226_vm0, %v1498_v10  ;;  %2057 = vrot.lane.b32.xlu1 %v7426_v63, %s6430_s28  ;;  %2059 = vrot.lane.b32.xlu0 %v7157_v29, %s6430_s28  ;;  %v1500_v11 = vsel %vm282_vm6, %v1496_v16, %v1498_v10 }
 0x228   : > { %v1536_v3 = vpop.permute.xlu1 %1535  ;;  %v1828_v58 = vld [vmem:[#allocation2 + $0x88] sm:$0xff] }
 0x229   : > { %v1510_v15 = vpop.permute.xlu0 %1509 }
 0x22a   : > { %v1513_v12 = vsel %vm297_vm5, %v1508_v48, %v1510_v15  ;;  %v1514_v4 = vsel %vm297_vm5, %v1510_v15, %v1512_v34  ;;  %2069 = vrot.lane.b32.xlu1 %v7412_v53, %s6431_s26  ;;  %2071 = vrot.lane.b32.xlu0 %v7426_v63, %s6431_s26  ;;  %v6223_v48 = vld [vmem:[%s6655_s12 + $0x50] sm:$0xff] }
 0x22b   : > { %v5549_v19 = vpack.c.bf16 %v1514_v4, %v1500_v11  ;;  %v5551_v20 = vpack.c.bf16 %v1513_v12, %v1499_v7 }
 0x22c   : > { %v1540_v21 = vpop.permute.xlu1 %1539 }
 0x22d   : > { %1548 = vst.msk [vmem:[#allocation2 + $0xb8] sm:$0xff] %vm226_vm0, %v1540_v21  ;;  %v1522_v23 = vpop.permute.xlu0 %1521  ;;  %v1825_v24 = vld [vmem:[#allocation2 + $0x70] sm:$0xff]  ;;  %5550 = vmatprep.subr.bf16.mxu0 %v5549_v19 }
 0x22e   : > { %2073 = vrot.lane.b32.xlu1 %v7157_v29, %s6431_s26  ;;  %2083 = vrot.lane.b32.xlu0 %v7412_v53, %s6432_s4  ;;  %v5600_v45 = vpack.c.bf16 %v1828_v58, %v1825_v24  ;;  %v1527_v32 = vsel %vm312_vm8, %v1522_v23, %v1524_v9 }
 0x22f   : > { %5552 = vmatpush1.bf16.msra.mxu0 %v5551_v20 }
 0x230   : > { %v1552_v25 = vpop.permute.xlu1 %1551  ;;  %5601 = vmatpush1.bf16.msra.mxu1 %v5600_v45 }
 0x231   : > { %v1526_v27 = vpop.permute.xlu0 %1525  ;;  %5602 = vmatprep.subr.bf16.mxu1 %v6429_v0 }
 0x232   : > { %1534 = vst.msk [vmem:[#allocation2 + $0xa0] sm:$0xff] %vm226_vm0, %v1526_v27  ;;  %2085 = vrot.lane.b32.xlu1 %v7426_v63, %s6432_s4  ;;  %2087 = vrot.lane.b32.xlu0 %v7157_v29, %s6432_s4  ;;  %v1528_v35 = vsel %vm312_vm8, %v1524_v9, %v1526_v27 }
 0x234   : > { %v7464_v31 = vpop.permute.xlu1 %1572  ;;  %v1834_v18 = vld [vmem:[#allocation2 + $0xb8] sm:$0xff] }
 0x235   : > { %v1538_v33 = vpop.permute.xlu0 %1537 }
 0x236   : > { %v1541_v36 = vsel %vm327_vm7, %v1536_v3, %v1538_v33  ;;  %v1542_v37 = vsel %vm327_vm7, %v1538_v33, %v1540_v21  ;;  %2097 = vrot.lane.b32.xlu1 %v7412_v53, %s6434_s8  ;;  %2099 = vrot.lane.b32.xlu0 %v7426_v63, %s6434_s8 }
 0x237   : > { %v5553_v8 = vpack.c.bf16 %v1542_v37, %v1528_v35  ;;  %v5555_v38 = vpack.c.bf16 %v1541_v36, %v1527_v32 }
 0x238   : > { %v1577_v39 = vpop.permute.xlu1 %1576 }
 0x239   : > { %1585 = vst.msk [vmem:[#allocation2 + $0x100] sm:$0xff] %vm226_vm0, %v1577_v39  ;;  %v1550_v42 = vpop.permute.xlu0 %1549  ;;  %v1831_v43 = vld [vmem:[#allocation2 + $0xa0] sm:$0xff]  ;;  %5554 = vmatprep.subr.bf16.mxu0 %v5553_v8 }
 0x23a   : > { %2101 = vrot.lane.b32.xlu1 %v7157_v29, %s6434_s8  ;;  %2111 = vrot.lane.b32.xlu0 %v7412_v53, %s6435_s9  ;;  %v5603_v44 = vpack.c.bf16 %v1834_v18, %v1831_v43  ;;  %v1555_v16 = vsel %vm342_vm9, %v1550_v42, %v1552_v25  ;;  %v7548_v42 = vld [vmem:[#allocation2 + $0xe8] sm:$0xff] }
 0x23b   : > { %5556 = vmatpush1.bf16.msra.mxu0 %v5555_v38  ;;  %v5559_v14 = vpack.c.bf16 %v6224_v22, %v1555_v16  ;;  %2776 = vst.msk [vmem:[#allocation2 + $0xe8] sm:$0xff] %vm226_vm0, %v7343_v2 }
 0x23c   : > { %v1589_v46 = vpop.permute.xlu1 %1588  ;;  %5604 = vmatpush1.bf16.msra.mxu1 %v5603_v44 }
 0x23d   : > { %v1554_v47 = vpop.permute.xlu0 %1553  ;;  %5605 = vmatprep.subr.bf16.mxu1 %v6429_v0 }
 0x23e   : > { %v1556_v17 = vsel %vm342_vm9, %v1552_v25, %v1554_v47  ;;  %1562 = vst.msk [vmem:[#allocation2 + $0xd0] sm:$0xff] %vm226_vm0, %v1554_v47  ;;  %2113 = vrot.lane.b32.xlu1 %v7426_v63, %s6435_s9  ;;  %2115 = vrot.lane.b32.xlu0 %v7157_v29, %s6435_s9 }
 0x23f   : > { %v5557_v28 = vpack.c.bf16 %v6223_v48, %v1556_v17 }
 0x240   : > { %v7489_v50 = vpop.permute.xlu1 %1600  ;;  %v1843_v25 = vld [vmem:[#allocation2 + $0x100] sm:$0xff] }
 0x241   : > { %v1575_v52 = vpop.permute.xlu0 %1574  ;;  %5558 = vmatprep.subr.bf16.mxu0 %v5557_v28 }
 0x242   : > { %2125 = vrot.lane.b32.xlu1 %v7412_v53, %s6436_s24  ;;  %2127 = vrot.lane.b32.xlu0 %v7426_v63, %s6436_s24  ;;  %v1579_v7 = vsel %vm237_vm1, %v1575_v52, %v1577_v39  ;;  %v1578_v4 = vsel %vm237_vm1, %v7464_v31, %v1575_v52 }
 0x243   : > { %5560 = vmatpush1.bf16.msra.mxu0 %v5559_v14 }
 0x244   : > { %v1605_v56 = vpop.permute.xlu1 %1604 }
 0x245   : > { %1613 = vst.msk [vmem:[#allocation2 + $0x130] sm:$0xff] %vm226_vm0, %v1605_v56  ;;  %v1587_v13 = vpop.permute.xlu0 %1586  ;;  %v1837_v34 = vld [vmem:[#allocation2 + $0xd0] sm:$0xff] }
 0x246   : > { %2129 = vrot.lane.b32.xlu1 %v7157_v29, %s6436_s24  ;;  %2139 = vrot.lane.b32.xlu0 %v7412_v53, %s6437_s7  ;;  %v5606_v57 = vpack.c.bf16 %v7243_v49, %v1837_v34  ;;  %v760_v59 = vpop.f32.mrb[0].mxu0  ;;  %v1592_v49 = vsel %vm252_vm3, %v1587_v13, %v1589_v46 }
 0x247   : > { %v761_v60 = vadd.f32 %v760_v59, %v7105_v55  ;;  %v762_v62 = vpop.f32.mrb[1].mxu0  ;;  %v5563_v24 = vpack.c.bf16 %v1592_v49, %v1578_v4 }
 0x248   : > { %v1617_v9 = vpop.permute.xlu1 %1616  ;;  %5607 = vmatpush1.bf16.msra.mxu1 %v5606_v57  ;;  %v763_v10 = vadd.f32 %v762_v62, %v7105_v55 }
 0x249   : > { %v1591_v3 = vpop.permute.xlu0 %1590  ;;  %835 = vst [vmem:[%s7506_s1] sm:$0xff] %v761_v60  ;;  %5608 = vmatprep.subr.bf16.mxu1 %v6429_v0 }
 0x24a   : > { %v1593_v15 = vsel %vm252_vm3, %v1589_v46, %v1591_v3  ;;  %1599 = vst.msk [vmem:[#allocation2 + $0x118] sm:$0xff] %vm226_vm0, %v1591_v3  ;;  %2141 = vrot.lane.b32.xlu1 %v7426_v63, %s6437_s7  ;;  %2143 = vrot.lane.b32.xlu0 %v7157_v29, %s6437_s7  ;;  %836 = vst [vmem:[%s7506_s1 + $0x8] sm:$0xff] %v763_v10 }
 0x24b   : > { %v831_v11 = vpop.f32.mrb[0].mxu1  ;;  %v5561_v12 = vpack.c.bf16 %v1593_v15, %v1579_v7 }
 0x24c   : > { %v832_v19 = vadd.f32 %v831_v11, %v7105_v55  ;;  %v1629_v20 = vpop.permute.xlu1 %1628  ;;  %v833_v21 = vpop.f32.mrb[1].mxu1  ;;  %v1849_v44 = vld [vmem:[#allocation2 + $0x130] sm:$0xff] }
 0x24d   : > { %v1603_v23 = vpop.permute.xlu0 %1602  ;;  %5562 = vmatprep.subr.bf16.mxu0 %v5561_v12 }
 0x24e   : > { %837 = vst.msk [vmem:[%s7506_s1 + $0x10] sm:$0xff] %vm226_vm0, %v832_v19  ;;  %2153 = vrot.lane.b32.xlu1 %v7412_v53, %s6438_s5  ;;  %2155 = vrot.lane.b32.xlu0 %v7426_v63, %s6438_s5  ;;  %v1607_v33 = vsel %vm267_vm2, %v1603_v23, %v1605_v56  ;;  %v1606_v37 = vsel %vm267_vm2, %v7489_v50, %v1603_v23 }
 0x24f   : > { %5564 = vmatpush1.bf16.msra.mxu0 %v5563_v24 }
 0x250   : > { %v1633_v58 = vpop.permute.xlu1 %1632 }
 0x251   : > { %1641 = vst.msk [vmem:[#allocation2 + $0x160] sm:$0xff] %vm226_vm0, %v1633_v58  ;;  %v1615_v45 = vpop.permute.xlu0 %1614  ;;  %v1846_v55 = vld [vmem:[#allocation2 + $0x118] sm:$0xff] }
 0x252   : > { %2157 = vrot.lane.b32.xlu1 %v7157_v29, %s6438_s5  ;;  %2176 = vrot.lane.b32.xlu0 %v7318_v40, %s6430_s28  ;;  %v5609_v27 = vpack.c.bf16 %v1846_v55, %v1843_v25  ;;  %v1620_v35 = vsel %vm282_vm6, %v1615_v45, %v1617_v9 }
 0x253   : > { %v5567_v39 = vpack.c.bf16 %v1620_v35, %v1606_v37 }
 0x254   : > { %v1645_v31 = vpop.permute.xlu1 %1644  ;;  %5610 = vmatpush1.bf16.msra.mxu1 %v5609_v27 }
 0x255   : > { %v1619_v32 = vpop.permute.xlu0 %1618  ;;  %5611 = vmatprep.subr.bf16.mxu1 %v6429_v0 }
 0x256   : > { %v1621_v36 = vsel %vm282_vm6, %v1617_v9, %v1619_v32  ;;  %1627 = vst.msk [vmem:[#allocation2 + $0x148] sm:$0xff] %vm226_vm0, %v1619_v32  ;;  %2178 = vrot.lane.b32.xlu1 %v7315_v6, %s6430_s28  ;;  %2180 = vrot.lane.b32.xlu0 %v7071_v41, %s6430_s28 }
 0x257   : > { %v5565_v29 = vpack.c.bf16 %v1621_v36, %v1607_v33 }
 0x258   : > { %v1657_v8 = vpop.permute.xlu1 %1656  ;;  %v1855_v59 = vld [vmem:[#allocation2 + $0x160] sm:$0xff] }
 0x259   : > { %v1631_v38 = vpop.permute.xlu0 %1630  ;;  %5566 = vmatprep.subr.bf16.mxu0 %v5565_v29 }
 0x25a   : > { %2190 = vrot.lane.b32.xlu1 %v7318_v40, %s6431_s26  ;;  %2192 = vrot.lane.b32.xlu0 %v7315_v6, %s6431_s26  ;;  %v1635_v48 = vsel %vm297_vm5, %v1631_v38, %v1633_v58  ;;  %v1634_v22 = vsel %vm297_vm5, %v1629_v20, %v1631_v38 }
 0x25b   : > { %5568 = vmatpush1.bf16.msra.mxu0 %v5567_v39 }
 0x25c   : > { %v1661_v43 = vpop.permute.xlu1 %1660 }
 0x25d   : > { %1669 = vst.msk [vmem:[#allocation2 + $0x190] sm:$0xff] %vm226_vm0, %v1661_v43  ;;  %v1643_v18 = vpop.permute.xlu0 %1642  ;;  %v1852_v46 = vld [vmem:[#allocation2 + $0x148] sm:$0xff] }
 0x25e   : > { %2194 = vrot.lane.b32.xlu1 %v7071_v41, %s6431_s26  ;;  %2204 = vrot.lane.b32.xlu0 %v7318_v40, %s6432_s4  ;;  %v5612_v47 = vpack.c.bf16 %v1852_v46, %v1849_v44  ;;  %v1648_v28 = vsel %vm312_vm8, %v1643_v18, %v1645_v31 }
 0x25f   : > { %v5571_v13 = vpack.c.bf16 %v1648_v28, %v1634_v22 }
 0x260   : > { %v1673_v16 = vpop.permute.xlu1 %1672  ;;  %5613 = vmatpush1.bf16.msra.mxu1 %v5612_v47 }
 0x261   : > { %v1647_v17 = vpop.permute.xlu0 %1646  ;;  %5614 = vmatprep.subr.bf16.mxu1 %v6429_v0 }
 0x262   : > { %v1649_v50 = vsel %vm312_vm8, %v1645_v31, %v1647_v17  ;;  %1655 = vst.msk [vmem:[#allocation2 + $0x178] sm:$0xff] %vm226_vm0, %v1647_v17  ;;  %2206 = vrot.lane.b32.xlu1 %v7315_v6, %s6432_s4  ;;  %2208 = vrot.lane.b32.xlu0 %v7071_v41, %s6432_s4  ;;  %v7624_v17 = vld [vmem:[%s6655_s12 + $0x80] sm:$0xff] }
 0x263   : > { %v5569_v52 = vpack.c.bf16 %v1649_v50, %v1635_v48 }
 0x264   : > { %v1698_v14 = vpop.permute.xlu1 %1697  ;;  %v1861_v25 = vld [vmem:[#allocation2 + $0x190] sm:$0xff] }
 0x265   : > { %v1659_v56 = vpop.permute.xlu0 %1658  ;;  %5570 = vmatprep.subr.bf16.mxu0 %v5569_v52 }
 0x266   : > { %2218 = vrot.lane.b32.xlu1 %v7318_v40, %s6434_s8  ;;  %2220 = vrot.lane.b32.xlu0 %v7315_v6, %s6434_s8  ;;  %v1663_v3 = vsel %vm327_vm7, %v1659_v56, %v1661_v43  ;;  %v1662_v11 = vsel %vm327_vm7, %v1657_v8, %v1659_v56 }
 0x267   : > { %5572 = vmatpush1.bf16.msra.mxu0 %v5571_v13 }
 0x268   : > { %v1702_v34 = vpop.permute.xlu1 %1701 }
 0x269   : > { %1710 = vst.msk [vmem:[#allocation2 + $0x1d8] sm:$0xff] %vm226_vm0, %v1702_v34  ;;  %v1671_v57 = vpop.permute.xlu0 %1670  ;;  %v1858_v60 = vld [vmem:[#allocation2 + $0x178] sm:$0xff] }
 0x26a   : > { %2222 = vrot.lane.b32.xlu1 %v7071_v41, %s6434_s8  ;;  %2232 = vrot.lane.b32.xlu0 %v7318_v40, %s6435_s9  ;;  %v5615_v62 = vpack.c.bf16 %v1858_v60, %v1855_v59  ;;  %v1676_v7 = vsel %vm342_vm9, %v1671_v57, %v1673_v16 }
 0x26b   : > { %v5575_v19 = vpack.c.bf16 %v1676_v7, %v1662_v11 }
 0x26c   : > { %v1714_v9 = vpop.permute.xlu1 %1713  ;;  %5616 = vmatpush1.bf16.msra.mxu1 %v5615_v62 }
 0x26d   : > { %v1675_v10 = vpop.permute.xlu0 %1674  ;;  %5617 = vmatprep.subr.bf16.mxu1 %v6429_v0 }
 0x26e   : > { %v1677_v49 = vsel %vm342_vm9, %v1673_v16, %v1675_v10  ;;  %1683 = vst.msk [vmem:[#allocation2 + $0x1a8] sm:$0xff] %vm226_vm0, %v1675_v10  ;;  %2234 = vrot.lane.b32.xlu1 %v7315_v6, %s6435_s9  ;;  %2236 = vrot.lane.b32.xlu0 %v7071_v41, %s6435_s9  ;;  %v7648_v10 = vld [vmem:[%s6655_s12 + $0xa0] sm:$0xff] }
 0x26f   : > { %v5573_v15 = vpack.c.bf16 %v1677_v49, %v1663_v3 }
 0x270   : > { %v1726_v12 = vpop.permute.xlu1 %1725  ;;  %v1870_v31 = vld [vmem:[#allocation2 + $0x1d8] sm:$0xff] }
 0x271   : > { %v1700_v4 = vpop.permute.xlu0 %1699  ;;  %5574 = vmatprep.subr.bf16.mxu0 %v5573_v15  ;;  %v5621_v35 = vpack.c.bf16 %v1870_v31, %v7340_v1  ;;  %v7616_v1 = vld [vmem:[%s6655_s12 + $0x78] sm:$0xff] }
 0x272   : > { %v1703_v20 = vsel %vm237_vm1, %v1698_v14, %v1700_v4  ;;  %v1704_v21 = vsel %vm237_vm1, %v1700_v4, %v1702_v34  ;;  %2246 = vrot.lane.b32.xlu1 %v7318_v40, %s6436_s24  ;;  %2248 = vrot.lane.b32.xlu0 %v7315_v6, %s6436_s24 }
 0x273   : > { %5576 = vmatpush1.bf16.msra.mxu0 %v5575_v19  ;;  %v5577_v23 = vpack.c.bf16 %v1704_v21, %v7315_v6  ;;  %v5579_v24 = vpack.c.bf16 %v1703_v20, %v7318_v40 }
 0x274   : > { %v1730_v58 = vpop.permute.xlu1 %1729 }
 0x275   : > { %1738 = vst.msk [vmem:[#allocation2 + $0x208] sm:$0xff] %vm226_vm0, %v1730_v58  ;;  %v1712_v45 = vpop.permute.xlu0 %1711  ;;  %v1864_v55 = vld [vmem:[#allocation2 + $0x1a8] sm:$0xff]  ;;  %5578 = vmatprep.subr.bf16.mxu0 %v5577_v23 }
 0x276   : > { %2250 = vrot.lane.b32.xlu1 %v7071_v41, %s6436_s24  ;;  %2260 = vrot.lane.b32.xlu0 %v7318_v40, %s6437_s7  ;;  %v5618_v27 = vpack.c.bf16 %v1864_v55, %v1861_v25  ;;  %v1717_v29 = vsel %vm252_vm3, %v1712_v45, %v1714_v9  ;;  %v7677_v55 = vld [vmem:[#allocation6] sm:$0xff] }
 0x277   : > { %5580 = vmatpush1.bf16.msra.mxu0 %v5579_v24 }
 0x278   : > { %v1742_v32 = vpop.permute.xlu1 %1741  ;;  %5619 = vmatpush1.bf16.msra.mxu1 %v5618_v27 }
 0x279   : > { %v1716_v33 = vpop.permute.xlu0 %1715  ;;  %5620 = vmatprep.subr.bf16.mxu1 %v6429_v0 }
 0x27a   : > { %1724 = vst.msk [vmem:[#allocation2 + $0x1f0] sm:$0xff] %vm226_vm0, %v1716_v33  ;;  %2262 = vrot.lane.b32.xlu1 %v7315_v6, %s6437_s7  ;;  %2264 = vrot.lane.b32.xlu0 %v7071_v41, %s6437_s7  ;;  %v1718_v8 = vsel %vm252_vm3, %v1714_v9, %v1716_v33  ;;  %v7645_v9 = vld [vmem:[#allocation2 + $0x1c0] sm:$0xff] }
 0x27b   : > { %2901 = vst.msk [vmem:[#allocation2 + $0x1c0] sm:$0xff] %vm226_vm0, %v7648_v10 }
 0x27c   : > { %v1754_v36 = vpop.permute.xlu1 %1753  ;;  %5622 = vmatpush1.bf16.msra.mxu1 %v5621_v35  ;;  %v1876_v16 = vld [vmem:[#allocation2 + $0x208] sm:$0xff] }
 0x27d   : > { %v1728_v37 = vpop.permute.xlu0 %1727  ;;  %5623 = vmatprep.subr.bf16.mxu1 %v6429_v0 }
 0x27e   : > { %v1731_v38 = vsel %vm267_vm2, %v1726_v12, %v1728_v37  ;;  %v1732_v39 = vsel %vm267_vm2, %v1728_v37, %v1730_v58  ;;  %2274 = vrot.lane.b32.xlu1 %v7318_v40, %s6438_s5  ;;  %2276 = vrot.lane.b32.xlu0 %v7315_v6, %s6438_s5 }
 0x27f   : > { %v5581_v43 = vpack.c.bf16 %v1732_v39, %v1718_v8  ;;  %v5583_v18 = vpack.c.bf16 %v1731_v38, %v1717_v29 }
 0x280   : > { %v1758_v44 = vpop.permute.xlu1 %1757 }
 0x281   : > { %1766 = vst.msk [vmem:[#allocation2 + $0x238] sm:$0xff] %vm226_vm0, %v1758_v44  ;;  %v1740_v46 = vpop.permute.xlu0 %1739  ;;  %v1873_v47 = vld [vmem:[#allocation2 + $0x1f0] sm:$0xff]  ;;  %5582 = vmatprep.subr.bf16.mxu0 %v5581_v43 }
 0x282   : > { %2278 = vrot.lane.b32.xlu1 %v7071_v41, %s6438_s5  ;;  %2301 = vrot.lane.b32.xlu0 %v7616_v1, %s6430_s28  ;;  %v5624_v40 = vpack.c.bf16 %v1876_v16, %v1873_v47  ;;  %v1745_v28 = vsel %vm282_vm6, %v1740_v46, %v1742_v32 }
 0x283   : > { %5584 = vmatpush1.bf16.msra.mxu0 %v5583_v18 }
 0x284   : > { %v1770_v6 = vpop.permute.xlu1 %1769  ;;  %5625 = vmatpush1.bf16.msra.mxu1 %v5624_v40 }
 0x285   : > { %v1744_v48 = vpop.permute.xlu0 %1743  ;;  %5626 = vmatprep.subr.bf16.mxu1 %v6429_v0 }
 0x286   : > { %1752 = vst.msk [vmem:[#allocation2 + $0x220] sm:$0xff] %vm226_vm0, %v1744_v48  ;;  %2303 = vrot.lane.b32.xlu1 %v7624_v17, %s6430_s28  ;;  %2305 = vrot.lane.b32.xlu0 %v7343_v2, %s6430_s28  ;;  %v1746_v52 = vsel %vm282_vm6, %v1742_v32, %v1744_v48  ;;  %v7725_v48 = vld [vmem:[%s6655_s12 + $0x60] sm:$0xff] }
 0x288   : > { %v1782_v41 = vpop.permute.xlu1 %1781  ;;  %v1882_v60 = vld [vmem:[#allocation2 + $0x238] sm:$0xff] }
 0x289   : > { %v1756_v50 = vpop.permute.xlu0 %1755 }
 0x28a   : > { %v1759_v22 = vsel %vm297_vm5, %v1754_v36, %v1756_v50  ;;  %v1760_v14 = vsel %vm297_vm5, %v1756_v50, %v1758_v44  ;;  %2315 = vrot.lane.b32.xlu1 %v7616_v1, %s6431_s26  ;;  %2317 = vrot.lane.b32.xlu0 %v7624_v17, %s6431_s26 }
 0x28b   : > { %v5585_v56 = vpack.c.bf16 %v1760_v14, %v1746_v52  ;;  %v5587_v13 = vpack.c.bf16 %v1759_v22, %v1745_v28 }
 0x28c   : > { %v1786_v34 = vpop.permute.xlu1 %1785 }
 0x28d   : > { %1794 = vst.msk [vmem:[#allocation2 + $0x268] sm:$0xff] %vm226_vm0, %v1786_v34  ;;  %v1768_v57 = vpop.permute.xlu0 %1767  ;;  %v1879_v59 = vld [vmem:[#allocation2 + $0x220] sm:$0xff]  ;;  %5586 = vmatprep.subr.bf16.mxu0 %v5585_v56 }
 0x28e   : > { %2319 = vrot.lane.b32.xlu1 %v7343_v2, %s6431_s26  ;;  %2329 = vrot.lane.b32.xlu0 %v7616_v1, %s6432_s4  ;;  %v5627_v62 = vpack.c.bf16 %v1882_v60, %v1879_v59  ;;  %v1773_v7 = vsel %vm312_vm8, %v1768_v57, %v1770_v6 }
 0x28f   : > { %5588 = vmatpush1.bf16.msra.mxu0 %v5587_v13 }
 0x290   : > { %5628 = vmatpush1.bf16.msra.mxu1 %v5627_v62  ;;  %v1798_v58 = vpop.permute.xlu1 %1797 }
 0x291   : > { %v1772_v3 = vpop.permute.xlu0 %1771  ;;  %5629 = vmatprep.subr.bf16.mxu1 %v6429_v0 }
 0x292   : > { %1780 = vst.msk [vmem:[#allocation2 + $0x250] sm:$0xff] %vm226_vm0, %v1772_v3  ;;  %2331 = vrot.lane.b32.xlu1 %v7624_v17, %s6432_s4  ;;  %2333 = vrot.lane.b32.xlu0 %v7343_v2, %s6432_s4  ;;  %v1774_v15 = vsel %vm312_vm8, %v1770_v6, %v1772_v3 }
 0x294   : > { %v1888_v23 = vld [vmem:[#allocation2 + $0x268] sm:$0xff] }
 0x295   : > { %v1784_v49 = vpop.permute.xlu0 %1783 }
 0x296   : > { %v1787_v11 = vsel %vm327_vm7, %v1782_v41, %v1784_v49  ;;  %v1788_v12 = vsel %vm327_vm7, %v1784_v49, %v1786_v34  ;;  %2343 = vrot.lane.b32.xlu1 %v7616_v1, %s6434_s8  ;;  %2345 = vrot.lane.b32.xlu0 %v7624_v17, %s6434_s8 }
 0x297   : > { %v5589_v4 = vpack.c.bf16 %v1788_v12, %v1774_v15  ;;  %v5591_v19 = vpack.c.bf16 %v1787_v11, %v1773_v7  ;;  %v7750_v12 = vld [vmem:[#allocation2 + $0x10] sm:$0xff] }
 0x299   : > { %v1796_v20 = vpop.permute.xlu0 %1795  ;;  %v1885_v21 = vld [vmem:[#allocation2 + $0x250] sm:$0xff]  ;;  %5590 = vmatprep.subr.bf16.mxu0 %v5589_v4  ;;  %v7753_v4 = vld [vmem:[%s6655_s12 + $0x88] sm:$0xff] }
 0x29a   : > { %2347 = vrot.lane.b32.xlu1 %v7343_v2, %s6434_s8  ;;  %2357 = vrot.lane.b32.xlu0 %v7616_v1, %s6435_s9  ;;  %v5630_v24 = vpack.c.bf16 %v1888_v23, %v1885_v21  ;;  %v1801_v27 = vsel %vm342_vm9, %v1796_v20, %v1798_v58  ;;  %3259 = vst.msk [vmem:[#allocation2 + $0x10] sm:$0xff] %vm226_vm0, %v7753_v4 }
 0x29b   : > { %5592 = vmatpush1.bf16.msra.mxu0 %v5591_v19 }
 0x29c   : > { %5631 = vmatpush1.bf16.msra.mxu1 %v5630_v24 }
 0x29d   : > { %v1800_v45 = vpop.permute.xlu0 %1799  ;;  %2024 = vmatprep.subr.mxu1 %v6439_v51 }
 0x29e   : > { %v1802_v25 = vsel %vm342_vm9, %v1798_v58, %v1800_v45  ;;  %1808 = vst.msk [vmem:[#allocation2 + $0x280] sm:$0xff] %vm226_vm0, %v1800_v45  ;;  %2359 = vrot.lane.b32.xlu1 %v7624_v17, %s6435_s9  ;;  %2361 = vrot.lane.b32.xlu0 %v7343_v2, %s6435_s9 }
 0x29f   : > { %1953 = vmatprep.subr.mxu0 %v1802_v25 }
 0x2a0   : > { %1954 = vmatpush1.msra.mxu0 %v1801_v27 }
 0x2a1   : > { %v7680_v31 = vpop.permute.xlu1 %1895  ;;  %v2056_v32 = vpop.permute.xlu0 %2055  ;;  %1966 = vmatmul.mubr.f32.vlgmr.msra.gmra.mrb[4].mxu0 %v7677_v55 }
 0x2a2   : > { %2371 = vrot.lane.b32.xlu1 %v7616_v1, %s6436_s24  ;;  %2373 = vrot.lane.b32.xlu0 %v7624_v17, %s6436_s24 }
 0x2a3   : > { %5284 = vmatprep.mubr.msk.f32.mxu0 %vm690_vm4, %v7420_v61 }
 0x2a5   : > { %v2058_v33 = vpop.permute.xlu1 %2057  ;;  %v2060_v35 = vpop.permute.xlu0 %2059  ;;  %v1891_v36 = vld [vmem:[#allocation2 + $0x280] sm:$0xff] }
 0x2a6   : > { %v2061_v29 = vsel %vm237_vm1, %v2056_v32, %v2058_v33  ;;  %v2062_v37 = vsel %vm237_vm1, %v2058_v33, %v2060_v35  ;;  %2068 = vst.msk [vmem:[#allocation2 + $0x28] sm:$0xff] %vm226_vm0, %v2060_v35  ;;  %2375 = vrot.lane.b32.xlu1 %v7343_v2, %s6436_s24  ;;  %2385 = vrot.lane.b32.xlu0 %v7616_v1, %s6437_s7 }
 0x2a7   : > { %2025 = vmatpush1.msra.mxu1 %v1891_v36  ;;  %v5632_v8 = vpack.c.bf16 %v2062_v37, %v7426_v63  ;;  %v5634_v38 = vpack.c.bf16 %v2061_v29, %v7412_v53 }
 0x2a8   : > { %2037 = vmatmul.mubr.f32.vlgmr.msra.gmra.mrb[4].mxu1 %v7677_v55  ;;  %5684 = vmatprep.subr.bf16.mxu1 %v6429_v0 }
 0x2a9   : > { %v2070_v39 = vpop.permute.xlu1 %2069  ;;  %v2072_v43 = vpop.permute.xlu0 %2071  ;;  %5633 = vmatprep.subr.bf16.mxu0 %v5632_v8  ;;  %5285 = vmatprep.mubr.msk.f32.mxu1 %vm690_vm4, %v7420_v61 }
 0x2aa   : > { %2387 = vrot.lane.b32.xlu1 %v7624_v17, %s6437_s7  ;;  %2389 = vrot.lane.b32.xlu0 %v7343_v2, %s6437_s7  ;;  %v2075_v44 = vsel %vm252_vm3, %v2070_v39, %v2072_v43 }
 0x2ab   : > { %5635 = vmatpush1.bf16.msra.mxu0 %v5634_v38 }
 0x2ad   : > { %v2074_v63 = vpop.permute.xlu1 %2073  ;;  %v2084_v18 = vpop.permute.xlu0 %2083  ;;  %v2420_v53 = vld [vmem:[#allocation2 + $0x28] sm:$0xff] }
 0x2ae   : > { %2082 = vst.msk [vmem:[#allocation2 + $0x40] sm:$0xff] %vm226_vm0, %v2074_v63  ;;  %2399 = vrot.lane.b32.xlu1 %v7616_v1, %s6438_s5  ;;  %2401 = vrot.lane.b32.xlu0 %v7624_v17, %s6438_s5  ;;  %v5685_v61 = vpack.c.bf16 %v2420_v53, %v7451_v5  ;;  %v2076_v16 = vsel %vm252_vm3, %v2072_v43, %v2074_v63  ;;  %v7722_v5 = vld [vmem:[%s6655_s12 + $0x68] sm:$0xff] }
 0x2b0   : > { %5686 = vmatpush1.bf16.msra.mxu1 %v5685_v61  ;;  %v6225_v61 = vld [vmem:[%s6655_s12 + $0x68] sm:$0xff] }
 0x2b1   : > { %v2086_v46 = vpop.permute.xlu1 %2085  ;;  %v2088_v47 = vpop.permute.xlu0 %2087  ;;  %5687 = vmatprep.subr.bf16.mxu1 %v6429_v0 }
 0x2b2   : > { %v2089_v40 = vsel %vm267_vm2, %v2084_v18, %v2086_v46  ;;  %v2090_v6 = vsel %vm267_vm2, %v2086_v46, %v2088_v47  ;;  %2096 = vst.msk [vmem:[#allocation2 + $0x58] sm:$0xff] %vm226_vm0, %v2088_v47  ;;  %2403 = vrot.lane.b32.xlu1 %v7343_v2, %s6438_s5  ;;  %2499 = vperm.xlu0 %6221, %v7417_v54  }
 0x2b3   : > { %v5636_v41 = vpack.c.bf16 %v2090_v6, %v2076_v16  ;;  %v5638_v28 = vpack.c.bf16 %v2089_v40, %v2075_v44  ;;  %v6226_v16 = vld [vmem:[%s6655_s12 + $0x60] sm:$0xff] }
 0x2b5   : > { %v2098_v50 = vpop.permute.xlu1 %2097  ;;  %v2100_v52 = vpop.permute.xlu0 %2099  ;;  %5637 = vmatprep.subr.bf16.mxu0 %v5636_v41  ;;  %v2423_v56 = vld [vmem:[#allocation2 + $0x40] sm:$0xff] }
 0x2b6   : > { %2659 = vrot.lane.b32.xlu1 %v7725_v48, %s6430_s28  ;;  %2661 = vrot.lane.b32.xlu0 %v7722_v5, %s6430_s28  ;;  %v2103_v34 = vsel %vm282_vm6, %v2098_v50, %v2100_v52 }
 0x2b7   : > { %5639 = vmatpush1.bf16.msra.mxu0 %v5638_v28 }
 0x2b9   : > { %v2102_v22 = vpop.permute.xlu1 %2101  ;;  %v2112_v14 = vpop.permute.xlu0 %2111  ;;  %v2426_v54 = vld [vmem:[#allocation2 + $0x58] sm:$0xff] }
 0x2ba   : > { %2110 = vst.msk [vmem:[#allocation2 + $0x70] sm:$0xff] %vm226_vm0, %v2102_v22  ;;  %2663 = vrot.lane.b32.xlu1 %v7454_v26, %s6430_s28  ;;  %2673 = vrot.lane.b32.xlu0 %v7725_v48, %s6431_s26  ;;  %v5688_v13 = vpack.c.bf16 %v2426_v54, %v2423_v56  ;;  %v2104_v60 = vsel %vm282_vm6, %v2100_v52, %v2102_v22 }
 0x2bc   : > { %5689 = vmatpush1.bf16.msra.mxu1 %v5688_v13 }
 0x2bd   : > { %v2114_v57 = vpop.permute.xlu1 %2113  ;;  %v2116_v59 = vpop.permute.xlu0 %2115  ;;  %5690 = vmatprep.subr.bf16.mxu1 %v6429_v0 }
 0x2be   : > { %v2117_v62 = vsel %vm297_vm5, %v2112_v14, %v2114_v57  ;;  %v2118_v3 = vsel %vm297_vm5, %v2114_v57, %v2116_v59  ;;  %2124 = vst.msk [vmem:[#allocation2 + $0x88] sm:$0xff] %vm226_vm0, %v2116_v59  ;;  %2675 = vrot.lane.b32.xlu1 %v7722_v5, %s6431_s26  ;;  %2677 = vrot.lane.b32.xlu0 %v7454_v26, %s6431_s26 }
 0x2bf   : > { %v5640_v7 = vpack.c.bf16 %v2118_v3, %v2104_v60  ;;  %v5642_v49 = vpack.c.bf16 %v2117_v62, %v2103_v34 }
 0x2c1   : > { %v2126_v15 = vpop.permute.xlu1 %2125  ;;  %v2128_v11 = vpop.permute.xlu0 %2127  ;;  %5641 = vmatprep.subr.bf16.mxu0 %v5640_v7  ;;  %v2429_v21 = vld [vmem:[#allocation2 + $0x70] sm:$0xff] }
 0x2c2   : > { %2687 = vrot.lane.b32.xlu1 %v7725_v48, %s6432_s4  ;;  %2689 = vrot.lane.b32.xlu0 %v7722_v5, %s6432_s4  ;;  %v2131_v58 = vsel %vm312_vm8, %v2126_v15, %v2128_v11 }
 0x2c3   : > { %5643 = vmatpush1.bf16.msra.mxu0 %v5642_v49 }
 0x2c5   : > { %v2130_v19 = vpop.permute.xlu1 %2129  ;;  %v2140_v20 = vpop.permute.xlu0 %2139  ;;  %v2432_v23 = vld [vmem:[#allocation2 + $0x88] sm:$0xff] }
 0x2c6   : > { %2138 = vst.msk [vmem:[#allocation2 + $0xa0] sm:$0xff] %vm226_vm0, %v2130_v19  ;;  %2691 = vrot.lane.b32.xlu1 %v7454_v26, %s6432_s4  ;;  %2701 = vrot.lane.b32.xlu0 %v7725_v48, %s6434_s8  ;;  %v5691_v24 = vpack.c.bf16 %v2432_v23, %v2429_v21  ;;  %v2132_v27 = vsel %vm312_vm8, %v2128_v11, %v2130_v19 }
 0x2c8   : > { %5692 = vmatpush1.bf16.msra.mxu1 %v5691_v24 }
 0x2c9   : > { %v2142_v45 = vpop.permute.xlu1 %2141  ;;  %v2144_v25 = vpop.permute.xlu0 %2143  ;;  %5693 = vmatprep.subr.bf16.mxu1 %v6429_v0 }
 0x2ca   : > { %v2145_v32 = vsel %vm327_vm7, %v2140_v20, %v2142_v45  ;;  %v2146_v33 = vsel %vm327_vm7, %v2142_v45, %v2144_v25  ;;  %2152 = vst.msk [vmem:[#allocation2 + $0xb8] sm:$0xff] %vm226_vm0, %v2144_v25  ;;  %2703 = vrot.lane.b32.xlu1 %v7722_v5, %s6434_s8  ;;  %2705 = vrot.lane.b32.xlu0 %v7454_v26, %s6434_s8 }
 0x2cb   : > { %v5644_v35 = vpack.c.bf16 %v2146_v33, %v2132_v27  ;;  %v5646_v36 = vpack.c.bf16 %v2145_v32, %v2131_v58  ;;  %v7831_v32 = vld [vmem:[#allocation2 + $0xe8] sm:$0xff] }
 0x2cc   : > { %3380 = vst.msk [vmem:[#allocation2 + $0xe8] sm:$0xff] %vm226_vm0, %v7648_v10 }
 0x2cd   : > { %v2154_v29 = vpop.permute.xlu1 %2153  ;;  %v2156_v37 = vpop.permute.xlu0 %2155  ;;  %5645 = vmatprep.subr.bf16.mxu0 %v5644_v35  ;;  %v2435_v39 = vld [vmem:[#allocation2 + $0xa0] sm:$0xff] }
 0x2ce   : > { %2715 = vrot.lane.b32.xlu1 %v7725_v48, %s6435_s9  ;;  %2717 = vrot.lane.b32.xlu0 %v7722_v5, %s6435_s9  ;;  %v2159_v63 = vsel %vm342_vm9, %v2154_v29, %v2156_v37 }
 0x2cf   : > { %5647 = vmatpush1.bf16.msra.mxu0 %v5646_v36  ;;  %v5650_v40 = vpack.c.bf16 %v6226_v16, %v2159_v63 }
 0x2d1   : > { %v2158_v8 = vpop.permute.xlu1 %2157  ;;  %v2177_v38 = vpop.permute.xlu0 %2176  ;;  %v2438_v43 = vld [vmem:[#allocation2 + $0xb8] sm:$0xff] }
 0x2d2   : > { %v2160_v18 = vsel %vm342_vm9, %v2156_v37, %v2158_v8  ;;  %2166 = vst.msk [vmem:[#allocation2 + $0xd0] sm:$0xff] %vm226_vm0, %v2158_v8  ;;  %2719 = vrot.lane.b32.xlu1 %v7454_v26, %s6435_s9  ;;  %2729 = vrot.lane.b32.xlu0 %v7725_v48, %s6436_s24  ;;  %v5694_v53 = vpack.c.bf16 %v2438_v43, %v2435_v39 }
 0x2d3   : > { %v5648_v44 = vpack.c.bf16 %v6225_v61, %v2160_v18 }
 0x2d4   : > { %5695 = vmatpush1.bf16.msra.mxu1 %v5694_v53 }
 0x2d5   : > { %v2179_v46 = vpop.permute.xlu1 %2178  ;;  %v2181_v47 = vpop.permute.xlu0 %2180  ;;  %5696 = vmatprep.subr.bf16.mxu1 %v6429_v0  ;;  %5649 = vmatprep.subr.bf16.mxu0 %v5648_v44 }
 0x2d6   : > { %2189 = vst.msk [vmem:[#allocation2 + $0x100] sm:$0xff] %vm226_vm0, %v2181_v47  ;;  %2731 = vrot.lane.b32.xlu1 %v7722_v5, %s6436_s24  ;;  %2733 = vrot.lane.b32.xlu0 %v7454_v26, %s6436_s24  ;;  %v2183_v14 = vsel %vm237_vm1, %v2179_v46, %v2181_v47  ;;  %v2182_v13 = vsel %vm237_vm1, %v2177_v38, %v2179_v46 }
 0x2d7   : > { %5651 = vmatpush1.bf16.msra.mxu0 %v5650_v40 }
 0x2d9   : > { %v2191_v6 = vpop.permute.xlu1 %2190  ;;  %v2193_v41 = vpop.permute.xlu0 %2192  ;;  %v2441_v28 = vld [vmem:[#allocation2 + $0xd0] sm:$0xff] }
 0x2da   : > { %2743 = vrot.lane.b32.xlu1 %v7725_v48, %s6437_s7  ;;  %2745 = vrot.lane.b32.xlu0 %v7722_v5, %s6437_s7  ;;  %v5697_v50 = vpack.c.bf16 %v7548_v42, %v2441_v28  ;;  %v2196_v56 = vsel %vm252_vm3, %v2191_v6, %v2193_v41 }
 0x2db   : > { %v5654_v59 = vpack.c.bf16 %v2196_v56, %v2182_v13 }
 0x2dc   : > { %5698 = vmatpush1.bf16.msra.mxu1 %v5697_v50 }
 0x2dd   : > { %v2195_v52 = vpop.permute.xlu1 %2194  ;;  %v2205_v22 = vpop.permute.xlu0 %2204  ;;  %5699 = vmatprep.subr.bf16.mxu1 %v6429_v0  ;;  %v2447_v15 = vld [vmem:[#allocation2 + $0x100] sm:$0xff] }
 0x2de   : > { %v2197_v54 = vsel %vm252_vm3, %v2193_v41, %v2195_v52  ;;  %2203 = vst.msk [vmem:[#allocation2 + $0x118] sm:$0xff] %vm226_vm0, %v2195_v52  ;;  %2747 = vrot.lane.b32.xlu1 %v7454_v26, %s6437_s7  ;;  %2757 = vrot.lane.b32.xlu0 %v7725_v48, %s6438_s5 }
 0x2df   : > { %v5652_v42 = vpack.c.bf16 %v2197_v54, %v2183_v14 }
 0x2e1   : > { %v2207_v34 = vpop.permute.xlu1 %2206  ;;  %v2209_v57 = vpop.permute.xlu0 %2208  ;;  %5653 = vmatprep.subr.bf16.mxu0 %v5652_v42 }
 0x2e2   : > { %2217 = vst.msk [vmem:[#allocation2 + $0x130] sm:$0xff] %vm226_vm0, %v2209_v57  ;;  %2759 = vrot.lane.b32.xlu1 %v7722_v5, %s6438_s5  ;;  %2761 = vrot.lane.b32.xlu0 %v7454_v26, %s6438_s5  ;;  %v2211_v58 = vsel %vm267_vm2, %v2207_v34, %v2209_v57  ;;  %v2210_v33 = vsel %vm267_vm2, %v2205_v22, %v2207_v34 }
 0x2e3   : > { %v1363_v60 = vpop.f32.mrb[2].mxu0  ;;  %5655 = vmatpush1.bf16.msra.mxu0 %v5654_v59 }
 0x2e4   : > { %v1364_v62 = vadd.f32 %v1363_v60, %v7372_v30  ;;  %v1365_v3 = vpop.f32.mrb[3].mxu0 }
 0x2e5   : > { %v2219_v7 = vpop.permute.xlu1 %2218  ;;  %v2221_v49 = vpop.permute.xlu0 %2220  ;;  %v2450_v11 = vld [vmem:[#allocation2 + $0x118] sm:$0xff]  ;;  %v1366_v19 = vadd.f32 %v1365_v3, %v7372_v30 }
 0x2e6   : > { %2780 = vrot.lane.b32.xlu1 %v7616_v1, %s6430_s28  ;;  %2782 = vrot.lane.b32.xlu0 %v7624_v17, %s6430_s28  ;;  %v5700_v20 = vpack.c.bf16 %v2450_v11, %v2447_v15  ;;  %5254 = vst [vmem:[%s7506_s1 + $0x18] sm:$0xff] %v1364_v62  ;;  %v2224_v45 = vsel %vm282_vm6, %v2219_v7, %v2221_v49 }
 0x2e7   : > { %5255 = vst [vmem:[%s7506_s1 + $0x20] sm:$0xff] %v1366_v19  ;;  %v5658_v29 = vpack.c.bf16 %v2224_v45, %v2210_v33 }
 0x2e8   : > { %v1434_v26 = vpop.f32.mrb[2].mxu1  ;;  %5701 = vmatpush1.bf16.msra.mxu1 %v5700_v20 }
 0x2e9   : > { %v1435_v21 = vadd.f32 %v1434_v26, %v7372_v30  ;;  %v2223_v23 = vpop.permute.xlu1 %2222  ;;  %v2233_v24 = vpop.permute.xlu0 %2232  ;;  %5702 = vmatprep.subr.bf16.mxu1 %v6429_v0  ;;  %v2453_v38 = vld [vmem:[#allocation2 + $0x130] sm:$0xff] }
 0x2ea   : > { %v2225_v25 = vsel %vm282_vm6, %v2221_v49, %v2223_v23  ;;  %2231 = vst.msk [vmem:[#allocation2 + $0x148] sm:$0xff] %vm226_vm0, %v2223_v23  ;;  %2784 = vrot.lane.b32.xlu1 %v7343_v2, %s6430_s28  ;;  %2794 = vrot.lane.b32.xlu0 %v7616_v1, %s6431_s26  ;;  %v1436_v27 = vpop.f32.mrb[3].mxu1 }
 0x2eb   : > { %5256 = vst.msk [vmem:[%s7506_s1 + $0x28] sm:$0xff] %vm226_vm0, %v1435_v21  ;;  %v5656_v30 = vpack.c.bf16 %v2225_v25, %v2211_v58 }
 0x2ed   : > { %v2235_v35 = vpop.permute.xlu1 %2234  ;;  %v2237_v36 = vpop.permute.xlu0 %2236  ;;  %5657 = vmatprep.subr.bf16.mxu0 %v5656_v30 }
 0x2ee   : > { %2245 = vst.msk [vmem:[#allocation2 + $0x160] sm:$0xff] %vm226_vm0, %v2237_v36  ;;  %2796 = vrot.lane.b32.xlu1 %v7624_v17, %s6431_s26  ;;  %2798 = vrot.lane.b32.xlu0 %v7343_v2, %s6431_s26  ;;  %v2239_v53 = vsel %vm297_vm5, %v2235_v35, %v2237_v36  ;;  %v2238_v47 = vsel %vm297_vm5, %v2233_v24, %v2235_v35 }
 0x2ef   : > { %5659 = vmatpush1.bf16.msra.mxu0 %v5658_v29 }
 0x2f1   : > { %v2247_v37 = vpop.permute.xlu1 %2246  ;;  %v2249_v8 = vpop.permute.xlu0 %2248  ;;  %v2456_v39 = vld [vmem:[#allocation2 + $0x148] sm:$0xff] }
 0x2f2   : > { %2808 = vrot.lane.b32.xlu1 %v7616_v1, %s6432_s4  ;;  %2810 = vrot.lane.b32.xlu0 %v7624_v17, %s6432_s4  ;;  %v5703_v43 = vpack.c.bf16 %v2456_v39, %v2453_v38  ;;  %v2252_v61 = vsel %vm312_vm8, %v2247_v37, %v2249_v8 }
 0x2f3   : > { %v5662_v6 = vpack.c.bf16 %v2252_v61, %v2238_v47 }
 0x2f4   : > { %5704 = vmatpush1.bf16.msra.mxu1 %v5703_v43 }
 0x2f5   : > { %v2251_v63 = vpop.permute.xlu1 %2250  ;;  %v2261_v18 = vpop.permute.xlu0 %2260  ;;  %5705 = vmatprep.subr.bf16.mxu1 %v6429_v0  ;;  %v2459_v50 = vld [vmem:[#allocation2 + $0x160] sm:$0xff] }
 0x2f6   : > { %v2253_v44 = vsel %vm312_vm8, %v2249_v8, %v2251_v63  ;;  %2259 = vst.msk [vmem:[#allocation2 + $0x178] sm:$0xff] %vm226_vm0, %v2251_v63  ;;  %2812 = vrot.lane.b32.xlu1 %v7343_v2, %s6432_s4  ;;  %2822 = vrot.lane.b32.xlu0 %v7616_v1, %s6434_s8 }
 0x2f7   : > { %v5660_v46 = vpack.c.bf16 %v2253_v44, %v2239_v53 }
 0x2f9   : > { %v2263_v16 = vpop.permute.xlu1 %2262  ;;  %v2265_v40 = vpop.permute.xlu0 %2264  ;;  %5661 = vmatprep.subr.bf16.mxu0 %v5660_v46 }
 0x2fa   : > { %2273 = vst.msk [vmem:[#allocation2 + $0x190] sm:$0xff] %vm226_vm0, %v2265_v40  ;;  %2824 = vrot.lane.b32.xlu1 %v7624_v17, %s6434_s8  ;;  %2826 = vrot.lane.b32.xlu0 %v7343_v2, %s6434_s8  ;;  %v2267_v54 = vsel %vm327_vm7, %v2263_v16, %v2265_v40  ;;  %v2266_v57 = vsel %vm327_vm7, %v2261_v18, %v2263_v16 }
 0x2fb   : > { %5663 = vmatpush1.bf16.msra.mxu0 %v5662_v6 }
 0x2fd   : > { %v2275_v41 = vpop.permute.xlu1 %2274  ;;  %v2277_v28 = vpop.permute.xlu0 %2276  ;;  %v2462_v52 = vld [vmem:[#allocation2 + $0x178] sm:$0xff] }
 0x2fe   : > { %2836 = vrot.lane.b32.xlu1 %v7616_v1, %s6435_s9  ;;  %2838 = vrot.lane.b32.xlu0 %v7624_v17, %s6435_s9  ;;  %v5706_v22 = vpack.c.bf16 %v2462_v52, %v2459_v50  ;;  %v2280_v42 = vsel %vm342_vm9, %v2275_v41, %v2277_v28  ;;  %v7936_v50 = vld [vmem:[%s6655_s12 + $0xb8] sm:$0xff] }
 0x2ff   : > { %v5666_v62 = vpack.c.bf16 %v2280_v42, %v2266_v57 }
 0x300   : > { %5707 = vmatpush1.bf16.msra.mxu1 %v5706_v22 }
 0x301   : > { %v2279_v14 = vpop.permute.xlu1 %2278  ;;  %v2302_v56 = vpop.permute.xlu0 %2301  ;;  %5708 = vmatprep.subr.bf16.mxu1 %v6429_v0  ;;  %v2465_v20 = vld [vmem:[#allocation2 + $0x190] sm:$0xff] }
 0x302   : > { %v2281_v13 = vsel %vm342_vm9, %v2277_v28, %v2279_v14  ;;  %2287 = vst.msk [vmem:[#allocation2 + $0x1a8] sm:$0xff] %vm226_vm0, %v2279_v14  ;;  %2840 = vrot.lane.b32.xlu1 %v7343_v2, %s6435_s9  ;;  %2850 = vrot.lane.b32.xlu0 %v7616_v1, %s6436_s24  ;;  %v7933_v28 = vld [vmem:[#allocation2 + $0x1c0] sm:$0xff] }
 0x303   : > { %v5664_v34 = vpack.c.bf16 %v2281_v13, %v2267_v54  ;;  %3505 = vst.msk [vmem:[#allocation2 + $0x1c0] sm:$0xff] %vm226_vm0, %v7936_v50 }
 0x305   : > { %v2304_v59 = vpop.permute.xlu1 %2303  ;;  %v2306_v60 = vpop.permute.xlu0 %2305  ;;  %5665 = vmatprep.subr.bf16.mxu0 %v5664_v34 }
 0x306   : > { %v2307_v3 = vsel %vm237_vm1, %v2302_v56, %v2304_v59  ;;  %v2308_v7 = vsel %vm237_vm1, %v2304_v59, %v2306_v60  ;;  %2314 = vst.msk [vmem:[#allocation2 + $0x1d8] sm:$0xff] %vm226_vm0, %v2306_v60  ;;  %2852 = vrot.lane.b32.xlu1 %v7624_v17, %s6436_s24  ;;  %2854 = vrot.lane.b32.xlu0 %v7343_v2, %s6436_s24 }
 0x307   : > { %5667 = vmatpush1.bf16.msra.mxu0 %v5666_v62  ;;  %v5668_v49 = vpack.c.bf16 %v2308_v7, %v7624_v17  ;;  %v5670_v15 = vpack.c.bf16 %v2307_v3, %v7616_v1 }
 0x309   : > { %v2316_v11 = vpop.permute.xlu1 %2315  ;;  %v2318_v19 = vpop.permute.xlu0 %2317  ;;  %v2468_v26 = vld [vmem:[#allocation2 + $0x1a8] sm:$0xff]  ;;  %5669 = vmatprep.subr.bf16.mxu0 %v5668_v49 }
 0x30a   : > { %2864 = vrot.lane.b32.xlu1 %v7616_v1, %s6437_s7  ;;  %2866 = vrot.lane.b32.xlu0 %v7624_v17, %s6437_s7  ;;  %v5709_v21 = vpack.c.bf16 %v2468_v26, %v2465_v20  ;;  %v2321_v25 = vsel %vm252_vm3, %v2316_v11, %v2318_v19 }
 0x30b   : > { %5671 = vmatpush1.bf16.msra.mxu0 %v5670_v15 }
 0x30c   : > { %5710 = vmatpush1.bf16.msra.mxu1 %v5709_v21 }
 0x30d   : > { %v2320_v23 = vpop.permute.xlu1 %2319  ;;  %v2330_v24 = vpop.permute.xlu0 %2329  ;;  %5711 = vmatprep.subr.bf16.mxu1 %v6429_v0  ;;  %v2474_v58 = vld [vmem:[#allocation2 + $0x1d8] sm:$0xff] }
 0x30e   : > { %2328 = vst.msk [vmem:[#allocation2 + $0x1f0] sm:$0xff] %vm226_vm0, %v2320_v23  ;;  %2868 = vrot.lane.b32.xlu1 %v7343_v2, %s6437_s7  ;;  %2878 = vrot.lane.b32.xlu0 %v7616_v1, %s6438_s5  ;;  %v5712_v45 = vpack.c.bf16 %v2474_v58, %v7645_v9  ;;  %v2322_v33 = vsel %vm252_vm3, %v2318_v19, %v2320_v23  ;;  %v7905_v1 = vld [vmem:[%s6655_s12 + $0x98] sm:$0xff]  ;;  %v7908_v9 = vld [vmem:[%s6655_s12 + $0x90] sm:$0xff] }
 0x310   : > { %5713 = vmatpush1.bf16.msra.mxu1 %v5712_v45 }
 0x311   : > { %v2332_v27 = vpop.permute.xlu1 %2331  ;;  %v2334_v30 = vpop.permute.xlu0 %2333  ;;  %5714 = vmatprep.subr.bf16.mxu1 %v6429_v0 }
 0x312   : > { %v2335_v35 = vsel %vm267_vm2, %v2330_v24, %v2332_v27  ;;  %v2336_v36 = vsel %vm267_vm2, %v2332_v27, %v2334_v30  ;;  %2342 = vst.msk [vmem:[#allocation2 + $0x208] sm:$0xff] %vm226_vm0, %v2334_v30  ;;  %2880 = vrot.lane.b32.xlu1 %v7624_v17, %s6438_s5  ;;  %2882 = vrot.lane.b32.xlu0 %v7343_v2, %s6438_s5 }
 0x313   : > { %v5672_v29 = vpack.c.bf16 %v2336_v36, %v2322_v33  ;;  %v5674_v37 = vpack.c.bf16 %v2335_v35, %v2321_v25 }
 0x315   : > { %v2344_v8 = vpop.permute.xlu1 %2343  ;;  %v2346_v38 = vpop.permute.xlu0 %2345  ;;  %5673 = vmatprep.subr.bf16.mxu0 %v5672_v29  ;;  %v2477_v43 = vld [vmem:[#allocation2 + $0x1f0] sm:$0xff] }
 0x316   : > { %2905 = vrot.lane.b32.xlu1 %v7908_v9, %s6430_s28  ;;  %2907 = vrot.lane.b32.xlu0 %v7905_v1, %s6430_s28  ;;  %v2349_v18 = vsel %vm282_vm6, %v2344_v8, %v2346_v38 }
 0x317   : > { %5675 = vmatpush1.bf16.msra.mxu0 %v5674_v37 }
 0x319   : > { %v2348_v17 = vpop.permute.xlu1 %2347  ;;  %v2358_v39 = vpop.permute.xlu0 %2357  ;;  %v2480_v2 = vld [vmem:[#allocation2 + $0x208] sm:$0xff] }
 0x31a   : > { %2356 = vst.msk [vmem:[#allocation2 + $0x220] sm:$0xff] %vm226_vm0, %v2348_v17  ;;  %2909 = vrot.lane.b32.xlu1 %v7648_v10, %s6430_s28  ;;  %2919 = vrot.lane.b32.xlu0 %v7908_v9, %s6431_s26  ;;  %v5715_v63 = vpack.c.bf16 %v2480_v2, %v2477_v43  ;;  %v2350_v44 = vsel %vm282_vm6, %v2346_v38, %v2348_v17  ;;  %v7996_v38 = vld [vmem:[%s6655_s12 + $0x80] sm:$0xff] }
 0x31b   : > { %v3100_v17 = vld [vmem:[%s9031_s2] sm:$0xff] }
 0x31c   : > { %5716 = vmatpush1.bf16.msra.mxu1 %v5715_v63 }
 0x31d   : > { %v2360_v53 = vpop.permute.xlu1 %2359  ;;  %v2362_v61 = vpop.permute.xlu0 %2361  ;;  %5717 = vmatprep.subr.bf16.mxu1 %v6429_v0 }
 0x31e   : > { %v2363_v46 = vsel %vm297_vm5, %v2358_v39, %v2360_v53  ;;  %v2364_v47 = vsel %vm297_vm5, %v2360_v53, %v2362_v61  ;;  %2370 = vst.msk [vmem:[#allocation2 + $0x238] sm:$0xff] %vm226_vm0, %v2362_v61  ;;  %2921 = vrot.lane.b32.xlu1 %v7905_v1, %s6431_s26  ;;  %2923 = vrot.lane.b32.xlu0 %v7648_v10, %s6431_s26  ;;  %v8011_v61 = vld [vmem:[#allocation6 + $0x8] sm:$0xff] }
 0x31f   : > { %v5676_v16 = vpack.c.bf16 %v2364_v47, %v2350_v44  ;;  %v5678_v40 = vpack.c.bf16 %v2363_v46, %v2349_v18 }
 0x321   : > { %v2372_v6 = vpop.permute.xlu1 %2371  ;;  %v2374_v41 = vpop.permute.xlu0 %2373  ;;  %5677 = vmatprep.subr.bf16.mxu0 %v5676_v16  ;;  %v2483_v14 = vld [vmem:[#allocation2 + $0x220] sm:$0xff] }
 0x322   : > { %2933 = vrot.lane.b32.xlu1 %v7908_v9, %s6432_s4  ;;  %2935 = vrot.lane.b32.xlu0 %v7905_v1, %s6432_s4  ;;  %v2377_v42 = vsel %vm312_vm8, %v2372_v6, %v2374_v41 }
 0x323   : > { %5679 = vmatpush1.bf16.msra.mxu0 %v5678_v40 }
 0x325   : > { %v2376_v52 = vpop.permute.xlu1 %2375  ;;  %v2386_v22 = vpop.permute.xlu0 %2385  ;;  %v2486_v56 = vld [vmem:[#allocation2 + $0x238] sm:$0xff] }
 0x326   : > { %2384 = vst.msk [vmem:[#allocation2 + $0x250] sm:$0xff] %vm226_vm0, %v2376_v52  ;;  %2937 = vrot.lane.b32.xlu1 %v7648_v10, %s6432_s4  ;;  %2947 = vrot.lane.b32.xlu0 %v7908_v9, %s6434_s8  ;;  %v5718_v54 = vpack.c.bf16 %v2486_v56, %v2483_v14  ;;  %v2378_v57 = vsel %vm312_vm8, %v2374_v41, %v2376_v52 }
 0x328   : > { %5719 = vmatpush1.bf16.msra.mxu1 %v5718_v54 }
 0x329   : > { %v2388_v13 = vpop.permute.xlu1 %2387  ;;  %v2390_v34 = vpop.permute.xlu0 %2389  ;;  %5720 = vmatprep.subr.bf16.mxu1 %v6429_v0 }
 0x32a   : > { %v2391_v59 = vsel %vm327_vm7, %v2386_v22, %v2388_v13  ;;  %v2392_v60 = vsel %vm327_vm7, %v2388_v13, %v2390_v34  ;;  %2398 = vst.msk [vmem:[#allocation2 + $0x268] sm:$0xff] %vm226_vm0, %v2390_v34  ;;  %2949 = vrot.lane.b32.xlu1 %v7905_v1, %s6434_s8  ;;  %2951 = vrot.lane.b32.xlu0 %v7648_v10, %s6434_s8 }
 0x32b   : > { %v5680_v62 = vpack.c.bf16 %v2392_v60, %v2378_v57  ;;  %v5682_v3 = vpack.c.bf16 %v2391_v59, %v2377_v42  ;;  %v8037_v59 = vld [vmem:[#allocation2 + $0x10] sm:$0xff]  ;;  %v8040_v60 = vld [vmem:[%s6655_s12 + $0xa0] sm:$0xff] }
 0x32c   : > { %3863 = vst.msk [vmem:[#allocation2 + $0x10] sm:$0xff] %vm226_vm0, %v8040_v60 }
 0x32d   : > { %v2400_v7 = vpop.permute.xlu1 %2399  ;;  %v2402_v49 = vpop.permute.xlu0 %2401  ;;  %5681 = vmatprep.subr.bf16.mxu0 %v5680_v62  ;;  %v2489_v19 = vld [vmem:[#allocation2 + $0x250] sm:$0xff] }
 0x32e   : > { %2961 = vrot.lane.b32.xlu1 %v7908_v9, %s6435_s9  ;;  %2963 = vrot.lane.b32.xlu0 %v7905_v1, %s6435_s9  ;;  %v2405_v23 = vsel %vm342_vm9, %v2400_v7, %v2402_v49 }
 0x32f   : > { %5683 = vmatpush1.bf16.msra.mxu0 %v5682_v3 }
 0x331   : > { %v2404_v15 = vpop.permute.xlu1 %2403  ;;  %v7959_v11 = vpop.permute.xlu0 %2499  ;;  %v2492_v20 = vld [vmem:[#allocation2 + $0x268] sm:$0xff] }
 0x332   : > { %v2406_v26 = vsel %vm342_vm9, %v2402_v49, %v2404_v15  ;;  %2412 = vst.msk [vmem:[#allocation2 + $0x280] sm:$0xff] %vm226_vm0, %v2404_v15  ;;  %2965 = vrot.lane.b32.xlu1 %v7648_v10, %s6435_s9  ;;  %2975 = vrot.lane.b32.xlu0 %v7908_v9, %s6436_s24  ;;  %v5721_v21 = vpack.c.bf16 %v2492_v20, %v2489_v19 }
 0x333   : > { %2557 = vmatprep.subr.mxu0 %v2406_v26 }
 0x334   : > { %5722 = vmatpush1.bf16.msra.mxu1 %v5721_v21  ;;  %2558 = vmatpush1.msra.mxu0 %v2405_v23 }
 0x335   : > { %v2660_v24 = vpop.permute.xlu1 %2659  ;;  %v2662_v58 = vpop.permute.xlu0 %2661  ;;  %2628 = vmatprep.subr.mxu1 %v6439_v51  ;;  %2570 = vmatmul.mubr.f32.vlgmr.msra.gmra.mrb[6].mxu0 %v7677_v55 }
 0x336   : > { %2977 = vrot.lane.b32.xlu1 %v7905_v1, %s6436_s24  ;;  %2979 = vrot.lane.b32.xlu0 %v7648_v10, %s6436_s24  ;;  %v2665_v30 = vsel %vm237_vm1, %v2660_v24, %v2662_v58 }
 0x337   : > { %v5725_v37 = vpack.c.bf16 %v2665_v30, %v7725_v48  ;;  %5300 = vmatprep.mubr.msk.f32.mxu0 %vm690_vm4, %v8011_v61 }
 0x339   : > { %v2664_v45 = vpop.permute.xlu1 %2663  ;;  %v2674_v25 = vpop.permute.xlu0 %2673  ;;  %v2495_v27 = vld [vmem:[#allocation2 + $0x280] sm:$0xff] }
 0x33a   : > { %v2666_v33 = vsel %vm237_vm1, %v2662_v58, %v2664_v45  ;;  %2672 = vst.msk [vmem:[#allocation2 + $0x28] sm:$0xff] %vm226_vm0, %v2664_v45  ;;  %2989 = vrot.lane.b32.xlu1 %v7908_v9, %s6437_s7  ;;  %2991 = vrot.lane.b32.xlu0 %v7905_v1, %s6437_s7 }
 0x33b   : > { %2629 = vmatpush1.msra.mxu1 %v2495_v27  ;;  %v5723_v35 = vpack.c.bf16 %v2666_v33, %v7722_v5 }
 0x33c   : > { %2641 = vmatmul.mubr.f32.vlgmr.msra.gmra.mrb[6].mxu1 %v7677_v55  ;;  %5775 = vmatprep.subr.bf16.mxu1 %v6429_v0 }
 0x33d   : > { %v2676_v36 = vpop.permute.xlu1 %2675  ;;  %v2678_v29 = vpop.permute.xlu0 %2677  ;;  %5724 = vmatprep.subr.bf16.mxu0 %v5723_v35  ;;  %5301 = vmatprep.mubr.msk.f32.mxu1 %vm690_vm4, %v8011_v61 }
 0x33e   : > { %2686 = vst.msk [vmem:[#allocation2 + $0x40] sm:$0xff] %vm226_vm0, %v2678_v29  ;;  %2993 = vrot.lane.b32.xlu1 %v7648_v10, %s6437_s7  ;;  %3003 = vrot.lane.b32.xlu0 %v7908_v9, %s6438_s5  ;;  %v2680_v2 = vsel %vm252_vm3, %v2676_v36, %v2678_v29  ;;  %v2679_v44 = vsel %vm252_vm3, %v2674_v25, %v2676_v36 }
 0x33f   : > { %5726 = vmatpush1.bf16.msra.mxu0 %v5725_v37  ;;  %v6227_v37 = vld [vmem:[%s6655_s12 + $0x80] sm:$0xff] }
 0x341   : > { %v2688_v5 = vpop.permute.xlu1 %2687  ;;  %v2690_v8 = vpop.permute.xlu0 %2689  ;;  %v3024_v55 = vld [vmem:[#allocation2 + $0x28] sm:$0xff] }
 0x342   : > { %3005 = vrot.lane.b32.xlu1 %v7905_v1, %s6438_s5  ;;  %3007 = vrot.lane.b32.xlu0 %v7648_v10, %s6438_s5  ;;  %v5776_v48 = vpack.c.bf16 %v3024_v55, %v7750_v12  ;;  %v2693_v63 = vsel %vm267_vm2, %v2688_v5, %v2690_v8  ;;  %v8009_v12 = vld [vmem:[%s6655_s12 + $0x78] sm:$0xff] }
 0x343   : > { %v5729_v16 = vpack.c.bf16 %v2693_v63, %v2679_v44 }
 0x344   : > { %5777 = vmatpush1.bf16.msra.mxu1 %v5776_v48 }
 0x345   : > { %v2692_v39 = vpop.permute.xlu1 %2691  ;;  %v2702_v43 = vpop.permute.xlu0 %2701  ;;  %5778 = vmatprep.subr.bf16.mxu1 %v6429_v0  ;;  %v3027_v41 = vld [vmem:[#allocation2 + $0x40] sm:$0xff] }
 0x346   : > { %v2694_v18 = vsel %vm267_vm2, %v2690_v8, %v2692_v39  ;;  %2700 = vst.msk [vmem:[#allocation2 + $0x58] sm:$0xff] %vm226_vm0, %v2692_v39  ;;  %3103 = vperm.xlu1 %6222, %v3100_v17   ;;  %3265 = vrot.lane.b32.xlu0 %v7996_v38, %s6430_s28  ;;  %v6228_v8 = vld [vmem:[%s6655_s12 + $0x78] sm:$0xff] }
 0x347   : > { %v5727_v53 = vpack.c.bf16 %v2694_v18, %v2680_v2 }
 0x349   : > { %v2704_v46 = vpop.permute.xlu1 %2703  ;;  %v2706_v47 = vpop.permute.xlu0 %2705  ;;  %5728 = vmatprep.subr.bf16.mxu0 %v5727_v53 }
 0x34a   : > { %2714 = vst.msk [vmem:[#allocation2 + $0x70] sm:$0xff] %vm226_vm0, %v2706_v47  ;;  %3267 = vrot.lane.b32.xlu1 %v7753_v4, %s6430_s28  ;;  %3263 = vrot.lane.b32.xlu0 %v8009_v12, %s6430_s28  ;;  %v2708_v54 = vsel %vm282_vm6, %v2704_v46, %v2706_v47  ;;  %v2707_v57 = vsel %vm282_vm6, %v2702_v43, %v2704_v46 }
 0x34b   : > { %5730 = vmatpush1.bf16.msra.mxu0 %v5729_v16 }
 0x34d   : > { %v2716_v40 = vpop.permute.xlu1 %2715  ;;  %v2718_v6 = vpop.permute.xlu0 %2717  ;;  %v3030_v52 = vld [vmem:[#allocation2 + $0x58] sm:$0xff] }
 0x34e   : > { %3279 = vrot.lane.b32.xlu1 %v7996_v38, %s6431_s26  ;;  %3281 = vrot.lane.b32.xlu0 %v7753_v4, %s6431_s26  ;;  %v5779_v22 = vpack.c.bf16 %v3030_v52, %v3027_v41  ;;  %v2721_v42 = vsel %vm297_vm5, %v2716_v40, %v2718_v6 }
 0x34f   : > { %v5733_v7 = vpack.c.bf16 %v2721_v42, %v2707_v57 }
 0x350   : > { %5780 = vmatpush1.bf16.msra.mxu1 %v5779_v22 }
 0x351   : > { %v2720_v14 = vpop.permute.xlu1 %2719  ;;  %v2730_v56 = vpop.permute.xlu0 %2729  ;;  %5781 = vmatprep.subr.bf16.mxu1 %v6429_v0  ;;  %v3033_v19 = vld [vmem:[#allocation2 + $0x70] sm:$0xff] }
 0x352   : > { %v2722_v13 = vsel %vm297_vm5, %v2718_v6, %v2720_v14  ;;  %2728 = vst.msk [vmem:[#allocation2 + $0x88] sm:$0xff] %vm226_vm0, %v2720_v14  ;;  %3293 = vrot.lane.b32.xlu1 %v7996_v38, %s6432_s4  ;;  %3295 = vrot.lane.b32.xlu0 %v7753_v4, %s6432_s4 }
 0x353   : > { %v5731_v34 = vpack.c.bf16 %v2722_v13, %v2708_v54 }
 0x355   : > { %v2732_v62 = vpop.permute.xlu1 %2731  ;;  %v2734_v3 = vpop.permute.xlu0 %2733  ;;  %5732 = vmatprep.subr.bf16.mxu0 %v5731_v34 }
 0x356   : > { %2742 = vst.msk [vmem:[#allocation2 + $0xa0] sm:$0xff] %vm226_vm0, %v2734_v3  ;;  %3277 = vrot.lane.b32.xlu1 %v8009_v12, %s6431_s26  ;;  %3291 = vrot.lane.b32.xlu0 %v8009_v12, %s6432_s4  ;;  %v2736_v24 = vsel %vm312_vm8, %v2732_v62, %v2734_v3  ;;  %v2735_v27 = vsel %vm312_vm8, %v2730_v56, %v2732_v62 }
 0x357   : > { %5734 = vmatpush1.bf16.msra.mxu0 %v5733_v7 }
 0x359   : > { %v2744_v49 = vpop.permute.xlu1 %2743  ;;  %v2746_v15 = vpop.permute.xlu0 %2745  ;;  %v3036_v20 = vld [vmem:[#allocation2 + $0x88] sm:$0xff] }
 0x35a   : > { %3307 = vrot.lane.b32.xlu1 %v7996_v38, %s6434_s8  ;;  %3309 = vrot.lane.b32.xlu0 %v7753_v4, %s6434_s8  ;;  %v5782_v26 = vpack.c.bf16 %v3036_v20, %v3033_v19  ;;  %v2749_v58 = vsel %vm327_vm7, %v2744_v49, %v2746_v15 }
 0x35b   : > { %v5737_v35 = vpack.c.bf16 %v2749_v58, %v2735_v27  ;;  %v8116_v58 = vld [vmem:[#allocation2 + $0xe8] sm:$0xff] }
 0x35c   : > { %5783 = vmatpush1.bf16.msra.mxu1 %v5782_v26  ;;  %3984 = vst.msk [vmem:[#allocation2 + $0xe8] sm:$0xff] %vm226_vm0, %v7936_v50 }
 0x35d   : > { %v2748_v21 = vpop.permute.xlu1 %2747  ;;  %v2758_v23 = vpop.permute.xlu0 %2757  ;;  %5784 = vmatprep.subr.bf16.mxu1 %v6429_v0  ;;  %v3039_v39 = vld [vmem:[#allocation2 + $0xa0] sm:$0xff] }
 0x35e   : > { %v2750_v45 = vsel %vm327_vm7, %v2746_v15, %v2748_v21  ;;  %2756 = vst.msk [vmem:[#allocation2 + $0xb8] sm:$0xff] %vm226_vm0, %v2748_v21  ;;  %3321 = vrot.lane.b32.xlu1 %v7996_v38, %s6435_s9  ;;  %3323 = vrot.lane.b32.xlu0 %v7753_v4, %s6435_s9 }
 0x35f   : > { %v5735_v25 = vpack.c.bf16 %v2750_v45, %v2736_v24 }
 0x361   : > { %v2760_v30 = vpop.permute.xlu1 %2759  ;;  %v2762_v33 = vpop.permute.xlu0 %2761  ;;  %5736 = vmatprep.subr.bf16.mxu0 %v5735_v25 }
 0x362   : > { %v2763_v36 = vsel %vm342_vm9, %v2758_v23, %v2760_v30  ;;  %v2764_v29 = vsel %vm342_vm9, %v2760_v30, %v2762_v33  ;;  %2770 = vst.msk [vmem:[#allocation2 + $0xd0] sm:$0xff] %vm226_vm0, %v2762_v33  ;;  %3305 = vrot.lane.b32.xlu1 %v8009_v12, %s6434_s8  ;;  %3319 = vrot.lane.b32.xlu0 %v8009_v12, %s6435_s9 }
 0x363   : > { %5738 = vmatpush1.bf16.msra.mxu0 %v5737_v35  ;;  %v5739_v5 = vpack.c.bf16 %v6227_v37, %v2764_v29  ;;  %v5741_v55 = vpack.c.bf16 %v6228_v8, %v2763_v36 }
 0x365   : > { %v2781_v48 = vpop.permute.xlu1 %2780  ;;  %v2783_v17 = vpop.permute.xlu0 %2782  ;;  %v3042_v43 = vld [vmem:[#allocation2 + $0xb8] sm:$0xff]  ;;  %5740 = vmatprep.subr.bf16.mxu0 %v5739_v5 }
 0x366   : > { %3335 = vrot.lane.b32.xlu1 %v7996_v38, %s6436_s24  ;;  %3337 = vrot.lane.b32.xlu0 %v7753_v4, %s6436_s24  ;;  %v5785_v2 = vpack.c.bf16 %v3042_v43, %v3039_v39  ;;  %v2786_v46 = vsel %vm237_vm1, %v2781_v48, %v2783_v17 }
 0x367   : > { %5742 = vmatpush1.bf16.msra.mxu0 %v5741_v55 }
 0x368   : > { %5786 = vmatpush1.bf16.msra.mxu1 %v5785_v2 }
 0x369   : > { %v2785_v63 = vpop.permute.xlu1 %2784  ;;  %v2795_v18 = vpop.permute.xlu0 %2794  ;;  %5787 = vmatprep.subr.bf16.mxu1 %v6429_v0  ;;  %v3045_v53 = vld [vmem:[#allocation2 + $0xd0] sm:$0xff] }
 0x36a   : > { %2793 = vst.msk [vmem:[#allocation2 + $0x100] sm:$0xff] %vm226_vm0, %v2785_v63  ;;  %3349 = vrot.lane.b32.xlu1 %v7996_v38, %s6437_s7  ;;  %3351 = vrot.lane.b32.xlu0 %v7753_v4, %s6437_s7  ;;  %v5788_v44 = vpack.c.bf16 %v7831_v32, %v3045_v53  ;;  %v2787_v40 = vsel %vm237_vm1, %v2783_v17, %v2785_v63 }
 0x36c   : > { %5789 = vmatpush1.bf16.msra.mxu1 %v5788_v44 }
 0x36d   : > { %v2797_v47 = vpop.permute.xlu1 %2796  ;;  %v2799_v16 = vpop.permute.xlu0 %2798  ;;  %5790 = vmatprep.subr.bf16.mxu1 %v6429_v0 }
 0x36e   : > { %v2800_v6 = vsel %vm252_vm3, %v2795_v18, %v2797_v47  ;;  %v2801_v41 = vsel %vm252_vm3, %v2797_v47, %v2799_v16  ;;  %2807 = vst.msk [vmem:[#allocation2 + $0x118] sm:$0xff] %vm226_vm0, %v2799_v16  ;;  %3333 = vrot.lane.b32.xlu1 %v8009_v12, %s6436_s24  ;;  %3347 = vrot.lane.b32.xlu0 %v8009_v12, %s6437_s7 }
 0x36f   : > { %v5743_v32 = vpack.c.bf16 %v2801_v41, %v2787_v40  ;;  %v5745_v52 = vpack.c.bf16 %v2800_v6, %v2786_v46 }
 0x371   : > { %v2809_v22 = vpop.permute.xlu1 %2808  ;;  %v2811_v14 = vpop.permute.xlu0 %2810  ;;  %5744 = vmatprep.subr.bf16.mxu0 %v5743_v32  ;;  %v3051_v13 = vld [vmem:[#allocation2 + $0x100] sm:$0xff] }
 0x372   : > { %3363 = vrot.lane.b32.xlu1 %v7996_v38, %s6438_s5  ;;  %3365 = vrot.lane.b32.xlu0 %v7753_v4, %s6438_s5  ;;  %v2814_v7 = vsel %vm267_vm2, %v2809_v22, %v2811_v14 }
 0x373   : > { %5746 = vmatpush1.bf16.msra.mxu0 %v5745_v52 }
 0x374   : > { %v1967_v56 = vpop.f32.mrb[4].mxu0 }
 0x375   : > { %v2813_v54 = vpop.permute.xlu1 %2812  ;;  %v2823_v42 = vpop.permute.xlu0 %2822  ;;  %v3054_v34 = vld [vmem:[#allocation2 + $0x118] sm:$0xff]  ;;  %v1968_v57 = vadd.f32 %v1967_v56, %v7680_v31 }
 0x376   : > { %2821 = vst.msk [vmem:[#allocation2 + $0x130] sm:$0xff] %vm226_vm0, %v2813_v54  ;;  %3361 = vrot.lane.b32.xlu1 %v8009_v12, %s6438_s5  ;;  %3386 = vrot.lane.b32.xlu0 %v7905_v1, %s6430_s28  ;;  %v5791_v62 = vpack.c.bf16 %v3054_v34, %v3051_v13  ;;  %v1969_v3 = vpop.f32.mrb[5].mxu0  ;;  %v2815_v19 = vsel %vm267_vm2, %v2811_v14, %v2813_v54 }
 0x377   : > { %5270 = vst [vmem:[%s7506_s1 + $0x30] sm:$0xff] %v1968_v57  ;;  %v1970_v4 = vadd.f32 %v1969_v3, %v7680_v31 }
 0x378   : > { %5792 = vmatpush1.bf16.msra.mxu1 %v5791_v62 }
 0x379   : > { %v2825_v49 = vpop.permute.xlu1 %2824  ;;  %v2827_v15 = vpop.permute.xlu0 %2826  ;;  %5271 = vst [vmem:[%s7506_s1 + $0x38] sm:$0xff] %v1970_v4  ;;  %5793 = vmatprep.subr.bf16.mxu1 %v6429_v0 }
 0x37a   : > { %v2828_v20 = vsel %vm282_vm6, %v2823_v42, %v2825_v49  ;;  %v2829_v26 = vsel %vm282_vm6, %v2825_v49, %v2827_v15  ;;  %2835 = vst.msk [vmem:[#allocation2 + $0x148] sm:$0xff] %vm226_vm0, %v2827_v15  ;;  %3388 = vrot.lane.b32.xlu1 %v7648_v10, %s6430_s28  ;;  %3400 = vrot.lane.b32.xlu0 %v7905_v1, %s6431_s26 }
 0x37b   : > { %v2038_v21 = vpop.f32.mrb[4].mxu1  ;;  %v5747_v23 = vpack.c.bf16 %v2829_v26, %v2815_v19  ;;  %v5749_v24 = vpack.c.bf16 %v2828_v20, %v2814_v7 }
 0x37c   : > { %v2039_v45 = vadd.f32 %v2038_v21, %v7680_v31  ;;  %v2040_v25 = vpop.f32.mrb[5].mxu1 }
 0x37d   : > { %v2837_v27 = vpop.permute.xlu1 %2836  ;;  %v2839_v30 = vpop.permute.xlu0 %2838  ;;  %5748 = vmatprep.subr.bf16.mxu0 %v5747_v23  ;;  %v3057_v36 = vld [vmem:[#allocation2 + $0x130] sm:$0xff] }
 0x37e   : > { %5272 = vst.msk [vmem:[%s7506_s1 + $0x40] sm:$0xff] %vm226_vm0, %v2039_v45  ;;  %3402 = vrot.lane.b32.xlu1 %v7648_v10, %s6431_s26  ;;  %3384 = vrot.lane.b32.xlu0 %v7908_v9, %s6430_s28  ;;  %v2842_v37 = vsel %vm297_vm5, %v2837_v27, %v2839_v30 }
 0x37f   : > { %5750 = vmatpush1.bf16.msra.mxu0 %v5749_v24  ;;  %v8186_v24 = vld [vmem:[%s6655_s12 + $0xb0] sm:$0xff] }
 0x381   : > { %v2841_v33 = vpop.permute.xlu1 %2840  ;;  %v2851_v35 = vpop.permute.xlu0 %2850  ;;  %v3060_v31 = vld [vmem:[#allocation2 + $0x148] sm:$0xff] }
 0x382   : > { %2849 = vst.msk [vmem:[#allocation2 + $0x160] sm:$0xff] %vm226_vm0, %v2841_v33  ;;  %3398 = vrot.lane.b32.xlu1 %v7908_v9, %s6431_s26  ;;  %3414 = vrot.lane.b32.xlu0 %v7905_v1, %s6432_s4  ;;  %v5794_v29 = vpack.c.bf16 %v3060_v31, %v3057_v36  ;;  %v2843_v55 = vsel %vm297_vm5, %v2839_v30, %v2841_v33 }
 0x384   : > { %5795 = vmatpush1.bf16.msra.mxu1 %v5794_v29 }
 0x385   : > { %v2853_v5 = vpop.permute.xlu1 %2852  ;;  %v2855_v8 = vpop.permute.xlu0 %2854  ;;  %5796 = vmatprep.subr.bf16.mxu1 %v6429_v0 }
 0x386   : > { %v2856_v48 = vsel %vm312_vm8, %v2851_v35, %v2853_v5  ;;  %v2857_v17 = vsel %vm312_vm8, %v2853_v5, %v2855_v8  ;;  %2863 = vst.msk [vmem:[#allocation2 + $0x178] sm:$0xff] %vm226_vm0, %v2855_v8  ;;  %3416 = vrot.lane.b32.xlu1 %v7648_v10, %s6432_s4  ;;  %3428 = vrot.lane.b32.xlu0 %v7905_v1, %s6434_s8 }
 0x387   : > { %v5751_v39 = vpack.c.bf16 %v2857_v17, %v2843_v55  ;;  %v5753_v43 = vpack.c.bf16 %v2856_v48, %v2842_v37 }
 0x389   : > { %v2865_v2 = vpop.permute.xlu1 %2864  ;;  %v2867_v63 = vpop.permute.xlu0 %2866  ;;  %5752 = vmatprep.subr.bf16.mxu0 %v5751_v39  ;;  %v3063_v44 = vld [vmem:[#allocation2 + $0x160] sm:$0xff] }
 0x38a   : > { %3430 = vrot.lane.b32.xlu1 %v7648_v10, %s6434_s8  ;;  %3412 = vrot.lane.b32.xlu0 %v7908_v9, %s6432_s4  ;;  %v2870_v16 = vsel %vm327_vm7, %v2865_v2, %v2867_v63 }
 0x38b   : > { %5754 = vmatpush1.bf16.msra.mxu0 %v5753_v43 }
 0x38d   : > { %v2869_v18 = vpop.permute.xlu1 %2868  ;;  %v2879_v53 = vpop.permute.xlu0 %2878  ;;  %v3066_v46 = vld [vmem:[#allocation2 + $0x178] sm:$0xff] }
 0x38e   : > { %2877 = vst.msk [vmem:[#allocation2 + $0x190] sm:$0xff] %vm226_vm0, %v2869_v18  ;;  %3426 = vrot.lane.b32.xlu1 %v7908_v9, %s6434_s8  ;;  %3442 = vrot.lane.b32.xlu0 %v7905_v1, %s6435_s9  ;;  %v5797_v47 = vpack.c.bf16 %v3066_v46, %v3063_v44  ;;  %v2871_v41 = vsel %vm327_vm7, %v2867_v63, %v2869_v18  ;;  %v8220_v18 = vld [vmem:[#allocation2 + $0x1c0] sm:$0xff] }
 0x390   : > { %5798 = vmatpush1.bf16.msra.mxu1 %v5797_v47 }
 0x391   : > { %v2881_v40 = vpop.permute.xlu1 %2880  ;;  %v2883_v6 = vpop.permute.xlu0 %2882  ;;  %5799 = vmatprep.subr.bf16.mxu1 %v6429_v0 }
 0x392   : > { %v2884_v32 = vsel %vm342_vm9, %v2879_v53, %v2881_v40  ;;  %v2885_v52 = vsel %vm342_vm9, %v2881_v40, %v2883_v6  ;;  %2891 = vst.msk [vmem:[#allocation2 + $0x1a8] sm:$0xff] %vm226_vm0, %v2883_v6  ;;  %3444 = vrot.lane.b32.xlu1 %v7648_v10, %s6435_s9  ;;  %3456 = vrot.lane.b32.xlu0 %v7905_v1, %s6436_s24  ;;  %v8223_v53 = vld [vmem:[%s6655_s12 + $0xd0] sm:$0xff]  ;;  %v8236_v40 = vld [vmem:[%s6655_s12 + $0xc0] sm:$0xff] }
 0x393   : > { %v5755_v22 = vpack.c.bf16 %v2885_v52, %v2871_v41  ;;  %v5757_v14 = vpack.c.bf16 %v2884_v32, %v2870_v16  ;;  %4109 = vst.msk [vmem:[#allocation2 + $0x1c0] sm:$0xff] %vm226_vm0, %v8223_v53  ;;  %v8233_v16 = vld [vmem:[%s6655_s12 + $0xc8] sm:$0xff]  ;;  %4586 = vst [vmem:[#allocation2 + $0xd8] sm:$0xff] %v8236_v40 }
 0x394   : > { %4587 = vst [vmem:[#allocation2 + $0xe0] sm:$0xff] %v8233_v16 }
 0x395   : > { %v2906_v56 = vpop.permute.xlu1 %2905  ;;  %v2908_v54 = vpop.permute.xlu0 %2907  ;;  %5756 = vmatprep.subr.bf16.mxu0 %v5755_v22  ;;  %v3069_v34 = vld [vmem:[#allocation2 + $0x190] sm:$0xff] }
 0x396   : > { %3458 = vrot.lane.b32.xlu1 %v7648_v10, %s6436_s24  ;;  %3440 = vrot.lane.b32.xlu0 %v7908_v9, %s6435_s9  ;;  %v2911_v62 = vsel %vm237_vm1, %v2906_v56, %v2908_v54 }
 0x397   : > { %5758 = vmatpush1.bf16.msra.mxu0 %v5757_v14  ;;  %v5761_v19 = vpack.c.bf16 %v2911_v62, %v7908_v9 }
 0x399   : > { %v2910_v42 = vpop.permute.xlu1 %2909  ;;  %v2920_v13 = vpop.permute.xlu0 %2919  ;;  %v3072_v57 = vld [vmem:[#allocation2 + $0x1a8] sm:$0xff] }
 0x39a   : > { %v2912_v3 = vsel %vm237_vm1, %v2908_v54, %v2910_v42  ;;  %2918 = vst.msk [vmem:[#allocation2 + $0x1d8] sm:$0xff] %vm226_vm0, %v2910_v42  ;;  %3454 = vrot.lane.b32.xlu1 %v7908_v9, %s6436_s24  ;;  %3470 = vrot.lane.b32.xlu0 %v7905_v1, %s6437_s7  ;;  %v5800_v4 = vpack.c.bf16 %v3072_v57, %v3069_v34 }
 0x39b   : > { %v5759_v7 = vpack.c.bf16 %v2912_v3, %v7905_v1 }
 0x39c   : > { %5801 = vmatpush1.bf16.msra.mxu1 %v5800_v4 }
 0x39d   : > { %v2922_v49 = vpop.permute.xlu1 %2921  ;;  %v2924_v15 = vpop.permute.xlu0 %2923  ;;  %5802 = vmatprep.subr.bf16.mxu1 %v6429_v0  ;;  %5760 = vmatprep.subr.bf16.mxu0 %v5759_v7 }
 0x39e   : > { %2932 = vst.msk [vmem:[#allocation2 + $0x1f0] sm:$0xff] %vm226_vm0, %v2924_v15  ;;  %3472 = vrot.lane.b32.xlu1 %v7648_v10, %s6437_s7  ;;  %3484 = vrot.lane.b32.xlu0 %v7905_v1, %s6438_s5  ;;  %v2926_v1 = vsel %vm252_vm3, %v2922_v49, %v2924_v15  ;;  %v2925_v33 = vsel %vm252_vm3, %v2920_v13, %v2922_v49 }
 0x39f   : > { %5762 = vmatpush1.bf16.msra.mxu0 %v5761_v19 }
 0x3a1   : > { %v2934_v20 = vpop.permute.xlu1 %2933  ;;  %v2936_v26 = vpop.permute.xlu0 %2935  ;;  %v3078_v21 = vld [vmem:[#allocation2 + $0x1d8] sm:$0xff] }
 0x3a2   : > { %3486 = vrot.lane.b32.xlu1 %v7648_v10, %s6438_s5  ;;  %3468 = vrot.lane.b32.xlu0 %v7908_v9, %s6437_s7  ;;  %v5803_v23 = vpack.c.bf16 %v3078_v21, %v7933_v28  ;;  %v2939_v27 = vsel %vm267_vm2, %v2934_v20, %v2936_v26  ;;  %v8198_v10 = vld [vmem:[%s6655_s12 + $0xa8] sm:$0xff] }
 0x3a3   : > { %v5765_v31 = vpack.c.bf16 %v2939_v27, %v2925_v33 }
 0x3a4   : > { %5804 = vmatpush1.bf16.msra.mxu1 %v5803_v23 }
 0x3a5   : > { %v2938_v45 = vpop.permute.xlu1 %2937  ;;  %v2948_v25 = vpop.permute.xlu0 %2947  ;;  %5805 = vmatprep.subr.bf16.mxu1 %v6429_v0  ;;  %v3081_v37 = vld [vmem:[#allocation2 + $0x1f0] sm:$0xff] }
 0x3a6   : > { %v2940_v30 = vsel %vm267_vm2, %v2936_v26, %v2938_v45  ;;  %2946 = vst.msk [vmem:[#allocation2 + $0x208] sm:$0xff] %vm226_vm0, %v2938_v45  ;;  %3482 = vrot.lane.b32.xlu1 %v7908_v9, %s6438_s5  ;;  %3511 = vrot.lane.b32.xlu0 %v8186_v24, %s6430_s28  ;;  %v8262_v26 = vld [vmem:[#allocation6] sm:$0xff] }
 0x3a7   : > { %v5763_v28 = vpack.c.bf16 %v2940_v30, %v2926_v1 }
 0x3a9   : > { %v2950_v35 = vpop.permute.xlu1 %2949  ;;  %v2952_v36 = vpop.permute.xlu0 %2951  ;;  %5764 = vmatprep.subr.bf16.mxu0 %v5763_v28 }
 0x3aa   : > { %2960 = vst.msk [vmem:[#allocation2 + $0x220] sm:$0xff] %vm226_vm0, %v2952_v36  ;;  %3513 = vrot.lane.b32.xlu1 %v7936_v50, %s6430_s28  ;;  %3509 = vrot.lane.b32.xlu0 %v8198_v10, %s6430_s28  ;;  %v2954_v17 = vsel %vm282_vm6, %v2950_v35, %v2952_v36  ;;  %v2953_v63 = vsel %vm282_vm6, %v2948_v25, %v2950_v35 }
 0x3ab   : > { %5766 = vmatpush1.bf16.msra.mxu0 %v5765_v31 }
 0x3ad   : > { %v2962_v9 = vpop.permute.xlu1 %2961  ;;  %v2964_v29 = vpop.permute.xlu0 %2963  ;;  %v3084_v5 = vld [vmem:[#allocation2 + $0x208] sm:$0xff] }
 0x3ae   : > { %3525 = vrot.lane.b32.xlu1 %v8186_v24, %s6431_s26  ;;  %3527 = vrot.lane.b32.xlu0 %v7936_v50, %s6431_s26  ;;  %v5806_v8 = vpack.c.bf16 %v3084_v5, %v3081_v37  ;;  %v2967_v39 = vsel %vm297_vm5, %v2962_v9, %v2964_v29 }
 0x3af   : > { %v5769_v47 = vpack.c.bf16 %v2967_v39, %v2953_v63 }
 0x3b0   : > { %5807 = vmatpush1.bf16.msra.mxu1 %v5806_v8 }
 0x3b1   : > { %v2966_v55 = vpop.permute.xlu1 %2965  ;;  %v2976_v48 = vpop.permute.xlu0 %2975  ;;  %5808 = vmatprep.subr.bf16.mxu1 %v6429_v0  ;;  %v3087_v32 = vld [vmem:[#allocation2 + $0x220] sm:$0xff] }
 0x3b2   : > { %v2968_v43 = vsel %vm297_vm5, %v2964_v29, %v2966_v55  ;;  %2974 = vst.msk [vmem:[#allocation2 + $0x238] sm:$0xff] %vm226_vm0, %v2966_v55  ;;  %3539 = vrot.lane.b32.xlu1 %v8186_v24, %s6432_s4  ;;  %3541 = vrot.lane.b32.xlu0 %v7936_v50, %s6432_s4 }
 0x3b3   : > { %v5767_v2 = vpack.c.bf16 %v2968_v43, %v2954_v17 }
 0x3b5   : > { %v2978_v44 = vpop.permute.xlu1 %2977  ;;  %v2980_v46 = vpop.permute.xlu0 %2979  ;;  %5768 = vmatprep.subr.bf16.mxu0 %v5767_v2 }
 0x3b6   : > { %2988 = vst.msk [vmem:[#allocation2 + $0x250] sm:$0xff] %vm226_vm0, %v2980_v46  ;;  %3523 = vrot.lane.b32.xlu1 %v8198_v10, %s6431_s26  ;;  %3537 = vrot.lane.b32.xlu0 %v8198_v10, %s6432_s4  ;;  %v2982_v54 = vsel %vm312_vm8, %v2978_v44, %v2980_v46  ;;  %v2981_v57 = vsel %vm312_vm8, %v2976_v48, %v2978_v44 }
 0x3b7   : > { %5770 = vmatpush1.bf16.msra.mxu0 %v5769_v47 }
 0x3b9   : > { %v2990_v6 = vpop.permute.xlu1 %2989  ;;  %v2992_v41 = vpop.permute.xlu0 %2991  ;;  %v3090_v52 = vld [vmem:[#allocation2 + $0x238] sm:$0xff] }
 0x3ba   : > { %3553 = vrot.lane.b32.xlu1 %v8186_v24, %s6434_s8  ;;  %3555 = vrot.lane.b32.xlu0 %v7936_v50, %s6434_s8  ;;  %v5809_v22 = vpack.c.bf16 %v3090_v52, %v3087_v32  ;;  %v2995_v42 = vsel %vm327_vm7, %v2990_v6, %v2992_v41 }
 0x3bb   : > { %v5773_v4 = vpack.c.bf16 %v2995_v42, %v2981_v57  ;;  %v8331_v42 = vld [vmem:[#allocation2 + $0x10] sm:$0xff] }
 0x3bc   : > { %5810 = vmatpush1.bf16.msra.mxu1 %v5809_v22 }
 0x3bd   : > { %v2994_v14 = vpop.permute.xlu1 %2993  ;;  %v3004_v56 = vpop.permute.xlu0 %3003  ;;  %5811 = vmatprep.subr.bf16.mxu1 %v6429_v0  ;;  %v3093_v19 = vld [vmem:[#allocation2 + $0x250] sm:$0xff] }
 0x3be   : > { %v2996_v13 = vsel %vm327_vm7, %v2992_v41, %v2994_v14  ;;  %3002 = vst.msk [vmem:[#allocation2 + $0x268] sm:$0xff] %vm226_vm0, %v2994_v14  ;;  %3567 = vrot.lane.b32.xlu1 %v8186_v24, %s6435_s9  ;;  %3569 = vrot.lane.b32.xlu0 %v7936_v50, %s6435_s9 }
 0x3bf   : > { %v5771_v34 = vpack.c.bf16 %v2996_v13, %v2982_v54  ;;  %v8334_v13 = vld [vmem:[%s6655_s12 + $0xb8] sm:$0xff] }
 0x3c0   : > { %4467 = vst.msk [vmem:[#allocation2 + $0x10] sm:$0xff] %vm226_vm0, %v8334_v13 }
 0x3c1   : > { %v3006_v62 = vpop.permute.xlu1 %3005  ;;  %v3008_v3 = vpop.permute.xlu0 %3007  ;;  %5772 = vmatprep.subr.bf16.mxu0 %v5771_v34  ;;  %v8337_v34 = vld [vmem:[%s6655_s12 + $0xb0] sm:$0xff] }
 0x3c2   : > { %v3010_v7 = vsel %vm342_vm9, %v3006_v62, %v3008_v3  ;;  %3016 = vst.msk [vmem:[#allocation2 + $0x280] sm:$0xff] %vm226_vm0, %v3008_v3  ;;  %3551 = vrot.lane.b32.xlu1 %v8198_v10, %s6434_s8  ;;  %3565 = vrot.lane.b32.xlu0 %v8198_v10, %s6435_s9  ;;  %v3009_v21 = vsel %vm342_vm9, %v3004_v56, %v3006_v62  ;;  %4466 = vst [vmem:[#allocation2 + $0x8] sm:$0xff] %v8337_v34 }
 0x3c3   : > { %5774 = vmatpush1.bf16.msra.mxu0 %v5773_v4 }
 0x3c4   : > { %3161 = vmatprep.subr.mxu0 %v3010_v7 }
 0x3c5   : > { %v8260_v49 = vpop.permute.xlu1 %3103  ;;  %v3266_v15 = vpop.permute.xlu0 %3265  ;;  %v3096_v20 = vld [vmem:[#allocation2 + $0x268] sm:$0xff] }
 0x3c6   : > { %3581 = vrot.lane.b32.xlu1 %v8186_v24, %s6436_s24  ;;  %3583 = vrot.lane.b32.xlu0 %v7936_v50, %s6436_s24  ;;  %v5812_v23 = vpack.c.bf16 %v3096_v20, %v3093_v19  ;;  %v8348_v19 = vld [vmem:[%s6655_s12 + $0xa8] sm:$0xff] }
 0x3c7   : > { %3162 = vmatpush1.msra.mxu0 %v3009_v21  ;;  %4465 = vst [vmem:[#allocation2] sm:$0xff] %v8348_v19 }
 0x3c8   : > { %5813 = vmatpush1.bf16.msra.mxu1 %v5812_v23  ;;  %3174 = vmatmul.mubr.f32.vlgmr.msra.gmra.mrb[8].mxu0 %v8262_v26 }
 0x3c9   : > { %v3268_v45 = vpop.permute.xlu1 %3267  ;;  %v3264_v25 = vpop.permute.xlu0 %3263  ;;  %3232 = vmatprep.subr.mxu1 %v6439_v51  ;;  %5316 = vmatprep.mubr.msk.f32.mxu0 %vm690_vm4, %v8011_v61  ;;  %v3099_v30 = vld [vmem:[#allocation2 + $0x280] sm:$0xff] }
 0x3ca   : > { %v3270_v1 = vsel %vm237_vm1, %v3266_v15, %v3268_v45  ;;  %3276 = vst.msk [vmem:[#allocation2 + $0x28] sm:$0xff] %vm226_vm0, %v3268_v45  ;;  %v3269_v27 = vsel %vm237_vm1, %v3264_v25, %v3266_v15  ;;  %3595 = vrot.lane.b32.xlu1 %v8186_v24, %s6437_s7  ;;  %3597 = vrot.lane.b32.xlu0 %v7936_v50, %s6437_s7 }
 0x3cb   : > { %v5814_v28 = vpack.c.bf16 %v3270_v1, %v7996_v38  ;;  %v5816_v33 = vpack.c.bf16 %v3269_v27, %v8009_v12 }
 0x3cc   : > { %3233 = vmatpush1.msra.mxu1 %v3099_v30 }
 0x3cd   : > { %v3280_v35 = vpop.permute.xlu1 %3279  ;;  %3245 = vmatmul.mubr.f32.vlgmr.msra.gmra.mrb[8].mxu1 %v8262_v26  ;;  %v3282_v36 = vpop.permute.xlu0 %3281  ;;  %5866 = vmatprep.subr.bf16.mxu1 %v6429_v0 }
 0x3ce   : > { %3290 = vst.msk [vmem:[#allocation2 + $0x40] sm:$0xff] %vm226_vm0, %v3282_v36  ;;  %3579 = vrot.lane.b32.xlu1 %v8198_v10, %s6436_s24  ;;  %3593 = vrot.lane.b32.xlu0 %v8198_v10, %s6437_s7  ;;  %v3284_v9 = vsel %vm252_vm3, %v3280_v35, %v3282_v36 }
 0x3cf   : > { %5815 = vmatprep.subr.bf16.mxu0 %v5814_v28  ;;  %5317 = vmatprep.mubr.msk.f32.mxu1 %vm690_vm4, %v8011_v61  ;;  %v8300_v61 = vld [vmem:[%s6655_s12 + $0x98] sm:$0xff] }
 0x3d0   : > { %5817 = vmatpush1.bf16.msra.mxu0 %v5816_v33 }
 0x3d1   : > { %v3294_v38 = vpop.permute.xlu1 %3293  ;;  %v3296_v12 = vpop.permute.xlu0 %3295  ;;  %v3628_v31 = vld [vmem:[#allocation2 + $0x28] sm:$0xff] }
 0x3d2   : > { %v3298_v29 = vsel %vm267_vm2, %v3294_v38, %v3296_v12  ;;  %3304 = vst.msk [vmem:[#allocation2 + $0x58] sm:$0xff] %vm226_vm0, %v3296_v12  ;;  %3609 = vrot.lane.b32.xlu1 %v8186_v24, %s6438_s5  ;;  %3611 = vrot.lane.b32.xlu0 %v7936_v50, %s6438_s5  ;;  %v5867_v37 = vpack.c.bf16 %v3628_v31, %v8037_v59  ;;  %v8310_v59 = vld [vmem:[%s6655_s12 + $0x90] sm:$0xff] }
 0x3d3   : > { %v5818_v5 = vpack.c.bf16 %v3298_v29, %v3284_v9  ;;  %v6229_v29 = vld [vmem:[%s6655_s12 + $0x98] sm:$0xff] }
 0x3d4   : > { %5868 = vmatpush1.bf16.msra.mxu1 %v5867_v37 }
 0x3d5   : > { %v3278_v8 = vpop.permute.xlu1 %3277  ;;  %v3292_v55 = vpop.permute.xlu0 %3291  ;;  %5869 = vmatprep.subr.bf16.mxu1 %v6429_v0  ;;  %5819 = vmatprep.subr.bf16.mxu0 %v5818_v5  ;;  %v3631_v63 = vld [vmem:[#allocation2 + $0x40] sm:$0xff] }
 0x3d6   : > { %v3283_v48 = vsel %vm252_vm3, %v3278_v8, %v3280_v35  ;;  %v3297_v17 = vsel %vm267_vm2, %v3292_v55, %v3294_v38  ;;  %3869 = vrot.lane.b32.xlu1 %v8300_v61, %s6430_s28  ;;  %3871 = vrot.lane.b32.xlu0 %v8040_v60, %s6430_s28 }
 0x3d7   : > { %v5820_v39 = vpack.c.bf16 %v3297_v17, %v3283_v48  ;;  %v6230_v48 = vld [vmem:[%s6655_s12 + $0x90] sm:$0xff] }
 0x3d9   : > { %v3308_v43 = vpop.permute.xlu1 %3307  ;;  %v3310_v2 = vpop.permute.xlu0 %3309  ;;  %v3634_v44 = vld [vmem:[#allocation2 + $0x58] sm:$0xff]  ;;  %5821 = vmatpush1.bf16.msra.mxu0 %v5820_v39 }
 0x3da   : > { %3318 = vst.msk [vmem:[#allocation2 + $0x70] sm:$0xff] %vm226_vm0, %v3310_v2  ;;  %3607 = vrot.lane.b32.xlu1 %v8198_v10, %s6438_s5  ;;  %3867 = vrot.lane.b32.xlu0 %v8310_v59, %s6430_s28  ;;  %v5870_v46 = vpack.c.bf16 %v3634_v44, %v3631_v63  ;;  %v3312_v41 = vsel %vm282_vm6, %v3308_v43, %v3310_v2 }
 0x3dc   : > { %5871 = vmatpush1.bf16.msra.mxu1 %v5870_v46 }
 0x3dd   : > { %v3322_v47 = vpop.permute.xlu1 %3321  ;;  %v3324_v6 = vpop.permute.xlu0 %3323  ;;  %5872 = vmatprep.subr.bf16.mxu1 %v6429_v0 }
 0x3de   : > { %v3326_v32 = vsel %vm297_vm5, %v3322_v47, %v3324_v6  ;;  %3332 = vst.msk [vmem:[#allocation2 + $0x88] sm:$0xff] %vm226_vm0, %v3324_v6  ;;  %3883 = vrot.lane.b32.xlu1 %v8300_v61, %s6431_s26  ;;  %3885 = vrot.lane.b32.xlu0 %v8040_v60, %s6431_s26 }
 0x3df   : > { %v5822_v52 = vpack.c.bf16 %v3326_v32, %v3312_v41 }
 0x3e1   : > { %v3306_v22 = vpop.permute.xlu1 %3305  ;;  %v3320_v14 = vpop.permute.xlu0 %3319  ;;  %5823 = vmatprep.subr.bf16.mxu0 %v5822_v52  ;;  %v3637_v4 = vld [vmem:[#allocation2 + $0x70] sm:$0xff] }
 0x3e2   : > { %v3311_v56 = vsel %vm282_vm6, %v3306_v22, %v3308_v43  ;;  %v3325_v54 = vsel %vm297_vm5, %v3320_v14, %v3322_v47  ;;  %3897 = vrot.lane.b32.xlu1 %v8300_v61, %s6432_s4  ;;  %3899 = vrot.lane.b32.xlu0 %v8040_v60, %s6432_s4 }
 0x3e3   : > { %v5824_v57 = vpack.c.bf16 %v3325_v54, %v3311_v56 }
 0x3e5   : > { %v3336_v62 = vpop.permute.xlu1 %3335  ;;  %v3338_v3 = vpop.permute.xlu0 %3337  ;;  %v3640_v7 = vld [vmem:[#allocation2 + $0x88] sm:$0xff]  ;;  %5825 = vmatpush1.bf16.msra.mxu0 %v5824_v57 }
 0x3e6   : > { %3346 = vst.msk [vmem:[#allocation2 + $0xa0] sm:$0xff] %vm226_vm0, %v3338_v3  ;;  %3881 = vrot.lane.b32.xlu1 %v8310_v59, %s6431_s26  ;;  %3895 = vrot.lane.b32.xlu0 %v8310_v59, %s6432_s4  ;;  %v5873_v15 = vpack.c.bf16 %v3640_v7, %v3637_v4  ;;  %v3340_v23 = vsel %vm312_vm8, %v3336_v62, %v3338_v3 }
 0x3e8   : > { %5874 = vmatpush1.bf16.msra.mxu1 %v5873_v15 }
 0x3e9   : > { %v3350_v20 = vpop.permute.xlu1 %3349  ;;  %v3352_v21 = vpop.permute.xlu0 %3351  ;;  %5875 = vmatprep.subr.bf16.mxu1 %v6429_v0 }
 0x3ea   : > { %v3354_v45 = vsel %vm327_vm7, %v3350_v20, %v3352_v21  ;;  %3360 = vst.msk [vmem:[#allocation2 + $0xb8] sm:$0xff] %vm226_vm0, %v3352_v21  ;;  %3911 = vrot.lane.b32.xlu1 %v8300_v61, %s6434_s8  ;;  %3913 = vrot.lane.b32.xlu0 %v8040_v60, %s6434_s8 }
 0x3eb   : > { %v5826_v25 = vpack.c.bf16 %v3354_v45, %v3340_v23 }
 0x3ed   : > { %v3334_v1 = vpop.permute.xlu1 %3333  ;;  %v3348_v27 = vpop.permute.xlu0 %3347  ;;  %5827 = vmatprep.subr.bf16.mxu0 %v5826_v25  ;;  %v3643_v38 = vld [vmem:[#allocation2 + $0xa0] sm:$0xff] }
 0x3ee   : > { %v3339_v30 = vsel %vm312_vm8, %v3334_v1, %v3336_v62  ;;  %v3353_v28 = vsel %vm327_vm7, %v3348_v27, %v3350_v20  ;;  %3925 = vrot.lane.b32.xlu1 %v8300_v61, %s6435_s9  ;;  %3927 = vrot.lane.b32.xlu0 %v8040_v60, %s6435_s9  ;;  %v8415_v1 = vld [vmem:[#allocation2 + $0xe8] sm:$0xff] }
 0x3ef   : > { %v5828_v33 = vpack.c.bf16 %v3353_v28, %v3339_v30  ;;  %4588 = vst.msk [vmem:[#allocation2 + $0xe8] sm:$0xff] %vm226_vm0, %v8223_v53 }
 0x3f1   : > { %v3364_v35 = vpop.permute.xlu1 %3363  ;;  %v3366_v36 = vpop.permute.xlu0 %3365  ;;  %v3646_v12 = vld [vmem:[#allocation2 + $0xb8] sm:$0xff]  ;;  %5829 = vmatpush1.bf16.msra.mxu0 %v5828_v33 }
 0x3f2   : > { %v3368_v31 = vsel %vm342_vm9, %v3364_v35, %v3366_v36  ;;  %3374 = vst.msk [vmem:[#allocation2 + $0xd0] sm:$0xff] %vm226_vm0, %v3366_v36  ;;  %3909 = vrot.lane.b32.xlu1 %v8310_v59, %s6434_s8  ;;  %3923 = vrot.lane.b32.xlu0 %v8310_v59, %s6435_s9  ;;  %v5876_v9 = vpack.c.bf16 %v3646_v12, %v3643_v38 }
 0x3f3   : > { %v5830_v37 = vpack.c.bf16 %v6229_v29, %v3368_v31 }
 0x3f4   : > { %5877 = vmatpush1.bf16.msra.mxu1 %v5876_v9 }
 0x3f5   : > { %v3362_v5 = vpop.permute.xlu1 %3361  ;;  %v3387_v8 = vpop.permute.xlu0 %3386  ;;  %5878 = vmatprep.subr.bf16.mxu1 %v6429_v0  ;;  %5831 = vmatprep.subr.bf16.mxu0 %v5830_v37 }
 0x3f6   : > { %v3367_v55 = vsel %vm342_vm9, %v3362_v5, %v3364_v35  ;;  %3939 = vrot.lane.b32.xlu1 %v8300_v61, %s6436_s24  ;;  %3941 = vrot.lane.b32.xlu0 %v8040_v60, %s6436_s24 }
 0x3f7   : > { %v5832_v17 = vpack.c.bf16 %v6230_v48, %v3367_v55 }
 0x3f9   : > { %v3389_v39 = vpop.permute.xlu1 %3388  ;;  %v3401_v43 = vpop.permute.xlu0 %3400  ;;  %v3649_v2 = vld [vmem:[#allocation2 + $0xd0] sm:$0xff]  ;;  %5833 = vmatpush1.bf16.msra.mxu0 %v5832_v17 }
 0x3fa   : > { %3397 = vst.msk [vmem:[#allocation2 + $0x100] sm:$0xff] %vm226_vm0, %v3389_v39  ;;  %3953 = vrot.lane.b32.xlu1 %v8300_v61, %s6437_s7  ;;  %3955 = vrot.lane.b32.xlu0 %v8040_v60, %s6437_s7  ;;  %v5879_v63 = vpack.c.bf16 %v8116_v58, %v3649_v2  ;;  %v3391_v47 = vsel %vm237_vm1, %v3387_v8, %v3389_v39 }
 0x3fc   : > { %5880 = vmatpush1.bf16.msra.mxu1 %v5879_v63 }
 0x3fd   : > { %v3403_v44 = vpop.permute.xlu1 %3402  ;;  %v3385_v46 = vpop.permute.xlu0 %3384  ;;  %5881 = vmatprep.subr.bf16.mxu1 %v6429_v0 }
 0x3fe   : > { %v3405_v6 = vsel %vm252_vm3, %v3401_v43, %v3403_v44  ;;  %3411 = vst.msk [vmem:[#allocation2 + $0x118] sm:$0xff] %vm226_vm0, %v3403_v44  ;;  %3937 = vrot.lane.b32.xlu1 %v8310_v59, %s6436_s24  ;;  %3951 = vrot.lane.b32.xlu0 %v8310_v59, %s6437_s7  ;;  %v3390_v52 = vsel %vm237_vm1, %v3385_v46, %v3387_v8 }
 0x3ff   : > { %v5834_v41 = vpack.c.bf16 %v3405_v6, %v3391_v47 }
 0x401   : > { %v3399_v32 = vpop.permute.xlu1 %3398  ;;  %v3415_v58 = vpop.permute.xlu0 %3414  ;;  %5835 = vmatprep.subr.bf16.mxu0 %v5834_v41  ;;  %v3655_v57 = vld [vmem:[#allocation2 + $0x100] sm:$0xff] }
 0x402   : > { %v3404_v22 = vsel %vm252_vm3, %v3399_v32, %v3401_v43  ;;  %3967 = vrot.lane.b32.xlu1 %v8300_v61, %s6438_s5  ;;  %3969 = vrot.lane.b32.xlu0 %v8040_v60, %s6438_s5 }
 0x403   : > { %v5836_v14 = vpack.c.bf16 %v3404_v22, %v3390_v52 }
 0x405   : > { %v3417_v56 = vpop.permute.xlu1 %3416  ;;  %v3429_v54 = vpop.permute.xlu0 %3428  ;;  %v3658_v62 = vld [vmem:[#allocation2 + $0x118] sm:$0xff]  ;;  %5837 = vmatpush1.bf16.msra.mxu0 %v5836_v14 }
 0x406   : > { %3425 = vst.msk [vmem:[#allocation2 + $0x130] sm:$0xff] %vm226_vm0, %v3417_v56  ;;  %3965 = vrot.lane.b32.xlu1 %v8310_v59, %s6438_s5  ;;  %3990 = vrot.lane.b32.xlu0 %v8186_v24, %s6430_s28  ;;  %v5882_v3 = vpack.c.bf16 %v3658_v62, %v3655_v57  ;;  %v3419_v20 = vsel %vm267_vm2, %v3415_v58, %v3417_v56 }
 0x408   : > { %5883 = vmatpush1.bf16.msra.mxu1 %v5882_v3  ;;  %v2571_v4 = vpop.f32.mrb[6].mxu0 }
 0x409   : > { %v3431_v7 = vpop.permute.xlu1 %3430  ;;  %v3413_v60 = vpop.permute.xlu0 %3412  ;;  %v2572_v15 = vadd.f32 %v2571_v4, %v7959_v11  ;;  %5884 = vmatprep.subr.bf16.mxu1 %v6429_v0 }
 0x40a   : > { %v3433_v21 = vsel %vm282_vm6, %v3429_v54, %v3431_v7  ;;  %3439 = vst.msk [vmem:[#allocation2 + $0x148] sm:$0xff] %vm226_vm0, %v3431_v7  ;;  %3992 = vrot.lane.b32.xlu1 %v7936_v50, %s6430_s28  ;;  %4004 = vrot.lane.b32.xlu0 %v8186_v24, %s6431_s26  ;;  %v2573_v23 = vpop.f32.mrb[7].mxu0  ;;  %v3418_v28 = vsel %vm267_vm2, %v3413_v60, %v3415_v58 }
 0x40b   : > { %5286 = vst [vmem:[%s7506_s1 + $0x48] sm:$0xff] %v2572_v15  ;;  %v2574_v45 = vadd.f32 %v2573_v23, %v7959_v11  ;;  %v5838_v25 = vpack.c.bf16 %v3433_v21, %v3419_v20 }
 0x40d   : > { %v3427_v27 = vpop.permute.xlu1 %3426  ;;  %v3443_v30 = vpop.permute.xlu0 %3442  ;;  %5287 = vst [vmem:[%s7506_s1 + $0x50] sm:$0xff] %v2574_v45  ;;  %5839 = vmatprep.subr.bf16.mxu0 %v5838_v25  ;;  %v3661_v29 = vld [vmem:[#allocation2 + $0x130] sm:$0xff] }
 0x40e   : > { %v3432_v33 = vsel %vm282_vm6, %v3427_v27, %v3429_v54  ;;  %4006 = vrot.lane.b32.xlu1 %v7936_v50, %s6431_s26  ;;  %3988 = vrot.lane.b32.xlu0 %v8198_v10, %s6430_s28 }
 0x40f   : > { %v2642_v35 = vpop.f32.mrb[6].mxu1  ;;  %v5840_v36 = vpack.c.bf16 %v3432_v33, %v3418_v28 }
 0x410   : > { %v2643_v38 = vadd.f32 %v2642_v35, %v7959_v11  ;;  %v2644_v12 = vpop.f32.mrb[7].mxu1 }
 0x411   : > { %v3445_v31 = vpop.permute.xlu1 %3444  ;;  %v3457_v9 = vpop.permute.xlu0 %3456  ;;  %v3664_v37 = vld [vmem:[#allocation2 + $0x148] sm:$0xff]  ;;  %5841 = vmatpush1.bf16.msra.mxu0 %v5840_v36 }
 0x412   : > { %5288 = vst.msk [vmem:[%s7506_s1 + $0x58] sm:$0xff] %vm226_vm0, %v2643_v38  ;;  %3453 = vst.msk [vmem:[#allocation2 + $0x160] sm:$0xff] %vm226_vm0, %v3445_v31  ;;  %4002 = vrot.lane.b32.xlu1 %v8198_v10, %s6431_s26  ;;  %4018 = vrot.lane.b32.xlu0 %v8186_v24, %s6432_s4  ;;  %v5885_v5 = vpack.c.bf16 %v3664_v37, %v3661_v29  ;;  %v3447_v55 = vsel %vm297_vm5, %v3443_v30, %v3445_v31 }
 0x414   : > { %5886 = vmatpush1.bf16.msra.mxu1 %v5885_v5 }
 0x415   : > { %v3459_v8 = vpop.permute.xlu1 %3458  ;;  %v3441_v11 = vpop.permute.xlu0 %3440  ;;  %5887 = vmatprep.subr.bf16.mxu1 %v6429_v0 }
 0x416   : > { %v3461_v48 = vsel %vm312_vm8, %v3457_v9, %v3459_v8  ;;  %3467 = vst.msk [vmem:[#allocation2 + $0x178] sm:$0xff] %vm226_vm0, %v3459_v8  ;;  %4020 = vrot.lane.b32.xlu1 %v7936_v50, %s6432_s4  ;;  %4032 = vrot.lane.b32.xlu0 %v8186_v24, %s6434_s8  ;;  %v3446_v2 = vsel %vm297_vm5, %v3441_v11, %v3443_v30 }
 0x417   : > { %v5842_v17 = vpack.c.bf16 %v3461_v48, %v3447_v55 }
 0x419   : > { %v3455_v39 = vpop.permute.xlu1 %3454  ;;  %v3471_v43 = vpop.permute.xlu0 %3470  ;;  %5843 = vmatprep.subr.bf16.mxu0 %v5842_v17  ;;  %v3667_v6 = vld [vmem:[#allocation2 + $0x160] sm:$0xff] }
 0x41a   : > { %v3460_v63 = vsel %vm312_vm8, %v3455_v39, %v3457_v9  ;;  %4034 = vrot.lane.b32.xlu1 %v7936_v50, %s6434_s8  ;;  %4016 = vrot.lane.b32.xlu0 %v8198_v10, %s6432_s4 }
 0x41b   : > { %v5844_v44 = vpack.c.bf16 %v3460_v63, %v3446_v2 }
 0x41d   : > { %v3473_v46 = vpop.permute.xlu1 %3472  ;;  %v3485_v47 = vpop.permute.xlu0 %3484  ;;  %v3670_v41 = vld [vmem:[#allocation2 + $0x178] sm:$0xff]  ;;  %5845 = vmatpush1.bf16.msra.mxu0 %v5844_v44 }
 0x41e   : > { %3481 = vst.msk [vmem:[#allocation2 + $0x190] sm:$0xff] %vm226_vm0, %v3473_v46  ;;  %4030 = vrot.lane.b32.xlu1 %v8198_v10, %s6434_s8  ;;  %4046 = vrot.lane.b32.xlu0 %v8186_v24, %s6435_s9  ;;  %v5888_v32 = vpack.c.bf16 %v3670_v41, %v3667_v6  ;;  %v3475_v22 = vsel %vm327_vm7, %v3471_v43, %v3473_v46  ;;  %v8516_v41 = vld [vmem:[#allocation2 + $0x1c0] sm:$0xff] }
 0x420   : > { %5889 = vmatpush1.bf16.msra.mxu1 %v5888_v32  ;;  %v8519_v32 = vld [vmem:[%s6655_s12 + $0xe8] sm:$0xff] }
 0x421   : > { %v3487_v58 = vpop.permute.xlu1 %3486  ;;  %v3469_v52 = vpop.permute.xlu0 %3468  ;;  %5890 = vmatprep.subr.bf16.mxu1 %v6429_v0  ;;  %4713 = vst.msk [vmem:[#allocation2 + $0x1c0] sm:$0xff] %vm226_vm0, %v8519_v32 }
 0x422   : > { %v3489_v14 = vsel %vm342_vm9, %v3485_v47, %v3487_v58  ;;  %3495 = vst.msk [vmem:[#allocation2 + $0x1a8] sm:$0xff] %vm226_vm0, %v3487_v58  ;;  %4048 = vrot.lane.b32.xlu1 %v7936_v50, %s6435_s9  ;;  %4060 = vrot.lane.b32.xlu0 %v8186_v24, %s6436_s24  ;;  %v3474_v62 = vsel %vm327_vm7, %v3469_v52, %v3471_v43 }
 0x423   : > { %v5846_v56 = vpack.c.bf16 %v3489_v14, %v3475_v22 }
 0x425   : > { %v3483_v54 = vpop.permute.xlu1 %3482  ;;  %v3512_v57 = vpop.permute.xlu0 %3511  ;;  %5847 = vmatprep.subr.bf16.mxu0 %v5846_v56  ;;  %v3673_v15 = vld [vmem:[#allocation2 + $0x190] sm:$0xff] }
 0x426   : > { %v3488_v3 = vsel %vm342_vm9, %v3483_v54, %v3485_v47  ;;  %4062 = vrot.lane.b32.xlu1 %v7936_v50, %s6436_s24  ;;  %4044 = vrot.lane.b32.xlu0 %v8198_v10, %s6435_s9  ;;  %v8529_v54 = vld [vmem:[%s6655_s12 + $0xe0] sm:$0xff] }
 0x427   : > { %v5848_v4 = vpack.c.bf16 %v3488_v3, %v3474_v62  ;;  %4712 = vst [vmem:[#allocation2 + $0x1b8] sm:$0xff] %v8529_v54 }
 0x429   : > { %v3514_v7 = vpop.permute.xlu1 %3513  ;;  %v3510_v60 = vpop.permute.xlu0 %3509  ;;  %v3676_v20 = vld [vmem:[#allocation2 + $0x1a8] sm:$0xff]  ;;  %5849 = vmatpush1.bf16.msra.mxu0 %v5848_v4 }
 0x42a   : > { %v3516_v21 = vsel %vm237_vm1, %v3512_v57, %v3514_v7  ;;  %3522 = vst.msk [vmem:[#allocation2 + $0x1d8] sm:$0xff] %vm226_vm0, %v3514_v7  ;;  %v3515_v23 = vsel %vm237_vm1, %v3510_v60, %v3512_v57  ;;  %4058 = vrot.lane.b32.xlu1 %v8198_v10, %s6436_s24  ;;  %4074 = vrot.lane.b32.xlu0 %v8186_v24, %s6437_s7  ;;  %v8532_v57 = vld [vmem:[%s6655_s12 + $0xd8] sm:$0xff] }
 0x42b   : > { %v5891_v45 = vpack.c.bf16 %v3676_v20, %v3673_v15  ;;  %v5850_v25 = vpack.c.bf16 %v3516_v21, %v8186_v24  ;;  %v5852_v27 = vpack.c.bf16 %v3515_v23, %v8198_v10  ;;  %4711 = vst [vmem:[#allocation2 + $0x1b0] sm:$0xff] %v8532_v57 }
 0x42d   : > { %5892 = vmatpush1.bf16.msra.mxu1 %v5891_v45  ;;  %v3526_v30 = vpop.permute.xlu1 %3525  ;;  %v3528_v28 = vpop.permute.xlu0 %3527  ;;  %5851 = vmatprep.subr.bf16.mxu0 %v5850_v25 }
 0x42e   : > { %5893 = vmatprep.subr.bf16.mxu1 %v6429_v0  ;;  %3536 = vst.msk [vmem:[#allocation2 + $0x1f0] sm:$0xff] %vm226_vm0, %v3528_v28  ;;  %4076 = vrot.lane.b32.xlu1 %v7936_v50, %s6437_s7  ;;  %v3530_v38 = vsel %vm252_vm3, %v3526_v30, %v3528_v28 }
 0x42f   : > { %4088 = vrot.lane.b32.xlu0 %v8186_v24, %s6438_s5  ;;  %5853 = vmatpush1.bf16.msra.mxu0 %v5852_v27 }
 0x431   : > { %v3540_v33 = vpop.permute.xlu1 %3539  ;;  %v3542_v35 = vpop.permute.xlu0 %3541  ;;  %v3682_v36 = vld [vmem:[#allocation2 + $0x1d8] sm:$0xff] }
 0x432   : > { %v3544_v12 = vsel %vm267_vm2, %v3540_v33, %v3542_v35  ;;  %3550 = vst.msk [vmem:[#allocation2 + $0x208] sm:$0xff] %vm226_vm0, %v3542_v35  ;;  %4090 = vrot.lane.b32.xlu1 %v7936_v50, %s6438_s5  ;;  %v5894_v31 = vpack.c.bf16 %v3682_v36, %v8220_v18 }
 0x433   : > { %4072 = vrot.lane.b32.xlu0 %v8198_v10, %s6437_s7  ;;  %v5854_v9 = vpack.c.bf16 %v3544_v12, %v3530_v38 }
 0x434   : > { %5895 = vmatpush1.bf16.msra.mxu1 %v5894_v31 }
 0x435   : > { %v3524_v24 = vpop.permute.xlu1 %3523  ;;  %v3538_v29 = vpop.permute.xlu0 %3537  ;;  %5896 = vmatprep.subr.bf16.mxu1 %v6429_v0  ;;  %5855 = vmatprep.subr.bf16.mxu0 %v5854_v9  ;;  %v3685_v11 = vld [vmem:[#allocation2 + $0x1f0] sm:$0xff] }
 0x436   : > { %v3529_v37 = vsel %vm252_vm3, %v3524_v24, %v3526_v30  ;;  %v3543_v5 = vsel %vm267_vm2, %v3538_v29, %v3540_v33  ;;  %4086 = vrot.lane.b32.xlu1 %v8198_v10, %s6438_s5 }
 0x437   : > { %4115 = vrot.lane.b32.xlu0 %v8233_v16, %s6430_s28  ;;  %v5856_v50 = vpack.c.bf16 %v3543_v5, %v3529_v37 }
 0x439   : > { %v3554_v8 = vpop.permute.xlu1 %3553  ;;  %v3556_v18 = vpop.permute.xlu0 %3555  ;;  %v3688_v55 = vld [vmem:[#allocation2 + $0x208] sm:$0xff]  ;;  %5857 = vmatpush1.bf16.msra.mxu0 %v5856_v50 }
 0x43a   : > { %3564 = vst.msk [vmem:[#allocation2 + $0x220] sm:$0xff] %vm226_vm0, %v3556_v18  ;;  %4117 = vrot.lane.b32.xlu1 %v8223_v53, %s6430_s28  ;;  %v5897_v48 = vpack.c.bf16 %v3688_v55, %v3685_v11  ;;  %v3558_v39 = vsel %vm282_vm6, %v3554_v8, %v3556_v18 }
 0x43b   : > { %4113 = vrot.lane.b32.xlu0 %v8236_v40, %s6430_s28 }
 0x43c   : > { %5898 = vmatpush1.bf16.msra.mxu1 %v5897_v48 }
 0x43d   : > { %v3568_v10 = vpop.permute.xlu1 %3567  ;;  %v3570_v17 = vpop.permute.xlu0 %3569  ;;  %5899 = vmatprep.subr.bf16.mxu1 %v6429_v0 }
 0x43e   : > { %v3572_v43 = vsel %vm297_vm5, %v3568_v10, %v3570_v17  ;;  %3578 = vst.msk [vmem:[#allocation2 + $0x238] sm:$0xff] %vm226_vm0, %v3570_v17  ;;  %4129 = vrot.lane.b32.xlu1 %v8233_v16, %s6431_s26 }
 0x43f   : > { %4131 = vrot.lane.b32.xlu0 %v8223_v53, %s6431_s26  ;;  %v5858_v2 = vpack.c.bf16 %v3572_v43, %v3558_v39 }
 0x441   : > { %v3552_v63 = vpop.permute.xlu1 %3551  ;;  %v3566_v44 = vpop.permute.xlu0 %3565  ;;  %5859 = vmatprep.subr.bf16.mxu0 %v5858_v2  ;;  %v3691_v22 = vld [vmem:[#allocation2 + $0x220] sm:$0xff] }
 0x442   : > { %v3557_v46 = vsel %vm282_vm6, %v3552_v63, %v3554_v8  ;;  %v3571_v47 = vsel %vm297_vm5, %v3566_v44, %v3568_v10  ;;  %4143 = vrot.lane.b32.xlu1 %v8233_v16, %s6432_s4 }
 0x443   : > { %4145 = vrot.lane.b32.xlu0 %v8223_v53, %s6432_s4  ;;  %v5860_v6 = vpack.c.bf16 %v3571_v47, %v3557_v46 }
 0x445   : > { %v3582_v58 = vpop.permute.xlu1 %3581  ;;  %v3584_v52 = vpop.permute.xlu0 %3583  ;;  %v3694_v14 = vld [vmem:[#allocation2 + $0x238] sm:$0xff]  ;;  %5861 = vmatpush1.bf16.msra.mxu0 %v5860_v6  ;;  %v8599_v6 = vld [vmem:[#allocation6 + $0x8] sm:$0xff] }
 0x446   : > { %3592 = vst.msk [vmem:[#allocation2 + $0x250] sm:$0xff] %vm226_vm0, %v3584_v52  ;;  %4127 = vrot.lane.b32.xlu1 %v8236_v40, %s6431_s26  ;;  %v5900_v56 = vpack.c.bf16 %v3694_v14, %v3691_v22  ;;  %v3586_v4 = vsel %vm312_vm8, %v3582_v58, %v3584_v52 }
 0x447   : > { %4141 = vrot.lane.b32.xlu0 %v8236_v40, %s6432_s4 }
 0x448   : > { %5901 = vmatpush1.bf16.msra.mxu1 %v5900_v56 }
 0x449   : > { %v3596_v62 = vpop.permute.xlu1 %3595  ;;  %v3598_v3 = vpop.permute.xlu0 %3597  ;;  %5902 = vmatprep.subr.bf16.mxu1 %v6429_v0 }
 0x44a   : > { %v3600_v7 = vsel %vm327_vm7, %v3596_v62, %v3598_v3  ;;  %3606 = vst.msk [vmem:[#allocation2 + $0x268] sm:$0xff] %vm226_vm0, %v3598_v3  ;;  %4157 = vrot.lane.b32.xlu1 %v8233_v16, %s6434_s8 }
 0x44b   : > { %4159 = vrot.lane.b32.xlu0 %v8223_v53, %s6434_s8  ;;  %v5862_v60 = vpack.c.bf16 %v3600_v7, %v3586_v4 }
 0x44d   : > { %v3580_v15 = vpop.permute.xlu1 %3579  ;;  %v3594_v20 = vpop.permute.xlu0 %3593  ;;  %5863 = vmatprep.subr.bf16.mxu0 %v5862_v60  ;;  %v3697_v30 = vld [vmem:[#allocation2 + $0x250] sm:$0xff] }
 0x44e   : > { %v3585_v21 = vsel %vm312_vm8, %v3580_v15, %v3582_v58  ;;  %v3599_v23 = vsel %vm327_vm7, %v3594_v20, %v3596_v62  ;;  %4171 = vrot.lane.b32.xlu1 %v8233_v16, %s6435_s9 }
 0x44f   : > { %4173 = vrot.lane.b32.xlu0 %v8223_v53, %s6435_s9  ;;  %v5864_v45 = vpack.c.bf16 %v3599_v23, %v3585_v21 }
 0x451   : > { %v3610_v25 = vpop.permute.xlu1 %3609  ;;  %v3612_v27 = vpop.permute.xlu0 %3611  ;;  %v3700_v28 = vld [vmem:[#allocation2 + $0x268] sm:$0xff]  ;;  %5865 = vmatpush1.bf16.msra.mxu0 %v5864_v45 }
 0x452   : > { %v3614_v33 = vsel %vm342_vm9, %v3610_v25, %v3612_v27  ;;  %3620 = vst.msk [vmem:[#allocation2 + $0x280] sm:$0xff] %vm226_vm0, %v3612_v27  ;;  %4155 = vrot.lane.b32.xlu1 %v8236_v40, %s6434_s8  ;;  %v5903_v35 = vpack.c.bf16 %v3700_v28, %v3697_v30 }
 0x453   : > { %4169 = vrot.lane.b32.xlu0 %v8236_v40, %s6435_s9  ;;  %3765 = vmatprep.subr.mxu0 %v3614_v33 }
 0x454   : > { %5904 = vmatpush1.bf16.msra.mxu1 %v5903_v35 }
 0x455   : > { %v3870_v36 = vpop.permute.xlu1 %3869  ;;  %v3872_v38 = vpop.permute.xlu0 %3871  ;;  %3836 = vmatprep.subr.mxu1 %v6439_v51 }
 0x456   : > { %3880 = vst.msk [vmem:[#allocation2 + $0x28] sm:$0xff] %vm226_vm0, %v3872_v38  ;;  %4185 = vrot.lane.b32.xlu1 %v8233_v16, %s6436_s24  ;;  %v3874_v12 = vsel %vm237_vm1, %v3870_v36, %v3872_v38 }
 0x457   : > { %4187 = vrot.lane.b32.xlu0 %v8223_v53, %s6436_s24  ;;  %v5905_v5 = vpack.c.bf16 %v3874_v12, %v8300_v61 }
 0x459   : > { %v3608_v31 = vpop.permute.xlu1 %3607  ;;  %v3868_v9 = vpop.permute.xlu0 %3867  ;;  %v3703_v24 = vld [vmem:[#allocation2 + $0x280] sm:$0xff] }
 0x45a   : > { %v3613_v29 = vsel %vm342_vm9, %v3608_v31, %v3610_v25  ;;  %v3873_v37 = vsel %vm237_vm1, %v3868_v9, %v3870_v36  ;;  %4199 = vrot.lane.b32.xlu1 %v8233_v16, %s6437_s7  ;;  %3837 = vmatpush1.msra.mxu1 %v3703_v24 }
 0x45b   : > { %4201 = vrot.lane.b32.xlu0 %v8223_v53, %s6437_s7  ;;  %3766 = vmatpush1.msra.mxu0 %v3613_v29  ;;  %v5907_v50 = vpack.c.bf16 %v3873_v37, %v8310_v59 }
 0x45c   : > { %5957 = vmatprep.subr.bf16.mxu1 %v6429_v0  ;;  %3849 = vmatmul.mubr.f32.vlgmr.msra.gmra.mrb[10].mxu1 %v8262_v26 }
 0x45d   : > { %v3884_v8 = vpop.permute.xlu1 %3883  ;;  %v3886_v18 = vpop.permute.xlu0 %3885  ;;  %v4232_v11 = vld [vmem:[#allocation2 + $0x28] sm:$0xff]  ;;  %5906 = vmatprep.subr.bf16.mxu0 %v5905_v5  ;;  %3778 = vmatmul.mubr.f32.vlgmr.msra.gmra.mrb[10].mxu0 %v8262_v26 }
 0x45e   : > { %3894 = vst.msk [vmem:[#allocation2 + $0x40] sm:$0xff] %vm226_vm0, %v3886_v18  ;;  %4183 = vrot.lane.b32.xlu1 %v8236_v40, %s6436_s24  ;;  %v5958_v61 = vpack.c.bf16 %v4232_v11, %v8331_v42  ;;  %5908 = vmatpush1.bf16.msra.mxu0 %v5907_v50  ;;  %v3888_v48 = vsel %vm252_vm3, %v3884_v8, %v3886_v18  ;;  %v6231_v50 = vld [vmem:[%s6655_s12 + $0xb0] sm:$0xff] }
 0x45f   : > { %4197 = vrot.lane.b32.xlu0 %v8236_v40, %s6437_s7  ;;  %5333 = vmatprep.mubr.msk.f32.mxu1 %vm690_vm4, %v8599_v6 }
 0x460   : > { %5959 = vmatpush1.bf16.msra.mxu1 %v5958_v61  ;;  %5332 = vmatprep.mubr.msk.f32.mxu0 %vm690_vm4, %v8599_v6 }
 0x461   : > { %v3898_v59 = vpop.permute.xlu1 %3897  ;;  %v3900_v55 = vpop.permute.xlu0 %3899  ;;  %5960 = vmatprep.subr.bf16.mxu1 %v6429_v0 }
 0x462   : > { %v3902_v26 = vsel %vm267_vm2, %v3898_v59, %v3900_v55  ;;  %3908 = vst.msk [vmem:[#allocation2 + $0x58] sm:$0xff] %vm226_vm0, %v3900_v55  ;;  %4213 = vrot.lane.b32.xlu1 %v8233_v16, %s6438_s5 }
 0x463   : > { %4215 = vrot.lane.b32.xlu0 %v8223_v53, %s6438_s5  ;;  %v5909_v10 = vpack.c.bf16 %v3902_v26, %v3888_v48 }
 0x465   : > { %v3882_v42 = vpop.permute.xlu1 %3881  ;;  %v3896_v17 = vpop.permute.xlu0 %3895  ;;  %5910 = vmatprep.subr.bf16.mxu0 %v5909_v10  ;;  %v4235_v44 = vld [vmem:[#allocation2 + $0x40] sm:$0xff] }
 0x466   : > { %v3887_v39 = vsel %vm252_vm3, %v3882_v42, %v3884_v8  ;;  %v3901_v43 = vsel %vm267_vm2, %v3896_v17, %v3898_v59  ;;  %4473 = vrot.lane.b32.xlu1 %v8337_v34, %s6430_s28  ;;  %v6232_v59 = vld [vmem:[%s6655_s12 + $0xa8] sm:$0xff] }
 0x467   : > { %4475 = vrot.lane.b32.xlu0 %v8334_v13, %s6430_s28  ;;  %v5911_v2 = vpack.c.bf16 %v3901_v43, %v3887_v39 }
 0x469   : > { %v3912_v63 = vpop.permute.xlu1 %3911  ;;  %v3914_v16 = vpop.permute.xlu0 %3913  ;;  %v4238_v46 = vld [vmem:[#allocation2 + $0x58] sm:$0xff]  ;;  %5912 = vmatpush1.bf16.msra.mxu0 %v5911_v2 }
 0x46a   : > { %3922 = vst.msk [vmem:[#allocation2 + $0x70] sm:$0xff] %vm226_vm0, %v3914_v16  ;;  %4211 = vrot.lane.b32.xlu1 %v8236_v40, %s6438_s5  ;;  %v5961_v47 = vpack.c.bf16 %v4238_v46, %v4235_v44  ;;  %v3916_v22 = vsel %vm282_vm6, %v3912_v63, %v3914_v16 }
 0x46b   : > { %4471 = vrot.lane.b32.xlu0 %v8348_v19, %s6430_s28 }
 0x46c   : > { %5962 = vmatpush1.bf16.msra.mxu1 %v5961_v47 }
 0x46d   : > { %v3926_v58 = vpop.permute.xlu1 %3925  ;;  %v3928_v52 = vpop.permute.xlu0 %3927  ;;  %5963 = vmatprep.subr.bf16.mxu1 %v6429_v0 }
 0x46e   : > { %v3930_v40 = vsel %vm297_vm5, %v3926_v58, %v3928_v52  ;;  %3936 = vst.msk [vmem:[#allocation2 + $0x88] sm:$0xff] %vm226_vm0, %v3928_v52  ;;  %4487 = vrot.lane.b32.xlu1 %v8337_v34, %s6431_s26 }
 0x46f   : > { %4489 = vrot.lane.b32.xlu0 %v8334_v13, %s6431_s26  ;;  %v5913_v14 = vpack.c.bf16 %v3930_v40, %v3916_v22 }
 0x471   : > { %v3910_v56 = vpop.permute.xlu1 %3909  ;;  %v3924_v62 = vpop.permute.xlu0 %3923  ;;  %5914 = vmatprep.subr.bf16.mxu0 %v5913_v14  ;;  %v4241_v20 = vld [vmem:[#allocation2 + $0x70] sm:$0xff]  ;;  %v8675_v14 = vld [vmem:[#allocation2 + $0xe0] sm:$0xff] }
 0x472   : > { %v3915_v3 = vsel %vm282_vm6, %v3910_v56, %v3912_v63  ;;  %v3929_v4 = vsel %vm297_vm5, %v3924_v62, %v3926_v58  ;;  %4501 = vrot.lane.b32.xlu1 %v8337_v34, %s6432_s4 }
 0x473   : > { %4503 = vrot.lane.b32.xlu0 %v8334_v13, %s6432_s4  ;;  %v5915_v7 = vpack.c.bf16 %v3929_v4, %v3915_v3 }
 0x475   : > { %v3940_v60 = vpop.permute.xlu1 %3939  ;;  %v3942_v15 = vpop.permute.xlu0 %3941  ;;  %v4244_v21 = vld [vmem:[#allocation2 + $0x88] sm:$0xff]  ;;  %5916 = vmatpush1.bf16.msra.mxu0 %v5915_v7 }
 0x476   : > { %3950 = vst.msk [vmem:[#allocation2 + $0xa0] sm:$0xff] %vm226_vm0, %v3942_v15  ;;  %4485 = vrot.lane.b32.xlu1 %v8348_v19, %s6431_s26  ;;  %v5964_v23 = vpack.c.bf16 %v4244_v21, %v4241_v20  ;;  %v3944_v27 = vsel %vm312_vm8, %v3940_v60, %v3942_v15 }
 0x477   : > { %4499 = vrot.lane.b32.xlu0 %v8348_v19, %s6432_s4 }
 0x478   : > { %5965 = vmatpush1.bf16.msra.mxu1 %v5964_v23 }
 0x479   : > { %v3954_v45 = vpop.permute.xlu1 %3953  ;;  %v3956_v25 = vpop.permute.xlu0 %3955  ;;  %5966 = vmatprep.subr.bf16.mxu1 %v6429_v0 }
 0x47a   : > { %v3958_v30 = vsel %vm327_vm7, %v3954_v45, %v3956_v25  ;;  %3964 = vst.msk [vmem:[#allocation2 + $0xb8] sm:$0xff] %vm226_vm0, %v3956_v25  ;;  %4515 = vrot.lane.b32.xlu1 %v8337_v34, %s6434_s8  ;;  %v8693_v25 = vld [vmem:[#allocation2 + $0xd8] sm:$0xff] }
 0x47b   : > { %4517 = vrot.lane.b32.xlu0 %v8334_v13, %s6434_s8  ;;  %v5917_v28 = vpack.c.bf16 %v3958_v30, %v3944_v27 }
 0x47d   : > { %v3938_v33 = vpop.permute.xlu1 %3937  ;;  %v3952_v35 = vpop.permute.xlu0 %3951  ;;  %5918 = vmatprep.subr.bf16.mxu0 %v5917_v28  ;;  %v4247_v24 = vld [vmem:[#allocation2 + $0xa0] sm:$0xff] }
 0x47e   : > { %v3943_v36 = vsel %vm312_vm8, %v3938_v33, %v3940_v60  ;;  %v3957_v38 = vsel %vm327_vm7, %v3952_v35, %v3954_v45  ;;  %4529 = vrot.lane.b32.xlu1 %v8337_v34, %s6435_s9 }
 0x47f   : > { %4531 = vrot.lane.b32.xlu0 %v8334_v13, %s6435_s9  ;;  %v5919_v12 = vpack.c.bf16 %v3957_v38, %v3943_v36 }
 0x481   : > { %v3968_v31 = vpop.permute.xlu1 %3967  ;;  %v3970_v9 = vpop.permute.xlu0 %3969  ;;  %v4250_v29 = vld [vmem:[#allocation2 + $0xb8] sm:$0xff]  ;;  %5920 = vmatpush1.bf16.msra.mxu0 %v5919_v12 }
 0x482   : > { %v3972_v37 = vsel %vm342_vm9, %v3968_v31, %v3970_v9  ;;  %3978 = vst.msk [vmem:[#allocation2 + $0xd0] sm:$0xff] %vm226_vm0, %v3970_v9  ;;  %4513 = vrot.lane.b32.xlu1 %v8348_v19, %s6434_s8  ;;  %v5967_v5 = vpack.c.bf16 %v4250_v29, %v4247_v24 }
 0x483   : > { %4527 = vrot.lane.b32.xlu0 %v8348_v19, %s6435_s9  ;;  %v5921_v8 = vpack.c.bf16 %v6231_v50, %v3972_v37 }
 0x484   : > { %5968 = vmatpush1.bf16.msra.mxu1 %v5967_v5 }
 0x485   : > { %v3966_v18 = vpop.permute.xlu1 %3965  ;;  %v3991_v11 = vpop.permute.xlu0 %3990  ;;  %5969 = vmatprep.subr.bf16.mxu1 %v6429_v0  ;;  %5922 = vmatprep.subr.bf16.mxu0 %v5921_v8 }
 0x486   : > { %v3971_v61 = vsel %vm342_vm9, %v3966_v18, %v3968_v31  ;;  %4543 = vrot.lane.b32.xlu1 %v8337_v34, %s6436_s24 }
 0x487   : > { %4545 = vrot.lane.b32.xlu0 %v8334_v13, %s6436_s24  ;;  %v5923_v55 = vpack.c.bf16 %v6232_v59, %v3971_v61 }
 0x489   : > { %v3993_v48 = vpop.permute.xlu1 %3992  ;;  %v4005_v26 = vpop.permute.xlu0 %4004  ;;  %v4253_v10 = vld [vmem:[#allocation2 + $0xd0] sm:$0xff]  ;;  %5924 = vmatpush1.bf16.msra.mxu0 %v5923_v55 }
 0x48a   : > { %4001 = vst.msk [vmem:[#allocation2 + $0x100] sm:$0xff] %vm226_vm0, %v3993_v48  ;;  %4557 = vrot.lane.b32.xlu1 %v8337_v34, %s6437_s7  ;;  %v5970_v42 = vpack.c.bf16 %v8415_v1, %v4253_v10  ;;  %v3995_v43 = vsel %vm237_vm1, %v3991_v11, %v3993_v48 }
 0x48b   : > { %4559 = vrot.lane.b32.xlu0 %v8334_v13, %s6437_s7 }
 0x48c   : > { %5971 = vmatpush1.bf16.msra.mxu1 %v5970_v42 }
 0x48d   : > { %v4007_v17 = vpop.permute.xlu1 %4006  ;;  %v3989_v39 = vpop.permute.xlu0 %3988  ;;  %5972 = vmatprep.subr.bf16.mxu1 %v6429_v0 }
 0x48e   : > { %v4009_v2 = vsel %vm252_vm3, %v4005_v26, %v4007_v17  ;;  %4015 = vst.msk [vmem:[#allocation2 + $0x118] sm:$0xff] %vm226_vm0, %v4007_v17  ;;  %4541 = vrot.lane.b32.xlu1 %v8348_v19, %s6436_s24  ;;  %v3994_v44 = vsel %vm237_vm1, %v3989_v39, %v3991_v11 }
 0x48f   : > { %4555 = vrot.lane.b32.xlu0 %v8348_v19, %s6437_s7  ;;  %v5925_v63 = vpack.c.bf16 %v4009_v2, %v3995_v43 }
 0x491   : > { %v4003_v16 = vpop.permute.xlu1 %4002  ;;  %v4019_v1 = vpop.permute.xlu0 %4018  ;;  %5926 = vmatprep.subr.bf16.mxu0 %v5925_v63  ;;  %v4259_v22 = vld [vmem:[#allocation2 + $0x100] sm:$0xff] }
 0x492   : > { %v4008_v46 = vsel %vm252_vm3, %v4003_v16, %v4005_v26  ;;  %4571 = vrot.lane.b32.xlu1 %v8337_v34, %s6438_s5 }
 0x493   : > { %4573 = vrot.lane.b32.xlu0 %v8334_v13, %s6438_s5  ;;  %v5927_v47 = vpack.c.bf16 %v4008_v46, %v3994_v44 }
 0x495   : > { %v4021_v58 = vpop.permute.xlu1 %4020  ;;  %v4033_v52 = vpop.permute.xlu0 %4032  ;;  %v4262_v40 = vld [vmem:[#allocation2 + $0x118] sm:$0xff]  ;;  %5928 = vmatpush1.bf16.msra.mxu0 %v5927_v47 }
 0x496   : > { %4029 = vst.msk [vmem:[#allocation2 + $0x130] sm:$0xff] %vm226_vm0, %v4021_v58  ;;  %4569 = vrot.lane.b32.xlu1 %v8348_v19, %s6438_s5  ;;  %v5973_v34 = vpack.c.bf16 %v4262_v40, %v4259_v22  ;;  %v4023_v62 = vsel %vm267_vm2, %v4019_v1, %v4021_v58 }
 0x497   : > { %4594 = vrot.lane.b32.xlu0 %v8675_v14, %s6430_s28 }
 0x498   : > { %5974 = vmatpush1.bf16.msra.mxu1 %v5973_v34 }
 0x499   : > { %v4035_v56 = vpop.permute.xlu1 %4034  ;;  %v4017_v13 = vpop.permute.xlu0 %4016  ;;  %5975 = vmatprep.subr.bf16.mxu1 %v6429_v0 }
 0x49a   : > { %v4037_v3 = vsel %vm282_vm6, %v4033_v52, %v4035_v56  ;;  %4043 = vst.msk [vmem:[#allocation2 + $0x148] sm:$0xff] %vm226_vm0, %v4035_v56  ;;  %4596 = vrot.lane.b32.xlu1 %v8223_v53, %s6430_s28  ;;  %v4022_v23 = vsel %vm267_vm2, %v4017_v13, %v4019_v1 }
 0x49b   : > { %4608 = vrot.lane.b32.xlu0 %v8675_v14, %s6431_s26  ;;  %v3175_v19 = vpop.f32.mrb[8].mxu0  ;;  %v5929_v4 = vpack.c.bf16 %v4037_v3, %v4023_v62 }
 0x49c   : > { %v3176_v7 = vadd.f32 %v3175_v19, %v8260_v49  ;;  %v3177_v60 = vpop.f32.mrb[9].mxu0 }
 0x49d   : > { %v4031_v15 = vpop.permute.xlu1 %4030  ;;  %v4047_v20 = vpop.permute.xlu0 %4046  ;;  %v3178_v21 = vadd.f32 %v3177_v60, %v8260_v49  ;;  %5930 = vmatprep.subr.bf16.mxu0 %v5929_v4  ;;  %v4265_v36 = vld [vmem:[#allocation2 + $0x130] sm:$0xff] }
 0x49e   : > { %v4036_v45 = vsel %vm282_vm6, %v4031_v15, %v4033_v52  ;;  %4610 = vrot.lane.b32.xlu1 %v8223_v53, %s6431_s26  ;;  %5302 = vst [vmem:[%s7506_s1 + $0x60] sm:$0xff] %v3176_v7 }
 0x49f   : > { %4592 = vrot.lane.b32.xlu0 %v8693_v25, %s6430_s28  ;;  %5303 = vst [vmem:[%s7506_s1 + $0x68] sm:$0xff] %v3178_v21  ;;  %v5931_v27 = vpack.c.bf16 %v4036_v45, %v4022_v23 }
 0x4a0   : > { %v3246_v30 = vpop.f32.mrb[8].mxu1 }
 0x4a1   : > { %v3247_v28 = vadd.f32 %v3246_v30, %v8260_v49  ;;  %v4049_v33 = vpop.permute.xlu1 %4048  ;;  %v4061_v35 = vpop.permute.xlu0 %4060  ;;  %v4268_v38 = vld [vmem:[#allocation2 + $0x148] sm:$0xff]  ;;  %5932 = vmatpush1.bf16.msra.mxu0 %v5931_v27 }
 0x4a2   : > { %4057 = vst.msk [vmem:[#allocation2 + $0x160] sm:$0xff] %vm226_vm0, %v4049_v33  ;;  %4606 = vrot.lane.b32.xlu1 %v8693_v25, %s6431_s26  ;;  %v5976_v12 = vpack.c.bf16 %v4268_v38, %v4265_v36  ;;  %v3248_v31 = vpop.f32.mrb[9].mxu1  ;;  %v4051_v24 = vsel %vm297_vm5, %v4047_v20, %v4049_v33 }
 0x4a3   : > { %4622 = vrot.lane.b32.xlu0 %v8675_v14, %s6432_s4  ;;  %5304 = vst.msk [vmem:[%s7506_s1 + $0x70] sm:$0xff] %vm226_vm0, %v3247_v28 }
 0x4a4   : > { %5977 = vmatpush1.bf16.msra.mxu1 %v5976_v12 }
 0x4a5   : > { %v4063_v9 = vpop.permute.xlu1 %4062  ;;  %v4045_v49 = vpop.permute.xlu0 %4044  ;;  %5978 = vmatprep.subr.bf16.mxu1 %v6429_v0 }
 0x4a6   : > { %v4065_v29 = vsel %vm312_vm8, %v4061_v35, %v4063_v9  ;;  %4071 = vst.msk [vmem:[#allocation2 + $0x178] sm:$0xff] %vm226_vm0, %v4063_v9  ;;  %4624 = vrot.lane.b32.xlu1 %v8223_v53, %s6432_s4  ;;  %v4050_v8 = vsel %vm297_vm5, %v4045_v49, %v4047_v20 }
 0x4a7   : > { %4636 = vrot.lane.b32.xlu0 %v8675_v14, %s6434_s8  ;;  %v5933_v37 = vpack.c.bf16 %v4065_v29, %v4051_v24 }
 0x4a9   : > { %v4059_v5 = vpop.permute.xlu1 %4058  ;;  %v4075_v50 = vpop.permute.xlu0 %4074  ;;  %5934 = vmatprep.subr.bf16.mxu0 %v5933_v37  ;;  %v4271_v55 = vld [vmem:[#allocation2 + $0x160] sm:$0xff] }
 0x4aa   : > { %v4064_v18 = vsel %vm312_vm8, %v4059_v5, %v4061_v35  ;;  %4638 = vrot.lane.b32.xlu1 %v8223_v53, %s6434_s8 }
 0x4ab   : > { %4620 = vrot.lane.b32.xlu0 %v8693_v25, %s6432_s4  ;;  %v5935_v11 = vpack.c.bf16 %v4064_v18, %v4050_v8 }
 0x4ad   : > { %v4077_v61 = vpop.permute.xlu1 %4076  ;;  %v4089_v59 = vpop.permute.xlu0 %4088  ;;  %v4274_v48 = vld [vmem:[#allocation2 + $0x178] sm:$0xff]  ;;  %5936 = vmatpush1.bf16.msra.mxu0 %v5935_v11 }
 0x4ae   : > { %4085 = vst.msk [vmem:[#allocation2 + $0x190] sm:$0xff] %vm226_vm0, %v4077_v61  ;;  %4634 = vrot.lane.b32.xlu1 %v8693_v25, %s6434_s8  ;;  %v5979_v26 = vpack.c.bf16 %v4274_v48, %v4271_v55  ;;  %v4079_v17 = vsel %vm327_vm7, %v4075_v50, %v4077_v61 }
 0x4af   : > { %4650 = vrot.lane.b32.xlu0 %v8675_v14, %s6435_s9 }
 0x4b0   : > { %5980 = vmatpush1.bf16.msra.mxu1 %v5979_v26 }
 0x4b1   : > { %v4091_v10 = vpop.permute.xlu1 %4090  ;;  %v4073_v42 = vpop.permute.xlu0 %4072  ;;  %5981 = vmatprep.subr.bf16.mxu1 %v6429_v0 }
 0x4b2   : > { %v4093_v39 = vsel %vm342_vm9, %v4089_v59, %v4091_v10  ;;  %4099 = vst.msk [vmem:[#allocation2 + $0x1a8] sm:$0xff] %vm226_vm0, %v4091_v10  ;;  %4652 = vrot.lane.b32.xlu1 %v8223_v53, %s6435_s9  ;;  %v4078_v16 = vsel %vm327_vm7, %v4073_v42, %v4075_v50 }
 0x4b3   : > { %4664 = vrot.lane.b32.xlu0 %v8675_v14, %s6436_s24  ;;  %v5937_v43 = vpack.c.bf16 %v4093_v39, %v4079_v17 }
 0x4b5   : > { %v4087_v2 = vpop.permute.xlu1 %4086  ;;  %v4116_v63 = vpop.permute.xlu0 %4115  ;;  %5938 = vmatprep.subr.bf16.mxu0 %v5937_v43  ;;  %v4277_v58 = vld [vmem:[#allocation2 + $0x190] sm:$0xff] }
 0x4b6   : > { %v4092_v1 = vsel %vm342_vm9, %v4087_v2, %v4089_v59  ;;  %4666 = vrot.lane.b32.xlu1 %v8223_v53, %s6436_s24 }
 0x4b7   : > { %4648 = vrot.lane.b32.xlu0 %v8693_v25, %s6435_s9  ;;  %v5939_v44 = vpack.c.bf16 %v4092_v1, %v4078_v16 }
 0x4b9   : > { %v4118_v46 = vpop.permute.xlu1 %4117  ;;  %v4114_v47 = vpop.permute.xlu0 %4113  ;;  %v4280_v52 = vld [vmem:[#allocation2 + $0x1a8] sm:$0xff]  ;;  %5940 = vmatpush1.bf16.msra.mxu0 %v5939_v44 }
 0x4ba   : > { %v4120_v22 = vsel %vm237_vm1, %v4116_v63, %v4118_v46  ;;  %4126 = vst.msk [vmem:[#allocation2 + $0x1d8] sm:$0xff] %vm226_vm0, %v4118_v46  ;;  %v4119_v40 = vsel %vm237_vm1, %v4114_v47, %v4116_v63  ;;  %4662 = vrot.lane.b32.xlu1 %v8693_v25, %s6436_s24  ;;  %v5982_v34 = vpack.c.bf16 %v4280_v52, %v4277_v58 }
 0x4bb   : > { %4678 = vrot.lane.b32.xlu0 %v8675_v14, %s6437_s7  ;;  %v5941_v56 = vpack.c.bf16 %v4120_v22, %v8675_v14  ;;  %v5943_v13 = vpack.c.bf16 %v4119_v40, %v8693_v25 }
 0x4bc   : > { %5983 = vmatpush1.bf16.msra.mxu1 %v5982_v34 }
 0x4bd   : > { %v4130_v62 = vpop.permute.xlu1 %4129  ;;  %v4132_v3 = vpop.permute.xlu0 %4131  ;;  %5984 = vmatprep.subr.bf16.mxu1 %v6429_v0  ;;  %5942 = vmatprep.subr.bf16.mxu0 %v5941_v56 }
 0x4be   : > { %4140 = vst.msk [vmem:[#allocation2 + $0x1f0] sm:$0xff] %vm226_vm0, %v4132_v3  ;;  %4680 = vrot.lane.b32.xlu1 %v8223_v53, %s6437_s7  ;;  %5944 = vmatpush1.bf16.msra.mxu0 %v5943_v13  ;;  %v4134_v60 = vsel %vm252_vm3, %v4130_v62, %v4132_v3 }
 0x4bf   : > { %4692 = vrot.lane.b32.xlu0 %v8675_v14, %s6438_s5 }
 0x4c1   : > { %v4144_v19 = vpop.permute.xlu1 %4143  ;;  %v4146_v4 = vpop.permute.xlu0 %4145  ;;  %v4286_v7 = vld [vmem:[#allocation2 + $0x1d8] sm:$0xff] }
 0x4c2   : > { %v4148_v15 = vsel %vm267_vm2, %v4144_v19, %v4146_v4  ;;  %4154 = vst.msk [vmem:[#allocation2 + $0x208] sm:$0xff] %vm226_vm0, %v4146_v4  ;;  %4694 = vrot.lane.b32.xlu1 %v8223_v53, %s6438_s5  ;;  %v5985_v20 = vpack.c.bf16 %v4286_v7, %v8516_v41  ;;  %v4833_v4 = vld [vmem:[#allocation2 + $0x10] sm:$0xff]  ;;  %v6235_v7 = vld [vmem:[#allocation2 + $0x8] sm:$0xff] }
 0x4c3   : > { %4676 = vrot.lane.b32.xlu0 %v8693_v25, %s6437_s7  ;;  %v5945_v21 = vpack.c.bf16 %v4148_v15, %v4134_v60  ;;  %v6236_v15 = vld [vmem:[#allocation2] sm:$0xff] }
 0x4c4   : > { %5986 = vmatpush1.bf16.msra.mxu1 %v5985_v20 }
 0x4c5   : > { %v4128_v23 = vpop.permute.xlu1 %4127  ;;  %v4142_v45 = vpop.permute.xlu0 %4141  ;;  %5987 = vmatprep.subr.bf16.mxu1 %v6429_v0  ;;  %5946 = vmatprep.subr.bf16.mxu0 %v5945_v21  ;;  %v4289_v33 = vld [vmem:[#allocation2 + $0x1f0] sm:$0xff] }
 0x4c6   : > { %v4133_v27 = vsel %vm252_vm3, %v4128_v23, %v4130_v62  ;;  %v4147_v30 = vsel %vm267_vm2, %v4142_v45, %v4144_v19  ;;  %4690 = vrot.lane.b32.xlu1 %v8693_v25, %s6438_s5  ;;  %v8821_v62 = vld [vmem:[#allocation6] sm:$0xff] }
 0x4c7   : > { %4719 = vrot.lane.b32.xlu0 %v8529_v54, %s6430_s28  ;;  %v5947_v53 = vpack.c.bf16 %v4147_v30, %v4133_v27 }
 0x4c9   : > { %v4158_v28 = vpop.permute.xlu1 %4157  ;;  %v4160_v41 = vpop.permute.xlu0 %4159  ;;  %v4292_v35 = vld [vmem:[#allocation2 + $0x208] sm:$0xff]  ;;  %5948 = vmatpush1.bf16.msra.mxu0 %v5947_v53 }
 0x4ca   : > { %4168 = vst.msk [vmem:[#allocation2 + $0x220] sm:$0xff] %vm226_vm0, %v4160_v41  ;;  %4721 = vrot.lane.b32.xlu1 %v8519_v32, %s6430_s28  ;;  %v5988_v36 = vpack.c.bf16 %v4292_v35, %v4289_v33  ;;  %v4162_v31 = vsel %vm282_vm6, %v4158_v28, %v4160_v41  ;;  %v3704_v33 = vld [vmem:[%s9031_s2] sm:$0xff] }
 0x4cb   : > { %4717 = vrot.lane.b32.xlu0 %v8532_v57, %s6430_s28 }
 0x4cc   : > { %5989 = vmatpush1.bf16.msra.mxu1 %v5988_v36 }
 0x4cd   : > { %v4172_v38 = vpop.permute.xlu1 %4171  ;;  %v4174_v12 = vpop.permute.xlu0 %4173  ;;  %5990 = vmatprep.subr.bf16.mxu1 %v6429_v0 }
 0x4ce   : > { %v4176_v9 = vsel %vm297_vm5, %v4172_v38, %v4174_v12  ;;  %4182 = vst.msk [vmem:[#allocation2 + $0x238] sm:$0xff] %vm226_vm0, %v4174_v12  ;;  %4733 = vrot.lane.b32.xlu1 %v8529_v54, %s6431_s26 }
 0x4cf   : > { %4735 = vrot.lane.b32.xlu0 %v8519_v32, %s6431_s26  ;;  %v5949_v49 = vpack.c.bf16 %v4176_v9, %v4162_v31 }
 0x4d1   : > { %v4156_v24 = vpop.permute.xlu1 %4155  ;;  %v4170_v29 = vpop.permute.xlu0 %4169  ;;  %5950 = vmatprep.subr.bf16.mxu0 %v5949_v49  ;;  %v4295_v11 = vld [vmem:[#allocation2 + $0x220] sm:$0xff] }
 0x4d2   : > { %v4161_v37 = vsel %vm282_vm6, %v4156_v24, %v4158_v28  ;;  %v4175_v5 = vsel %vm297_vm5, %v4170_v29, %v4172_v38  ;;  %4747 = vrot.lane.b32.xlu1 %v8529_v54, %s6432_s4 }
 0x4d3   : > { %4749 = vrot.lane.b32.xlu0 %v8519_v32, %s6432_s4  ;;  %v5951_v50 = vpack.c.bf16 %v4175_v5, %v4161_v37 }
 0x4d5   : > { %v4186_v8 = vpop.permute.xlu1 %4185  ;;  %v4188_v18 = vpop.permute.xlu0 %4187  ;;  %v4298_v61 = vld [vmem:[#allocation2 + $0x238] sm:$0xff]  ;;  %5952 = vmatpush1.bf16.msra.mxu0 %v5951_v50 }
 0x4d6   : > { %4196 = vst.msk [vmem:[#allocation2 + $0x250] sm:$0xff] %vm226_vm0, %v4188_v18  ;;  %4731 = vrot.lane.b32.xlu1 %v8532_v57, %s6431_s26  ;;  %v5991_v59 = vpack.c.bf16 %v4298_v61, %v4295_v11  ;;  %v4190_v26 = vsel %vm312_vm8, %v4186_v8, %v4188_v18  ;;  %s6091_s26 = smul.u32 24, %s6407_s18 }
 0x4d7   : > { %4745 = vrot.lane.b32.xlu0 %v8532_v57, %s6432_s4  ;;  %s6092_s4 = smul.u32 48, %s6411_s19 }
 0x4d8   : > { %5992 = vmatpush1.bf16.msra.mxu1 %v5991_v59 }
 0x4d9   : > { %v4200_v55 = vpop.permute.xlu1 %4199  ;;  %v4202_v48 = vpop.permute.xlu0 %4201  ;;  %5993 = vmatprep.subr.bf16.mxu1 %v6429_v0 }
 0x4da   : > { %v4204_v10 = vsel %vm327_vm7, %v4200_v55, %v4202_v48  ;;  %4210 = vst.msk [vmem:[#allocation2 + $0x268] sm:$0xff] %vm226_vm0, %v4202_v48  ;;  %4761 = vrot.lane.b32.xlu1 %v8529_v54, %s6434_s8 }
 0x4db   : > { %4763 = vrot.lane.b32.xlu0 %v8519_v32, %s6434_s8  ;;  %v5953_v42 = vpack.c.bf16 %v4204_v10, %v4190_v26 }
 0x4dd   : > { %v4184_v17 = vpop.permute.xlu1 %4183  ;;  %v4198_v39 = vpop.permute.xlu0 %4197  ;;  %5954 = vmatprep.subr.bf16.mxu0 %v5953_v42  ;;  %v4301_v44 = vld [vmem:[#allocation2 + $0x250] sm:$0xff] }
 0x4de   : > { %v4189_v43 = vsel %vm312_vm8, %v4184_v17, %v4186_v8  ;;  %v4203_v2 = vsel %vm327_vm7, %v4198_v39, %v4200_v55  ;;  %4775 = vrot.lane.b32.xlu1 %v8529_v54, %s6435_s9 }
 0x4df   : > { %4777 = vrot.lane.b32.xlu0 %v8519_v32, %s6435_s9  ;;  %v5955_v63 = vpack.c.bf16 %v4203_v2, %v4189_v43 }
 0x4e1   : > { %v4214_v16 = vpop.permute.xlu1 %4213  ;;  %v4216_v1 = vpop.permute.xlu0 %4215  ;;  %v4304_v46 = vld [vmem:[#allocation2 + $0x268] sm:$0xff]  ;;  %5956 = vmatpush1.bf16.msra.mxu0 %v5955_v63 }
 0x4e2   : > { %v4218_v47 = vsel %vm342_vm9, %v4214_v16, %v4216_v1  ;;  %4224 = vst.msk [vmem:[#allocation2 + $0x280] sm:$0xff] %vm226_vm0, %v4216_v1  ;;  %4759 = vrot.lane.b32.xlu1 %v8532_v57, %s6434_s8  ;;  %v5994_v58 = vpack.c.bf16 %v4304_v46, %v4301_v44  ;;  %s5080_s8 = sadd.s32 %s6092_s4, %s6091_s26 }
 0x4e3   : > { %4773 = vrot.lane.b32.xlu0 %v8532_v57, %s6435_s9  ;;  %4369 = vmatprep.subr.mxu0 %v4218_v47  ;;  %s5083_s9 = sshll.u32 %s7506_s1, 4  ;;  %s8956_s9 = int_to_ptr.vmem [resolvable:$true] %s5083_s9 }
 0x4e4   : > { %5995 = vmatpush1.bf16.msra.mxu1 %v5994_v58  ;;  %s6297_s30 = scalar_lea.vmem %s8956_s9, 3072  ;;  %p6304_p3 = scmp.lt.s32.totalorder %s8956_s9, %s6302_s23 }
 0x4e5   : > { %v4474_v52 = vpop.permute.xlu1 %4473  ;;  %v4476_v22 = vpop.permute.xlu0 %4475  ;;  %4440 = vmatprep.subr.mxu1 %v6439_v51  ;;  %p6298_p5 = scmp.ne.s32.totalorder %s8956_s9, %s6297_s30  ;;  %p6305_p6 = scmp.lt.s32.totalorder %s6303_s25, %s6297_s30 }
 0x4e6   : > { %v4478_v40 = vsel %vm237_vm1, %v4474_v52, %v4476_v22  ;;  %4484 = vst.msk [vmem:[#allocation2 + $0x28] sm:$0xff] %vm226_vm0, %v4476_v22  ;;  %4789 = vrot.lane.b32.xlu1 %v8529_v54, %s6436_s24 }
 0x4e7   : > { %4791 = vrot.lane.b32.xlu0 %v8519_v32, %s6436_s24  ;;  %v5996_v60 = vpack.c.bf16 %v4478_v40, %v6235_v7  ;;  %v4860_v7 = vld [vmem:[#allocation2 + $0xe8] sm:$0xff]  ;;  %p6299_p2 = pnand %p6298_p5, %p9062_p4  ;;  %p6306_p10 = por %p6305_p6, %p6304_p3 }
 0x4e9   : > { %v4212_v34 = vpop.permute.xlu1 %4211  ;;  %v4472_v56 = vpop.permute.xlu0 %4471  ;;  %v4307_v13 = vld [vmem:[#allocation2 + $0x280] sm:$0xff]  ;;  %p6300_p12 = pneg %p6299_p2 }
 0x4ea   : > { %v4217_v3 = vsel %vm342_vm9, %v4212_v34, %v4214_v16  ;;  %v4477_v19 = vsel %vm237_vm1, %v4472_v56, %v4474_v52  ;;  %4803 = vrot.lane.b32.xlu1 %v8529_v54, %s6437_s7  ;;  %4441 = vmatpush1.msra.mxu1 %v4307_v13 }
 0x4eb   : > { %4805 = vrot.lane.b32.xlu0 %v8519_v32, %s6437_s7  ;;  %4370 = vmatpush1.msra.mxu0 %v4217_v3  ;;  %v5998_v20 = vpack.c.bf16 %v4477_v19, %v6236_v15  ;;  %p6307_p0 = pnand %p6306_p10, %p6300_p12 }
 0x4ec   : > { %4453 = vmatmul.mubr.f32.vlgmr.msra.gmra.mrb[12].mxu1 %v8821_v62  ;;  %6048 = vmatprep.subr.bf16.mxu1 %v6429_v0 }
 0x4ed   : > { %v4488_v21 = vpop.permute.xlu1 %4487  ;;  %v4490_v23 = vpop.permute.xlu0 %4489  ;;  %v4836_v45 = vld [vmem:[#allocation2 + $0x28] sm:$0xff]  ;;  %4382 = vmatmul.mubr.f32.vlgmr.msra.gmra.mrb[12].mxu0 %v8821_v62  ;;  %5997 = vmatprep.subr.bf16.mxu0 %v5996_v60 }
 0x4ee   : > { %v4492_v27 = vsel %vm252_vm3, %v4488_v21, %v4490_v23  ;;  %4498 = vst.msk [vmem:[#allocation2 + $0x40] sm:$0xff] %vm226_vm0, %v4490_v23  ;;  %4787 = vrot.lane.b32.xlu1 %v8532_v57, %s6436_s24  ;;  %v6049_v30 = vpack.c.bf16 %v4836_v45, %v4833_v4  ;;  %5999 = vmatpush1.bf16.msra.mxu0 %v5998_v20  ;;  %s5355_s24 = sshll.u32 %s5080_s8, 7 }
 0x4ef   : > { %4801 = vrot.lane.b32.xlu0 %v8532_v57, %s6437_s7  ;;  %5349 = vmatprep.mubr.msk.f32.mxu1 %vm690_vm4, %v8599_v6  ;;  %s8962_s7 = scalar_lea.hbm %s9032_s3, %s5355_s24 }
 0x4f0   : > { %6050 = vmatpush1.bf16.msra.mxu1 %v6049_v30  ;;  %5348 = vmatprep.mubr.msk.f32.mxu0 %vm690_vm4, %v8599_v6 }
 0x4f1   : > { %v4502_v53 = vpop.permute.xlu1 %4501  ;;  %v4504_v28 = vpop.permute.xlu0 %4503  ;;  %6051 = vmatprep.subr.bf16.mxu1 %v6429_v0 }
 0x4f2   : > { %v4506_v41 = vsel %vm267_vm2, %v4502_v53, %v4504_v28  ;;  %4512 = vst.msk [vmem:[#allocation2 + $0x58] sm:$0xff] %vm226_vm0, %v4504_v28  ;;  %4817 = vrot.lane.b32.xlu1 %v8529_v54, %s6438_s5 }
 0x4f3   : > { %4819 = vrot.lane.b32.xlu0 %v8519_v32, %s6438_s5  ;;  %v6000_v35 = vpack.c.bf16 %v4506_v41, %v4492_v27 }
 0x4f5   : > { %v4486_v6 = vpop.permute.xlu1 %4485  ;;  %v4500_v36 = vpop.permute.xlu0 %4499  ;;  %6001 = vmatprep.subr.bf16.mxu0 %v6000_v35  ;;  %v4839_v32 = vld [vmem:[#allocation2 + $0x40] sm:$0xff] }
 0x4f6   : > { %v4491_v38 = vsel %vm252_vm3, %v4486_v6, %v4488_v21  ;;  %v4505_v12 = vsel %vm267_vm2, %v4500_v36, %v4502_v53  ;;  %4815 = vrot.lane.b32.xlu1 %v8532_v57, %s6438_s5  ;;  %s8968_s5 = scalar_lea.sflag [#allocation5], %s213_s27 }
 0x4f7   : > { %3707 = vperm.xlu0 %6221, %v3704_v33   ;;  %v6002_v54 = vpack.c.bf16 %v4505_v12, %v4491_v38 }
 0x4f9   : > { %v4516_v31 = vpop.permute.xlu1 %4515  ;;  %v4518_v9 = vpop.permute.xlu0 %4517  ;;  %v4842_v49 = vld [vmem:[#allocation2 + $0x58] sm:$0xff]  ;;  %6003 = vmatpush1.bf16.msra.mxu0 %v6002_v54 }
 0x4fa   : > { %v4520_v24 = vsel %vm282_vm6, %v4516_v31, %v4518_v9  ;;  %4526 = vst.msk [vmem:[#allocation2 + $0x70] sm:$0xff] %vm226_vm0, %v4518_v9  ;;  %4311 = vperm.xlu1 %6222, %v3704_v33   ;;  %v6052_v29 = vpack.c.bf16 %v4842_v49, %v4839_v32 }
 0x4fb   : > { %4915 = vperm.xlu0 %6221, %v3704_v33  }
 0x4fc   : > { %6053 = vmatpush1.bf16.msra.mxu1 %v6052_v29 }
 0x4fd   : > { %v4530_v37 = vpop.permute.xlu1 %4529  ;;  %v4532_v5 = vpop.permute.xlu0 %4531  ;;  %6054 = vmatprep.subr.bf16.mxu1 %v6429_v0 }
 0x4fe   : > { %v4534_v57 = vsel %vm297_vm5, %v4530_v37, %v4532_v5  ;;  %4540 = vst.msk [vmem:[#allocation2 + $0x88] sm:$0xff] %vm226_vm0, %v4532_v5 }
 0x4ff   : > { %v6004_v50 = vpack.c.bf16 %v4534_v57, %v4520_v24 }
 0x501   : > { %v4514_v8 = vpop.permute.xlu1 %4513  ;;  %v4528_v18 = vpop.permute.xlu0 %4527  ;;  %6005 = vmatprep.subr.bf16.mxu0 %v6004_v50  ;;  %v4845_v26 = vld [vmem:[#allocation2 + $0x70] sm:$0xff] }
 0x502   : > { %v4519_v11 = vsel %vm282_vm6, %v4514_v8, %v4516_v31  ;;  %v4533_v61 = vsel %vm297_vm5, %v4528_v18, %v4530_v37 }
 0x503   : > { %v6006_v59 = vpack.c.bf16 %v4533_v61, %v4519_v11 }
 0x505   : > { %v4544_v55 = vpop.permute.xlu1 %4543  ;;  %v4546_v48 = vpop.permute.xlu0 %4545  ;;  %v4848_v10 = vld [vmem:[#allocation2 + $0x88] sm:$0xff]  ;;  %6007 = vmatpush1.bf16.msra.mxu0 %v6006_v59 }
 0x506   : > { %v4548_v42 = vsel %vm312_vm8, %v4544_v55, %v4546_v48  ;;  %4554 = vst.msk [vmem:[#allocation2 + $0xa0] sm:$0xff] %vm226_vm0, %v4546_v48  ;;  %v6055_v17 = vpack.c.bf16 %v4848_v10, %v4845_v26 }
 0x508   : > { %6056 = vmatpush1.bf16.msra.mxu1 %v6055_v17 }
 0x509   : > { %v4558_v39 = vpop.permute.xlu1 %4557  ;;  %v4560_v43 = vpop.permute.xlu0 %4559  ;;  %6057 = vmatprep.subr.bf16.mxu1 %v6429_v0 }
 0x50a   : > { %v4562_v2 = vsel %vm327_vm7, %v4558_v39, %v4560_v43  ;;  %4568 = vst.msk [vmem:[#allocation2 + $0xb8] sm:$0xff] %vm226_vm0, %v4560_v43 }
 0x50b   : > { %v6008_v63 = vpack.c.bf16 %v4562_v2, %v4548_v42 }
 0x50d   : > { %v4542_v16 = vpop.permute.xlu1 %4541  ;;  %v4556_v1 = vpop.permute.xlu0 %4555  ;;  %6009 = vmatprep.subr.bf16.mxu0 %v6008_v63  ;;  %v4851_v22 = vld [vmem:[#allocation2 + $0xa0] sm:$0xff] }
 0x50e   : > { %v4547_v44 = vsel %vm312_vm8, %v4542_v16, %v4544_v55  ;;  %v4561_v46 = vsel %vm327_vm7, %v4556_v1, %v4558_v39 }
 0x50f   : > { %v6010_v47 = vpack.c.bf16 %v4561_v46, %v4547_v44 }
 0x511   : > { %v4572_v58 = vpop.permute.xlu1 %4571  ;;  %v4574_v52 = vpop.permute.xlu0 %4573  ;;  %v4854_v40 = vld [vmem:[#allocation2 + $0xb8] sm:$0xff]  ;;  %6011 = vmatpush1.bf16.msra.mxu0 %v6010_v47 }
 0x512   : > { %v4576_v34 = vsel %vm342_vm9, %v4572_v58, %v4574_v52  ;;  %4582 = vst.msk [vmem:[#allocation2 + $0xd0] sm:$0xff] %vm226_vm0, %v4574_v52  ;;  %v6058_v56 = vpack.c.bf16 %v4854_v40, %v4851_v22 }
 0x513   : > { %v6012_v13 = vpack.c.bf16 %v8675_v14, %v4576_v34 }
 0x514   : > { %6059 = vmatpush1.bf16.msra.mxu1 %v6058_v56 }
 0x515   : > { %v4570_v3 = vpop.permute.xlu1 %4569  ;;  %v4595_v19 = vpop.permute.xlu0 %4594  ;;  %6060 = vmatprep.subr.bf16.mxu1 %v6429_v0  ;;  %6013 = vmatprep.subr.bf16.mxu0 %v6012_v13 }
 0x516   : > { %v4575_v4 = vsel %vm342_vm9, %v4570_v3, %v4572_v58 }
 0x517   : > { %v6014_v60 = vpack.c.bf16 %v8693_v25, %v4575_v4 }
 0x519   : > { %v4597_v15 = vpop.permute.xlu1 %4596  ;;  %v4609_v20 = vpop.permute.xlu0 %4608  ;;  %v4857_v21 = vld [vmem:[#allocation2 + $0xd0] sm:$0xff]  ;;  %6015 = vmatpush1.bf16.msra.mxu0 %v6014_v60 }
 0x51a   : > { %v4599_v23 = vsel %vm237_vm1, %v4595_v19, %v4597_v15  ;;  %4605 = vst.msk [vmem:[#allocation2 + $0x100] sm:$0xff] %vm226_vm0, %v4597_v15  ;;  %v6061_v14 = vpack.c.bf16 %v4860_v7, %v4857_v21 }
 0x51c   : > { %6062 = vmatpush1.bf16.msra.mxu1 %v6061_v14 }
 0x51d   : > { %v4611_v45 = vpop.permute.xlu1 %4610  ;;  %v4593_v27 = vpop.permute.xlu0 %4592  ;;  %6063 = vmatprep.subr.bf16.mxu1 %v6429_v0 }
 0x51e   : > { %v4613_v30 = vsel %vm252_vm3, %v4609_v20, %v4611_v45  ;;  %4619 = vst.msk [vmem:[#allocation2 + $0x118] sm:$0xff] %vm226_vm0, %v4611_v45  ;;  %v4598_v25 = vsel %vm237_vm1, %v4593_v27, %v4595_v19 }
 0x51f   : > { %v6016_v53 = vpack.c.bf16 %v4613_v30, %v4599_v23 }
 0x521   : > { %v4607_v28 = vpop.permute.xlu1 %4606  ;;  %v4623_v41 = vpop.permute.xlu0 %4622  ;;  %6017 = vmatprep.subr.bf16.mxu0 %v6016_v53  ;;  %v4863_v38 = vld [vmem:[#allocation2 + $0x100] sm:$0xff]  ;;  %v6237_v53 = vld [vmem:[#allocation2 + $0x1b8] sm:$0xff] }
 0x522   : > { %v4612_v33 = vsel %vm252_vm3, %v4607_v28, %v4609_v20 }
 0x523   : > { %v6018_v35 = vpack.c.bf16 %v4612_v33, %v4598_v25 }
 0x525   : > { %v4625_v6 = vpop.permute.xlu1 %4624  ;;  %v4637_v36 = vpop.permute.xlu0 %4636  ;;  %v4866_v12 = vld [vmem:[#allocation2 + $0x118] sm:$0xff]  ;;  %6019 = vmatpush1.bf16.msra.mxu0 %v6018_v35 }
 0x526   : > { %v4627_v54 = vsel %vm267_vm2, %v4623_v41, %v4625_v6  ;;  %4633 = vst.msk [vmem:[#allocation2 + $0x130] sm:$0xff] %vm226_vm0, %v4625_v6  ;;  %v6064_v31 = vpack.c.bf16 %v4866_v12, %v4863_v38  ;;  %v4887_v38 = vld [vmem:[#allocation2 + $0x1c0] sm:$0xff] }
 0x528   : > { %6065 = vmatpush1.bf16.msra.mxu1 %v6064_v31 }
 0x529   : > { %v4639_v9 = vpop.permute.xlu1 %4638  ;;  %v4621_v32 = vpop.permute.xlu0 %4620  ;;  %6066 = vmatprep.subr.bf16.mxu1 %v6429_v0 }
 0x52a   : > { %v4641_v49 = vsel %vm282_vm6, %v4637_v36, %v4639_v9  ;;  %4647 = vst.msk [vmem:[#allocation2 + $0x148] sm:$0xff] %vm226_vm0, %v4639_v9  ;;  %v4626_v24 = vsel %vm267_vm2, %v4621_v32, %v4623_v41  ;;  %v6238_v41 = vld [vmem:[#allocation2 + $0x1b0] sm:$0xff] }
 0x52b   : > { %v6020_v29 = vpack.c.bf16 %v4641_v49, %v4627_v54 }
 0x52d   : > { %v4635_v37 = vpop.permute.xlu1 %4634  ;;  %v4651_v5 = vpop.permute.xlu0 %4650  ;;  %6021 = vmatprep.subr.bf16.mxu0 %v6020_v29  ;;  %v4869_v55 = vld [vmem:[#allocation2 + $0x130] sm:$0xff] }
 0x52e   : > { %v4640_v57 = vsel %vm282_vm6, %v4635_v37, %v4637_v36 }
 0x52f   : > { %v6022_v50 = vpack.c.bf16 %v4640_v57, %v4626_v24  ;;  %v8890_v8 = vpop.f32.mrb[10].mxu1 }
 0x530   : > { %v8892_v18 = vpop.f32.mrb[10].mxu0  ;;  %v3852_v11 = vpop.f32.mrb[11].mxu1 }
 0x531   : > { %v4653_v61 = vpop.permute.xlu1 %4652  ;;  %v4665_v59 = vpop.permute.xlu0 %4664  ;;  %v4872_v48 = vld [vmem:[#allocation2 + $0x148] sm:$0xff]  ;;  %6023 = vmatpush1.bf16.msra.mxu0 %v6022_v50 }
 0x532   : > { %v4655_v26 = vsel %vm297_vm5, %v4651_v5, %v4653_v61  ;;  %4661 = vst.msk [vmem:[#allocation2 + $0x160] sm:$0xff] %vm226_vm0, %v4653_v61  ;;  %v6067_v10 = vpack.c.bf16 %v4872_v48, %v4869_v55  ;;  %v8896_v42 = vpop.f32.mrb[11].mxu0 }
 0x534   : > { %6068 = vmatpush1.bf16.msra.mxu1 %v6067_v10 }
 0x535   : > { %v4667_v17 = vpop.permute.xlu1 %4666  ;;  %v4649_v39 = vpop.permute.xlu0 %4648  ;;  %6069 = vmatprep.subr.bf16.mxu1 %v6429_v0 }
 0x536   : > { %v4669_v43 = vsel %vm312_vm8, %v4665_v59, %v4667_v17  ;;  %4675 = vst.msk [vmem:[#allocation2 + $0x178] sm:$0xff] %vm226_vm0, %v4667_v17  ;;  %v4654_v2 = vsel %vm297_vm5, %v4649_v39, %v4651_v5 }
 0x537   : > { %v6024_v63 = vpack.c.bf16 %v4669_v43, %v4655_v26 }
 0x539   : > { %v4663_v16 = vpop.permute.xlu1 %4662  ;;  %v4679_v1 = vpop.permute.xlu0 %4678  ;;  %6025 = vmatprep.subr.bf16.mxu0 %v6024_v63  ;;  %v4875_v52 = vld [vmem:[#allocation2 + $0x160] sm:$0xff] }
 0x53a   : > { %v4668_v44 = vsel %vm312_vm8, %v4663_v16, %v4665_v59 }
 0x53b   : > { %v6026_v46 = vpack.c.bf16 %v4668_v44, %v4654_v2 }
 0x53d   : > { %v4681_v47 = vpop.permute.xlu1 %4680  ;;  %v4693_v58 = vpop.permute.xlu0 %4692  ;;  %v4878_v22 = vld [vmem:[#allocation2 + $0x178] sm:$0xff]  ;;  %6027 = vmatpush1.bf16.msra.mxu0 %v6026_v46 }
 0x53e   : > { %v4683_v40 = vsel %vm327_vm7, %v4679_v1, %v4681_v47  ;;  %4689 = vst.msk [vmem:[#allocation2 + $0x190] sm:$0xff] %vm226_vm0, %v4681_v47  ;;  %v6070_v34 = vpack.c.bf16 %v4878_v22, %v4875_v52 }
 0x540   : > { %6071 = vmatpush1.bf16.msra.mxu1 %v6070_v34 }
 0x541   : > { %v4695_v56 = vpop.permute.xlu1 %4694  ;;  %v4677_v13 = vpop.permute.xlu0 %4676  ;;  %6072 = vmatprep.subr.bf16.mxu1 %v6429_v0 }
 0x542   : > { %v4697_v3 = vsel %vm342_vm9, %v4693_v58, %v4695_v56  ;;  %4703 = vst.msk [vmem:[#allocation2 + $0x1a8] sm:$0xff] %vm226_vm0, %v4695_v56  ;;  %v4682_v19 = vsel %vm327_vm7, %v4677_v13, %v4679_v1 }
 0x543   : > { %v6028_v4 = vpack.c.bf16 %v4697_v3, %v4683_v40 }
 0x545   : > { %v4691_v7 = vpop.permute.xlu1 %4690  ;;  %v4720_v60 = vpop.permute.xlu0 %4719  ;;  %6029 = vmatprep.subr.bf16.mxu0 %v6028_v4  ;;  %v4881_v14 = vld [vmem:[#allocation2 + $0x190] sm:$0xff] }
 0x546   : > { %v4696_v15 = vsel %vm342_vm9, %v4691_v7, %v4693_v58 }
 0x547   : > { %v6030_v20 = vpack.c.bf16 %v4696_v15, %v4682_v19 }
 0x549   : > { %v4722_v21 = vpop.permute.xlu1 %4721  ;;  %v4718_v23 = vpop.permute.xlu0 %4717  ;;  %v4884_v45 = vld [vmem:[#allocation2 + $0x1a8] sm:$0xff]  ;;  %6031 = vmatpush1.bf16.msra.mxu0 %v6030_v20 }
 0x54a   : > { %v4724_v27 = vsel %vm237_vm1, %v4720_v60, %v4722_v21  ;;  %4730 = vst.msk [vmem:[#allocation2 + $0x1d8] sm:$0xff] %vm226_vm0, %v4722_v21  ;;  %v4723_v30 = vsel %vm237_vm1, %v4718_v23, %v4720_v60  ;;  %v6073_v25 = vpack.c.bf16 %v4884_v45, %v4881_v14 }
 0x54b   : > { %v6032_v28 = vpack.c.bf16 %v4724_v27, %v6237_v53  ;;  %v6034_v33 = vpack.c.bf16 %v4723_v30, %v6238_v41 }
 0x54c   : > { %6074 = vmatpush1.bf16.msra.mxu1 %v6073_v25 }
 0x54d   : > { %v4734_v35 = vpop.permute.xlu1 %4733  ;;  %v4736_v6 = vpop.permute.xlu0 %4735  ;;  %6075 = vmatprep.subr.bf16.mxu1 %v6429_v0  ;;  %6033 = vmatprep.subr.bf16.mxu0 %v6032_v28 }
 0x54e   : > { %v4738_v36 = vsel %vm252_vm3, %v4734_v35, %v4736_v6  ;;  %4744 = vst.msk [vmem:[#allocation2 + $0x1f0] sm:$0xff] %vm226_vm0, %v4736_v6  ;;  %6035 = vmatpush1.bf16.msra.mxu0 %v6034_v33 }
 0x551   : > { %v4748_v12 = vpop.permute.xlu1 %4747  ;;  %v4750_v54 = vpop.permute.xlu0 %4749  ;;  %v4890_v31 = vld [vmem:[#allocation2 + $0x1d8] sm:$0xff] }
 0x552   : > { %v4752_v9 = vsel %vm267_vm2, %v4748_v12, %v4750_v54  ;;  %4758 = vst.msk [vmem:[#allocation2 + $0x208] sm:$0xff] %vm226_vm0, %v4750_v54  ;;  %v6076_v32 = vpack.c.bf16 %v4890_v31, %v4887_v38 }
 0x553   : > { %v6036_v49 = vpack.c.bf16 %v4752_v9, %v4738_v36 }
 0x554   : > { %6077 = vmatpush1.bf16.msra.mxu1 %v6076_v32 }
 0x555   : > { %v4732_v24 = vpop.permute.xlu1 %4731  ;;  %v4746_v29 = vpop.permute.xlu0 %4745  ;;  %6078 = vmatprep.subr.bf16.mxu1 %v6429_v0  ;;  %6037 = vmatprep.subr.bf16.mxu0 %v6036_v49  ;;  %v4893_v61 = vld [vmem:[#allocation2 + $0x1f0] sm:$0xff] }
 0x556   : > { %v4737_v37 = vsel %vm252_vm3, %v4732_v24, %v4734_v35  ;;  %v4751_v5 = vsel %vm267_vm2, %v4746_v29, %v4748_v12 }
 0x557   : > { %v6038_v57 = vpack.c.bf16 %v4751_v5, %v4737_v37 }
 0x559   : > { %v4762_v50 = vpop.permute.xlu1 %4761  ;;  %v4764_v11 = vpop.permute.xlu0 %4763  ;;  %v4896_v59 = vld [vmem:[#allocation2 + $0x208] sm:$0xff]  ;;  %6039 = vmatpush1.bf16.msra.mxu0 %v6038_v57 }
 0x55a   : > { %v4766_v55 = vsel %vm282_vm6, %v4762_v50, %v4764_v11  ;;  %4772 = vst.msk [vmem:[#allocation2 + $0x220] sm:$0xff] %vm226_vm0, %v4764_v11  ;;  %v6079_v48 = vpack.c.bf16 %v4896_v59, %v4893_v61 }
 0x55c   : > { %6080 = vmatpush1.bf16.msra.mxu1 %v6079_v48 }
 0x55d   : > { %v4776_v26 = vpop.permute.xlu1 %4775  ;;  %v4778_v10 = vpop.permute.xlu0 %4777  ;;  %6081 = vmatprep.subr.bf16.mxu1 %v6429_v0 }
 0x55e   : > { %v4780_v17 = vsel %vm297_vm5, %v4776_v26, %v4778_v10  ;;  %4786 = vst.msk [vmem:[#allocation2 + $0x238] sm:$0xff] %vm226_vm0, %v4778_v10 }
 0x55f   : > { %v6040_v39 = vpack.c.bf16 %v4780_v17, %v4766_v55 }
 0x561   : > { %v4760_v43 = vpop.permute.xlu1 %4759  ;;  %v4774_v2 = vpop.permute.xlu0 %4773  ;;  %6041 = vmatprep.subr.bf16.mxu0 %v6040_v39  ;;  %v4899_v47 = vld [vmem:[#allocation2 + $0x220] sm:$0xff] }
 0x562   : > { %v4765_v63 = vsel %vm282_vm6, %v4760_v43, %v4762_v50  ;;  %v4779_v16 = vsel %vm297_vm5, %v4774_v2, %v4776_v26 }
 0x563   : > { %v6042_v1 = vpack.c.bf16 %v4779_v16, %v4765_v63 }
 0x565   : > { %v4790_v44 = vpop.permute.xlu1 %4789  ;;  %v4792_v46 = vpop.permute.xlu0 %4791  ;;  %v4902_v58 = vld [vmem:[#allocation2 + $0x238] sm:$0xff]  ;;  %6043 = vmatpush1.bf16.msra.mxu0 %v6042_v1 }
 0x566   : > { %v4794_v52 = vsel %vm312_vm8, %v4790_v44, %v4792_v46  ;;  %4800 = vst.msk [vmem:[#allocation2 + $0x250] sm:$0xff] %vm226_vm0, %v4792_v46  ;;  %v6082_v22 = vpack.c.bf16 %v4902_v58, %v4899_v47 }
 0x568   : > { %6083 = vmatpush1.bf16.msra.mxu1 %v6082_v22 }
 0x569   : > { %v4804_v40 = vpop.permute.xlu1 %4803  ;;  %v4806_v34 = vpop.permute.xlu0 %4805  ;;  %6084 = vmatprep.subr.bf16.mxu1 %v6429_v0 }
 0x56a   : > { %v4808_v56 = vsel %vm327_vm7, %v4804_v40, %v4806_v34  ;;  %4814 = vst.msk [vmem:[#allocation2 + $0x268] sm:$0xff] %vm226_vm0, %v4806_v34 }
 0x56b   : > { %v6044_v13 = vpack.c.bf16 %v4808_v56, %v4794_v52 }
 0x56d   : > { %v4788_v3 = vpop.permute.xlu1 %4787  ;;  %v4802_v19 = vpop.permute.xlu0 %4801  ;;  %6045 = vmatprep.subr.bf16.mxu0 %v6044_v13  ;;  %v4905_v21 = vld [vmem:[#allocation2 + $0x250] sm:$0xff] }
 0x56e   : > { %v4793_v4 = vsel %vm312_vm8, %v4788_v3, %v4790_v44  ;;  %v4807_v7 = vsel %vm327_vm7, %v4802_v19, %v4804_v40 }
 0x56f   : > { %v6046_v60 = vpack.c.bf16 %v4807_v7, %v4793_v4 }
 0x571   : > { %v4818_v15 = vpop.permute.xlu1 %4817  ;;  %v4820_v20 = vpop.permute.xlu0 %4819  ;;  %v4908_v23 = vld [vmem:[#allocation2 + $0x268] sm:$0xff]  ;;  %6047 = vmatpush1.bf16.msra.mxu0 %v6046_v60 }
 0x572   : > { %v4822_v0 = vsel %vm342_vm9, %v4818_v15, %v4820_v20  ;;  %4828 = vst.msk [vmem:[#allocation2 + $0x280] sm:$0xff] %vm226_vm0, %v4820_v20  ;;  %v6085_v14 = vpack.c.bf16 %v4908_v23, %v4905_v21 }
 0x573   : > { %4973 = vmatprep.subr.mxu0 %v4822_v0 }
 0x574   : > { %6086 = vmatpush1.bf16.msra.mxu1 %v6085_v14 }
 0x575   : > { %v4816_v45 = vpop.permute.xlu1 %4815  ;;  %5044 = vmatprep.subr.mxu1 %v6439_v51 }
 0x576   : > { %v3708_v27 = vpop.permute.xlu0 %3707  ;;  %v4821_v30 = vsel %vm342_vm9, %v4816_v45, %v4818_v15 }
 0x577   : > { %v3780_v25 = vadd.f32 %v8892_v18, %v3708_v27  ;;  %v3851_v53 = vadd.f32 %v8890_v8, %v3708_v27  ;;  %v3782_v28 = vadd.f32 %v8896_v42, %v3708_v27  ;;  %4974 = vmatpush1.msra.mxu0 %v4821_v30 }
 0x578   : > { %4986 = vmatmul.mubr.f32.vlgmr.msra.gmra.mrb[14].mxu0 %v8821_v62 }
 0x579   : > { %5318 = vst [vmem:[%s7506_s1 + $0x78] sm:$0xff] %v3780_v25  ;;  %5320 = vst.msk [vmem:[%s7506_s1 + $0x88] sm:$0xff] %vm226_vm0, %v3851_v53  ;;  %v4911_v51 = vld [vmem:[#allocation2 + $0x280] sm:$0xff]  ;;  %v4312_v18 = vpop.permute.xlu1 %4311 }
 0x57a   : > { %5319 = vst [vmem:[%s7506_s1 + $0x80] sm:$0xff] %v3782_v28  ;;  %5045 = vmatpush1.msra.mxu1 %v4911_v51 }
 0x57b   : > { %5057 = vmatmul.mubr.f32.vlgmr.msra.gmra.mrb[14].mxu1 %v8821_v62  ;;  %v4916_v62 = vpop.permute.xlu0 %4915 }
 0x5bf   : > { %v4454_v8 = vpop.f32.mrb[12].mxu1 }
 0x5c0   : > { %v4455_v42 = vadd.f32 %v4454_v8, %v4312_v18  ;;  %v4383_v41 = vpop.f32.mrb[12].mxu0  ;;  %v4456_v33 = vpop.f32.mrb[13].mxu1 }
 0x5c1   : > { %v4384_v35 = vadd.f32 %v4383_v41, %v4312_v18  ;;  %v4385_v6 = vpop.f32.mrb[13].mxu0 }
 0x5c2   : > { %5336 = vst.msk [vmem:[%s7506_s1 + $0xa0] sm:$0xff] %vm226_vm0, %v4455_v42  ;;  %v4386_v36 = vadd.f32 %v4385_v6, %v4312_v18 }
 0x5c3   : > { %5334 = vst [vmem:[%s7506_s1 + $0x90] sm:$0xff] %v4384_v35 }
 0x5c4   : > { %5335 = vst [vmem:[%s7506_s1 + $0x98] sm:$0xff] %v4386_v36 }
 0x64b   : > { %v4987_v38 = vpop.f32.mrb[14].mxu0 }
 0x64c   : > { %v4988_v12 = vadd.f32 %v4987_v38, %v4916_v62  ;;  %v4989_v54 = vpop.f32.mrb[15].mxu0 }
 0x64d   : > { %v4990_v31 = vadd.f32 %v4989_v54, %v4916_v62 }
 0x64e   : > { %v5058_v9 = vpop.f32.mrb[14].mxu1  ;;  %5350 = vst [vmem:[%s7506_s1 + $0xa8] sm:$0xff] %v4988_v12 }
 0x64f   : > { %v5059_v32 = vadd.f32 %v5058_v9, %v4916_v62  ;;  %5351 = vst [vmem:[%s7506_s1 + $0xb0] sm:$0xff] %v4990_v31  ;;  %v5060_v49 = vpop.f32.mrb[15].mxu1 }
 0x651   : > { %5352 = vst.msk [vmem:[%s7506_s1 + $0xb8] sm:$0xff] %vm226_vm0, %v5059_v32 }
 0x652   : > { %6310 = shalt.err (!%p6307_p0)
}
 0x653   : > { %s6311_s27 = scalar_lea.hbm %s8962_s7, 3072  ;;  %s6315_s12 = scalar_lea.hbm %s9032_s3, 12288 }
 0x654   : > { %p6312_p8 = scmp.ne.s32.totalorder %s8962_s7, %s6311_s27  ;;  %p6316_p7 = scmp.lt.u32.totalorder %s8962_s7, %s9032_s3 }
 0x655   : > { %p6317_p9 = scmp.lt.u32.totalorder %s6315_s12, %s6311_s27  ;;  %p6319_p5 = scmp.lt.u32.totalorder %s6311_s27, %s8962_s7 }
 0x656   : > { %p6313_p11 = pnand %p6312_p8, %p9062_p4 }
 0x657   : > { %p6318_p1 = por %p6317_p9, %p6316_p7 }
 0x658   : > { %p6314_p13 = pneg %p6313_p11 }
 0x659   : > { %p6320_p2 = por %p6319_p5, %p6318_p1 }
 0x65b   : > { %p6321_p12 = pnand %p6320_p2, %p6314_p13 }
 0x65d   : > { %6324 = shalt.err (!%p6321_p12)
}
 0x65e   : > { %s6441_s4 = smov 384   ;;  %s6442_s8 = smov 24  }
 0x65f   : > { %6099 = dma.vmem_to_hbm [thread:$0]  (%p9062_p4), %s8956_s9, 3072, %s8962_s7, %s8968_s5, %s6441_s4, %s6441_s4, %s6442_s8  }
 0x660 PF: > { %s9063_s24 = sld [smem:[#allocation12_spill]]  ;;  %s9064_s18 = sld [smem:[#allocation14_spill]] }
 0x661   : > { %p6116_p3 = scmp.ge.s32.totalorder %s6423_s22, 2 }
 0x666   : > { %s5098_s19 = sand.u32 1, %s9063_s24   ;;  %p9065_p6 = scmp.ne.s32.totalorder %s9064_s18, 0 }
 0x667   : > { %s5099_s30 = scalar_lea.sflag [#allocation5], %s5098_s19 }
 0x668   : > { %p6110_p10 = pnand %p6116_p3, %p9065_p6 }
 0x66a   : > { %6378 = dma.done.wait (!%p6110_p10), %s5099_s30, 3072  }
 0x66b   : > { %6380 = vsyncadd (!%p6110_p10), %s5099_s30, 4294964224  ;;  %s20_s22 = sadd.s32 1, %s6423_s22   ;;  %s9066_s18 = sld [smem:[#allocation13_spill]] }
 0x66c   : > { %p17_p0 = scmp.ge.s32.totalorder %s20_s22, 6   ;;  %s9067_s29 = sld [smem:[#allocation15_spill]] }
 0x66d   : > { %s9068_s9 = smov %s9083_s15  ;;  %s9069_s12 = smov %s6387_s13 }
 0x66e   : > { %s9070_s13 = smov %s6391_s14  ;;  %s9071_s14 = smov %s6613_s20 }
 0x66f   : > { %s9072_s15 = smov %s6399_s16  ;;  %s9073_s16 = smov %s6403_s17 }
 0x670   : > { %s9074_s17 = smov %s6610_s6  ;;  %s9075_s19 = smov %s6419_s21 }
 0x671   : > { %s9077_s21 = smov %s9068_s9  ;;  %19 = sbr.rel (!%p17_p0) target bundleno = 12 (0xc), region = 98 }
 0x672   : > { %s9076_s20 = smov %s9067_s29 }
 0x678   :  { %5104 = vsyncpa [#allocation4], 1 }
 0x679   :  { %5106 = vsyncpa [#allocation4 + $0x1], 1 }
 0x67a   :  { %5107 = vsyncpa [#allocation7], 1 }
 0x67b   :  { %5108 = vsyncpa [#allocation5], 1 }
 0x67c   :  { %5110 = vsyncpa [#allocation5 + $0x1], 1 }

</bundles_post_ra>
